<compile_context>
chip_gen: v7x
topology: tpu7x:2x2x1
jax: 0.10.0
libtpu: 0.0.40
codegen_flags: <defaults>
</compile_context>

<pallas_src>
import functools

import jax
import jax.numpy as jnp
import numpy as np
from jax import lax
from jax.experimental import pallas as pl
from jax.experimental.pallas import tpu as pltpu

C_PAD = 128  # lane-dense channel width used end-to-end inside the kernel


# ------------------------------ fused kernel --------------------------------

def _alexnet_kernel(x_ref, w1_ref, b1_ref, w2_ref, b2_ref, w3_ref, b3_ref,
                    fw1_ref, fb1_ref, fw2_ref, fb2_ref, o_ref,
                    pad1_ref, pad2_ref, pad3_ref):
    C = pad1_ref.shape[-1]
    H1, W1 = x_ref.shape[1], x_ref.shape[2]

    # stage-in: spatial zero-pad of the (already channel-padded, bf16) image in VMEM
    pad1_ref[...] = jnp.zeros_like(pad1_ref)
    pad1_ref[0, 1:1 + H1, 1:1 + W1, :] = x_ref[0]

    def conv_rows(src_ref, w_ref, b_row, r0, rc, wo):
        """ReLU(conv3x3 + bias) for output rows [r0, r0+rc) -> (rc*wo, C) f32."""
        acc = jnp.zeros((rc * wo, C), jnp.float32)
        for kh in range(3):                       # static unroll: 9 MXU matmuls
            for kw in range(3):
                patch = src_ref[0, r0 + kh:r0 + kh + rc, kw:kw + wo, :]
                acc = acc + jnp.dot(patch.reshape(rc * wo, C), w_ref[kh * 3 + kw],
                                    preferred_element_type=jnp.float32)
        return jnp.maximum(acc + b_row, 0.0)

    def conv_pool_layer(src_ref, w_ref, b_ref, dst_ref, ho, wo, rc):
        """conv3x3 + bias + ReLU + 2x2/2 maxpool fused; result written into the
        interior of the next layer's zero-padded bf16 VMEM buffer."""
        b_row = b_ref[...]
        dst_ref[...] = jnp.zeros_like(dst_ref)
        for r0 in range(0, ho, rc):               # row chunks bound register pressure
            y = conv_rows(src_ref, w_ref, b_row, r0, rc, wo).reshape(rc, wo, C)
            p = jnp.max(y.reshape(rc // 2, 2, wo // 2, 2, C), axis=(1, 3))
            dst_ref[0, 1 + r0 // 2:1 + (r0 + rc) // 2, 1:1 + wo // 2, :] = (
                p.astype(jnp.bfloat16))

    conv_pool_layer(pad1_ref, w1_ref, b1_ref, pad2_ref, H1, W1, min(8, H1))
    H2, W2 = H1 // 2, W1 // 2
    conv_pool_layer(pad2_ref, w2_ref, b2_ref, pad3_ref, H2, W2, min(8, H2))
    H3, W3 = H2 // 2, W2 // 2

    # conv3 (no pool): stays in registers, rows ordered h*W3 + w
    x3 = conv_rows(pad3_ref, w3_ref, b3_ref[...], 0, H3, W3).astype(jnp.bfloat16)

    # classifier: AdaptiveAvgPool2d((3,3)) + NCHW flatten pre-folded into fw1_ref
    # (one (C, hidden) slab per conv3 spatial position); Dropout = eval identity.
    # TODO(synk): nn.Dropout is stochastic in train mode; eval-mode identity here.
    hidden = fw1_ref.shape[2]
    h = jnp.zeros((1, hidden), jnp.float32)
    for p in range(fw1_ref.shape[0]):             # 16 position-wise MXU matmuls
        h = h + jnp.dot(x3[p:p + 1, :], fw1_ref[p],
                        preferred_element_type=jnp.float32)
    h = jnp.maximum(h + fb1_ref[...], 0.0).astype(jnp.bfloat16)
    o_ref[0] = jnp.dot(h, fw2_ref[...],
                       preferred_element_type=jnp.float32) + fb2_ref[...]


# ------------------------------ wrapper --------------------------------------

@functools.partial(jax.jit, static_argnums=(2,))
def alexnet_forward(prep, x_nchw, num_classes):
    """Matches AlexNet.forward: features -> avgpool(3,3) -> flatten -> classifier."""
    x = jnp.transpose(x_nchw, (0, 2, 3, 1)).astype(jnp.float32)      # NCHW -> NHWC
    N, H, W, cin = x.shape
    assert H % 8 == 0 and W % 8 == 0, "kernel chunking assumes H, W multiples of 8"
    # channel-pad to the lane width once; all other padding happens inside VMEM
    x = jnp.pad(x, ((0, 0), (0, 0), (0, 0), (0, C_PAD - cin))).astype(jnp.bfloat16)

    P, _, hidden = prep["fw1"].shape
    assert P == (H // 4) * (W // 4), "classifier fold was built for this input size"

    const3 = lambda n: (0, 0, 0)
    const2 = lambda n: (0, 0)
    out = pl.pallas_call(
        _alexnet_kernel,
        out_shape=jax.ShapeDtypeStruct((N, 1, C_PAD), jnp.float32),
        grid=(N,),
        in_specs=[
            pl.BlockSpec((1, H, W, C_PAD), lambda n: (n, 0, 0, 0)),           # x
            pl.BlockSpec((9, C_PAD, C_PAD), const3), pl.BlockSpec((1, C_PAD), const2),
            pl.BlockSpec((9, C_PAD, C_PAD), const3), pl.BlockSpec((1, C_PAD), const2),
            pl.BlockSpec((9, C_PAD, C_PAD), const3), pl.BlockSpec((1, C_PAD), const2),
            pl.BlockSpec((P, C_PAD, hidden), const3), pl.BlockSpec((1, hidden), const2),
            pl.BlockSpec((hidden, C_PAD), const2), pl.BlockSpec((1, C_PAD), const2),
        ],
        out_specs=pl.BlockSpec((1, 1, C_PAD), lambda n: (n, 0, 0)),
        scratch_shapes=[                                  # per-image VMEM buffers
            pltpu.VMEM((1, H + 2, W + 2, C_PAD), jnp.bfloat16),
            pltpu.VMEM((1, H // 2 + 2, W // 2 + 2, C_PAD), jnp.bfloat16),
            pltpu.VMEM((1, H // 4 + 2, W // 4 + 2, C_PAD), jnp.bfloat16),
        ],
        compiler_params=pltpu.CompilerParams(dimension_semantics=("parallel",)),
    )(x, prep["w1"], prep["b1"], prep["w2"], prep["b2"], prep["w3"], prep["b3"],
      prep["fw1"], prep["fb1"], prep["fw2"], prep["fb2"])
    return out.reshape(N, C_PAD)[:, :num_classes]


# --------------------- params (torch-like) + one-time layout prep ------------

def init_params(key, num_classes=10, in_channels=1):
    ks = jax.random.split(key, 10)

    def conv_w(k, cin, cout):
        return jax.random.normal(k, (3, 3, cin, cout), jnp.float32) * (2.0 / (9 * cin)) ** 0.5

    def lin_w(k, fin, fout):
        return jax.random.normal(k, (fin, fout), jnp.float32) * (2.0 / fin) ** 0.5

    return dict(
        w1=conv_w(ks[0], in_channels, 32), b1=0.01 * jax.random.normal(ks[1], (32,), jnp.float32),
        w2=conv_w(ks[2], 32, 64),          b2=0.01 * jax.random.normal(ks[3], (64,), jnp.float32),
        w3=conv_w(ks[4], 64, 128),         b3=0.01 * jax.random.normal(ks[5], (128,), jnp.float32),
        fw1=lin_w(ks[6], 128 * 3 * 3, 256), fb1=0.01 * jax.random.normal(ks[7], (256,), jnp.float32),
        fw2=lin_w(ks[8], 256, num_classes), fb2=0.01 * jax.random.normal(ks[9], (num_classes,), jnp.float32),
    )


def prepare_params(raw, input_hw=(16, 16)):
    """One-time layout plumbing (free at runtime): pad channels to 128 lanes,
    flatten conv taps, permute fc1 rows to NHWC order, fold AdaptiveAvgPool2d((3,3))
    into fc1, pad the classifier output to 128 lanes, cast matmul weights to bf16."""
    def prep_conv(w, b):
        _, _, cin, cout = w.shape
        wp = jnp.zeros((3, 3, C_PAD, C_PAD), jnp.float32).at[:, :, :cin, :cout].set(w)
        bp = jnp.zeros((1, C_PAD), jnp.float32).at[0, :cout].set(b)
        return wp.reshape(9, C_PAD, C_PAD).astype(jnp.bfloat16), bp

    w1, b1 = prep_conv(raw["w1"], raw["b1"])
    w2, b2 = prep_conv(raw["w2"], raw["b2"])
    w3, b3 = prep_conv(raw["w3"], raw["b3"])

    cout3 = raw["w3"].shape[-1]
    hidden = raw["fw1"].shape[1]
    H3, W3 = input_hw[0] // 4, input_hw[1] // 4
    # fw1 rows are in torch-flatten (c, oh, ow) order over the 3x3 pooled map.
    w_hwc = raw["fw1"].reshape(cout3, 3, 3, hidden).transpose(1, 2, 0, 3)  # (3,3,c,hid)
    # AdaptiveAvgPool2d((3,3)) expressed as a (H3*W3, 9) linear pooling operator.
    A = np.zeros((H3 * W3, 9), np.float32)
    for oh in range(3):
        hs, he = (oh * H3) // 3, -(-((oh + 1) * H3) // 3)
        for ow in range(3):
            ws, we = (ow * W3) // 3, -(-((ow + 1) * W3) // 3)
            inv = 1.0 / ((he - hs) * (we - ws))
            for hh in range(hs, he):
                for ww in range(ws, we):
                    A[hh * W3 + ww, oh * 3 + ow] = inv
    folded = jnp.asarray(A) @ w_hwc.reshape(9, cout3 * hidden)            # (P, c*hid)
    fw1 = jnp.zeros((H3 * W3, C_PAD, hidden), jnp.float32
                    ).at[:, :cout3, :].set(folded.reshape(H3 * W3, cout3, hidden))
    fb1 = raw["fb1"].reshape(1, hidden).astype(jnp.float32)

    nc = raw["fw2"].shape[-1]
    fw2 = jnp.zeros((hidden, C_PAD), jnp.float32).at[:, :nc].set(raw["fw2"])
    fb2 = jnp.zeros((1, C_PAD), jnp.float32).at[0, :nc].set(raw["fb2"])
    return dict(w1=w1, b1=b1, w2=w2, b2=b2, w3=w3, b3=b3,
                fw1=fw1.astype(jnp.bfloat16), fb1=fb1,
                fw2=fw2.astype(jnp.bfloat16), fb2=fb2)


# --------------------------- pure-JAX reference ------------------------------

@jax.jit
def reference_forward(raw, x_nchw):
    """PyTorch-semantics reference from the RAW params (NCHW flatten, unfolded
    avgpool).  Matmul inputs are rounded to bf16 at the same points as the kernel."""
    x = jnp.transpose(x_nchw, (0, 2, 3, 1))

    def conv(x, w, b):
        y = lax.conv_general_dilated(
            x.astype(jnp.bfloat16), w.astype(jnp.bfloat16), (1, 1), "SAME",
            dimension_numbers=("NHWC", "HWIO", "NHWC"),
            preferred_element_type=jnp.float32)
        return jax.nn.relu(y + b)

    def mp(x):
        return lax.reduce_window(x, -jnp.inf, lax.max,
                                 (1, 2, 2, 1), (1, 2, 2, 1), "VALID")

    x = conv(x, raw["w1"], raw["b1"]); x = mp(x)
    x = conv(x, raw["w2"], raw["b2"]); x = mp(x)
    x = conv(x, raw["w3"], raw["b3"])
    N, H, W, _ = x.shape
    rows = []
    for oh in range(3):
        hs, he = (oh * H) // 3, -(-((oh + 1) * H) // 3)
        cols = []
        for ow in range(3):
            ws, we = (ow * W) // 3, -(-((ow + 1) * W) // 3)
            cols.append(jnp.mean(x[:, hs:he, ws:we, :], axis=(1, 2)))
        rows.append(jnp.stack(cols, axis=1))
    x = jnp.stack(rows, axis=1)                                    # (N,3,3,C)
    x = jnp.transpose(x, (0, 3, 1, 2)).reshape(N, -1)              # torch flatten order
    h = jax.nn.relu(jnp.dot(x.astype(jnp.bfloat16), raw["fw1"].astype(jnp.bfloat16),
                            preferred_element_type=jnp.float32) + raw["fb1"])
    return jnp.dot(h.astype(jnp.bfloat16), raw["fw2"].astype(jnp.bfloat16),
                   preferred_element_type=jnp.float32) + raw["fb2"]


# --------------------------- main --------------------------------------------

if __name__ == "__main__":
    key = jax.random.PRNGKey(0)
    pkey, xkey = jax.random.split(key)
    raw = init_params(pkey, num_classes=10, in_channels=1)

    # NCHW input, same convention as the PyTorch module (batch=2, 1 channel, 16x16)
    x = jax.random.normal(xkey, (2, 1, 16, 16), jnp.float32)

    prep = prepare_params(raw, input_hw=(16, 16))
    out = jax.block_until_ready(alexnet_forward(prep, x, 10))
    assert out.shape == (2, 10), out.shape

    ref = jax.block_until_ready(reference_forward(raw, x))
    # bf16 matmuls + avgpool folded into the fc1 weights -> small rounding delta
    np.testing.assert_allclose(np.asarray(out), np.asarray(ref), rtol=2e-2, atol=2e-2)

    print("KERNEL_OK")
</pallas_src>

<mosaic_0001>
module attributes {stable_mosaic.version = 11 : i64} {
  func.func @_alexnet_kernel(%arg0: i32, %arg1: memref<1x16x16x128xbf16, #tpu.memory_space<vmem>>, %arg2: memref<9x128x128xbf16, #tpu.memory_space<vmem>>, %arg3: memref<1x128xf32, #tpu.memory_space<vmem>>, %arg4: memref<9x128x128xbf16, #tpu.memory_space<vmem>>, %arg5: memref<1x128xf32, #tpu.memory_space<vmem>>, %arg6: memref<9x128x128xbf16, #tpu.memory_space<vmem>>, %arg7: memref<1x128xf32, #tpu.memory_space<vmem>>, %arg8: memref<16x128x256xbf16, #tpu.memory_space<vmem>>, %arg9: memref<1x256xf32, #tpu.memory_space<vmem>>, %arg10: memref<256x128xbf16, #tpu.memory_space<vmem>>, %arg11: memref<1x128xf32, #tpu.memory_space<vmem>>, %arg12: memref<1x1x128xf32, #tpu.memory_space<vmem>>, %arg13: memref<1x18x18x128xbf16, #tpu.memory_space<vmem>>, %arg14: memref<1x10x10x128xbf16, #tpu.memory_space<vmem>>, %arg15: memref<1x6x6x128xbf16, #tpu.memory_space<vmem>>) attributes {dimension_semantics = [#tpu.dimension_semantics<parallel>], iteration_bounds = array<i64: 2>, scalar_prefetch = 0 : i64, scratch_operands = 3 : i64, tpu.core_type = #tpu.core_type<tc>, window_params = [{transform_indices = @transform_0, window_bounds = array<i64: 1, 16, 16, 128>}, {pipeline_mode = #tpu.pipeline_mode<synchronous>, transform_indices = @transform_1, window_bounds = array<i64: 9, 128, 128>}, {pipeline_mode = #tpu.pipeline_mode<synchronous>, transform_indices = @transform_2, window_bounds = array<i64: 1, 128>}, {pipeline_mode = #tpu.pipeline_mode<synchronous>, transform_indices = @transform_3, window_bounds = array<i64: 9, 128, 128>}, {pipeline_mode = #tpu.pipeline_mode<synchronous>, transform_indices = @transform_4, window_bounds = array<i64: 1, 128>}, {pipeline_mode = #tpu.pipeline_mode<synchronous>, transform_indices = @transform_5, window_bounds = array<i64: 9, 128, 128>}, {pipeline_mode = #tpu.pipeline_mode<synchronous>, transform_indices = @transform_6, window_bounds = array<i64: 1, 128>}, {pipeline_mode = #tpu.pipeline_mode<synchronous>, transform_indices = @transform_7, window_bounds = array<i64: 16, 128, 256>}, {pipeline_mode = #tpu.pipeline_mode<synchronous>, transform_indices = @transform_8, window_bounds = array<i64: 1, 256>}, {pipeline_mode = #tpu.pipeline_mode<synchronous>, transform_indices = @transform_9, window_bounds = array<i64: 256, 128>}, {pipeline_mode = #tpu.pipeline_mode<synchronous>, transform_indices = @transform_10, window_bounds = array<i64: 1, 128>}, {transform_indices = @transform_11, window_bounds = array<i64: 1, 1, 128>}]} {
    %cst = arith.constant 0.000000e+00 : bf16
    %0 = vector.broadcast %cst : bf16 to vector<1x18x18x128xbf16>
    %c0 = arith.constant 0 : index
    %c0_0 = arith.constant 0 : index
    %c0_1 = arith.constant 0 : index
    %c0_2 = arith.constant 0 : index
    %1 = vector.load %arg13[%c0, %c0_0, %c0_1, %c0_2] : memref<1x18x18x128xbf16, #tpu.memory_space<vmem>>, vector<1x18x18x128xbf16>
    tpu.vector_store %arg13[%c0, %c0_0, %c0_1, %c0_2], %0 {strides = array<i32>} : memref<1x18x18x128xbf16, #tpu.memory_space<vmem>>, vector<1x18x18x128xbf16>,
    %c0_3 = arith.constant 0 : index
    %c0_4 = arith.constant 0 : index
    %c0_5 = arith.constant 0 : index
    %c0_6 = arith.constant 0 : index
    %2 = vector.load %arg1[%c0_3, %c0_4, %c0_5, %c0_6] : memref<1x16x16x128xbf16, #tpu.memory_space<vmem>>, vector<1x16x16x128xbf16>
    %3 = vector.shape_cast %2 : vector<1x16x16x128xbf16> to vector<16x16x128xbf16>
    %c0_7 = arith.constant 0 : index
    %c1 = arith.constant 1 : index
    %c1_8 = arith.constant 1 : index
    %c0_9 = arith.constant 0 : index
    %4 = vector.load %arg13[%c0_7, %c1, %c1_8, %c0_9] : memref<1x18x18x128xbf16, #tpu.memory_space<vmem>>, vector<1x16x16x128xbf16>
    %5 = vector.shape_cast %4 : vector<1x16x16x128xbf16> to vector<16x16x128xbf16>
    %6 = vector.shape_cast %3 : vector<16x16x128xbf16> to vector<1x16x16x128xbf16>
    tpu.vector_store %arg13[%c0_7, %c1, %c1_8, %c0_9], %6 {strides = array<i32>} : memref<1x18x18x128xbf16, #tpu.memory_space<vmem>>, vector<1x16x16x128xbf16>,
    %c0_10 = arith.constant 0 : index
    %c0_11 = arith.constant 0 : index
    %7 = vector.load %arg3[%c0_10, %c0_11] : memref<1x128xf32, #tpu.memory_space<vmem>>, vector<1x128xf32>
    %cst_12 = arith.constant 0.000000e+00 : bf16
    %8 = vector.broadcast %cst_12 : bf16 to vector<1x10x10x128xbf16>
    %c0_13 = arith.constant 0 : index
    %c0_14 = arith.constant 0 : index
    %c0_15 = arith.constant 0 : index
    %c0_16 = arith.constant 0 : index
    %9 = vector.load %arg14[%c0_13, %c0_14, %c0_15, %c0_16] : memref<1x10x10x128xbf16, #tpu.memory_space<vmem>>, vector<1x10x10x128xbf16>
    tpu.vector_store %arg14[%c0_13, %c0_14, %c0_15, %c0_16], %8 {strides = array<i32>} : memref<1x10x10x128xbf16, #tpu.memory_space<vmem>>, vector<1x10x10x128xbf16>,
    %cst_17 = arith.constant 0.000000e+00 : f32
    %10 = vector.broadcast %cst_17 : f32 to vector<128x128xf32>
    %c0_18 = arith.constant 0 : index
    %c0_19 = arith.constant 0 : index
    %c0_20 = arith.constant 0 : index
    %c0_21 = arith.constant 0 : index
    %11 = vector.load %arg13[%c0_18, %c0_19, %c0_20, %c0_21] : memref<1x18x18x128xbf16, #tpu.memory_space<vmem>>, vector<1x8x16x128xbf16>
    %12 = vector.shape_cast %11 : vector<1x8x16x128xbf16> to vector<8x16x128xbf16>
    %13 = vector.shape_cast %12 : vector<8x16x128xbf16> to vector<128x128xbf16>
    %c0_22 = arith.constant 0 : index
    %c0_23 = arith.constant 0 : index
    %c0_24 = arith.constant 0 : index
    %14 = vector.load %arg2[%c0_22, %c0_23, %c0_24] : memref<9x128x128xbf16, #tpu.memory_space<vmem>>, vector<1x128x128xbf16>
    %15 = vector.shape_cast %14 : vector<1x128x128xbf16> to vector<128x128xbf16>
    %cst_25 = arith.constant dense<0.000000e+00> : vector<128x128xf32>
    %16 = tpu.matmul %13, %15, %cst_25 {dimension_numbers = #tpu.dot_dimension_numbers<[1], [0], [0], [1], [0, 0, 1, 1], [], []>} : vector<128x128xbf16>, vector<128x128xbf16>, vector<128x128xf32> -> vector<128x128xf32>
    %17 = arith.addf %10, %16 : vector<128x128xf32>
    %c0_26 = arith.constant 0 : index
    %c0_27 = arith.constant 0 : index
    %c1_28 = arith.constant 1 : index
    %c0_29 = arith.constant 0 : index
    %18 = vector.load %arg13[%c0_26, %c0_27, %c1_28, %c0_29] : memref<1x18x18x128xbf16, #tpu.memory_space<vmem>>, vector<1x8x16x128xbf16>
    %19 = vector.shape_cast %18 : vector<1x8x16x128xbf16> to vector<8x16x128xbf16>
    %20 = vector.shape_cast %19 : vector<8x16x128xbf16> to vector<128x128xbf16>
    %c1_30 = arith.constant 1 : index
    %c0_31 = arith.constant 0 : index
    %c0_32 = arith.constant 0 : index
    %21 = vector.load %arg2[%c1_30, %c0_31, %c0_32] : memref<9x128x128xbf16, #tpu.memory_space<vmem>>, vector<1x128x128xbf16>
    %22 = vector.shape_cast %21 : vector<1x128x128xbf16> to vector<128x128xbf16>
    %cst_33 = arith.constant dense<0.000000e+00> : vector<128x128xf32>
    %23 = tpu.matmul %20, %22, %cst_33 {dimension_numbers = #tpu.dot_dimension_numbers<[1], [0], [0], [1], [0, 0, 1, 1], [], []>} : vector<128x128xbf16>, vector<128x128xbf16>, vector<128x128xf32> -> vector<128x128xf32>
    %24 = arith.addf %17, %23 : vector<128x128xf32>
    %c0_34 = arith.constant 0 : index
    %c0_35 = arith.constant 0 : index
    %c2 = arith.constant 2 : index
    %c0_36 = arith.constant 0 : index
    %25 = vector.load %arg13[%c0_34, %c0_35, %c2, %c0_36] : memref<1x18x18x128xbf16, #tpu.memory_space<vmem>>, vector<1x8x16x128xbf16>
    %26 = vector.shape_cast %25 : vector<1x8x16x128xbf16> to vector<8x16x128xbf16>
    %27 = vector.shape_cast %26 : vector<8x16x128xbf16> to vector<128x128xbf16>
    %c2_37 = arith.constant 2 : index
    %c0_38 = arith.constant 0 : index
    %c0_39 = arith.constant 0 : index
    %28 = vector.load %arg2[%c2_37, %c0_38, %c0_39] : memref<9x128x128xbf16, #tpu.memory_space<vmem>>, vector<1x128x128xbf16>
    %29 = vector.shape_cast %28 : vector<1x128x128xbf16> to vector<128x128xbf16>
    %cst_40 = arith.constant dense<0.000000e+00> : vector<128x128xf32>
    %30 = tpu.matmul %27, %29, %cst_40 {dimension_numbers = #tpu.dot_dimension_numbers<[1], [0], [0], [1], [0, 0, 1, 1], [], []>} : vector<128x128xbf16>, vector<128x128xbf16>, vector<128x128xf32> -> vector<128x128xf32>
    %31 = arith.addf %24, %30 : vector<128x128xf32>
    %c0_41 = arith.constant 0 : index
    %c1_42 = arith.constant 1 : index
    %c0_43 = arith.constant 0 : index
    %c0_44 = arith.constant 0 : index
    %32 = vector.load %arg13[%c0_41, %c1_42, %c0_43, %c0_44] : memref<1x18x18x128xbf16, #tpu.memory_space<vmem>>, vector<1x8x16x128xbf16>
    %33 = vector.shape_cast %32 : vector<1x8x16x128xbf16> to vector<8x16x128xbf16>
    %34 = vector.shape_cast %33 : vector<8x16x128xbf16> to vector<128x128xbf16>
    %c3 = arith.constant 3 : index
    %c0_45 = arith.constant 0 : index
    %c0_46 = arith.constant 0 : index
    %35 = vector.load %arg2[%c3, %c0_45, %c0_46] : memref<9x128x128xbf16, #tpu.memory_space<vmem>>, vector<1x128x128xbf16>
    %36 = vector.shape_cast %35 : vector<1x128x128xbf16> to vector<128x128xbf16>
    %cst_47 = arith.constant dense<0.000000e+00> : vector<128x128xf32>
    %37 = tpu.matmul %34, %36, %cst_47 {dimension_numbers = #tpu.dot_dimension_numbers<[1], [0], [0], [1], [0, 0, 1, 1], [], []>} : vector<128x128xbf16>, vector<128x128xbf16>, vector<128x128xf32> -> vector<128x128xf32>
    %38 = arith.addf %31, %37 : vector<128x128xf32>
    %c0_48 = arith.constant 0 : index
    %c1_49 = arith.constant 1 : index
    %c1_50 = arith.constant 1 : index
    %c0_51 = arith.constant 0 : index
    %39 = vector.load %arg13[%c0_48, %c1_49, %c1_50, %c0_51] : memref<1x18x18x128xbf16, #tpu.memory_space<vmem>>, vector<1x8x16x128xbf16>
    %40 = vector.shape_cast %39 : vector<1x8x16x128xbf16> to vector<8x16x128xbf16>
    %41 = vector.shape_cast %40 : vector<8x16x128xbf16> to vector<128x128xbf16>
    %c4 = arith.constant 4 : index
    %c0_52 = arith.constant 0 : index
    %c0_53 = arith.constant 0 : index
    %42 = vector.load %arg2[%c4, %c0_52, %c0_53] : memref<9x128x128xbf16, #tpu.memory_space<vmem>>, vector<1x128x128xbf16>
    %43 = vector.shape_cast %42 : vector<1x128x128xbf16> to vector<128x128xbf16>
    %cst_54 = arith.constant dense<0.000000e+00> : vector<128x128xf32>
    %44 = tpu.matmul %41, %43, %cst_54 {dimension_numbers = #tpu.dot_dimension_numbers<[1], [0], [0], [1], [0, 0, 1, 1], [], []>} : vector<128x128xbf16>, vector<128x128xbf16>, vector<128x128xf32> -> vector<128x128xf32>
    %45 = arith.addf %38, %44 : vector<128x128xf32>
    %c0_55 = arith.constant 0 : index
    %c1_56 = arith.constant 1 : index
    %c2_57 = arith.constant 2 : index
    %c0_58 = arith.constant 0 : index
    %46 = vector.load %arg13[%c0_55, %c1_56, %c2_57, %c0_58] : memref<1x18x18x128xbf16, #tpu.memory_space<vmem>>, vector<1x8x16x128xbf16>
    %47 = vector.shape_cast %46 : vector<1x8x16x128xbf16> to vector<8x16x128xbf16>
    %48 = vector.shape_cast %47 : vector<8x16x128xbf16> to vector<128x128xbf16>
    %c5 = arith.constant 5 : index
    %c0_59 = arith.constant 0 : index
    %c0_60 = arith.constant 0 : index
    %49 = vector.load %arg2[%c5, %c0_59, %c0_60] : memref<9x128x128xbf16, #tpu.memory_space<vmem>>, vector<1x128x128xbf16>
    %50 = vector.shape_cast %49 : vector<1x128x128xbf16> to vector<128x128xbf16>
    %cst_61 = arith.constant dense<0.000000e+00> : vector<128x128xf32>
    %51 = tpu.matmul %48, %50, %cst_61 {dimension_numbers = #tpu.dot_dimension_numbers<[1], [0], [0], [1], [0, 0, 1, 1], [], []>} : vector<128x128xbf16>, vector<128x128xbf16>, vector<128x128xf32> -> vector<128x128xf32>
    %52 = arith.addf %45, %51 : vector<128x128xf32>
    %c0_62 = arith.constant 0 : index
    %c2_63 = arith.constant 2 : index
    %c0_64 = arith.constant 0 : index
    %c0_65 = arith.constant 0 : index
    %53 = vector.load %arg13[%c0_62, %c2_63, %c0_64, %c0_65] : memref<1x18x18x128xbf16, #tpu.memory_space<vmem>>, vector<1x8x16x128xbf16>
    %54 = vector.shape_cast %53 : vector<1x8x16x128xbf16> to vector<8x16x128xbf16>
    %55 = vector.shape_cast %54 : vector<8x16x128xbf16> to vector<128x128xbf16>
    %c6 = arith.constant 6 : index
    %c0_66 = arith.constant 0 : index
    %c0_67 = arith.constant 0 : index
    %56 = vector.load %arg2[%c6, %c0_66, %c0_67] : memref<9x128x128xbf16, #tpu.memory_space<vmem>>, vector<1x128x128xbf16>
    %57 = vector.shape_cast %56 : vector<1x128x128xbf16> to vector<128x128xbf16>
    %cst_68 = arith.constant dense<0.000000e+00> : vector<128x128xf32>
    %58 = tpu.matmul %55, %57, %cst_68 {dimension_numbers = #tpu.dot_dimension_numbers<[1], [0], [0], [1], [0, 0, 1, 1], [], []>} : vector<128x128xbf16>, vector<128x128xbf16>, vector<128x128xf32> -> vector<128x128xf32>
    %59 = arith.addf %52, %58 : vector<128x128xf32>
    %c0_69 = arith.constant 0 : index
    %c2_70 = arith.constant 2 : index
    %c1_71 = arith.constant 1 : index
    %c0_72 = arith.constant 0 : index
    %60 = vector.load %arg13[%c0_69, %c2_70, %c1_71, %c0_72] : memref<1x18x18x128xbf16, #tpu.memory_space<vmem>>, vector<1x8x16x128xbf16>
    %61 = vector.shape_cast %60 : vector<1x8x16x128xbf16> to vector<8x16x128xbf16>
    %62 = vector.shape_cast %61 : vector<8x16x128xbf16> to vector<128x128xbf16>
    %c7 = arith.constant 7 : index
    %c0_73 = arith.constant 0 : index
    %c0_74 = arith.constant 0 : index
    %63 = vector.load %arg2[%c7, %c0_73, %c0_74] : memref<9x128x128xbf16, #tpu.memory_space<vmem>>, vector<1x128x128xbf16>
    %64 = vector.shape_cast %63 : vector<1x128x128xbf16> to vector<128x128xbf16>
    %cst_75 = arith.constant dense<0.000000e+00> : vector<128x128xf32>
    %65 = tpu.matmul %62, %64, %cst_75 {dimension_numbers = #tpu.dot_dimension_numbers<[1], [0], [0], [1], [0, 0, 1, 1], [], []>} : vector<128x128xbf16>, vector<128x128xbf16>, vector<128x128xf32> -> vector<128x128xf32>
    %66 = arith.addf %59, %65 : vector<128x128xf32>
    %c0_76 = arith.constant 0 : index
    %c2_77 = arith.constant 2 : index
    %c2_78 = arith.constant 2 : index
    %c0_79 = arith.constant 0 : index
    %67 = vector.load %arg13[%c0_76, %c2_77, %c2_78, %c0_79] : memref<1x18x18x128xbf16, #tpu.memory_space<vmem>>, vector<1x8x16x128xbf16>
    %68 = vector.shape_cast %67 : vector<1x8x16x128xbf16> to vector<8x16x128xbf16>
    %69 = vector.shape_cast %68 : vector<8x16x128xbf16> to vector<128x128xbf16>
    %c8 = arith.constant 8 : index
    %c0_80 = arith.constant 0 : index
    %c0_81 = arith.constant 0 : index
    %70 = vector.load %arg2[%c8, %c0_80, %c0_81] : memref<9x128x128xbf16, #tpu.memory_space<vmem>>, vector<1x128x128xbf16>
    %71 = vector.shape_cast %70 : vector<1x128x128xbf16> to vector<128x128xbf16>
    %cst_82 = arith.constant dense<0.000000e+00> : vector<128x128xf32>
    %72 = tpu.matmul %69, %71, %cst_82 {dimension_numbers = #tpu.dot_dimension_numbers<[1], [0], [0], [1], [0, 0, 1, 1], [], []>} : vector<128x128xbf16>, vector<128x128xbf16>, vector<128x128xf32> -> vector<128x128xf32>
    %73 = arith.addf %66, %72 : vector<128x128xf32>
    %74 = vector.broadcast %7 : vector<1x128xf32> to vector<128x128xf32>
    %75 = arith.addf %73, %74 : vector<128x128xf32>
    %cst_83 = arith.constant 0.000000e+00 : f32
    %76 = vector.broadcast %cst_83 : f32 to vector<128x128xf32>
    %77 = arith.maximumf %75, %76 : vector<128x128xf32>
    %78 = vector.shape_cast %77 : vector<128x128xf32> to vector<8x16x128xf32>
    %79 = vector.shape_cast %78 : vector<8x16x128xf32> to vector<4x2x8x2x128xf32>
    %cst_84 = arith.constant dense<0xFF800000> : vector<4x8x128xf32>
    %80 = vector.multi_reduction <maximumf>, %79, %cst_84 [1, 3] : vector<4x2x8x2x128xf32> to vector<4x8x128xf32>
    %81 = arith.truncf %80 : vector<4x8x128xf32> to vector<4x8x128xbf16>
    %c0_85 = arith.constant 0 : index
    %c1_86 = arith.constant 1 : index
    %c1_87 = arith.constant 1 : index
    %c0_88 = arith.constant 0 : index
    %82 = vector.load %arg14[%c0_85, %c1_86, %c1_87, %c0_88] : memref<1x10x10x128xbf16, #tpu.memory_space<vmem>>, vector<1x4x8x128xbf16>
    %83 = vector.shape_cast %82 : vector<1x4x8x128xbf16> to vector<4x8x128xbf16>
    %84 = vector.shape_cast %81 : vector<4x8x128xbf16> to vector<1x4x8x128xbf16>
    tpu.vector_store %arg14[%c0_85, %c1_86, %c1_87, %c0_88], %84 {strides = array<i32>} : memref<1x10x10x128xbf16, #tpu.memory_space<vmem>>, vector<1x4x8x128xbf16>,
    %cst_89 = arith.constant 0.000000e+00 : f32
    %85 = vector.broadcast %cst_89 : f32 to vector<128x128xf32>
    %c0_90 = arith.constant 0 : index
    %c8_91 = arith.constant 8 : index
    %c0_92 = arith.constant 0 : index
    %c0_93 = arith.constant 0 : index
    %86 = vector.load %arg13[%c0_90, %c8_91, %c0_92, %c0_93] : memref<1x18x18x128xbf16, #tpu.memory_space<vmem>>, vector<1x8x16x128xbf16>
    %87 = vector.shape_cast %86 : vector<1x8x16x128xbf16> to vector<8x16x128xbf16>
    %88 = vector.shape_cast %87 : vector<8x16x128xbf16> to vector<128x128xbf16>
    %c0_94 = arith.constant 0 : index
    %c0_95 = arith.constant 0 : index
    %c0_96 = arith.constant 0 : index
    %89 = vector.load %arg2[%c0_94, %c0_95, %c0_96] : memref<9x128x128xbf16, #tpu.memory_space<vmem>>, vector<1x128x128xbf16>
    %90 = vector.shape_cast %89 : vector<1x128x128xbf16> to vector<128x128xbf16>
    %cst_97 = arith.constant dense<0.000000e+00> : vector<128x128xf32>
    %91 = tpu.matmul %88, %90, %cst_97 {dimension_numbers = #tpu.dot_dimension_numbers<[1], [0], [0], [1], [0, 0, 1, 1], [], []>} : vector<128x128xbf16>, vector<128x128xbf16>, vector<128x128xf32> -> vector<128x128xf32>
    %92 = arith.addf %85, %91 : vector<128x128xf32>
    %c0_98 = arith.constant 0 : index
    %c8_99 = arith.constant 8 : index
    %c1_100 = arith.constant 1 : index
    %c0_101 = arith.constant 0 : index
    %93 = vector.load %arg13[%c0_98, %c8_99, %c1_100, %c0_101] : memref<1x18x18x128xbf16, #tpu.memory_space<vmem>>, vector<1x8x16x128xbf16>
    %94 = vector.shape_cast %93 : vector<1x8x16x128xbf16> to vector<8x16x128xbf16>
    %95 = vector.shape_cast %94 : vector<8x16x128xbf16> to vector<128x128xbf16>
    %c1_102 = arith.constant 1 : index
    %c0_103 = arith.constant 0 : index
    %c0_104 = arith.constant 0 : index
    %96 = vector.load %arg2[%c1_102, %c0_103, %c0_104] : memref<9x128x128xbf16, #tpu.memory_space<vmem>>, vector<1x128x128xbf16>
    %97 = vector.shape_cast %96 : vector<1x128x128xbf16> to vector<128x128xbf16>
    %cst_105 = arith.constant dense<0.000000e+00> : vector<128x128xf32>
    %98 = tpu.matmul %95, %97, %cst_105 {dimension_numbers = #tpu.dot_dimension_numbers<[1], [0], [0], [1], [0, 0, 1, 1], [], []>} : vector<128x128xbf16>, vector<128x128xbf16>, vector<128x128xf32> -> vector<128x128xf32>
    %99 = arith.addf %92, %98 : vector<128x128xf32>
    %c0_106 = arith.constant 0 : index
    %c8_107 = arith.constant 8 : index
    %c2_108 = arith.constant 2 : index
    %c0_109 = arith.constant 0 : index
    %100 = vector.load %arg13[%c0_106, %c8_107, %c2_108, %c0_109] : memref<1x18x18x128xbf16, #tpu.memory_space<vmem>>, vector<1x8x16x128xbf16>
    %101 = vector.shape_cast %100 : vector<1x8x16x128xbf16> to vector<8x16x128xbf16>
    %102 = vector.shape_cast %101 : vector<8x16x128xbf16> to vector<128x128xbf16>
    %c2_110 = arith.constant 2 : index
    %c0_111 = arith.constant 0 : index
    %c0_112 = arith.constant 0 : index
    %103 = vector.load %arg2[%c2_110, %c0_111, %c0_112] : memref<9x128x128xbf16, #tpu.memory_space<vmem>>, vector<1x128x128xbf16>
    %104 = vector.shape_cast %103 : vector<1x128x128xbf16> to vector<128x128xbf16>
    %cst_113 = arith.constant dense<0.000000e+00> : vector<128x128xf32>
    %105 = tpu.matmul %102, %104, %cst_113 {dimension_numbers = #tpu.dot_dimension_numbers<[1], [0], [0], [1], [0, 0, 1, 1], [], []>} : vector<128x128xbf16>, vector<128x128xbf16>, vector<128x128xf32> -> vector<128x128xf32>
    %106 = arith.addf %99, %105 : vector<128x128xf32>
    %c0_114 = arith.constant 0 : index
    %c9 = arith.constant 9 : index
    %c0_115 = arith.constant 0 : index
    %c0_116 = arith.constant 0 : index
    %107 = vector.load %arg13[%c0_114, %c9, %c0_115, %c0_116] : memref<1x18x18x128xbf16, #tpu.memory_space<vmem>>, vector<1x8x16x128xbf16>
    %108 = vector.shape_cast %107 : vector<1x8x16x128xbf16> to vector<8x16x128xbf16>
    %109 = vector.shape_cast %108 : vector<8x16x128xbf16> to vector<128x128xbf16>
    %c3_117 = arith.constant 3 : index
    %c0_118 = arith.constant 0 : index
    %c0_119 = arith.constant 0 : index
    %110 = vector.load %arg2[%c3_117, %c0_118, %c0_119] : memref<9x128x128xbf16, #tpu.memory_space<vmem>>, vector<1x128x128xbf16>
    %111 = vector.shape_cast %110 : vector<1x128x128xbf16> to vector<128x128xbf16>
    %cst_120 = arith.constant dense<0.000000e+00> : vector<128x128xf32>
    %112 = tpu.matmul %109, %111, %cst_120 {dimension_numbers = #tpu.dot_dimension_numbers<[1], [0], [0], [1], [0, 0, 1, 1], [], []>} : vector<128x128xbf16>, vector<128x128xbf16>, vector<128x128xf32> -> vector<128x128xf32>
    %113 = arith.addf %106, %112 : vector<128x128xf32>
    %c0_121 = arith.constant 0 : index
    %c9_122 = arith.constant 9 : index
    %c1_123 = arith.constant 1 : index
    %c0_124 = arith.constant 0 : index
    %114 = vector.load %arg13[%c0_121, %c9_122, %c1_123, %c0_124] : memref<1x18x18x128xbf16, #tpu.memory_space<vmem>>, vector<1x8x16x128xbf16>
    %115 = vector.shape_cast %114 : vector<1x8x16x128xbf16> to vector<8x16x128xbf16>
    %116 = vector.shape_cast %115 : vector<8x16x128xbf16> to vector<128x128xbf16>
    %c4_125 = arith.constant 4 : index
    %c0_126 = arith.constant 0 : index
    %c0_127 = arith.constant 0 : index
    %117 = vector.load %arg2[%c4_125, %c0_126, %c0_127] : memref<9x128x128xbf16, #tpu.memory_space<vmem>>, vector<1x128x128xbf16>
    %118 = vector.shape_cast %117 : vector<1x128x128xbf16> to vector<128x128xbf16>
    %cst_128 = arith.constant dense<0.000000e+00> : vector<128x128xf32>
    %119 = tpu.matmul %116, %118, %cst_128 {dimension_numbers = #tpu.dot_dimension_numbers<[1], [0], [0], [1], [0, 0, 1, 1], [], []>} : vector<128x128xbf16>, vector<128x128xbf16>, vector<128x128xf32> -> vector<128x128xf32>
    %120 = arith.addf %113, %119 : vector<128x128xf32>
    %c0_129 = arith.constant 0 : index
    %c9_130 = arith.constant 9 : index
    %c2_131 = arith.constant 2 : index
    %c0_132 = arith.constant 0 : index
    %121 = vector.load %arg13[%c0_129, %c9_130, %c2_131, %c0_132] : memref<1x18x18x128xbf16, #tpu.memory_space<vmem>>, vector<1x8x16x128xbf16>
    %122 = vector.shape_cast %121 : vector<1x8x16x128xbf16> to vector<8x16x128xbf16>
    %123 = vector.shape_cast %122 : vector<8x16x128xbf16> to vector<128x128xbf16>
    %c5_133 = arith.constant 5 : index
    %c0_134 = arith.constant 0 : index
    %c0_135 = arith.constant 0 : index
    %124 = vector.load %arg2[%c5_133, %c0_134, %c0_135] : memref<9x128x128xbf16, #tpu.memory_space<vmem>>, vector<1x128x128xbf16>
    %125 = vector.shape_cast %124 : vector<1x128x128xbf16> to vector<128x128xbf16>
    %cst_136 = arith.constant dense<0.000000e+00> : vector<128x128xf32>
    %126 = tpu.matmul %123, %125, %cst_136 {dimension_numbers = #tpu.dot_dimension_numbers<[1], [0], [0], [1], [0, 0, 1, 1], [], []>} : vector<128x128xbf16>, vector<128x128xbf16>, vector<128x128xf32> -> vector<128x128xf32>
    %127 = arith.addf %120, %126 : vector<128x128xf32>
    %c0_137 = arith.constant 0 : index
    %c10 = arith.constant 10 : index
    %c0_138 = arith.constant 0 : index
    %c0_139 = arith.constant 0 : index
    %128 = vector.load %arg13[%c0_137, %c10, %c0_138, %c0_139] : memref<1x18x18x128xbf16, #tpu.memory_space<vmem>>, vector<1x8x16x128xbf16>
    %129 = vector.shape_cast %128 : vector<1x8x16x128xbf16> to vector<8x16x128xbf16>
    %130 = vector.shape_cast %129 : vector<8x16x128xbf16> to vector<128x128xbf16>
    %c6_140 = arith.constant 6 : index
    %c0_141 = arith.constant 0 : index
    %c0_142 = arith.constant 0 : index
    %131 = vector.load %arg2[%c6_140, %c0_141, %c0_142] : memref<9x128x128xbf16, #tpu.memory_space<vmem>>, vector<1x128x128xbf16>
    %132 = vector.shape_cast %131 : vector<1x128x128xbf16> to vector<128x128xbf16>
    %cst_143 = arith.constant dense<0.000000e+00> : vector<128x128xf32>
    %133 = tpu.matmul %130, %132, %cst_143 {dimension_numbers = #tpu.dot_dimension_numbers<[1], [0], [0], [1], [0, 0, 1, 1], [], []>} : vector<128x128xbf16>, vector<128x128xbf16>, vector<128x128xf32> -> vector<128x128xf32>
    %134 = arith.addf %127, %133 : vector<128x128xf32>
    %c0_144 = arith.constant 0 : index
    %c10_145 = arith.constant 10 : index
    %c1_146 = arith.constant 1 : index
    %c0_147 = arith.constant 0 : index
    %135 = vector.load %arg13[%c0_144, %c10_145, %c1_146, %c0_147] : memref<1x18x18x128xbf16, #tpu.memory_space<vmem>>, vector<1x8x16x128xbf16>
    %136 = vector.shape_cast %135 : vector<1x8x16x128xbf16> to vector<8x16x128xbf16>
    %137 = vector.shape_cast %136 : vector<8x16x128xbf16> to vector<128x128xbf16>
    %c7_148 = arith.constant 7 : index
    %c0_149 = arith.constant 0 : index
    %c0_150 = arith.constant 0 : index
    %138 = vector.load %arg2[%c7_148, %c0_149, %c0_150] : memref<9x128x128xbf16, #tpu.memory_space<vmem>>, vector<1x128x128xbf16>
    %139 = vector.shape_cast %138 : vector<1x128x128xbf16> to vector<128x128xbf16>
    %cst_151 = arith.constant dense<0.000000e+00> : vector<128x128xf32>
    %140 = tpu.matmul %137, %139, %cst_151 {dimension_numbers = #tpu.dot_dimension_numbers<[1], [0], [0], [1], [0, 0, 1, 1], [], []>} : vector<128x128xbf16>, vector<128x128xbf16>, vector<128x128xf32> -> vector<128x128xf32>
    %141 = arith.addf %134, %140 : vector<128x128xf32>
    %c0_152 = arith.constant 0 : index
    %c10_153 = arith.constant 10 : index
    %c2_154 = arith.constant 2 : index
    %c0_155 = arith.constant 0 : index
    %142 = vector.load %arg13[%c0_152, %c10_153, %c2_154, %c0_155] : memref<1x18x18x128xbf16, #tpu.memory_space<vmem>>, vector<1x8x16x128xbf16>
    %143 = vector.shape_cast %142 : vector<1x8x16x128xbf16> to vector<8x16x128xbf16>
    %144 = vector.shape_cast %143 : vector<8x16x128xbf16> to vector<128x128xbf16>
    %c8_156 = arith.constant 8 : index
    %c0_157 = arith.constant 0 : index
    %c0_158 = arith.constant 0 : index
    %145 = vector.load %arg2[%c8_156, %c0_157, %c0_158] : memref<9x128x128xbf16, #tpu.memory_space<vmem>>, vector<1x128x128xbf16>
    %146 = vector.shape_cast %145 : vector<1x128x128xbf16> to vector<128x128xbf16>
    %cst_159 = arith.constant dense<0.000000e+00> : vector<128x128xf32>
    %147 = tpu.matmul %144, %146, %cst_159 {dimension_numbers = #tpu.dot_dimension_numbers<[1], [0], [0], [1], [0, 0, 1, 1], [], []>} : vector<128x128xbf16>, vector<128x128xbf16>, vector<128x128xf32> -> vector<128x128xf32>
    %148 = arith.addf %141, %147 : vector<128x128xf32>
    %149 = vector.broadcast %7 : vector<1x128xf32> to vector<128x128xf32>
    %150 = arith.addf %148, %149 : vector<128x128xf32>
    %cst_160 = arith.constant 0.000000e+00 : f32
    %151 = vector.broadcast %cst_160 : f32 to vector<128x128xf32>
    %152 = arith.maximumf %150, %151 : vector<128x128xf32>
    %153 = vector.shape_cast %152 : vector<128x128xf32> to vector<8x16x128xf32>
    %154 = vector.shape_cast %153 : vector<8x16x128xf32> to vector<4x2x8x2x128xf32>
    %cst_161 = arith.constant dense<0xFF800000> : vector<4x8x128xf32>
    %155 = vector.multi_reduction <maximumf>, %154, %cst_161 [1, 3] : vector<4x2x8x2x128xf32> to vector<4x8x128xf32>
    %156 = arith.truncf %155 : vector<4x8x128xf32> to vector<4x8x128xbf16>
    %c0_162 = arith.constant 0 : index
    %c5_163 = arith.constant 5 : index
    %c1_164 = arith.constant 1 : index
    %c0_165 = arith.constant 0 : index
    %157 = vector.load %arg14[%c0_162, %c5_163, %c1_164, %c0_165] : memref<1x10x10x128xbf16, #tpu.memory_space<vmem>>, vector<1x4x8x128xbf16>
    %158 = vector.shape_cast %157 : vector<1x4x8x128xbf16> to vector<4x8x128xbf16>
    %159 = vector.shape_cast %156 : vector<4x8x128xbf16> to vector<1x4x8x128xbf16>
    tpu.vector_store %arg14[%c0_162, %c5_163, %c1_164, %c0_165], %159 {strides = array<i32>} : memref<1x10x10x128xbf16, #tpu.memory_space<vmem>>, vector<1x4x8x128xbf16>,
    %c0_166 = arith.constant 0 : index
    %c0_167 = arith.constant 0 : index
    %160 = vector.load %arg5[%c0_166, %c0_167] : memref<1x128xf32, #tpu.memory_space<vmem>>, vector<1x128xf32>
    %cst_168 = arith.constant 0.000000e+00 : bf16
    %161 = vector.broadcast %cst_168 : bf16 to vector<1x6x6x128xbf16>
    %c0_169 = arith.constant 0 : index
    %c0_170 = arith.constant 0 : index
    %c0_171 = arith.constant 0 : index
    %c0_172 = arith.constant 0 : index
    %162 = vector.load %arg15[%c0_169, %c0_170, %c0_171, %c0_172] : memref<1x6x6x128xbf16, #tpu.memory_space<vmem>>, vector<1x6x6x128xbf16>
    tpu.vector_store %arg15[%c0_169, %c0_170, %c0_171, %c0_172], %161 {strides = array<i32>} : memref<1x6x6x128xbf16, #tpu.memory_space<vmem>>, vector<1x6x6x128xbf16>,
    %cst_173 = arith.constant 0.000000e+00 : f32
    %163 = vector.broadcast %cst_173 : f32 to vector<64x128xf32>
    %c0_174 = arith.constant 0 : index
    %c0_175 = arith.constant 0 : index
    %c0_176 = arith.constant 0 : index
    %c0_177 = arith.constant 0 : index
    %164 = vector.load %arg14[%c0_174, %c0_175, %c0_176, %c0_177] : memref<1x10x10x128xbf16, #tpu.memory_space<vmem>>, vector<1x8x8x128xbf16>
    %165 = vector.shape_cast %164 : vector<1x8x8x128xbf16> to vector<8x8x128xbf16>
    %166 = vector.shape_cast %165 : vector<8x8x128xbf16> to vector<64x128xbf16>
    %c0_178 = arith.constant 0 : index
    %c0_179 = arith.constant 0 : index
    %c0_180 = arith.constant 0 : index
    %167 = vector.load %arg4[%c0_178, %c0_179, %c0_180] : memref<9x128x128xbf16, #tpu.memory_space<vmem>>, vector<1x128x128xbf16>
    %168 = vector.shape_cast %167 : vector<1x128x128xbf16> to vector<128x128xbf16>
    %cst_181 = arith.constant dense<0.000000e+00> : vector<64x128xf32>
    %169 = tpu.matmul %166, %168, %cst_181 {dimension_numbers = #tpu.dot_dimension_numbers<[1], [0], [0], [1], [0, 0, 1, 1], [], []>} : vector<64x128xbf16>, vector<128x128xbf16>, vector<64x128xf32> -> vector<64x128xf32>
    %170 = arith.addf %163, %169 : vector<64x128xf32>
    %c0_182 = arith.constant 0 : index
    %c0_183 = arith.constant 0 : index
    %c1_184 = arith.constant 1 : index
    %c0_185 = arith.constant 0 : index
    %171 = vector.load %arg14[%c0_182, %c0_183, %c1_184, %c0_185] : memref<1x10x10x128xbf16, #tpu.memory_space<vmem>>, vector<1x8x8x128xbf16>
    %172 = vector.shape_cast %171 : vector<1x8x8x128xbf16> to vector<8x8x128xbf16>
    %173 = vector.shape_cast %172 : vector<8x8x128xbf16> to vector<64x128xbf16>
    %c1_186 = arith.constant 1 : index
    %c0_187 = arith.constant 0 : index
    %c0_188 = arith.constant 0 : index
    %174 = vector.load %arg4[%c1_186, %c0_187, %c0_188] : memref<9x128x128xbf16, #tpu.memory_space<vmem>>, vector<1x128x128xbf16>
    %175 = vector.shape_cast %174 : vector<1x128x128xbf16> to vector<128x128xbf16>
    %cst_189 = arith.constant dense<0.000000e+00> : vector<64x128xf32>
    %176 = tpu.matmul %173, %175, %cst_189 {dimension_numbers = #tpu.dot_dimension_numbers<[1], [0], [0], [1], [0, 0, 1, 1], [], []>} : vector<64x128xbf16>, vector<128x128xbf16>, vector<64x128xf32> -> vector<64x128xf32>
    %177 = arith.addf %170, %176 : vector<64x128xf32>
    %c0_190 = arith.constant 0 : index
    %c0_191 = arith.constant 0 : index
    %c2_192 = arith.constant 2 : index
    %c0_193 = arith.constant 0 : index
    %178 = vector.load %arg14[%c0_190, %c0_191, %c2_192, %c0_193] : memref<1x10x10x128xbf16, #tpu.memory_space<vmem>>, vector<1x8x8x128xbf16>
    %179 = vector.shape_cast %178 : vector<1x8x8x128xbf16> to vector<8x8x128xbf16>
    %180 = vector.shape_cast %179 : vector<8x8x128xbf16> to vector<64x128xbf16>
    %c2_194 = arith.constant 2 : index
    %c0_195 = arith.constant 0 : index
    %c0_196 = arith.constant 0 : index
    %181 = vector.load %arg4[%c2_194, %c0_195, %c0_196] : memref<9x128x128xbf16, #tpu.memory_space<vmem>>, vector<1x128x128xbf16>
    %182 = vector.shape_cast %181 : vector<1x128x128xbf16> to vector<128x128xbf16>
    %cst_197 = arith.constant dense<0.000000e+00> : vector<64x128xf32>
    %183 = tpu.matmul %180, %182, %cst_197 {dimension_numbers = #tpu.dot_dimension_numbers<[1], [0], [0], [1], [0, 0, 1, 1], [], []>} : vector<64x128xbf16>, vector<128x128xbf16>, vector<64x128xf32> -> vector<64x128xf32>
    %184 = arith.addf %177, %183 : vector<64x128xf32>
    %c0_198 = arith.constant 0 : index
    %c1_199 = arith.constant 1 : index
    %c0_200 = arith.constant 0 : index
    %c0_201 = arith.constant 0 : index
    %185 = vector.load %arg14[%c0_198, %c1_199, %c0_200, %c0_201] : memref<1x10x10x128xbf16, #tpu.memory_space<vmem>>, vector<1x8x8x128xbf16>
    %186 = vector.shape_cast %185 : vector<1x8x8x128xbf16> to vector<8x8x128xbf16>
    %187 = vector.shape_cast %186 : vector<8x8x128xbf16> to vector<64x128xbf16>
    %c3_202 = arith.constant 3 : index
    %c0_203 = arith.constant 0 : index
    %c0_204 = arith.constant 0 : index
    %188 = vector.load %arg4[%c3_202, %c0_203, %c0_204] : memref<9x128x128xbf16, #tpu.memory_space<vmem>>, vector<1x128x128xbf16>
    %189 = vector.shape_cast %188 : vector<1x128x128xbf16> to vector<128x128xbf16>
    %cst_205 = arith.constant dense<0.000000e+00> : vector<64x128xf32>
    %190 = tpu.matmul %187, %189, %cst_205 {dimension_numbers = #tpu.dot_dimension_numbers<[1], [0], [0], [1], [0, 0, 1, 1], [], []>} : vector<64x128xbf16>, vector<128x128xbf16>, vector<64x128xf32> -> vector<64x128xf32>
    %191 = arith.addf %184, %190 : vector<64x128xf32>
    %c0_206 = arith.constant 0 : index
    %c1_207 = arith.constant 1 : index
    %c1_208 = arith.constant 1 : index
    %c0_209 = arith.constant 0 : index
    %192 = vector.load %arg14[%c0_206, %c1_207, %c1_208, %c0_209] : memref<1x10x10x128xbf16, #tpu.memory_space<vmem>>, vector<1x8x8x128xbf16>
    %193 = vector.shape_cast %192 : vector<1x8x8x128xbf16> to vector<8x8x128xbf16>
    %194 = vector.shape_cast %193 : vector<8x8x128xbf16> to vector<64x128xbf16>
    %c4_210 = arith.constant 4 : index
    %c0_211 = arith.constant 0 : index
    %c0_212 = arith.constant 0 : index
    %195 = vector.load %arg4[%c4_210, %c0_211, %c0_212] : memref<9x128x128xbf16, #tpu.memory_space<vmem>>, vector<1x128x128xbf16>
    %196 = vector.shape_cast %195 : vector<1x128x128xbf16> to vector<128x128xbf16>
    %cst_213 = arith.constant dense<0.000000e+00> : vector<64x128xf32>
    %197 = tpu.matmul %194, %196, %cst_213 {dimension_numbers = #tpu.dot_dimension_numbers<[1], [0], [0], [1], [0, 0, 1, 1], [], []>} : vector<64x128xbf16>, vector<128x128xbf16>, vector<64x128xf32> -> vector<64x128xf32>
    %198 = arith.addf %191, %197 : vector<64x128xf32>
    %c0_214 = arith.constant 0 : index
    %c1_215 = arith.constant 1 : index
    %c2_216 = arith.constant 2 : index
    %c0_217 = arith.constant 0 : index
    %199 = vector.load %arg14[%c0_214, %c1_215, %c2_216, %c0_217] : memref<1x10x10x128xbf16, #tpu.memory_space<vmem>>, vector<1x8x8x128xbf16>
    %200 = vector.shape_cast %199 : vector<1x8x8x128xbf16> to vector<8x8x128xbf16>
    %201 = vector.shape_cast %200 : vector<8x8x128xbf16> to vector<64x128xbf16>
    %c5_218 = arith.constant 5 : index
    %c0_219 = arith.constant 0 : index
    %c0_220 = arith.constant 0 : index
    %202 = vector.load %arg4[%c5_218, %c0_219, %c0_220] : memref<9x128x128xbf16, #tpu.memory_space<vmem>>, vector<1x128x128xbf16>
    %203 = vector.shape_cast %202 : vector<1x128x128xbf16> to vector<128x128xbf16>
    %cst_221 = arith.constant dense<0.000000e+00> : vector<64x128xf32>
    %204 = tpu.matmul %201, %203, %cst_221 {dimension_numbers = #tpu.dot_dimension_numbers<[1], [0], [0], [1], [0, 0, 1, 1], [], []>} : vector<64x128xbf16>, vector<128x128xbf16>, vector<64x128xf32> -> vector<64x128xf32>
    %205 = arith.addf %198, %204 : vector<64x128xf32>
    %c0_222 = arith.constant 0 : index
    %c2_223 = arith.constant 2 : index
    %c0_224 = arith.constant 0 : index
    %c0_225 = arith.constant 0 : index
    %206 = vector.load %arg14[%c0_222, %c2_223, %c0_224, %c0_225] : memref<1x10x10x128xbf16, #tpu.memory_space<vmem>>, vector<1x8x8x128xbf16>
    %207 = vector.shape_cast %206 : vector<1x8x8x128xbf16> to vector<8x8x128xbf16>
    %208 = vector.shape_cast %207 : vector<8x8x128xbf16> to vector<64x128xbf16>
    %c6_226 = arith.constant 6 : index
    %c0_227 = arith.constant 0 : index
    %c0_228 = arith.constant 0 : index
    %209 = vector.load %arg4[%c6_226, %c0_227, %c0_228] : memref<9x128x128xbf16, #tpu.memory_space<vmem>>, vector<1x128x128xbf16>
    %210 = vector.shape_cast %209 : vector<1x128x128xbf16> to vector<128x128xbf16>
    %cst_229 = arith.constant dense<0.000000e+00> : vector<64x128xf32>
    %211 = tpu.matmul %208, %210, %cst_229 {dimension_numbers = #tpu.dot_dimension_numbers<[1], [0], [0], [1], [0, 0, 1, 1], [], []>} : vector<64x128xbf16>, vector<128x128xbf16>, vector<64x128xf32> -> vector<64x128xf32>
    %212 = arith.addf %205, %211 : vector<64x128xf32>
    %c0_230 = arith.constant 0 : index
    %c2_231 = arith.constant 2 : index
    %c1_232 = arith.constant 1 : index
    %c0_233 = arith.constant 0 : index
    %213 = vector.load %arg14[%c0_230, %c2_231, %c1_232, %c0_233] : memref<1x10x10x128xbf16, #tpu.memory_space<vmem>>, vector<1x8x8x128xbf16>
    %214 = vector.shape_cast %213 : vector<1x8x8x128xbf16> to vector<8x8x128xbf16>
    %215 = vector.shape_cast %214 : vector<8x8x128xbf16> to vector<64x128xbf16>
    %c7_234 = arith.constant 7 : index
    %c0_235 = arith.constant 0 : index
    %c0_236 = arith.constant 0 : index
    %216 = vector.load %arg4[%c7_234, %c0_235, %c0_236] : memref<9x128x128xbf16, #tpu.memory_space<vmem>>, vector<1x128x128xbf16>
    %217 = vector.shape_cast %216 : vector<1x128x128xbf16> to vector<128x128xbf16>
    %cst_237 = arith.constant dense<0.000000e+00> : vector<64x128xf32>
    %218 = tpu.matmul %215, %217, %cst_237 {dimension_numbers = #tpu.dot_dimension_numbers<[1], [0], [0], [1], [0, 0, 1, 1], [], []>} : vector<64x128xbf16>, vector<128x128xbf16>, vector<64x128xf32> -> vector<64x128xf32>
    %219 = arith.addf %212, %218 : vector<64x128xf32>
    %c0_238 = arith.constant 0 : index
    %c2_239 = arith.constant 2 : index
    %c2_240 = arith.constant 2 : index
    %c0_241 = arith.constant 0 : index
    %220 = vector.load %arg14[%c0_238, %c2_239, %c2_240, %c0_241] : memref<1x10x10x128xbf16, #tpu.memory_space<vmem>>, vector<1x8x8x128xbf16>
    %221 = vector.shape_cast %220 : vector<1x8x8x128xbf16> to vector<8x8x128xbf16>
    %222 = vector.shape_cast %221 : vector<8x8x128xbf16> to vector<64x128xbf16>
    %c8_242 = arith.constant 8 : index
    %c0_243 = arith.constant 0 : index
    %c0_244 = arith.constant 0 : index
    %223 = vector.load %arg4[%c8_242, %c0_243, %c0_244] : memref<9x128x128xbf16, #tpu.memory_space<vmem>>, vector<1x128x128xbf16>
    %224 = vector.shape_cast %223 : vector<1x128x128xbf16> to vector<128x128xbf16>
    %cst_245 = arith.constant dense<0.000000e+00> : vector<64x128xf32>
    %225 = tpu.matmul %222, %224, %cst_245 {dimension_numbers = #tpu.dot_dimension_numbers<[1], [0], [0], [1], [0, 0, 1, 1], [], []>} : vector<64x128xbf16>, vector<128x128xbf16>, vector<64x128xf32> -> vector<64x128xf32>
    %226 = arith.addf %219, %225 : vector<64x128xf32>
    %227 = vector.broadcast %160 : vector<1x128xf32> to vector<64x128xf32>
    %228 = arith.addf %226, %227 : vector<64x128xf32>
    %cst_246 = arith.constant 0.000000e+00 : f32
    %229 = vector.broadcast %cst_246 : f32 to vector<64x128xf32>
    %230 = arith.maximumf %228, %229 : vector<64x128xf32>
    %231 = vector.shape_cast %230 : vector<64x128xf32> to vector<8x8x128xf32>
    %232 = vector.shape_cast %231 : vector<8x8x128xf32> to vector<4x2x4x2x128xf32>
    %cst_247 = arith.constant dense<0xFF800000> : vector<4x4x128xf32>
    %233 = vector.multi_reduction <maximumf>, %232, %cst_247 [1, 3] : vector<4x2x4x2x128xf32> to vector<4x4x128xf32>
    %234 = arith.truncf %233 : vector<4x4x128xf32> to vector<4x4x128xbf16>
    %c0_248 = arith.constant 0 : index
    %c1_249 = arith.constant 1 : index
    %c1_250 = arith.constant 1 : index
    %c0_251 = arith.constant 0 : index
    %235 = vector.load %arg15[%c0_248, %c1_249, %c1_250, %c0_251] : memref<1x6x6x128xbf16, #tpu.memory_space<vmem>>, vector<1x4x4x128xbf16>
    %236 = vector.shape_cast %235 : vector<1x4x4x128xbf16> to vector<4x4x128xbf16>
    %237 = vector.shape_cast %234 : vector<4x4x128xbf16> to vector<1x4x4x128xbf16>
    tpu.vector_store %arg15[%c0_248, %c1_249, %c1_250, %c0_251], %237 {strides = array<i32>} : memref<1x6x6x128xbf16, #tpu.memory_space<vmem>>, vector<1x4x4x128xbf16>,
    %c0_252 = arith.constant 0 : index
    %c0_253 = arith.constant 0 : index
    %238 = vector.load %arg7[%c0_252, %c0_253] : memref<1x128xf32, #tpu.memory_space<vmem>>, vector<1x128xf32>
    %cst_254 = arith.constant 0.000000e+00 : f32
    %239 = vector.broadcast %cst_254 : f32 to vector<16x128xf32>
    %c0_255 = arith.constant 0 : index
    %c0_256 = arith.constant 0 : index
    %c0_257 = arith.constant 0 : index
    %c0_258 = arith.constant 0 : index
    %240 = vector.load %arg15[%c0_255, %c0_256, %c0_257, %c0_258] : memref<1x6x6x128xbf16, #tpu.memory_space<vmem>>, vector<1x4x4x128xbf16>
    %241 = vector.shape_cast %240 : vector<1x4x4x128xbf16> to vector<4x4x128xbf16>
    %242 = vector.shape_cast %241 : vector<4x4x128xbf16> to vector<16x128xbf16>
    %c0_259 = arith.constant 0 : index
    %c0_260 = arith.constant 0 : index
    %c0_261 = arith.constant 0 : index
    %243 = vector.load %arg6[%c0_259, %c0_260, %c0_261] : memref<9x128x128xbf16, #tpu.memory_space<vmem>>, vector<1x128x128xbf16>
    %244 = vector.shape_cast %243 : vector<1x128x128xbf16> to vector<128x128xbf16>
    %cst_262 = arith.constant dense<0.000000e+00> : vector<16x128xf32>
    %245 = tpu.matmul %242, %244, %cst_262 {dimension_numbers = #tpu.dot_dimension_numbers<[1], [0], [0], [1], [0, 0, 1, 1], [], []>} : vector<16x128xbf16>, vector<128x128xbf16>, vector<16x128xf32> -> vector<16x128xf32>
    %246 = arith.addf %239, %245 : vector<16x128xf32>
    %c0_263 = arith.constant 0 : index
    %c0_264 = arith.constant 0 : index
    %c1_265 = arith.constant 1 : index
    %c0_266 = arith.constant 0 : index
    %247 = vector.load %arg15[%c0_263, %c0_264, %c1_265, %c0_266] : memref<1x6x6x128xbf16, #tpu.memory_space<vmem>>, vector<1x4x4x128xbf16>
    %248 = vector.shape_cast %247 : vector<1x4x4x128xbf16> to vector<4x4x128xbf16>
    %249 = vector.shape_cast %248 : vector<4x4x128xbf16> to vector<16x128xbf16>
    %c1_267 = arith.constant 1 : index
    %c0_268 = arith.constant 0 : index
    %c0_269 = arith.constant 0 : index
    %250 = vector.load %arg6[%c1_267, %c0_268, %c0_269] : memref<9x128x128xbf16, #tpu.memory_space<vmem>>, vector<1x128x128xbf16>
    %251 = vector.shape_cast %250 : vector<1x128x128xbf16> to vector<128x128xbf16>
    %cst_270 = arith.constant dense<0.000000e+00> : vector<16x128xf32>
    %252 = tpu.matmul %249, %251, %cst_270 {dimension_numbers = #tpu.dot_dimension_numbers<[1], [0], [0], [1], [0, 0, 1, 1], [], []>} : vector<16x128xbf16>, vector<128x128xbf16>, vector<16x128xf32> -> vector<16x128xf32>
    %253 = arith.addf %246, %252 : vector<16x128xf32>
    %c0_271 = arith.constant 0 : index
    %c0_272 = arith.constant 0 : index
    %c2_273 = arith.constant 2 : index
    %c0_274 = arith.constant 0 : index
    %254 = vector.load %arg15[%c0_271, %c0_272, %c2_273, %c0_274] : memref<1x6x6x128xbf16, #tpu.memory_space<vmem>>, vector<1x4x4x128xbf16>
    %255 = vector.shape_cast %254 : vector<1x4x4x128xbf16> to vector<4x4x128xbf16>
    %256 = vector.shape_cast %255 : vector<4x4x128xbf16> to vector<16x128xbf16>
    %c2_275 = arith.constant 2 : index
    %c0_276 = arith.constant 0 : index
    %c0_277 = arith.constant 0 : index
    %257 = vector.load %arg6[%c2_275, %c0_276, %c0_277] : memref<9x128x128xbf16, #tpu.memory_space<vmem>>, vector<1x128x128xbf16>
    %258 = vector.shape_cast %257 : vector<1x128x128xbf16> to vector<128x128xbf16>
    %cst_278 = arith.constant dense<0.000000e+00> : vector<16x128xf32>
    %259 = tpu.matmul %256, %258, %cst_278 {dimension_numbers = #tpu.dot_dimension_numbers<[1], [0], [0], [1], [0, 0, 1, 1], [], []>} : vector<16x128xbf16>, vector<128x128xbf16>, vector<16x128xf32> -> vector<16x128xf32>
    %260 = arith.addf %253, %259 : vector<16x128xf32>
    %c0_279 = arith.constant 0 : index
    %c1_280 = arith.constant 1 : index
    %c0_281 = arith.constant 0 : index
    %c0_282 = arith.constant 0 : index
    %261 = vector.load %arg15[%c0_279, %c1_280, %c0_281, %c0_282] : memref<1x6x6x128xbf16, #tpu.memory_space<vmem>>, vector<1x4x4x128xbf16>
    %262 = vector.shape_cast %261 : vector<1x4x4x128xbf16> to vector<4x4x128xbf16>
    %263 = vector.shape_cast %262 : vector<4x4x128xbf16> to vector<16x128xbf16>
    %c3_283 = arith.constant 3 : index
    %c0_284 = arith.constant 0 : index
    %c0_285 = arith.constant 0 : index
    %264 = vector.load %arg6[%c3_283, %c0_284, %c0_285] : memref<9x128x128xbf16, #tpu.memory_space<vmem>>, vector<1x128x128xbf16>
    %265 = vector.shape_cast %264 : vector<1x128x128xbf16> to vector<128x128xbf16>
    %cst_286 = arith.constant dense<0.000000e+00> : vector<16x128xf32>
    %266 = tpu.matmul %263, %265, %cst_286 {dimension_numbers = #tpu.dot_dimension_numbers<[1], [0], [0], [1], [0, 0, 1, 1], [], []>} : vector<16x128xbf16>, vector<128x128xbf16>, vector<16x128xf32> -> vector<16x128xf32>
    %267 = arith.addf %260, %266 : vector<16x128xf32>
    %c0_287 = arith.constant 0 : index
    %c1_288 = arith.constant 1 : index
    %c1_289 = arith.constant 1 : index
    %c0_290 = arith.constant 0 : index
    %268 = vector.load %arg15[%c0_287, %c1_288, %c1_289, %c0_290] : memref<1x6x6x128xbf16, #tpu.memory_space<vmem>>, vector<1x4x4x128xbf16>
    %269 = vector.shape_cast %268 : vector<1x4x4x128xbf16> to vector<4x4x128xbf16>
    %270 = vector.shape_cast %269 : vector<4x4x128xbf16> to vector<16x128xbf16>
    %c4_291 = arith.constant 4 : index
    %c0_292 = arith.constant 0 : index
    %c0_293 = arith.constant 0 : index
    %271 = vector.load %arg6[%c4_291, %c0_292, %c0_293] : memref<9x128x128xbf16, #tpu.memory_space<vmem>>, vector<1x128x128xbf16>
    %272 = vector.shape_cast %271 : vector<1x128x128xbf16> to vector<128x128xbf16>
    %cst_294 = arith.constant dense<0.000000e+00> : vector<16x128xf32>
    %273 = tpu.matmul %270, %272, %cst_294 {dimension_numbers = #tpu.dot_dimension_numbers<[1], [0], [0], [1], [0, 0, 1, 1], [], []>} : vector<16x128xbf16>, vector<128x128xbf16>, vector<16x128xf32> -> vector<16x128xf32>
    %274 = arith.addf %267, %273 : vector<16x128xf32>
    %c0_295 = arith.constant 0 : index
    %c1_296 = arith.constant 1 : index
    %c2_297 = arith.constant 2 : index
    %c0_298 = arith.constant 0 : index
    %275 = vector.load %arg15[%c0_295, %c1_296, %c2_297, %c0_298] : memref<1x6x6x128xbf16, #tpu.memory_space<vmem>>, vector<1x4x4x128xbf16>
    %276 = vector.shape_cast %275 : vector<1x4x4x128xbf16> to vector<4x4x128xbf16>
    %277 = vector.shape_cast %276 : vector<4x4x128xbf16> to vector<16x128xbf16>
    %c5_299 = arith.constant 5 : index
    %c0_300 = arith.constant 0 : index
    %c0_301 = arith.constant 0 : index
    %278 = vector.load %arg6[%c5_299, %c0_300, %c0_301] : memref<9x128x128xbf16, #tpu.memory_space<vmem>>, vector<1x128x128xbf16>
    %279 = vector.shape_cast %278 : vector<1x128x128xbf16> to vector<128x128xbf16>
    %cst_302 = arith.constant dense<0.000000e+00> : vector<16x128xf32>
    %280 = tpu.matmul %277, %279, %cst_302 {dimension_numbers = #tpu.dot_dimension_numbers<[1], [0], [0], [1], [0, 0, 1, 1], [], []>} : vector<16x128xbf16>, vector<128x128xbf16>, vector<16x128xf32> -> vector<16x128xf32>
    %281 = arith.addf %274, %280 : vector<16x128xf32>
    %c0_303 = arith.constant 0 : index
    %c2_304 = arith.constant 2 : index
    %c0_305 = arith.constant 0 : index
    %c0_306 = arith.constant 0 : index
    %282 = vector.load %arg15[%c0_303, %c2_304, %c0_305, %c0_306] : memref<1x6x6x128xbf16, #tpu.memory_space<vmem>>, vector<1x4x4x128xbf16>
    %283 = vector.shape_cast %282 : vector<1x4x4x128xbf16> to vector<4x4x128xbf16>
    %284 = vector.shape_cast %283 : vector<4x4x128xbf16> to vector<16x128xbf16>
    %c6_307 = arith.constant 6 : index
    %c0_308 = arith.constant 0 : index
    %c0_309 = arith.constant 0 : index
    %285 = vector.load %arg6[%c6_307, %c0_308, %c0_309] : memref<9x128x128xbf16, #tpu.memory_space<vmem>>, vector<1x128x128xbf16>
    %286 = vector.shape_cast %285 : vector<1x128x128xbf16> to vector<128x128xbf16>
    %cst_310 = arith.constant dense<0.000000e+00> : vector<16x128xf32>
    %287 = tpu.matmul %284, %286, %cst_310 {dimension_numbers = #tpu.dot_dimension_numbers<[1], [0], [0], [1], [0, 0, 1, 1], [], []>} : vector<16x128xbf16>, vector<128x128xbf16>, vector<16x128xf32> -> vector<16x128xf32>
    %288 = arith.addf %281, %287 : vector<16x128xf32>
    %c0_311 = arith.constant 0 : index
    %c2_312 = arith.constant 2 : index
    %c1_313 = arith.constant 1 : index
    %c0_314 = arith.constant 0 : index
    %289 = vector.load %arg15[%c0_311, %c2_312, %c1_313, %c0_314] : memref<1x6x6x128xbf16, #tpu.memory_space<vmem>>, vector<1x4x4x128xbf16>
    %290 = vector.shape_cast %289 : vector<1x4x4x128xbf16> to vector<4x4x128xbf16>
    %291 = vector.shape_cast %290 : vector<4x4x128xbf16> to vector<16x128xbf16>
    %c7_315 = arith.constant 7 : index
    %c0_316 = arith.constant 0 : index
    %c0_317 = arith.constant 0 : index
    %292 = vector.load %arg6[%c7_315, %c0_316, %c0_317] : memref<9x128x128xbf16, #tpu.memory_space<vmem>>, vector<1x128x128xbf16>
    %293 = vector.shape_cast %292 : vector<1x128x128xbf16> to vector<128x128xbf16>
    %cst_318 = arith.constant dense<0.000000e+00> : vector<16x128xf32>
    %294 = tpu.matmul %291, %293, %cst_318 {dimension_numbers = #tpu.dot_dimension_numbers<[1], [0], [0], [1], [0, 0, 1, 1], [], []>} : vector<16x128xbf16>, vector<128x128xbf16>, vector<16x128xf32> -> vector<16x128xf32>
    %295 = arith.addf %288, %294 : vector<16x128xf32>
    %c0_319 = arith.constant 0 : index
    %c2_320 = arith.constant 2 : index
    %c2_321 = arith.constant 2 : index
    %c0_322 = arith.constant 0 : index
    %296 = vector.load %arg15[%c0_319, %c2_320, %c2_321, %c0_322] : memref<1x6x6x128xbf16, #tpu.memory_space<vmem>>, vector<1x4x4x128xbf16>
    %297 = vector.shape_cast %296 : vector<1x4x4x128xbf16> to vector<4x4x128xbf16>
    %298 = vector.shape_cast %297 : vector<4x4x128xbf16> to vector<16x128xbf16>
    %c8_323 = arith.constant 8 : index
    %c0_324 = arith.constant 0 : index
    %c0_325 = arith.constant 0 : index
    %299 = vector.load %arg6[%c8_323, %c0_324, %c0_325] : memref<9x128x128xbf16, #tpu.memory_space<vmem>>, vector<1x128x128xbf16>
    %300 = vector.shape_cast %299 : vector<1x128x128xbf16> to vector<128x128xbf16>
    %cst_326 = arith.constant dense<0.000000e+00> : vector<16x128xf32>
    %301 = tpu.matmul %298, %300, %cst_326 {dimension_numbers = #tpu.dot_dimension_numbers<[1], [0], [0], [1], [0, 0, 1, 1], [], []>} : vector<16x128xbf16>, vector<128x128xbf16>, vector<16x128xf32> -> vector<16x128xf32>
    %302 = arith.addf %295, %301 : vector<16x128xf32>
    %303 = vector.broadcast %238 : vector<1x128xf32> to vector<16x128xf32>
    %304 = arith.addf %302, %303 : vector<16x128xf32>
    %cst_327 = arith.constant 0.000000e+00 : f32
    %305 = vector.broadcast %cst_327 : f32 to vector<16x128xf32>
    %306 = arith.maximumf %304, %305 : vector<16x128xf32>
    %307 = arith.truncf %306 : vector<16x128xf32> to vector<16x128xbf16>
    %cst_328 = arith.constant 0.000000e+00 : f32
    %308 = vector.broadcast %cst_328 : f32 to vector<1x256xf32>
    %309 = vector.extract_strided_slice %307 {offsets = [0, 0], sizes = [1, 128], strides = [1, 1]} : vector<16x128xbf16> to vector<1x128xbf16>
    %c0_329 = arith.constant 0 : index
    %c0_330 = arith.constant 0 : index
    %c0_331 = arith.constant 0 : index
    %310 = vector.load %arg8[%c0_329, %c0_330, %c0_331] : memref<16x128x256xbf16, #tpu.memory_space<vmem>>, vector<1x128x256xbf16>
    %311 = vector.shape_cast %310 : vector<1x128x256xbf16> to vector<128x256xbf16>
    %cst_332 = arith.constant dense<0.000000e+00> : vector<1x256xf32>
    %312 = tpu.matmul %309, %311, %cst_332 {dimension_numbers = #tpu.dot_dimension_numbers<[1], [0], [0], [1], [0, 0, 1, 1], [], []>} : vector<1x128xbf16>, vector<128x256xbf16>, vector<1x256xf32> -> vector<1x256xf32>
    %313 = arith.addf %308, %312 : vector<1x256xf32>
    %314 = vector.extract_strided_slice %307 {offsets = [1, 0], sizes = [1, 128], strides = [1, 1]} : vector<16x128xbf16> to vector<1x128xbf16>
    %c1_333 = arith.constant 1 : index
    %c0_334 = arith.constant 0 : index
    %c0_335 = arith.constant 0 : index
    %315 = vector.load %arg8[%c1_333, %c0_334, %c0_335] : memref<16x128x256xbf16, #tpu.memory_space<vmem>>, vector<1x128x256xbf16>
    %316 = vector.shape_cast %315 : vector<1x128x256xbf16> to vector<128x256xbf16>
    %cst_336 = arith.constant dense<0.000000e+00> : vector<1x256xf32>
    %317 = tpu.matmul %314, %316, %cst_336 {dimension_numbers = #tpu.dot_dimension_numbers<[1], [0], [0], [1], [0, 0, 1, 1], [], []>} : vector<1x128xbf16>, vector<128x256xbf16>, vector<1x256xf32> -> vector<1x256xf32>
    %318 = arith.addf %313, %317 : vector<1x256xf32>
    %319 = vector.extract_strided_slice %307 {offsets = [2, 0], sizes = [1, 128], strides = [1, 1]} : vector<16x128xbf16> to vector<1x128xbf16>
    %c2_337 = arith.constant 2 : index
    %c0_338 = arith.constant 0 : index
    %c0_339 = arith.constant 0 : index
    %320 = vector.load %arg8[%c2_337, %c0_338, %c0_339] : memref<16x128x256xbf16, #tpu.memory_space<vmem>>, vector<1x128x256xbf16>
    %321 = vector.shape_cast %320 : vector<1x128x256xbf16> to vector<128x256xbf16>
    %cst_340 = arith.constant dense<0.000000e+00> : vector<1x256xf32>
    %322 = tpu.matmul %319, %321, %cst_340 {dimension_numbers = #tpu.dot_dimension_numbers<[1], [0], [0], [1], [0, 0, 1, 1], [], []>} : vector<1x128xbf16>, vector<128x256xbf16>, vector<1x256xf32> -> vector<1x256xf32>
    %323 = arith.addf %318, %322 : vector<1x256xf32>
    %324 = vector.extract_strided_slice %307 {offsets = [3, 0], sizes = [1, 128], strides = [1, 1]} : vector<16x128xbf16> to vector<1x128xbf16>
    %c3_341 = arith.constant 3 : index
    %c0_342 = arith.constant 0 : index
    %c0_343 = arith.constant 0 : index
    %325 = vector.load %arg8[%c3_341, %c0_342, %c0_343] : memref<16x128x256xbf16, #tpu.memory_space<vmem>>, vector<1x128x256xbf16>
    %326 = vector.shape_cast %325 : vector<1x128x256xbf16> to vector<128x256xbf16>
    %cst_344 = arith.constant dense<0.000000e+00> : vector<1x256xf32>
    %327 = tpu.matmul %324, %326, %cst_344 {dimension_numbers = #tpu.dot_dimension_numbers<[1], [0], [0], [1], [0, 0, 1, 1], [], []>} : vector<1x128xbf16>, vector<128x256xbf16>, vector<1x256xf32> -> vector<1x256xf32>
    %328 = arith.addf %323, %327 : vector<1x256xf32>
    %329 = vector.extract_strided_slice %307 {offsets = [4, 0], sizes = [1, 128], strides = [1, 1]} : vector<16x128xbf16> to vector<1x128xbf16>
    %c4_345 = arith.constant 4 : index
    %c0_346 = arith.constant 0 : index
    %c0_347 = arith.constant 0 : index
    %330 = vector.load %arg8[%c4_345, %c0_346, %c0_347] : memref<16x128x256xbf16, #tpu.memory_space<vmem>>, vector<1x128x256xbf16>
    %331 = vector.shape_cast %330 : vector<1x128x256xbf16> to vector<128x256xbf16>
    %cst_348 = arith.constant dense<0.000000e+00> : vector<1x256xf32>
    %332 = tpu.matmul %329, %331, %cst_348 {dimension_numbers = #tpu.dot_dimension_numbers<[1], [0], [0], [1], [0, 0, 1, 1], [], []>} : vector<1x128xbf16>, vector<128x256xbf16>, vector<1x256xf32> -> vector<1x256xf32>
    %333 = arith.addf %328, %332 : vector<1x256xf32>
    %334 = vector.extract_strided_slice %307 {offsets = [5, 0], sizes = [1, 128], strides = [1, 1]} : vector<16x128xbf16> to vector<1x128xbf16>
    %c5_349 = arith.constant 5 : index
    %c0_350 = arith.constant 0 : index
    %c0_351 = arith.constant 0 : index
    %335 = vector.load %arg8[%c5_349, %c0_350, %c0_351] : memref<16x128x256xbf16, #tpu.memory_space<vmem>>, vector<1x128x256xbf16>
    %336 = vector.shape_cast %335 : vector<1x128x256xbf16> to vector<128x256xbf16>
    %cst_352 = arith.constant dense<0.000000e+00> : vector<1x256xf32>
    %337 = tpu.matmul %334, %336, %cst_352 {dimension_numbers = #tpu.dot_dimension_numbers<[1], [0], [0], [1], [0, 0, 1, 1], [], []>} : vector<1x128xbf16>, vector<128x256xbf16>, vector<1x256xf32> -> vector<1x256xf32>
    %338 = arith.addf %333, %337 : vector<1x256xf32>
    %339 = vector.extract_strided_slice %307 {offsets = [6, 0], sizes = [1, 128], strides = [1, 1]} : vector<16x128xbf16> to vector<1x128xbf16>
    %c6_353 = arith.constant 6 : index
    %c0_354 = arith.constant 0 : index
    %c0_355 = arith.constant 0 : index
    %340 = vector.load %arg8[%c6_353, %c0_354, %c0_355] : memref<16x128x256xbf16, #tpu.memory_space<vmem>>, vector<1x128x256xbf16>
    %341 = vector.shape_cast %340 : vector<1x128x256xbf16> to vector<128x256xbf16>
    %cst_356 = arith.constant dense<0.000000e+00> : vector<1x256xf32>
    %342 = tpu.matmul %339, %341, %cst_356 {dimension_numbers = #tpu.dot_dimension_numbers<[1], [0], [0], [1], [0, 0, 1, 1], [], []>} : vector<1x128xbf16>, vector<128x256xbf16>, vector<1x256xf32> -> vector<1x256xf32>
    %343 = arith.addf %338, %342 : vector<1x256xf32>
    %344 = vector.extract_strided_slice %307 {offsets = [7, 0], sizes = [1, 128], strides = [1, 1]} : vector<16x128xbf16> to vector<1x128xbf16>
    %c7_357 = arith.constant 7 : index
    %c0_358 = arith.constant 0 : index
    %c0_359 = arith.constant 0 : index
    %345 = vector.load %arg8[%c7_357, %c0_358, %c0_359] : memref<16x128x256xbf16, #tpu.memory_space<vmem>>, vector<1x128x256xbf16>
    %346 = vector.shape_cast %345 : vector<1x128x256xbf16> to vector<128x256xbf16>
    %cst_360 = arith.constant dense<0.000000e+00> : vector<1x256xf32>
    %347 = tpu.matmul %344, %346, %cst_360 {dimension_numbers = #tpu.dot_dimension_numbers<[1], [0], [0], [1], [0, 0, 1, 1], [], []>} : vector<1x128xbf16>, vector<128x256xbf16>, vector<1x256xf32> -> vector<1x256xf32>
    %348 = arith.addf %343, %347 : vector<1x256xf32>
    %349 = vector.extract_strided_slice %307 {offsets = [8, 0], sizes = [1, 128], strides = [1, 1]} : vector<16x128xbf16> to vector<1x128xbf16>
    %c8_361 = arith.constant 8 : index
    %c0_362 = arith.constant 0 : index
    %c0_363 = arith.constant 0 : index
    %350 = vector.load %arg8[%c8_361, %c0_362, %c0_363] : memref<16x128x256xbf16, #tpu.memory_space<vmem>>, vector<1x128x256xbf16>
    %351 = vector.shape_cast %350 : vector<1x128x256xbf16> to vector<128x256xbf16>
    %cst_364 = arith.constant dense<0.000000e+00> : vector<1x256xf32>
    %352 = tpu.matmul %349, %351, %cst_364 {dimension_numbers = #tpu.dot_dimension_numbers<[1], [0], [0], [1], [0, 0, 1, 1], [], []>} : vector<1x128xbf16>, vector<128x256xbf16>, vector<1x256xf32> -> vector<1x256xf32>
    %353 = arith.addf %348, %352 : vector<1x256xf32>
    %354 = vector.extract_strided_slice %307 {offsets = [9, 0], sizes = [1, 128], strides = [1, 1]} : vector<16x128xbf16> to vector<1x128xbf16>
    %c9_365 = arith.constant 9 : index
    %c0_366 = arith.constant 0 : index
    %c0_367 = arith.constant 0 : index
    %355 = vector.load %arg8[%c9_365, %c0_366, %c0_367] : memref<16x128x256xbf16, #tpu.memory_space<vmem>>, vector<1x128x256xbf16>
    %356 = vector.shape_cast %355 : vector<1x128x256xbf16> to vector<128x256xbf16>
    %cst_368 = arith.constant dense<0.000000e+00> : vector<1x256xf32>
    %357 = tpu.matmul %354, %356, %cst_368 {dimension_numbers = #tpu.dot_dimension_numbers<[1], [0], [0], [1], [0, 0, 1, 1], [], []>} : vector<1x128xbf16>, vector<128x256xbf16>, vector<1x256xf32> -> vector<1x256xf32>
    %358 = arith.addf %353, %357 : vector<1x256xf32>
    %359 = vector.extract_strided_slice %307 {offsets = [10, 0], sizes = [1, 128], strides = [1, 1]} : vector<16x128xbf16> to vector<1x128xbf16>
    %c10_369 = arith.constant 10 : index
    %c0_370 = arith.constant 0 : index
    %c0_371 = arith.constant 0 : index
    %360 = vector.load %arg8[%c10_369, %c0_370, %c0_371] : memref<16x128x256xbf16, #tpu.memory_space<vmem>>, vector<1x128x256xbf16>
    %361 = vector.shape_cast %360 : vector<1x128x256xbf16> to vector<128x256xbf16>
    %cst_372 = arith.constant dense<0.000000e+00> : vector<1x256xf32>
    %362 = tpu.matmul %359, %361, %cst_372 {dimension_numbers = #tpu.dot_dimension_numbers<[1], [0], [0], [1], [0, 0, 1, 1], [], []>} : vector<1x128xbf16>, vector<128x256xbf16>, vector<1x256xf32> -> vector<1x256xf32>
    %363 = arith.addf %358, %362 : vector<1x256xf32>
    %364 = vector.extract_strided_slice %307 {offsets = [11, 0], sizes = [1, 128], strides = [1, 1]} : vector<16x128xbf16> to vector<1x128xbf16>
    %c11 = arith.constant 11 : index
    %c0_373 = arith.constant 0 : index
    %c0_374 = arith.constant 0 : index
    %365 = vector.load %arg8[%c11, %c0_373, %c0_374] : memref<16x128x256xbf16, #tpu.memory_space<vmem>>, vector<1x128x256xbf16>
    %366 = vector.shape_cast %365 : vector<1x128x256xbf16> to vector<128x256xbf16>
    %cst_375 = arith.constant dense<0.000000e+00> : vector<1x256xf32>
    %367 = tpu.matmul %364, %366, %cst_375 {dimension_numbers = #tpu.dot_dimension_numbers<[1], [0], [0], [1], [0, 0, 1, 1], [], []>} : vector<1x128xbf16>, vector<128x256xbf16>, vector<1x256xf32> -> vector<1x256xf32>
    %368 = arith.addf %363, %367 : vector<1x256xf32>
    %369 = vector.extract_strided_slice %307 {offsets = [12, 0], sizes = [1, 128], strides = [1, 1]} : vector<16x128xbf16> to vector<1x128xbf16>
    %c12 = arith.constant 12 : index
    %c0_376 = arith.constant 0 : index
    %c0_377 = arith.constant 0 : index
    %370 = vector.load %arg8[%c12, %c0_376, %c0_377] : memref<16x128x256xbf16, #tpu.memory_space<vmem>>, vector<1x128x256xbf16>
    %371 = vector.shape_cast %370 : vector<1x128x256xbf16> to vector<128x256xbf16>
    %cst_378 = arith.constant dense<0.000000e+00> : vector<1x256xf32>
    %372 = tpu.matmul %369, %371, %cst_378 {dimension_numbers = #tpu.dot_dimension_numbers<[1], [0], [0], [1], [0, 0, 1, 1], [], []>} : vector<1x128xbf16>, vector<128x256xbf16>, vector<1x256xf32> -> vector<1x256xf32>
    %373 = arith.addf %368, %372 : vector<1x256xf32>
    %374 = vector.extract_strided_slice %307 {offsets = [13, 0], sizes = [1, 128], strides = [1, 1]} : vector<16x128xbf16> to vector<1x128xbf16>
    %c13 = arith.constant 13 : index
    %c0_379 = arith.constant 0 : index
    %c0_380 = arith.constant 0 : index
    %375 = vector.load %arg8[%c13, %c0_379, %c0_380] : memref<16x128x256xbf16, #tpu.memory_space<vmem>>, vector<1x128x256xbf16>
    %376 = vector.shape_cast %375 : vector<1x128x256xbf16> to vector<128x256xbf16>
    %cst_381 = arith.constant dense<0.000000e+00> : vector<1x256xf32>
    %377 = tpu.matmul %374, %376, %cst_381 {dimension_numbers = #tpu.dot_dimension_numbers<[1], [0], [0], [1], [0, 0, 1, 1], [], []>} : vector<1x128xbf16>, vector<128x256xbf16>, vector<1x256xf32> -> vector<1x256xf32>
    %378 = arith.addf %373, %377 : vector<1x256xf32>
    %379 = vector.extract_strided_slice %307 {offsets = [14, 0], sizes = [1, 128], strides = [1, 1]} : vector<16x128xbf16> to vector<1x128xbf16>
    %c14 = arith.constant 14 : index
    %c0_382 = arith.constant 0 : index
    %c0_383 = arith.constant 0 : index
    %380 = vector.load %arg8[%c14, %c0_382, %c0_383] : memref<16x128x256xbf16, #tpu.memory_space<vmem>>, vector<1x128x256xbf16>
    %381 = vector.shape_cast %380 : vector<1x128x256xbf16> to vector<128x256xbf16>
    %cst_384 = arith.constant dense<0.000000e+00> : vector<1x256xf32>
    %382 = tpu.matmul %379, %381, %cst_384 {dimension_numbers = #tpu.dot_dimension_numbers<[1], [0], [0], [1], [0, 0, 1, 1], [], []>} : vector<1x128xbf16>, vector<128x256xbf16>, vector<1x256xf32> -> vector<1x256xf32>
    %383 = arith.addf %378, %382 : vector<1x256xf32>
    %384 = vector.extract_strided_slice %307 {offsets = [15, 0], sizes = [1, 128], strides = [1, 1]} : vector<16x128xbf16> to vector<1x128xbf16>
    %c15 = arith.constant 15 : index
    %c0_385 = arith.constant 0 : index
    %c0_386 = arith.constant 0 : index
    %385 = vector.load %arg8[%c15, %c0_385, %c0_386] : memref<16x128x256xbf16, #tpu.memory_space<vmem>>, vector<1x128x256xbf16>
    %386 = vector.shape_cast %385 : vector<1x128x256xbf16> to vector<128x256xbf16>
    %cst_387 = arith.constant dense<0.000000e+00> : vector<1x256xf32>
    %387 = tpu.matmul %384, %386, %cst_387 {dimension_numbers = #tpu.dot_dimension_numbers<[1], [0], [0], [1], [0, 0, 1, 1], [], []>} : vector<1x128xbf16>, vector<128x256xbf16>, vector<1x256xf32> -> vector<1x256xf32>
    %388 = arith.addf %383, %387 : vector<1x256xf32>
    %c0_388 = arith.constant 0 : index
    %c0_389 = arith.constant 0 : index
    %389 = vector.load %arg9[%c0_388, %c0_389] : memref<1x256xf32, #tpu.memory_space<vmem>>, vector<1x256xf32>
    %390 = arith.addf %388, %389 : vector<1x256xf32>
    %cst_390 = arith.constant 0.000000e+00 : f32
    %391 = vector.broadcast %cst_390 : f32 to vector<1x256xf32>
    %392 = arith.maximumf %390, %391 : vector<1x256xf32>
    %393 = arith.truncf %392 : vector<1x256xf32> to vector<1x256xbf16>
    %c0_391 = arith.constant 0 : index
    %c0_392 = arith.constant 0 : index
    %394 = vector.load %arg10[%c0_391, %c0_392] : memref<256x128xbf16, #tpu.memory_space<vmem>>, vector<256x128xbf16>
    %cst_393 = arith.constant dense<0.000000e+00> : vector<1x128xf32>
    %395 = tpu.matmul %393, %394, %cst_393 {dimension_numbers = #tpu.dot_dimension_numbers<[1], [0], [0], [1], [0, 0, 1, 1], [], []>} : vector<1x256xbf16>, vector<256x128xbf16>, vector<1x128xf32> -> vector<1x128xf32>
    %c0_394 = arith.constant 0 : index
    %c0_395 = arith.constant 0 : index
    %396 = vector.load %arg11[%c0_394, %c0_395] : memref<1x128xf32, #tpu.memory_space<vmem>>, vector<1x128xf32>
    %397 = arith.addf %395, %396 : vector<1x128xf32>
    %c0_396 = arith.constant 0 : index
    %c0_397 = arith.constant 0 : index
    %c0_398 = arith.constant 0 : index
    %398 = vector.load %arg12[%c0_396, %c0_397, %c0_398] : memref<1x1x128xf32, #tpu.memory_space<vmem>>, vector<1x1x128xf32>
    %399 = vector.shape_cast %398 : vector<1x1x128xf32> to vector<1x128xf32>
    %400 = vector.shape_cast %397 : vector<1x128xf32> to vector<1x1x128xf32>
    tpu.vector_store %arg12[%c0_396, %c0_397, %c0_398], %400 {strides = array<i32>} : memref<1x1x128xf32, #tpu.memory_space<vmem>>, vector<1x1x128xf32>,
    return
  }
  func.func @transform_0(%arg0: i32) -> (i32, i32, i32, i32) {
    %c0_i32 = arith.constant 0 : i32
    %c0_i32_0 = arith.constant 0 : i32
    %c0_i32_1 = arith.constant 0 : i32
    %c0_i32_2 = arith.constant 0 : i32
    return %arg0, %c0_i32, %c0_i32_0, %c0_i32_1 : i32, i32, i32, i32
  }
  func.func @transform_1(%arg0: i32) -> (i32, i32, i32) {
    %c0_i32 = arith.constant 0 : i32
    %c0_i32_0 = arith.constant 0 : i32
    %c0_i32_1 = arith.constant 0 : i32
    %c0_i32_2 = arith.constant 0 : i32
    return %c0_i32, %c0_i32_0, %c0_i32_1 : i32, i32, i32
  }
  func.func @transform_2(%arg0: i32) -> (i32, i32) {
    %c0_i32 = arith.constant 0 : i32
    %c0_i32_0 = arith.constant 0 : i32
    %c0_i32_1 = arith.constant 0 : i32
    return %c0_i32, %c0_i32_0 : i32, i32
  }
  func.func @transform_3(%arg0: i32) -> (i32, i32, i32) {
    %c0_i32 = arith.constant 0 : i32
    %c0_i32_0 = arith.constant 0 : i32
    %c0_i32_1 = arith.constant 0 : i32
    %c0_i32_2 = arith.constant 0 : i32
    return %c0_i32, %c0_i32_0, %c0_i32_1 : i32, i32, i32
  }
  func.func @transform_4(%arg0: i32) -> (i32, i32) {
    %c0_i32 = arith.constant 0 : i32
    %c0_i32_0 = arith.constant 0 : i32
    %c0_i32_1 = arith.constant 0 : i32
    return %c0_i32, %c0_i32_0 : i32, i32
  }
  func.func @transform_5(%arg0: i32) -> (i32, i32, i32) {
    %c0_i32 = arith.constant 0 : i32
    %c0_i32_0 = arith.constant 0 : i32
    %c0_i32_1 = arith.constant 0 : i32
    %c0_i32_2 = arith.constant 0 : i32
    return %c0_i32, %c0_i32_0, %c0_i32_1 : i32, i32, i32
  }
  func.func @transform_6(%arg0: i32) -> (i32, i32) {
    %c0_i32 = arith.constant 0 : i32
    %c0_i32_0 = arith.constant 0 : i32
    %c0_i32_1 = arith.constant 0 : i32
    return %c0_i32, %c0_i32_0 : i32, i32
  }
  func.func @transform_7(%arg0: i32) -> (i32, i32, i32) {
    %c0_i32 = arith.constant 0 : i32
    %c0_i32_0 = arith.constant 0 : i32
    %c0_i32_1 = arith.constant 0 : i32
    %c0_i32_2 = arith.constant 0 : i32
    return %c0_i32, %c0_i32_0, %c0_i32_1 : i32, i32, i32
  }
  func.func @transform_8(%arg0: i32) -> (i32, i32) {
    %c0_i32 = arith.constant 0 : i32
    %c0_i32_0 = arith.constant 0 : i32
    %c0_i32_1 = arith.constant 0 : i32
    return %c0_i32, %c0_i32_0 : i32, i32
  }
  func.func @transform_9(%arg0: i32) -> (i32, i32) {
    %c0_i32 = arith.constant 0 : i32
    %c0_i32_0 = arith.constant 0 : i32
    %c0_i32_1 = arith.constant 0 : i32
    return %c0_i32, %c0_i32_0 : i32, i32
  }
  func.func @transform_10(%arg0: i32) -> (i32, i32) {
    %c0_i32 = arith.constant 0 : i32
    %c0_i32_0 = arith.constant 0 : i32
    %c0_i32_1 = arith.constant 0 : i32
    return %c0_i32, %c0_i32_0 : i32, i32
  }
  func.func @transform_11(%arg0: i32) -> (i32, i32, i32) {
    %c0_i32 = arith.constant 0 : i32
    %c0_i32_0 = arith.constant 0 : i32
    %c0_i32_1 = arith.constant 0 : i32
    return %arg0, %c0_i32, %c0_i32_0 : i32, i32, i32
  }
}

</mosaic_0001>

<bundles_post_ra>
// kernel: alexnet_forward.1
= control target key start
LH: loop header
LB: loop body
LE: loop exit
PB: predicated region body
PF: predicated region fallthrough
CT: control target
= control target key end

     0   :  { %s22637_s0 = inlined_call_operand.vmem [shape: bf16[2,16,16,128], index: 0, kind: input, shape index: {}]   ;;  %s22638_s1 = inlined_call_operand.vmem [shape: bf16[9,128,128], index: 1, kind: input, shape index: {}]   ;;  %s22639_s2 = inlined_call_operand.vmem [shape: f32[1,128], index: 2, kind: input, shape index: {}]   ;;  %s22640_s3 = inlined_call_operand.hbm [shape: bf16[9,128,128], index: 3, kind: input, shape index: {}]   ;;  %s22641_s4 = inlined_call_operand.vmem [shape: f32[1,128], index: 4, kind: input, shape index: {}]   ;;  %s22642_s5 = inlined_call_operand.hbm [shape: bf16[9,128,128], index: 5, kind: input, shape index: {}]   ;;  %s22643_s6 = inlined_call_operand.vmem [shape: f32[1,128], index: 6, kind: input, shape index: {}]   ;;  %s22644_s7 = inlined_call_operand.hbm [shape: bf16[16,128,256], index: 7, kind: input, shape index: {}]   ;;  %s22645_s8 = inlined_call_operand.vmem [shape: f32[1,256], index: 8, kind: input, shape index: {}]   ;;  %s22646_s9 = inlined_call_operand.vmem [shape: bf16[256,128], index: 9, kind: input, shape index: {}]   ;;  %s22647_s10 = inlined_call_operand.vmem [shape: f32[1,128], index: 10, kind: input, shape index: {}]   ;;  %s22648_s11 = inlined_call_operand.hbm [shape: f32[2,1,128], index: 11, kind: output, shape index: {}]  }
   0x1   :  { %22685 = sst [smem:[#allocation36_spill]] %s22648_s11 }
   0x2   :  { %16 = vsyncpa [#allocation6], 0 }
   0x3   :  { %17 = vsyncpa [#allocation9], 0 }
   0x4   :  { %18 = vsyncpa [#allocation7], 0 }
   0x5   :  { %20 = vsyncpa [#allocation7 + $0x1], 0  ;;  %s19266_s17 = smov 0   ;;  %s19268_s18 = smov 0  }
   0x6   :  { %s19270_s19 = smov 0   ;;  %s19272_s20 = smov 0  }
   0x7 LB: > { %22686 = sst [smem:[#allocation15_spill]] %s19180_s17  ;;  %s19287_s21 = sadd.s32 4294967295, %s19192_s20   ;;  %s19192_s20 = sphi %s19272_s20, %s22810_s20   ;;  %s19188_s19 = sphi %s19270_s19, %s22812_s19   ;;  %s19184_s18 = sphi %s19268_s18, %s22814_s18   ;;  %s19180_s17 = sphi %s19266_s17, %s22813_s17  }
   0x8   : > { %22687 = sst [smem:[#allocation16_spill]] %s19188_s19  ;;  %s15084_s22 = sadd.s32 4294967294, %s19192_s20  }
   0x9   : > { %22688 = sst [smem:[#allocation17_spill]] %s19192_s20  ;;  %s19291_s23 = sadd.s32 1, %s19192_s20  }
   0xa   : > { %22689 = sst [smem:[#allocation18_spill]] %s19291_s23  ;;  %s269_s24 = sadd.s32 1, %s19188_s19 }
   0xb   : > { %s266_s25 = ssub.s32 %s19192_s20, %s19291_s23  ;;  %p279_p0 = scmp.ne.s32.totalorder %s19188_s19, %s19184_s18 }
   0xc   : > { %p267_p1 = scmp.eq.s32.totalorder %s266_s25, 0  ;;  %p280_p2 = scmp.eq.s32.totalorder %s19287_s21, 1 }
   0xd   : > { %p285_p3 = scmp.ne.s32.totalorder %s19184_s18, %s19180_s17  ;;  %p286_p4 = scmp.eq.s32.totalorder %s15084_s22, 1 }
   0xe   : > { %s19302_s26 = scalar_select %p267_p1, %s19188_s19, %s269_s24  }
   0xf   : > { %p19304_p5 = por %p280_p2, %p279_p0  ;;  %p19308_p6 = por %p286_p4, %p285_p3 }
  0x10   : > { %22690 = sst [smem:[#allocation19_spill]] %s19302_s26  ;;  %p15085_p7 = scmp.ge.s32.totalorder %s19192_s20, 1 }
  0x11   : > { %s22691_s27 = scalar_select %p19304_p5, 1, 0 }
  0x12   : > { %s22692_s28 = scalar_select %p19308_p6, 1, 0 }
  0x13   : > { %p293_p8 = scmp.lt.s32.totalorder %s19192_s20, 3  ;;  %p22652_p9 = scmp.eq.s32.totalorder %s19287_s21, 0 }
  0x14   : > { %22693 = sst [smem:[#allocation20_spill]] %s22692_s28  ;;  %s19194_s30 = smov [#allocation8]  }
  0x15   : > { %p19315_p10 = pnand %p15085_p7, %p293_p8  ;;  %s327_s12 = sshll.u32 %s19194_s30, 4  ;;  %s19321_s12 = int_to_ptr.vmem [resolvable:$true] %s327_s12 }
  0x16   : > { %s19195_s14 = smov [#allocation5]   ;;  %s19196_s16 = smov [#allocation10]  }
  0x17   : > { %s22694_s29 = scalar_select %p19315_p10, 1, 0 }
  0x18   : > { %p18188_p11 = pneg %p19315_p10  ;;  %s311_s15 = sshll.u32 %s19195_s14, 4  ;;  %s19329_s15 = int_to_ptr.vmem [resolvable:$true] %s311_s15 }
  0x19   : > { %s19331_s22 = sshll.u32 %s19196_s16, 4  ;;  %s19038_s26 = scalar_lea.hbm %s22642_s5, 9216  ;;  %s344_s22 = int_to_ptr.vmem [resolvable:$true] %s19331_s22 }
  0x1a   : > { %p19325_p12 = pnand %p22652_p9, %p18188_p11  ;;  %p19039_p13 = scmp.ne.s32.totalorder %s22642_s5, %s19038_s26 }
  0x1b   : > { %p19045_p3 = scmp.lt.u32.totalorder %s19038_s26, %s22642_s5 }
  0x1c   : > { %p19341_p0 = pneg %p19325_p12 }
  0x1e   : > { %p19041_p1 = pnand %p19341_p0, %p19039_p13 }
  0x20   : > { %p19042_p2 = pneg %p19041_p1 }
  0x22   : > { %p19047_p4 = pnand %p19045_p3, %p19042_p2 }
  0x24   : > { %19050 = shalt.err (!%p19047_p4)
}
  0x25   : > { %s19051_s19 = scalar_lea.vmem %s19321_s12, 9216  ;;  %p19059_p9 = scmp.lt.s32.totalorder %s19321_s12, %s19321_s12 }
  0x26   : > { %p19052_p7 = scmp.ne.s32.totalorder %s19321_s12, %s19051_s19  ;;  %p19060_p6 = scmp.lt.s32.totalorder %s19051_s19, %s19051_s19 }
  0x28   : > { %p19054_p8 = pnand %p19052_p7, %p19341_p0  ;;  %p19061_p13 = por %p19060_p6, %p19059_p9 }
  0x2a   : > { %p19055_p11 = pneg %p19054_p8 }
  0x2c   : > { %p19062_p1 = pnand %p19061_p13, %p19055_p11 }
  0x2e   : > { %19065 = shalt.err (!%p19062_p1)
}
  0x2f   : > { %s19197_s24 = smov 64   ;;  %s19198_s26 = smov 4  }
  0x30   : > { %18194 = dma.hbm_to_vmem [thread:$0]  (!%p19325_p12), %s22642_s5, 9216, %s19321_s12, [#allocation9], %s19197_s24, %s19197_s24, %s19198_s26  }
  0x31   : > { %s19066_s28 = scalar_lea.hbm %s22640_s3, 9216 }
  0x32   : > { %p19067_p6 = scmp.ne.s32.totalorder %s22640_s3, %s19066_s28  ;;  %p19073_p3 = scmp.lt.u32.totalorder %s19066_s28, %s22640_s3 }
  0x34   : > { %p19069_p9 = pnand %p19067_p6, %p19341_p0 }
  0x36   : > { %p19070_p2 = pneg %p19069_p9 }
  0x38   : > { %p19075_p4 = pnand %p19073_p3, %p19070_p2 }
  0x3a   : > { %19078 = shalt.err (!%p19075_p4)
}
  0x3b   : > { %s19079_s12 = scalar_lea.vmem %s19329_s15, 9216  ;;  %p19087_p13 = scmp.lt.s32.totalorder %s19329_s15, %s19329_s15 }
  0x3c   : > { %p19080_p7 = scmp.ne.s32.totalorder %s19329_s15, %s19079_s12  ;;  %p19088_p1 = scmp.lt.s32.totalorder %s19079_s12, %s19079_s12 }
  0x3e   : > { %p19082_p8 = pnand %p19080_p7, %p19341_p0  ;;  %p19089_p6 = por %p19088_p1, %p19087_p13 }
  0x40   : > { %p19083_p11 = pneg %p19082_p8 }
  0x42   : > { %p19090_p9 = pnand %p19089_p6, %p19083_p11 }
  0x44   : > { %19093 = shalt.err (!%p19090_p9)
}
  0x45   : > { %18191 = dma.hbm_to_vmem [thread:$0]  (!%p19325_p12), %s22640_s3, 9216, %s19329_s15, [#allocation6], %s19197_s24, %s19197_s24, %s19198_s26  }
  0x46   : > { %s19094_s25 = scalar_lea.hbm %s22644_s7, 32768 }
  0x47   : > { %p19095_p2 = scmp.ne.s32.totalorder %s22644_s7, %s19094_s25  ;;  %p19101_p7 = scmp.lt.u32.totalorder %s19094_s25, %s22644_s7 }
  0x49   : > { %p19097_p3 = pnand %p19095_p2, %p19341_p0 }
  0x4b   : > { %p19098_p4 = pneg %p19097_p3 }
  0x4d   : > { %p19103_p8 = pnand %p19101_p7, %p19098_p4 }
  0x4f   : > { %19106 = shalt.err (!%p19103_p8)
}
  0x50   : > { %s19107_s12 = scalar_lea.vmem %s344_s22, 32768  ;;  %p19115_p6 = scmp.lt.s32.totalorder %s344_s22, %s344_s22 }
  0x51   : > { %p19108_p11 = scmp.ne.s32.totalorder %s344_s22, %s19107_s12  ;;  %p19116_p9 = scmp.lt.s32.totalorder %s19107_s12, %s19107_s12 }
  0x53   : > { %p19110_p13 = pnand %p19108_p11, %p19341_p0  ;;  %p19117_p5 = por %p19116_p9, %p19115_p6 }
  0x55   : > { %p19111_p1 = pneg %p19110_p13 }
  0x57   : > { %p19118_p10 = pnand %p19117_p5, %p19111_p1 }
  0x59   : > { %19121 = shalt.err (!%p19118_p10)
}
  0x5a   : > { %s19199_s15 = smov 128   ;;  %s19200_s24 = smov 8  }
  0x5b   : > { %18197 = dma.hbm_to_vmem [thread:$0]  (!%p19325_p12), %s22644_s7, 32768, %s344_s22, [#allocation9], %s19199_s15, %s19199_s15, %s19200_s24  }
  0x5c   : > { %p22697_p2 = scmp.ne.s32.totalorder %s22694_s29, 0 }
  0x5e   : > { %376 = sbr.rel (%p22697_p2) target bundleno = 2716 (0xa9c), region = 64 }
  0x65   : > { %p22698_p3 = scmp.eq.s32.totalorder %s19287_s21, 0 }
  0x67   : > { %19167 = dma.done.wait (%p22698_p3), [#allocation6], 9216   ;;  %p22699_p0 = pmov %p22698_p3 }
  0x69   : > { %19169 = vsyncadd (%p22699_p0), [#allocation6], 4294958080  ;;  %p22700_p5 = pmov %p22699_p0 }
  0x6a   : > { %p22701_p10 = pmov %p22699_p0 }
  0x6b   : > { %19171 = dma.done.wait (%p22700_p5), [#allocation9], 41984  }
  0x6c   : > { %19173 = vsyncadd (%p22701_p10), [#allocation9], 4294925312  ;;  %v22659_v0 = vmov 0   ;;  %v18252_v1 = vld [vmem:[%s22638_s1 + $0x40] sm:$0xff]   ;;  %v18254_v3 = vld [vmem:[%s22638_s1 + $0x48] sm:$0xff]   ;;  %p423_p12 = scmp.lt.s32.totalorder %s19287_s21, 1 }
  0x6d   : > { %429 = vst [vmem:[#allocation2] sm:$0xf] %v22659_v0  ;;  %430 = vst [vmem:[#allocation2 + $0x4] sm:$0xf] %v22659_v0  ;;  %v18253_v2 = vld [vmem:[%s22638_s1 + $0x40] sm:$0xff]   ;;  %16882 = vmatprep.subr.bf16.mxu0 %v18252_v1  ;;  %v18255_v4 = vld [vmem:[%s22638_s1 + $0x48] sm:$0xff]  }
  0x6e   : > { %431 = vst [vmem:[#allocation2 + $0x8] sm:$0x1] %v22659_v0  ;;  %432 = vst [vmem:[#allocation2 + $0xc] sm:$0xf] %v22659_v0  ;;  %17170 = vmatprep.subr.bf16.mxu1 %v18253_v2  ;;  %16883 = vmatpush3.bf16.msra.mxu0 %v18252_v1  ;;  %v18256_v5 = vld [vmem:[%s22638_s1 + $0x50] sm:$0xff]   ;;  %s424_s12 = scalar_select %p423_p12, %s19287_s21, 1 }
  0x6f   : > { %433 = vst [vmem:[#allocation2 + $0x10] sm:$0xf] %v22659_v0  ;;  %434 = vst [vmem:[#allocation2 + $0x14] sm:$0x1] %v22659_v0  ;;  %17171 = vmatpush3.bf16.msra.mxu1 %v18253_v2  ;;  %16884 = vmatprep.subr.bf16.mxu0 %v18254_v3  ;;  %v18257_v6 = vld [vmem:[%s22638_s1 + $0x50] sm:$0xff]   ;;  %v18258_v7 = vld [vmem:[%s22638_s1 + $0x58] sm:$0xff]  }
  0x70   : > { %435 = vst [vmem:[#allocation2 + $0x18] sm:$0xf] %v22659_v0  ;;  %436 = vst [vmem:[#allocation2 + $0x1c] sm:$0xf] %v22659_v0  ;;  %17172 = vmatprep.subr.bf16.mxu1 %v18255_v4  ;;  %vm1017_vm0 = vsmask.f32 3328 }
  0x71   : > { %437 = vst [vmem:[#allocation2 + $0x20] sm:$0x1] %v22659_v0  ;;  %438 = vst [vmem:[#allocation2 + $0x24] sm:$0xf] %v22659_v0  ;;  %vm1018_vm1 = vsmask.f32 7440 }
  0x72   : > { %439 = vst [vmem:[#allocation2 + $0x28] sm:$0xf] %v22659_v0  ;;  %440 = vst [vmem:[#allocation2 + $0x2c] sm:$0x1] %v22659_v0  ;;  %16885 = vmatpush3.bf16.msra.mxu0 %v18254_v3  ;;  %v18259_v8 = vld [vmem:[%s22638_s1 + $0x58] sm:$0xff]   ;;  %s16294_s23 = sshll.u32 %s424_s12, 7 }
  0x73   : > { %441 = vst [vmem:[#allocation2 + $0x30] sm:$0xf] %v22659_v0  ;;  %442 = vst [vmem:[#allocation2 + $0x34] sm:$0xf] %v22659_v0  ;;  %17173 = vmatpush3.bf16.msra.mxu1 %v18255_v4  ;;  %16886 = vmatprep.subr.bf16.mxu0 %v18256_v5  ;;  %vm840_vm2 = vsmask.f32 7938  ;;  %s19532_s14 = scalar_lea.vmem %s22637_s0, %s16294_s23 }
  0x74   : > { %443 = vst [vmem:[#allocation2 + $0x38] sm:$0x1] %v22659_v0  ;;  %444 = vst [vmem:[#allocation2 + $0x3c] sm:$0xf] %v22659_v0  ;;  %17174 = vmatprep.subr.bf16.mxu1 %v18257_v6  ;;  %vm515_vm3 = vsmask.f32 256 }
  0x75   : > { %445 = vst [vmem:[#allocation2 + $0x40] sm:$0xf] %v22659_v0  ;;  %446 = vst [vmem:[#allocation2 + $0x44] sm:$0x1] %v22659_v0  ;;  %vm516_vm4 = vsmask.f32 4368 }
  0x76   : > { %447 = vst [vmem:[#allocation2 + $0x48] sm:$0xf] %v22659_v0  ;;  %448 = vst [vmem:[#allocation2 + $0x4c] sm:$0xf] %v22659_v0  ;;  %16887 = vmatpush3.bf16.msra.mxu0 %v18256_v5  ;;  %v18260_v9 = vld [vmem:[%s22638_s1 + $0x60] sm:$0xff]   ;;  %v18262_v11 = vld [vmem:[%s22638_s1 + $0x68] sm:$0xff]  }
  0x77   : > { %449 = vst [vmem:[#allocation2 + $0x50] sm:$0x1] %v22659_v0  ;;  %450 = vst [vmem:[#allocation2 + $0x54] sm:$0xf] %v22659_v0  ;;  %17175 = vmatpush3.bf16.msra.mxu1 %v18257_v6  ;;  %16888 = vmatprep.subr.bf16.mxu0 %v18258_v7  ;;  %v18261_v10 = vld [vmem:[%s22638_s1 + $0x60] sm:$0xff]   ;;  %v18263_v12 = vld [vmem:[%s22638_s1 + $0x68] sm:$0xff]  }
  0x78   : > { %451 = vst [vmem:[#allocation2 + $0x58] sm:$0xf] %v22659_v0  ;;  %452 = vst [vmem:[#allocation2 + $0x5c] sm:$0x1] %v22659_v0  ;;  %17176 = vmatprep.subr.bf16.mxu1 %v18259_v8  ;;  %vm839_vm5 = vcmask 1043456   ;;  %vm846_vm6 = vcmask 1040384  }
  0x79   : > { %453 = vst [vmem:[#allocation2 + $0x60] sm:$0xf] %v22659_v0  ;;  %454 = vst [vmem:[#allocation2 + $0x64] sm:$0xf] %v22659_v0  ;;  %v977_v13 = vld [vmem:[#allocation2] sm:$0xf] }
  0x7a   : > { %455 = vst [vmem:[#allocation2 + $0x68] sm:$0x1] %v22659_v0  ;;  %456 = vst [vmem:[#allocation2 + $0x6c] sm:$0xf] %v22659_v0  ;;  %16889 = vmatpush3.bf16.msra.mxu0 %v18258_v7  ;;  %v978_v14 = vld [vmem:[#allocation2 + $0x4] sm:$0xf] }
  0x7b   : > { %457 = vst [vmem:[#allocation2 + $0x70] sm:$0xf] %v22659_v0  ;;  %458 = vst [vmem:[#allocation2 + $0x74] sm:$0x1] %v22659_v0  ;;  %17177 = vmatpush3.bf16.msra.mxu1 %v18259_v8  ;;  %16890 = vmatprep.subr.bf16.mxu0 %v18260_v9  ;;  %v1009_v15 = vld [vmem:[#allocation2 + $0x8] sm:$0x1] }
  0x7c   : > { %459 = vst [vmem:[#allocation2 + $0x78] sm:$0xf] %v22659_v0  ;;  %460 = vst [vmem:[#allocation2 + $0x7c] sm:$0xf] %v22659_v0  ;;  %17178 = vmatprep.subr.bf16.mxu1 %v18261_v10  ;;  %v1021_v16 = vshrl.u32 %v977_v13, 16  ;;  %v1024_v17 = vshll.u32 %v977_v13, 16 }
  0x7d   : > { %461 = vst [vmem:[#allocation2 + $0x80] sm:$0x1] %v22659_v0  ;;  %462 = vst [vmem:[#allocation2 + $0x84] sm:$0xf] %v22659_v0  ;;  %v1030_v18 = vshll.u32 %v978_v14, 16  ;;  %v1034_v19 = vshrl.u32 %v978_v14, 16 }
  0x7e   : > { %463 = vst [vmem:[#allocation2 + $0x88] sm:$0xf] %v22659_v0  ;;  %464 = vst [vmem:[#allocation2 + $0x8c] sm:$0x1] %v22659_v0  ;;  %v497_v20 = vld [vmem:[%s19532_s14 + $0x38] sm:$0xf]  ;;  %16891 = vmatpush3.bf16.msra.mxu0 %v18260_v9 }
  0x7f   : > { %465 = vst [vmem:[#allocation2 + $0x90] sm:$0xf] %v22659_v0  ;;  %466 = vst [vmem:[#allocation2 + $0x94] sm:$0xf] %v22659_v0  ;;  %v1040_v21 = vshll.u32 %v1009_v15, 16  ;;  %v638_v23 = vshrl.u32 %v497_v20, 16  ;;  %17179 = vmatpush3.bf16.msra.mxu1 %v18261_v10  ;;  %16892 = vmatprep.subr.bf16.mxu0 %v18262_v11 }
  0x80   : > { %467 = vst [vmem:[#allocation2 + $0x98] sm:$0x1] %v22659_v0  ;;  %468 = vst [vmem:[#allocation2 + $0x9c] sm:$0xf] %v22659_v0  ;;  %v498_v22 = vld [vmem:[%s19532_s14 + $0x3c] sm:$0xf]  ;;  %17180 = vmatprep.subr.bf16.mxu1 %v18263_v12 }
  0x81   : > { %469 = vst [vmem:[#allocation2 + $0xa0] sm:$0xf] %v22659_v0  ;;  %470 = vst [vmem:[#allocation2 + $0xa4] sm:$0x1] %v22659_v0  ;;  %v641_v24 = vshll.u32 %v497_v20, 16  ;;  %v22702_v25 = vmov 0 }
  0x82   : > { %471 = vst [vmem:[#allocation2 + $0xa8] sm:$0xf] %v22659_v0  ;;  %472 = vst [vmem:[#allocation2 + $0xac] sm:$0xf] %v22659_v0  ;;  %v1023_v26 = vrot.slane %v1021_v16, 4  ;;  %v1026_v27 = vrot.slane %v1024_v17, 5  ;;  %16893 = vmatpush3.bf16.msra.mxu0 %v18262_v11 }
  0x83   : > { %473 = vst [vmem:[#allocation2 + $0xb0] sm:$0x1] %v22659_v0  ;;  %474 = vst [vmem:[#allocation2 + $0xb4] sm:$0xf] %v22659_v0  ;;  %v1032_v28 = vrot.slane %v1030_v18, 5  ;;  %v1036_v29 = vrot.slane %v1034_v19, 4  ;;  %17181 = vmatpush3.bf16.msra.mxu1 %v18263_v12 }
  0x84   : > { %475 = vst [vmem:[#allocation2 + $0xb8] sm:$0xf] %v22659_v0  ;;  %476 = vst [vmem:[#allocation2 + $0xbc] sm:$0x1] %v22659_v0  ;;  %v18264_v30 = vld [vmem:[%s22638_s1 + $0x70] sm:$0xff]   ;;  %v640_v31 = vrot.slane %v638_v23, 7  ;;  %v1027_v37 = vor.u32 %v1026_v27, %v1023_v26 }
  0x85   : > { %477 = vst [vmem:[#allocation2 + $0xc0] sm:$0xf] %v22659_v0  ;;  %478 = vst [vmem:[#allocation2 + $0xc4] sm:$0xf] %v22659_v0  ;;  %v646_v32 = vshrl.u32 %v498_v22, 16  ;;  %v649_v33 = vshll.u32 %v498_v22, 16  ;;  %v1037_v38 = vor.u32 %v1036_v29, %v1032_v28  ;;  %16894 = vmatprep.subr.bf16.mxu0 %v18264_v30 }
  0x86   : > { %479 = vst [vmem:[#allocation2 + $0xc8] sm:$0x1] %v22659_v0  ;;  %480 = vst [vmem:[#allocation2 + $0xcc] sm:$0xf] %v22659_v0  ;;  %v22705_v34 = vmov 0  ;;  %v18265_v36 = vld [vmem:[%s22638_s1 + $0x70] sm:$0xff]   ;;  %v643_v44 = vor.u32 %v641_v24, %v640_v31  ;;  %16895 = vmatpush3.bf16.msra.mxu0 %v18264_v30 }
  0x87   : > { %481 = vst [vmem:[#allocation2 + $0xd0] sm:$0xf] %v22659_v0  ;;  %482 = vst [vmem:[#allocation2 + $0xd4] sm:$0x1] %v22659_v0  ;;  %v893_v35 = vld [vmem:[#allocation2 + $0x60] sm:$0xf]  ;;  %17182 = vmatprep.subr.bf16.mxu1 %v18265_v36 }
  0x88   : > { %957 = vst [vmem:[#allocation3] sm:$0xf] %v22659_v0  ;;  %958 = vst [vmem:[#allocation3 + $0x4] sm:$0x1] %v22659_v0  ;;  %v1042_v39 = vrot.slane %v1040_v21, 5  ;;  %v18266_v42 = vld [vmem:[%s22638_s1 + $0x78] sm:$0xff]   ;;  %17183 = vmatpush3.bf16.msra.mxu1 %v18265_v36 }
  0x89   : > { %959 = vst [vmem:[#allocation3 + $0x8] sm:$0xf] %v22659_v0  ;;  %960 = vst [vmem:[#allocation3 + $0xc] sm:$0x1] %v22659_v0  ;;  %v483_v40 = vld [vmem:[%s19532_s14] sm:$0xf]  ;;  %16896 = vmatprep.subr.bf16.mxu0 %v18266_v42 }
  0x8a   : > { %961 = vst [vmem:[#allocation3 + $0x10] sm:$0xf] %v22659_v0  ;;  %962 = vst [vmem:[#allocation3 + $0x14] sm:$0x1] %v22659_v0  ;;  %v484_v41 = vld [vmem:[%s19532_s14 + $0x4] sm:$0xf]  ;;  %16897 = vmatpush3.bf16.msra.mxu0 %v18266_v42 }
  0x8b   : > { %963 = vst [vmem:[#allocation3 + $0x18] sm:$0xf] %v22659_v0  ;;  %964 = vst [vmem:[#allocation3 + $0x1c] sm:$0x1] %v22659_v0  ;;  %v22708_v43 = vmov 0  ;;  %v644_v45 = vrot.slane %v640_v31, 4 }
  0x8c   : > { %965 = vst [vmem:[#allocation3 + $0x20] sm:$0xf] %v22659_v0  ;;  %966 = vst [vmem:[#allocation3 + $0x24] sm:$0x1] %v22659_v0  ;;  %v648_v46 = vrot.slane %v646_v32, 7  ;;  %v519_v48 = vshrl.u32 %v483_v40, 16 }
  0x8d   : > { %967 = vst [vmem:[#allocation3 + $0x28] sm:$0xf] %v22659_v0  ;;  %968 = vst [vmem:[#allocation3 + $0x2c] sm:$0x1] %v22659_v0  ;;  %v897_v47 = vld [vmem:[#allocation2 + $0x68] sm:$0x1] }
  0x8e   : > { %969 = vst [vmem:[#allocation3 + $0x30] sm:$0xf] %v22659_v0  ;;  %970 = vst [vmem:[#allocation3 + $0x34] sm:$0x1] %v22659_v0  ;;  %v18267_v49 = vld [vmem:[%s22638_s1 + $0x78] sm:$0xff]   ;;  %v1028_v50 = vrot.slane %v1027_v37, 4  ;;  %v651_v55 = vor.u32 %v649_v33, %v648_v46 }
  0x8f   : > { %971 = vst [vmem:[#allocation3 + $0x38] sm:$0xf] %v22659_v0  ;;  %972 = vst [vmem:[#allocation3 + $0x3c] sm:$0x1] %v22659_v0  ;;  %v1038_v51 = vrot.slane %v1037_v38, 4  ;;  %v22711_v52 = vmov 0  ;;  %17184 = vmatprep.subr.bf16.mxu1 %v18267_v49 }
  0x90   : > { %973 = vst [vmem:[#allocation3 + $0x40] sm:$0xf] %v22659_v0  ;;  %974 = vst [vmem:[#allocation3 + $0x44] sm:$0x1] %v22659_v0  ;;  %v522_v53 = vshll.u32 %v483_v40, 16  ;;  %v527_v54 = vshrl.u32 %v484_v41, 16  ;;  %17185 = vmatpush3.bf16.msra.mxu1 %v18267_v49 }
  0x91   : > { %975 = vst [vmem:[#allocation3 + $0x48] sm:$0xf] %v22659_v0  ;;  %976 = vst [vmem:[#allocation3 + $0x4c] sm:$0x1] %v22659_v0  ;;  %v653_v56 = vrot.slane %v648_v46, 4  ;;  %v521_v58 = vrot.slane %v519_v48, 7 }
  0x92   : > { %8469 = vst [vmem:[#allocation4] sm:$0x7] %v22659_v0  ;;  %8470 = vst [vmem:[#allocation4 + $0x4] sm:$0x7] %v22659_v0  ;;  %v499_v59 = vld [vmem:[%s19532_s14 + $0x40] sm:$0xf] }
  0x93   : > { %8471 = vst [vmem:[#allocation4 + $0x8] sm:$0x7] %v22659_v0  ;;  %8472 = vst [vmem:[#allocation4 + $0xc] sm:$0x7] %v22659_v0  ;;  %v529_v62 = vrot.slane %v527_v54, 7  ;;  %v530_v63 = vshll.u32 %v484_v41, 16  ;;  %v524_v6 = vor.u32 %v522_v53, %v521_v58 }
  0x94   : > { %8473 = vst [vmem:[#allocation4 + $0x10] sm:$0x7] %v22659_v0  ;;  %8474 = vst [vmem:[#allocation4 + $0x14] sm:$0x7] %v22659_v0  ;;  %v842_v1 = vld [vmem:[#allocation2 + $0xc] sm:$0xf] }
  0x95   : > { %vm19541_vm7 = vmor %vm1017_vm0, %vm1018_vm1  ;;  %v500_v2 = vld [vmem:[%s19532_s14 + $0x44] sm:$0xf]  ;;  %v848_v7 = vld [vmem:[#allocation2 + $0x14] sm:$0x1]  ;;  %v525_v8 = vrot.slane %v521_v58, 4  ;;  %v532_v9 = vor.u32 %v530_v63, %v529_v62  ;;  %v534_v10 = vrot.slane %v529_v62, 4 }
  0x96   : > { %v22703_v25 = vsel %vm19541_vm7, 4294967295, %v22702_v25  ;;  %vm19550_vm8 = vmand %vm839_vm5, %vm840_vm2  ;;  %v1033_v60 = vsel %vm19541_vm7, %v1028_v50, %v1032_v28  ;;  %v1043_v61 = vsel %vm19541_vm7, %v1038_v51, %v1042_v39  ;;  %v655_v11 = vshrl.u32 %v499_v59, 16  ;;  %v19594_v13 = vld [vmem:[%s22638_s1] sm:$0xff]   ;;  %v900_v17 = vld [vmem:[#allocation2 + $0x6c] sm:$0xf]  ;;  %s421_s23 = sand.u32 1, %s19184_s18  }
  0x97   : > { %22704 = vst [vmem:[#allocation21_spill] sm:$0xff] %v22703_v25  ;;  %v22706_v34 = vsel %vm19550_vm8, 4294967295, %v22705_v34  ;;  %vm19564_vm9 = vmor %vm515_vm3, %vm516_vm4  ;;  %v894_v57 = vsel %vm19550_vm8, %v643_v44, %v893_v35  ;;  %v15112_v3 = vcombine.low %v1033_v60, %v1043_v61  ;;  %v843_v12 = vsel %vm19550_vm8, %v524_v6, %v842_v1  ;;  %v19603_v21 = vld [vmem:[%s22638_s1] sm:$0xff]   ;;  %v485_v23 = vld [vmem:[%s19532_s14 + $0x8] sm:$0xf]  ;;  %16914 = vmatprep.subr.bf16.mxu0 %v19594_v13  ;;  %s16291_s13 = sshll.u32 %s19287_s21, 4 }
  0x98   : > { %22707 = vst [vmem:[#allocation22_spill] sm:$0xff] %v22706_v34  ;;  %v22709_v43 = vsel %vm19564_vm9, 4294967295, %v22708_v43  ;;  %vm19573_vm10 = vmand %vm846_vm6, %vm515_vm3  ;;  %v652_v4 = vsel %vm19564_vm9, %v644_v45, %v651_v55  ;;  %v658_v14 = vshll.u32 %v499_v59, 16  ;;  %v663_v15 = vshrl.u32 %v500_v2, 16  ;;  %v486_v24 = vld [vmem:[%s19532_s14 + $0xc] sm:$0xf]  ;;  %17202 = vmatprep.subr.bf16.mxu1 %v19603_v21 }
  0x99   : > { %22710 = vst [vmem:[#allocation23_spill] sm:$0xff] %v22709_v43  ;;  %v22712_v52 = vsel %vm19573_vm10, 4294967295, %v22711_v52  ;;  %895 = vst [vmem:[#allocation2 + $0x60] sm:$0xf] %v894_v57  ;;  %v898_v5 = vsel %vm19573_vm10, %v653_v56, %v897_v47  ;;  %v666_v16 = vshll.u32 %v500_v2, 16  ;;  %16898 = vmatprep.mubr.bf16.mxu0 %v15112_v3  ;;  %v533_v18 = vsel %vm19564_vm9, %v525_v8, %v532_v9  ;;  %s422_s22 = scalar_lea.vmem [#allocation11], %s421_s23 }
  0x9a   : > { %22713 = vst [vmem:[#allocation24_spill] sm:$0xff] %v22712_v52  ;;  %896 = vst [vmem:[#allocation2 + $0x64] sm:$0xf] %v652_v4  ;;  %v849_v19 = vsel %vm19573_vm10, %v534_v10, %v848_v7  ;;  %v657_v20 = vrot.slane %v655_v11, 7  ;;  %v665_v22 = vrot.slane %v663_v15, 7  ;;  %v536_v29 = vshrl.u32 %v485_v23, 16 }
  0x9b   : > { %899 = vst [vmem:[#allocation2 + $0x68] sm:$0x1] %v898_v5  ;;  %844 = vst [vmem:[#allocation2 + $0xc] sm:$0xf] %v843_v12  ;;  %v904_v28 = vld [vmem:[#allocation2 + $0x74] sm:$0x1] }
  0x9c   : > { %845 = vst [vmem:[#allocation2 + $0x10] sm:$0xf] %v533_v18  ;;  %850 = vst [vmem:[#allocation2 + $0x14] sm:$0x1] %v849_v19  ;;  %v660_v26 = vor.u32 %v658_v14, %v657_v20  ;;  %v661_v27 = vrot.slane %v657_v20, 4  ;;  %v668_v31 = vor.u32 %v666_v16, %v665_v22  ;;  %v670_v32 = vrot.slane %v665_v22, 4 }
  0x9d   : > { %v544_v33 = vshrl.u32 %v486_v24, 16  ;;  %v547_v35 = vshll.u32 %v486_v24, 16  ;;  %v538_v39 = vrot.slane %v536_v29, 7  ;;  %v539_v53 = vshll.u32 %v485_v23, 16  ;;  %v855_v29 = vld [vmem:[#allocation2 + $0x20] sm:$0x1] }
  0x9e   : > { %v901_v38 = vsel %vm19550_vm8, %v660_v26, %v900_v17  ;;  %v669_v42 = vsel %vm19564_vm9, %v661_v27, %v668_v31  ;;  %v905_v44 = vsel %vm19573_vm10, %v670_v32, %v904_v28  ;;  %v851_v28 = vld [vmem:[#allocation2 + $0x18] sm:$0xf]  ;;  %vm1623_vm11 = vcmask 1042432   ;;  %s14998_s17 = sshll.u32 %s422_s22, 4  ;;  %s22804_s25 = sld [smem:[#allocation36_spill]]  ;;  %s22597_s17 = int_to_ptr.vmem [resolvable:$true] %s14998_s17 }
  0x9f   : > { %902 = vst [vmem:[#allocation2 + $0x6c] sm:$0xf] %v901_v38  ;;  %v19615_v45 = vrot.slane %v544_v33, 7  ;;  %903 = vst [vmem:[#allocation2 + $0x70] sm:$0xf] %v669_v42  ;;  %v542_v54 = vrot.slane %v538_v39, 4  ;;  %v541_v9 = vor.u32 %v539_v53, %v538_v39 }
  0xa0   : > { %v4736_v30 = vld [vmem:[#allocation2 + $0x60] sm:$0xf]  ;;  %906 = vst [vmem:[#allocation2 + $0x74] sm:$0x1] %v905_v44  ;;  %vm1624_vm12 = vcmask 1046532   ;;  %vm4215_vm14 = vcmask 1041408  }
  0xa1   : > { %v4777_v36 = vshrl.u32 %v4736_v30, 16  ;;  %v4780_v37 = vshll.u32 %v4736_v30, 16  ;;  %v4737_v40 = vld [vmem:[#allocation2 + $0x64] sm:$0xf]  ;;  %v549_v60 = vor.u32 %v547_v35, %v19615_v45  ;;  %v501_v35 = vld [vmem:[%s19532_s14 + $0x48] sm:$0xf]  ;;  %vm20076_vm13 = vmor %vm1623_vm11, %vm1624_vm12 }
  0xa2   : > { %v4768_v41 = vld [vmem:[#allocation2 + $0x68] sm:$0x1]  ;;  %v4786_v48 = vshll.u32 %v4737_v40, 16  ;;  %v4790_v49 = vshrl.u32 %v4737_v40, 16  ;;  %v979_v51 = vld [vmem:[#allocation2 + $0xc] sm:$0xf] }
  0xa3   : > { %v4779_v46 = vrot.slane %v4777_v36, 4  ;;  %v4782_v47 = vrot.slane %v4780_v37, 5  ;;  %v4796_v50 = vshll.u32 %v4768_v41, 16  ;;  %v980_v58 = vld [vmem:[#allocation2 + $0x10] sm:$0xf]  ;;  %v1045_v62 = vshrl.u32 %v979_v51, 16 }
  0xa4   : > { %v4788_v56 = vrot.slane %v4786_v48, 5  ;;  %v4792_v57 = vrot.slane %v4790_v49, 4  ;;  %v1010_v59 = vld [vmem:[#allocation2 + $0x14] sm:$0x1]  ;;  %v1048_v63 = vshll.u32 %v979_v51, 16  ;;  %v1054_v1 = vshll.u32 %v980_v58, 16  ;;  %s22595_s30 = scalar_lea.hbm %s22804_s25, %s16291_s13 }
  0xa5   : > { %v4783_v55 = vor.u32 %v4782_v47, %v4779_v46  ;;  %v4798_v61 = vrot.slane %v4796_v50, 5  ;;  %v1058_v4 = vshrl.u32 %v980_v58, 16  ;;  %v1064_v5 = vshll.u32 %v1010_v59, 16  ;;  %v502_v40 = vld [vmem:[%s19532_s14 + $0x4c] sm:$0xf]  ;;  %s14986_s16 = scalar_lea.sflag [#allocation7], %s421_s23 }
  0xa6   : > { %v4793_v3 = vor.u32 %v4792_v57, %v4788_v56  ;;  %v1047_v6 = vrot.slane %v1045_v62, 4  ;;  %v1050_v7 = vrot.slane %v1048_v63, 5  ;;  %v1056_v8 = vrot.slane %v1054_v1, 5  ;;  %v4738_v15 = vld [vmem:[#allocation2 + $0x6c] sm:$0xf]  ;;  %s19122_s19 = scalar_lea.vmem %s22597_s17, 16 }
  0xa7   : > { %v4784_v2 = vrot.slane %v4783_v55, 4  ;;  %v1060_v12 = vrot.slane %v1058_v4, 4  ;;  %v1066_v14 = vrot.slane %v1064_v5, 5  ;;  %v4739_v17 = vld [vmem:[#allocation2 + $0x70] sm:$0xf]  ;;  %v4801_v19 = vshrl.u32 %v4738_v15, 16  ;;  %p19123_p4 = scmp.ne.s32.totalorder %s22597_s17, %s19122_s19 }
  0xa8   : > { %v4794_v11 = vrot.slane %v4793_v3, 4  ;;  %v1051_v16 = vor.u32 %v1050_v7, %v1047_v6  ;;  %v4769_v18 = vld [vmem:[#allocation2 + $0x74] sm:$0x1]  ;;  %v4804_v20 = vshll.u32 %v4738_v15, 16  ;;  %v550_v22 = vsel %vm19564_vm9, %v542_v54, %v549_v60  ;;  %v487_v50 = vld [vmem:[%s19532_s14 + $0x10] sm:$0xf] }
  0xa9   : > { %v4789_v10 = vsel %vm19541_vm7, %v4784_v2, %v4788_v56  ;;  %v1061_v24 = vor.u32 %v1060_v12, %v1056_v8  ;;  %v4810_v26 = vshll.u32 %v4739_v17, 16  ;;  %v4814_v27 = vshrl.u32 %v4739_v17, 16  ;;  %854 = vst [vmem:[#allocation2 + $0x1c] sm:$0xf] %v550_v22  ;;  %v18270_v54 = vld [vmem:[%s22638_s1 + $0x8] sm:$0xff]   ;;  %p22805_p7 = scmp.ne.s32.totalorder %s22691_s27, 0 }
  0xaa   : > { %v4799_v23 = vsel %vm19541_vm7, %v4794_v11, %v4798_v61  ;;  %v1052_v31 = vrot.slane %v1051_v16, 4  ;;  %v4803_v32 = vrot.slane %v4801_v19, 4  ;;  %v4806_v33 = vrot.slane %v4804_v20, 5  ;;  %v907_v60 = vld [vmem:[#allocation2 + $0x78] sm:$0xf]  ;;  %v18271_v63 = vld [vmem:[%s22638_s1 + $0x8] sm:$0xff]  }
  0xab   : > { %v15445_v30 = vcombine.low %v4789_v10, %v4799_v23  ;;  %v1062_v36 = vrot.slane %v1061_v24, 4  ;;  %v4812_v37 = vrot.slane %v4810_v26, 5  ;;  %v4816_v38 = vrot.slane %v4814_v27, 4  ;;  %v488_v61 = vld [vmem:[%s19532_s14 + $0x14] sm:$0xf]  ;;  %p19124_p8 = pnand %p19123_p4, %p22805_p7  ;;  %s19205_s21 = smov [#allocation11]  }
  0xac   : > { %v4820_v39 = vshll.u32 %v4769_v18, 16  ;;  %v1057_v41 = vsel %vm19541_vm7, %v1052_v31, %v1056_v8  ;;  %v4807_v42 = vor.u32 %v4806_v33, %v4803_v32  ;;  %v551_v44 = vrot.slane %v19615_v45, 4  ;;  %v911_v3 = vld [vmem:[#allocation2 + $0x80] sm:$0x1]  ;;  %v858_v10 = vld [vmem:[#allocation2 + $0x24] sm:$0xf] }
  0xad   : > { %17186 = vmatprep.mubr.bf16.mxu1 %v15445_v30  ;;  %v1067_v46 = vsel %vm19541_vm7, %v1062_v36, %v1066_v14  ;;  %v4817_v47 = vor.u32 %v4816_v38, %v4812_v37  ;;  %v852_v49 = vsel %vm19550_vm8, %v541_v9, %v851_v28  ;;  %v672_v55 = vshrl.u32 %v501_v35, 16  ;;  %v18272_v11 = vld [vmem:[%s22638_s1 + $0x10] sm:$0xff]   ;;  %v862_v32 = vld [vmem:[#allocation2 + $0x2c] sm:$0x1]  ;;  %p19125_p11 = pneg %p19124_p8  ;;  %s19126_s12 = sshll.u32 %s19205_s21, 4  ;;  %s19127_s12 = int_to_ptr.vmem [resolvable:$false] %s19126_s12 }
  0xae   : > { %v4822_v48 = vrot.slane %v4820_v39, 5  ;;  %v15113_v51 = vcombine.low %v1057_v41, %v1067_v46  ;;  %v4808_v53 = vrot.slane %v4807_v42, 4  ;;  %853 = vst [vmem:[#allocation2 + $0x18] sm:$0xf] %v852_v49  ;;  %v856_v45 = vsel %vm19573_vm10, %v551_v44, %v855_v29  ;;  %v503_v26 = vld [vmem:[%s19532_s14 + $0x50] sm:$0xf]  ;;  %p19129_p13 = scmp.lt.s32.totalorder %s22597_s17, %s19127_s12 }
  0xaf   : > { %v4818_v56 = vrot.slane %v4817_v47, 4  ;;  %857 = vst [vmem:[#allocation2 + $0x20] sm:$0x1] %v856_v45  ;;  %v675_v57 = vshll.u32 %v501_v35, 16  ;;  %v680_v58 = vshrl.u32 %v502_v40, 16  ;;  %v683_v59 = vshll.u32 %v502_v40, 16 }
  0xb0   : > { %16899 = vmatmul.mubr.bf16.vlgmr.msra.gmra.mrb[0].mxu0 %v15113_v51  ;;  %v4813_v62 = vsel %vm19541_vm7, %v4808_v53, %v4812_v37  ;;  %v982_v1 = vld [vmem:[#allocation2 + $0x1c] sm:$0xf]  ;;  %v674_v2 = vrot.slane %v672_v55, 7  ;;  %v553_v4 = vshrl.u32 %v487_v50, 16  ;;  %v556_v5 = vshll.u32 %v487_v50, 16  ;;  %v18273_v35 = vld [vmem:[%s22638_s1 + $0x10] sm:$0xff]  }
  0xb1   : > { %v4823_v6 = vsel %vm19541_vm7, %v4818_v56, %v4822_v48  ;;  %16915 = vmatpush3.bf16.msra.mxu0 %v19594_v13  ;;  %v1078_v7 = vshll.u32 %v982_v1, 16  ;;  %v1082_v8 = vshrl.u32 %v982_v1, 16  ;;  %v682_v9 = vrot.slane %v680_v58, 7  ;;  %v504_v33 = vld [vmem:[%s19532_s14 + $0x54] sm:$0xf]  ;;  %v18274_v40 = vld [vmem:[%s22638_s1 + $0x18] sm:$0xff]  }
  0xb2   : > { %v15446_v12 = vcombine.low %v4813_v62, %v4823_v6  ;;  %16916 = vmatprep.subr.bf16.mxu0 %v18270_v54  ;;  %v677_v14 = vor.u32 %v675_v57, %v674_v2  ;;  %v678_v15 = vrot.slane %v674_v2, 4  ;;  %v555_v16 = vrot.slane %v553_v4, 7  ;;  %v19672_v47 = vld [vmem:[%s19532_s14 + $0x18] sm:$0xf]  ;;  %v19675_v56 = vld [vmem:[%s19532_s14 + $0x1c] sm:$0xf] }
  0xb3   : > { %v19651_v17 = vrot.slane %v1078_v7, 5  ;;  %v1084_v18 = vrot.slane %v1082_v8, 4  ;;  %v685_v19 = vor.u32 %v683_v59, %v682_v9  ;;  %v687_v20 = vrot.slane %v682_v9, 4  ;;  %v19023_v34 = vld [vmem:[#allocation2 + $0x6c] sm:$0xf]  ;;  %s19128_s15 = scalar_lea.vmem %s19127_s12, 32 }
  0xb4   : > { %17187 = vmatmul.mubr.bf16.vlgmr.msra.gmra.mrb[0].mxu1 %v15446_v12  ;;  %v908_v13 = vsel %vm19550_vm8, %v677_v14, %v907_v60  ;;  %v558_v22 = vor.u32 %v556_v5, %v555_v16  ;;  %v559_v23 = vrot.slane %v555_v16, 4  ;;  %v561_v24 = vshrl.u32 %v488_v61, 16  ;;  %v914_v60 = vld [vmem:[#allocation2 + $0x84] sm:$0xf]  ;;  %p19130_p1 = scmp.lt.s32.totalorder %s19128_s15, %s19122_s19 }
  0xb5   : > { %17203 = vmatpush3.bf16.msra.mxu1 %v19603_v21  ;;  %16917 = vmatpush3.bf16.msra.mxu0 %v18270_v54  ;;  %v981_v27 = vld [vmem:[#allocation2 + $0x18] sm:$0xf]  ;;  %v1085_v28 = vor.u32 %v1084_v18, %v19651_v17  ;;  %v686_v29 = vsel %vm19564_vm9, %v678_v15, %v685_v19  ;;  %909 = vst [vmem:[#allocation2 + $0x78] sm:$0xf] %v908_v13  ;;  %v564_v31 = vshll.u32 %v488_v61, 16  ;;  %v689_v44 = vshrl.u32 %v503_v26, 16 }
  0xb6   : > { %v912_v30 = vsel %vm19573_vm10, %v687_v20, %v911_v3  ;;  %17204 = vmatprep.subr.bf16.mxu1 %v18271_v63  ;;  %v1011_v21 = vld [vmem:[#allocation2 + $0x20] sm:$0x1]  ;;  %v1069_v36 = vshrl.u32 %v981_v27, 16  ;;  %v1072_v37 = vshll.u32 %v981_v27, 16  ;;  %910 = vst [vmem:[#allocation2 + $0x7c] sm:$0xf] %v686_v29  ;;  %v859_v39 = vsel %vm19550_vm8, %v558_v22, %v858_v10  ;;  %16918 = vmatprep.subr.bf16.mxu0 %v18272_v11  ;;  %p19131_p6 = por %p19130_p1, %p19129_p13 }
  0xb7   : > { %913 = vst [vmem:[#allocation2 + $0x80] sm:$0x1] %v912_v30  ;;  %v563_v38 = vrot.slane %v561_v24, 7  ;;  %v1086_v41 = vrot.slane %v1085_v28, 4  ;;  %v1088_v42 = vshll.u32 %v1011_v21, 16  ;;  %v692_v46 = vshll.u32 %v503_v26, 16 }
  0xb8   : > { %860 = vst [vmem:[#allocation2 + $0x24] sm:$0xf] %v859_v39  ;;  %v1071_v48 = vrot.slane %v1069_v36, 4  ;;  %v1074_v49 = vrot.slane %v1072_v37, 5  ;;  %v691_v54 = vrot.slane %v689_v44, 7  ;;  %v697_v45 = vshrl.u32 %v504_v33, 16  ;;  %p19132_p9 = pnand %p19131_p6, %p19125_p11 }
  0xb9   : > { %v566_v50 = vor.u32 %v564_v31, %v563_v38  ;;  %v568_v51 = vrot.slane %v563_v38, 4  ;;  %17205 = vmatpush3.bf16.msra.mxu1 %v18271_v63  ;;  %v1090_v53 = vrot.slane %v1088_v42, 5  ;;  %v700_v55 = vshll.u32 %v504_v33, 16  ;;  %16919 = vmatpush3.bf16.msra.mxu0 %v18272_v11  ;;  %v18275_v61 = vld [vmem:[%s22638_s1 + $0x18] sm:$0xff]   ;;  %v18276_v63 = vld [vmem:[%s22638_s1 + $0x20] sm:$0xff]   ;;  %v18278_v29 = vld [vmem:[%s22638_s1 + $0x28] sm:$0xff]  }
  0xba   : > { %v1075_v57 = vor.u32 %v1074_v49, %v1071_v48  ;;  %17206 = vmatprep.subr.bf16.mxu1 %v18273_v35  ;;  %16920 = vmatprep.subr.bf16.mxu0 %v18274_v40  ;;  %v570_v62 = vshrl.u32 %v19672_v47, 16  ;;  %v694_v2 = vor.u32 %v692_v46, %v691_v54  ;;  %v695_v3 = vrot.slane %v691_v54, 4  ;;  %v18279_v33 = vld [vmem:[%s22638_s1 + $0x28] sm:$0xff]   ;;  %v18280_v39 = vld [vmem:[%s22638_s1 + $0x30] sm:$0xff]   ;;  %v19017_v0 = vld [vmem:[#allocation2 + $0x18] sm:$0xf] }
  0xbb   : > { %v567_v58 = vsel %vm19564_vm9, %v559_v23, %v566_v50  ;;  %v863_v59 = vsel %vm19573_vm10, %v568_v51, %v862_v32  ;;  %v1091_v1 = vsel %vm19541_vm7, %v1086_v41, %v1090_v53  ;;  %v699_v4 = vrot.slane %v697_v45, 7  ;;  %v18277_v23 = vld [vmem:[%s22638_s1 + $0x20] sm:$0xff]   ;;  %v918_v38 = vld [vmem:[#allocation2 + $0x8c] sm:$0x1] }
  0xbc   : > { %861 = vst [vmem:[#allocation2 + $0x28] sm:$0xf] %v567_v58  ;;  %864 = vst [vmem:[#allocation2 + $0x2c] sm:$0x1] %v863_v59  ;;  %v1076_v5 = vrot.slane %v1075_v57, 4  ;;  %v19690_v7 = vrot.slane %v570_v62, 7  ;;  %v915_v16 = vsel %vm19550_vm8, %v694_v2, %v914_v60 }
  0xbd   : > { %v4740_v6 = vld [vmem:[#allocation2 + $0x78] sm:$0xf]  ;;  %v573_v8 = vshll.u32 %v19672_v47, 16  ;;  %v578_v9 = vshrl.u32 %v19675_v56, 16  ;;  %v4741_v10 = vld [vmem:[#allocation2 + $0x7c] sm:$0xf]  ;;  %v702_v15 = vor.u32 %v700_v55, %v699_v4  ;;  %17207 = vmatpush3.bf16.msra.mxu1 %v18273_v35  ;;  %16921 = vmatpush3.bf16.msra.mxu0 %v18274_v40 }
  0xbe   : > { %v4770_v11 = vld [vmem:[#allocation2 + $0x80] sm:$0x1]  ;;  %v4825_v12 = vshrl.u32 %v4740_v6, 16  ;;  %v4828_v14 = vshll.u32 %v4740_v6, 16  ;;  %v1081_v18 = vsel %vm19541_vm7, %v1076_v5, %v19651_v17  ;;  %v4834_v19 = vshll.u32 %v4741_v10, 16  ;;  %17208 = vmatprep.subr.bf16.mxu1 %v18275_v61  ;;  %16922 = vmatprep.subr.bf16.mxu0 %v18276_v63 }
  0xbf   : > { %v4838_v20 = vshrl.u32 %v4741_v10, 16  ;;  %v4844_v13 = vshll.u32 %v4770_v11, 16  ;;  %v983_v22 = vld [vmem:[#allocation2 + $0x24] sm:$0xf]  ;;  %916 = vst [vmem:[#allocation2 + $0x84] sm:$0xf] %v915_v16  ;;  %v15114_v24 = vcombine.low %v1081_v18, %v1091_v1  ;;  %v703_v36 = vsel %vm19564_vm9, %v695_v3, %v702_v15 }
  0xc0   : > { %v4827_v26 = vrot.slane %v4825_v12, 4  ;;  %v4830_v27 = vrot.slane %v4828_v14, 5  ;;  %v1093_v28 = vshrl.u32 %v983_v22, 16  ;;  %v4836_v17 = vrot.slane %v4834_v19, 5  ;;  %917 = vst [vmem:[#allocation2 + $0x88] sm:$0xf] %v703_v36 }
  0xc1   : > { %v4840_v30 = vrot.slane %v4838_v20, 4  ;;  %v4846_v31 = vrot.slane %v4844_v13, 5  ;;  %v1096_v32 = vshll.u32 %v983_v22, 16  ;;  %16902 = vmatprep.mubr.bf16.mxu0 %v15114_v24  ;;  %v704_v37 = vrot.slane %v699_v4, 4  ;;  %17209 = vmatpush3.bf16.msra.mxu1 %v18275_v61  ;;  %v865_v57 = vld [vmem:[#allocation2 + $0x30] sm:$0xf] }
  0xc2   : > { %v4831_v35 = vor.u32 %v4830_v27, %v4827_v26  ;;  %v1095_v21 = vrot.slane %v1093_v28, 4  ;;  %v575_v46 = vor.u32 %v573_v8, %v19690_v7  ;;  %v576_v47 = vrot.slane %v19690_v7, 4  ;;  %17210 = vmatprep.subr.bf16.mxu1 %v18277_v23  ;;  %16923 = vmatpush3.bf16.msra.mxu0 %v18276_v63  ;;  %v869_v58 = vld [vmem:[#allocation2 + $0x38] sm:$0x1]  ;;  %v18281_v1 = vld [vmem:[%s22638_s1 + $0x30] sm:$0xff]  }
  0xc3   : > { %v4841_v40 = vor.u32 %v4840_v30, %v4836_v17  ;;  %v19713_v41 = vld [vmem:[#allocation2 + $0x28] sm:$0xf]  ;;  %v1012_v42 = vld [vmem:[#allocation2 + $0x2c] sm:$0x1]  ;;  %v1098_v44 = vrot.slane %v1096_v32, 5  ;;  %16924 = vmatprep.subr.bf16.mxu0 %v18278_v29  ;;  %v919_v45 = vsel %vm19573_vm10, %v704_v37, %v918_v38  ;;  %v580_v55 = vrot.slane %v578_v9, 7 }
  0xc4   : > { %v4832_v48 = vrot.slane %v4831_v35, 4  ;;  %v1102_v49 = vshll.u32 %v19713_v41, 16  ;;  %v1106_v50 = vshrl.u32 %v19713_v41, 16  ;;  %v1112_v51 = vshll.u32 %v1012_v42, 16  ;;  %920 = vst [vmem:[#allocation2 + $0x8c] sm:$0x1] %v919_v45 }
  0xc5   : > { %v4842_v53 = vrot.slane %v4841_v40, 4  ;;  %v1099_v54 = vor.u32 %v1098_v44, %v1095_v21  ;;  %17211 = vmatpush3.bf16.msra.mxu1 %v18277_v23  ;;  %v505_v6 = vld [vmem:[%s19532_s14 + $0x58] sm:$0xf]  ;;  %v581_v10 = vshll.u32 %v19675_v56, 16  ;;  %v585_v11 = vrot.slane %v580_v55, 4 }
  0xc6   : > { %v4837_v59 = vsel %vm19541_vm7, %v4832_v48, %v4836_v17  ;;  %v1104_v60 = vrot.slane %v1102_v49, 5  ;;  %v1108_v61 = vrot.slane %v1106_v50, 4  ;;  %v1114_v62 = vrot.slane %v1112_v51, 5  ;;  %v19723_v63 = vld [vmem:[#allocation2 + $0x84] sm:$0xf]  ;;  %17212 = vmatprep.subr.bf16.mxu1 %v18279_v33  ;;  %16925 = vmatpush3.bf16.msra.mxu0 %v18278_v29  ;;  %v18282_v7 = vld [vmem:[%s22638_s1 + $0x38] sm:$0xff]  }
  0xc7   : > { %v4847_v2 = vsel %vm19541_vm7, %v4842_v53, %v4846_v31  ;;  %v1100_v3 = vrot.slane %v1099_v54, 4  ;;  %v4849_v4 = vshrl.u32 %v19723_v63, 16  ;;  %v4852_v5 = vshll.u32 %v19723_v63, 16  ;;  %v506_v12 = vld [vmem:[%s19532_s14 + $0x5c] sm:$0xf]  ;;  %16926 = vmatprep.subr.bf16.mxu0 %v18280_v39  ;;  %v19767_v54 = vld [vmem:[%s22638_s1 + $0x80] sm:$0xff]  }
  0xc8   : > { %v15447_v8 = vcombine.low %v4837_v59, %v4847_v2  ;;  %v1109_v9 = vor.u32 %v1108_v61, %v1104_v60  ;;  %v866_v18 = vsel %vm19550_vm8, %v575_v46, %v865_v57  ;;  %v19742_v20 = vld [vmem:[#allocation2 + $0x88] sm:$0xf]  ;;  %v583_v13 = vor.u32 %v581_v10, %v580_v55  ;;  %v921_v28 = vld [vmem:[#allocation2 + $0x90] sm:$0xf]  ;;  %v18283_v29 = vld [vmem:[%s22638_s1 + $0x38] sm:$0xff]  }
  0xc9   : > { %v1105_v14 = vsel %vm19541_vm7, %v1100_v3, %v1104_v60  ;;  %v4851_v15 = vrot.slane %v4849_v4, 4  ;;  %v4854_v16 = vrot.slane %v4852_v5, 5  ;;  %867 = vst [vmem:[#allocation2 + $0x30] sm:$0xf] %v866_v18  ;;  %v870_v56 = vsel %vm19573_vm10, %v585_v11, %v869_v58  ;;  %17213 = vmatpush3.bf16.msra.mxu1 %v18279_v33  ;;  %v491_v33 = vld [vmem:[%s19532_s14 + $0x20] sm:$0xf] }
  0xca   : > { %17190 = vmatprep.mubr.bf16.mxu1 %v15447_v8  ;;  %v1110_v19 = vrot.slane %v1109_v9, 4  ;;  %v706_v22 = vshrl.u32 %v505_v6, 16  ;;  %v4858_v24 = vshll.u32 %v19742_v20, 16  ;;  %v4862_v26 = vshrl.u32 %v19742_v20, 16  ;;  %871 = vst [vmem:[#allocation2 + $0x38] sm:$0x1] %v870_v56  ;;  %17214 = vmatprep.subr.bf16.mxu1 %v18281_v1 }
  0xcb   : > { %v4855_v23 = vor.u32 %v4854_v16, %v4851_v15  ;;  %v709_v27 = vshll.u32 %v505_v6, 16  ;;  %16927 = vmatpush3.bf16.msra.mxu0 %v18280_v39  ;;  %v584_v30 = vsel %vm19564_vm9, %v576_v47, %v583_v13  ;;  %v714_v32 = vshrl.u32 %v506_v12, 16  ;;  %v4771_v21 = vld [vmem:[#allocation2 + $0x8c] sm:$0x1]  ;;  %v19759_v39 = vld [vmem:[%s22638_s1 + $0x80] sm:$0xff]  }
  0xcc   : > { %v1115_v17 = vsel %vm19541_vm7, %v1110_v19, %v1114_v62  ;;  %v708_v31 = vrot.slane %v706_v22, 7  ;;  %16928 = vmatprep.subr.bf16.mxu0 %v18282_v7  ;;  %v4860_v37 = vrot.slane %v4858_v24, 5  ;;  %v4864_v38 = vrot.slane %v4862_v26, 4  ;;  %868 = vst [vmem:[#allocation2 + $0x34] sm:$0xf] %v584_v30 }
  0xcd   : > { %v15115_v35 = vcombine.low %v1105_v14, %v1115_v17  ;;  %v4856_v36 = vrot.slane %v4855_v23, 4  ;;  %v4868_v40 = vshll.u32 %v4771_v21, 16  ;;  %v716_v46 = vrot.slane %v714_v32, 7  ;;  %v492_v47 = vld [vmem:[%s19532_s14 + $0x24] sm:$0xf]  ;;  %17215 = vmatpush3.bf16.msra.mxu1 %v18281_v1 }
  0xce   : > { %v711_v42 = vor.u32 %v709_v27, %v708_v31  ;;  %v712_v44 = vrot.slane %v708_v31, 4  ;;  %v4865_v49 = vor.u32 %v4864_v38, %v4860_v37  ;;  %v717_v50 = vshll.u32 %v506_v12, 16  ;;  %v925_v51 = vld [vmem:[#allocation2 + $0x98] sm:$0x1]  ;;  %17216 = vmatprep.subr.bf16.mxu1 %v18283_v29  ;;  %v872_v11 = vld [vmem:[#allocation2 + $0x3c] sm:$0xf] }
  0xcf   : > { %16903 = vmatmul.mubr.bf16.gmra.mrb[4].mxu0 %v15115_v35  ;;  %v4861_v48 = vsel %vm19541_vm7, %v4856_v36, %v4860_v37  ;;  %v587_v53 = vshrl.u32 %v491_v33, 16  ;;  %v4870_v45 = vrot.slane %v4868_v40, 5  ;;  %v721_v55 = vrot.slane %v716_v46, 4  ;;  %v507_v12 = vld [vmem:[%s19532_s14 + $0x60] sm:$0xf] }
  0xd0   : > { %v922_v57 = vsel %vm19550_vm8, %v711_v42, %v921_v28  ;;  %v590_v58 = vshll.u32 %v491_v33, 16  ;;  %16929 = vmatpush3.bf16.msra.mxu0 %v18282_v7  ;;  %v4866_v59 = vrot.slane %v4865_v49, 4  ;;  %v19771_v60 = vld [vmem:[#allocation2 + $0x30] sm:$0xf]  ;;  %v719_v61 = vor.u32 %v717_v50, %v716_v46  ;;  %v508_v24 = vld [vmem:[%s19532_s14 + $0x64] sm:$0xf] }
  0xd1   : > { %923 = vst [vmem:[#allocation2 + $0x90] sm:$0xf] %v922_v57  ;;  %v589_v62 = vrot.slane %v587_v53, 7  ;;  %v595_v1 = vshrl.u32 %v492_v47, 16  ;;  %16946 = vmatprep.subr.bf16.mxu0 %v19759_v39  ;;  %v19774_v2 = vld [vmem:[#allocation2 + $0x38] sm:$0x1]  ;;  %v926_v5 = vsel %vm19573_vm10, %v721_v55, %v925_v51  ;;  %17217 = vmatpush3.bf16.msra.mxu1 %v18283_v29 }
  0xd2   : > { %v1117_v3 = vshrl.u32 %v19771_v60, 16  ;;  %v1120_v4 = vshll.u32 %v19771_v60, 16  ;;  %v598_v6 = vshll.u32 %v492_v47, 16  ;;  %v4871_v7 = vsel %vm19541_vm7, %v4866_v59, %v4870_v45  ;;  %927 = vst [vmem:[#allocation2 + $0x98] sm:$0x1] %v926_v5  ;;  %17234 = vmatprep.subr.bf16.mxu1 %v19767_v54 }
  0xd3   : > { %v1136_v8 = vshll.u32 %v19774_v2, 16  ;;  %v720_v9 = vsel %vm19564_vm9, %v712_v44, %v719_v61  ;;  %v592_v10 = vor.u32 %v590_v58, %v589_v62  ;;  %v15448_v14 = vcombine.low %v4861_v48, %v4871_v7  ;;  %v19787_v15 = vld [vmem:[#allocation2 + $0x34] sm:$0xf]  ;;  %v876_v28 = vld [vmem:[#allocation2 + $0x44] sm:$0x1] }
  0xd4   : > { %v1119_v16 = vrot.slane %v1117_v3, 4  ;;  %v1122_v18 = vrot.slane %v1120_v4, 5  ;;  %924 = vst [vmem:[#allocation2 + $0x94] sm:$0xf] %v720_v9  ;;  %v593_v19 = vrot.slane %v589_v62, 4  ;;  %v1126_v13 = vshll.u32 %v19787_v15, 16 }
  0xd5   : > { %v1130_v56 = vshrl.u32 %v19787_v15, 16  ;;  %v1138_v22 = vrot.slane %v1136_v8, 5  ;;  %v597_v23 = vrot.slane %v595_v1, 7  ;;  %17191 = vmatmul.mubr.bf16.gmra.mrb[4].mxu1 %v15448_v14  ;;  %v873_v27 = vsel %vm19550_vm8, %v592_v10, %v872_v11  ;;  %v928_v35 = vld [vmem:[#allocation2 + $0x9c] sm:$0xf] }
  0xd6   : > { %v1123_v26 = vor.u32 %v1122_v18, %v1119_v16  ;;  %v723_v29 = vshrl.u32 %v507_v12, 16  ;;  %v726_v17 = vshll.u32 %v507_v12, 16  ;;  %v1128_v30 = vrot.slane %v1126_v13, 5  ;;  %874 = vst [vmem:[#allocation2 + $0x3c] sm:$0xf] %v873_v27 }
  0xd7   : > { %v1132_v31 = vrot.slane %v1130_v56, 4  ;;  %v600_v32 = vor.u32 %v598_v6, %v597_v23  ;;  %v602_v33 = vrot.slane %v597_v23, 4  ;;  %v731_v38 = vshrl.u32 %v508_v24, 16  ;;  %v493_v48 = vld [vmem:[%s19532_s14 + $0x28] sm:$0xf] }
  0xd8   : > { %v1124_v21 = vrot.slane %v1123_v26, 4  ;;  %v19794_v36 = vld [vmem:[#allocation2 + $0x90] sm:$0xf]  ;;  %v725_v37 = vrot.slane %v723_v29, 7  ;;  %v734_v40 = vshll.u32 %v508_v24, 16  ;;  %v604_v9 = vshrl.u32 %v493_v48, 16 }
  0xd9   : > { %v1133_v42 = vor.u32 %v1132_v31, %v1128_v30  ;;  %v4873_v44 = vshrl.u32 %v19794_v36, 16  ;;  %v4876_v46 = vshll.u32 %v19794_v36, 16  ;;  %v601_v47 = vsel %vm19564_vm9, %v593_v19, %v600_v32  ;;  %v19803_v50 = vld [vmem:[#allocation2 + $0x98] sm:$0x1]  ;;  %v932_v8 = vld [vmem:[#allocation2 + $0xa4] sm:$0x1] }
  0xda   : > { %v1129_v49 = vsel %vm19541_vm7, %v1124_v21, %v1128_v30  ;;  %875 = vst [vmem:[#allocation2 + $0x40] sm:$0xf] %v601_v47  ;;  %v877_v51 = vsel %vm19573_vm10, %v602_v33, %v876_v28  ;;  %v728_v53 = vor.u32 %v726_v17, %v725_v37  ;;  %v729_v45 = vrot.slane %v725_v37, 4  ;;  %v494_v18 = vld [vmem:[%s19532_s14 + $0x2c] sm:$0xf] }
  0xdb   : > { %v1134_v55 = vrot.slane %v1133_v42, 4  ;;  %v19807_v57 = vld [vmem:[#allocation2 + $0x94] sm:$0xf]  ;;  %v4875_v58 = vrot.slane %v4873_v44, 4  ;;  %v4878_v59 = vrot.slane %v4876_v46, 5  ;;  %v4892_v61 = vshll.u32 %v19803_v50, 16 }
  0xdc   : > { %878 = vst [vmem:[#allocation2 + $0x44] sm:$0x1] %v877_v51  ;;  %v4882_v62 = vshll.u32 %v19807_v57, 16  ;;  %v4886_v1 = vshrl.u32 %v19807_v57, 16  ;;  %v733_v3 = vrot.slane %v731_v38, 7  ;;  %v929_v4 = vsel %vm19550_vm8, %v728_v53, %v928_v35 }
  0xdd   : > { %v1139_v5 = vsel %vm19541_vm7, %v1134_v55, %v1138_v22  ;;  %v4879_v6 = vor.u32 %v4878_v59, %v4875_v58  ;;  %v4894_v7 = vrot.slane %v4892_v61, 5  ;;  %930 = vst [vmem:[#allocation2 + $0x9c] sm:$0xf] %v929_v4  ;;  %v19816_v14 = vld [vmem:[#allocation2 + $0x3c] sm:$0xf]  ;;  %v606_v26 = vrot.slane %v604_v9, 7 }
  0xde   : > { %v15116_v10 = vcombine.low %v1129_v49, %v1139_v5  ;;  %v4884_v11 = vrot.slane %v4882_v62, 5  ;;  %v4888_v12 = vrot.slane %v4886_v1, 4  ;;  %v736_v16 = vor.u32 %v734_v40, %v733_v3  ;;  %v879_v32 = vld [vmem:[#allocation2 + $0x48] sm:$0xf]  ;;  %v510_v55 = vld [vmem:[%s19532_s14 + $0x6c] sm:$0xf] }
  0xdf   : > { %v4880_v19 = vrot.slane %v4879_v6, 4  ;;  %v1141_v13 = vshrl.u32 %v19816_v14, 16  ;;  %v1144_v56 = vshll.u32 %v19816_v14, 16  ;;  %v738_v23 = vrot.slane %v733_v3, 4  ;;  %v509_v40 = vld [vmem:[%s19532_s14 + $0x68] sm:$0xf] }
  0xe0   : > { %16906 = vmatprep.mubr.bf16.mxu0 %v15116_v10  ;;  %v4889_v22 = vor.u32 %v4888_v12, %v4884_v11  ;;  %v737_v24 = vsel %vm19564_vm9, %v729_v45, %v736_v16  ;;  %v607_v27 = vshll.u32 %v493_v48, 16  ;;  %v610_v46 = vrot.slane %v606_v26, 4  ;;  %v883_v6 = vld [vmem:[#allocation2 + $0x50] sm:$0x1]  ;;  %v20033_v25 = vld [vmem:[#allocation2 + $0x30] sm:$0xe] }
  0xe1   : > { %v4885_v28 = vsel %vm19541_vm7, %v4880_v19, %v4884_v11  ;;  %v19825_v29 = vld [vmem:[#allocation2 + $0x40] sm:$0xf]  ;;  %v1143_v17 = vrot.slane %v1141_v13, 4  ;;  %v1146_v30 = vrot.slane %v1144_v56, 5  ;;  %931 = vst [vmem:[#allocation2 + $0xa0] sm:$0xf] %v737_v24  ;;  %v933_v31 = vsel %vm19573_vm10, %v738_v23, %v932_v8 }
  0xe2   : > { %v4890_v33 = vrot.slane %v4889_v22, 4  ;;  %v1150_v21 = vshll.u32 %v19825_v29, 16  ;;  %v1154_v37 = vshrl.u32 %v19825_v29, 16  ;;  %934 = vst [vmem:[#allocation2 + $0xa4] sm:$0x1] %v933_v31  ;;  %v609_v38 = vor.u32 %v607_v27, %v606_v26  ;;  %22722 = vst [vmem:[#allocation33_spill] sm:$0xff] %v20033_v25 }
  0xe3   : > { %v19829_v35 = vld [vmem:[#allocation2 + $0x44] sm:$0x1]  ;;  %v1147_v42 = vor.u32 %v1146_v30, %v1143_v17  ;;  %v612_v47 = vshrl.u32 %v494_v18, 16  ;;  %v615_v45 = vshll.u32 %v494_v18, 16  ;;  %v740_v9 = vshrl.u32 %v509_v40, 16 }
  0xe4   : > { %v1160_v44 = vshll.u32 %v19829_v35, 16  ;;  %v4895_v48 = vsel %vm19541_vm7, %v4890_v33, %v4894_v7  ;;  %v1152_v49 = vrot.slane %v1150_v21, 5  ;;  %v1156_v51 = vrot.slane %v1154_v37, 4  ;;  %v19837_v53 = vld [vmem:[#allocation2 + $0x9c] sm:$0xf] }
  0xe5   : > { %v15449_v58 = vcombine.low %v4885_v28, %v4895_v48  ;;  %v1148_v59 = vrot.slane %v1147_v42, 4  ;;  %v4897_v62 = vshrl.u32 %v19837_v53, 16  ;;  %v4900_v3 = vshll.u32 %v19837_v53, 16  ;;  %v495_v13 = vld [vmem:[%s19532_s14 + $0x30] sm:$0xf] }
  0xe6   : > { %v1162_v61 = vrot.slane %v1160_v44, 5  ;;  %v1157_v1 = vor.u32 %v1156_v51, %v1152_v49  ;;  %v614_v4 = vrot.slane %v612_v47, 7  ;;  %v880_v5 = vsel %vm19550_vm8, %v609_v38, %v879_v32  ;;  %v935_v27 = vld [vmem:[#allocation2 + $0xa8] sm:$0xf]  ;;  %v496_v28 = vld [vmem:[%s19532_s14 + $0x34] sm:$0xf] }
  0xe7   : > { %17194 = vmatprep.mubr.bf16.mxu1 %v15449_v58  ;;  %v1153_v7 = vsel %vm19541_vm7, %v1148_v59, %v1152_v49  ;;  %v4899_v8 = vrot.slane %v4897_v62, 4  ;;  %881 = vst [vmem:[#allocation2 + $0x48] sm:$0xf] %v880_v5  ;;  %v743_v10 = vshll.u32 %v509_v40, 16  ;;  %v4902_v16 = vrot.slane %v4900_v3, 5 }
  0xe8   : > { %v1158_v11 = vrot.slane %v1157_v1, 4  ;;  %v19846_v12 = vld [vmem:[#allocation2 + $0xa0] sm:$0xf]  ;;  %v617_v18 = vor.u32 %v615_v45, %v614_v4  ;;  %v619_v19 = vrot.slane %v614_v4, 4  ;;  %v742_v24 = vrot.slane %v740_v9, 7 }
  0xe9   : > { %v19849_v56 = vld [vmem:[#allocation2 + $0xa4] sm:$0x1]  ;;  %v4906_v23 = vshll.u32 %v19846_v12, 16  ;;  %v4910_v22 = vshrl.u32 %v19846_v12, 16  ;;  %v748_v26 = vshrl.u32 %v510_v55, 16  ;;  %v4903_v30 = vor.u32 %v4902_v16, %v4899_v8 }
  0xea   : > { %v1163_v17 = vsel %vm19541_vm7, %v1158_v11, %v1162_v61  ;;  %v4916_v31 = vshll.u32 %v19849_v56, 16  ;;  %v618_v32 = vsel %vm19564_vm9, %v610_v46, %v617_v18  ;;  %v884_v38 = vsel %vm19573_vm10, %v619_v19, %v883_v6  ;;  %v939_v45 = vld [vmem:[#allocation2 + $0xb0] sm:$0x1] }
  0xeb   : > { %v15117_v33 = vcombine.low %v1153_v7, %v1163_v17  ;;  %v4908_v21 = vrot.slane %v4906_v23, 5  ;;  %v4912_v37 = vrot.slane %v4910_v22, 4  ;;  %882 = vst [vmem:[#allocation2 + $0x4c] sm:$0xf] %v618_v32  ;;  %v4904_v40 = vrot.slane %v4903_v30, 4 }
  0xec   : > { %v4918_v42 = vrot.slane %v4916_v31, 5  ;;  %885 = vst [vmem:[#allocation2 + $0x50] sm:$0x1] %v884_v38  ;;  %v745_v44 = vor.u32 %v743_v10, %v742_v24  ;;  %v746_v47 = vrot.slane %v742_v24, 4  ;;  %v750_v49 = vrot.slane %v748_v26, 7 }
  0xed   : > { %16907 = vmatmul.mubr.bf16.gmra.mrb[8].mxu0 %v15117_v33  ;;  %v4913_v48 = vor.u32 %v4912_v37, %v4908_v21  ;;  %v751_v51 = vshll.u32 %v510_v55, 16  ;;  %v621_v58 = vshrl.u32 %v495_v13, 16  ;;  %v4909_v46 = vsel %vm19541_vm7, %v4904_v40, %v4908_v21  ;;  %v886_v55 = vld [vmem:[#allocation2 + $0x54] sm:$0xf]  ;;  %v511_v7 = vld [vmem:[%s19532_s14 + $0x70] sm:$0xf] }
  0xee   : > { %v19863_v59 = vld [vmem:[#allocation2 + $0x48] sm:$0xf]  ;;  %v936_v61 = vsel %vm19550_vm8, %v745_v44, %v935_v27  ;;  %v624_v62 = vshll.u32 %v495_v13, 16  ;;  %v629_v1 = vshrl.u32 %v496_v28, 16  ;;  %v755_v8 = vrot.slane %v750_v49, 4 }
  0xef   : > { %v4914_v3 = vrot.slane %v4913_v48, 4  ;;  %v1165_v4 = vshrl.u32 %v19863_v59, 16  ;;  %v1168_v5 = vshll.u32 %v19863_v59, 16  ;;  %v753_v6 = vor.u32 %v751_v51, %v750_v49  ;;  %937 = vst [vmem:[#allocation2 + $0xa8] sm:$0xf] %v936_v61 }
  0xf0   : > { %v623_v9 = vrot.slane %v621_v58, 7  ;;  %v631_v10 = vrot.slane %v629_v1, 7  ;;  %v632_v11 = vshll.u32 %v496_v28, 16  ;;  %v890_v23 = vld [vmem:[#allocation2 + $0x5c] sm:$0x1]  ;;  %v940_v26 = vsel %vm19573_vm10, %v755_v8, %v939_v45 }
  0xf1   : > { %v4919_v16 = vsel %vm19541_vm7, %v4914_v3, %v4918_v42  ;;  %v1167_v18 = vrot.slane %v1165_v4, 4  ;;  %v1170_v19 = vrot.slane %v1168_v5, 5  ;;  %v754_v13 = vsel %vm19564_vm9, %v746_v47, %v753_v6  ;;  %941 = vst [vmem:[#allocation2 + $0xb0] sm:$0x1] %v940_v26  ;;  %v512_v21 = vld [vmem:[%s19532_s14 + $0x74] sm:$0xf] }
  0xf2   : > { %v15450_v22 = vcombine.low %v4909_v46, %v4919_v16  ;;  %v19874_v24 = vld [vmem:[#allocation2 + $0x4c] sm:$0xf]  ;;  %938 = vst [vmem:[#allocation2 + $0xac] sm:$0xf] %v754_v13  ;;  %v626_v27 = vor.u32 %v624_v62, %v623_v9  ;;  %v627_v17 = vrot.slane %v623_v9, 4  ;;  %v634_v33 = vor.u32 %v632_v11, %v631_v10 }
  0xf3   : > { %v19878_v28 = vld [vmem:[#allocation2 + $0x50] sm:$0x1]  ;;  %v1171_v30 = vor.u32 %v1170_v19, %v1167_v18  ;;  %v1174_v31 = vshll.u32 %v19874_v24, 16  ;;  %v1178_v32 = vshrl.u32 %v19874_v24, 16  ;;  %v636_v38 = vrot.slane %v631_v10, 4 }
  0xf4   : > { %17195 = vmatmul.mubr.bf16.gmra.mrb[8].mxu1 %v15450_v22  ;;  %v1184_v37 = vshll.u32 %v19878_v28, 16  ;;  %v887_v40 = vsel %vm19550_vm8, %v626_v27, %v886_v55  ;;  %v757_v42 = vshrl.u32 %v511_v7, 16  ;;  %v635_v49 = vsel %vm19564_vm9, %v627_v17, %v634_v33  ;;  %v942_v51 = vld [vmem:[#allocation2 + $0xb4] sm:$0xf] }
  0xf5   : > { %v1172_v44 = vrot.slane %v1171_v30, 4  ;;  %v1176_v47 = vrot.slane %v1174_v31, 5  ;;  %v1180_v48 = vrot.slane %v1178_v32, 4  ;;  %888 = vst [vmem:[#allocation2 + $0x54] sm:$0xf] %v887_v40  ;;  %v891_v46 = vsel %vm19573_vm10, %v636_v38, %v890_v23 }
  0xf6   : > { %v1186_v45 = vrot.slane %v1184_v37, 5  ;;  %v19888_v58 = vld [vmem:[#allocation2 + $0xa8] sm:$0xf]  ;;  %889 = vst [vmem:[#allocation2 + $0x58] sm:$0xf] %v635_v49  ;;  %v759_v61 = vrot.slane %v757_v42, 7 }
  0xf7   : > { %v760_v62 = vshll.u32 %v511_v7, 16  ;;  %v1181_v1 = vor.u32 %v1180_v48, %v1176_v47  ;;  %v4921_v3 = vshrl.u32 %v19888_v58, 16  ;;  %v4924_v4 = vshll.u32 %v19888_v58, 16  ;;  %892 = vst [vmem:[#allocation2 + $0x5c] sm:$0x1] %v891_v46 }
  0xf8   : > { %v1177_v5 = vsel %vm19541_vm7, %v1172_v44, %v1176_v47  ;;  %v765_v55 = vshrl.u32 %v512_v21, 16  ;;  %v768_v8 = vshll.u32 %v512_v21, 16  ;;  %v763_v18 = vrot.slane %v759_v61, 4  ;;  %v19898_v19 = vld [vmem:[#allocation2 + $0xb0] sm:$0x1] }
  0xf9   : > { %v762_v6 = vor.u32 %v760_v62, %v759_v61  ;;  %v1182_v9 = vrot.slane %v1181_v1, 4  ;;  %v19896_v10 = vld [vmem:[#allocation2 + $0xac] sm:$0xf]  ;;  %v4923_v11 = vrot.slane %v4921_v3, 4  ;;  %v4926_v16 = vrot.slane %v4924_v4, 5 }
  0xfa   : > { %v4930_v7 = vshll.u32 %v19896_v10, 16  ;;  %v4934_v13 = vshrl.u32 %v19896_v10, 16  ;;  %v767_v23 = vrot.slane %v765_v55, 7  ;;  %v4940_v17 = vshll.u32 %v19898_v19, 16  ;;  %v946_v47 = vld [vmem:[#allocation2 + $0xbc] sm:$0x1] }
  0xfb   : > { %v943_v22 = vsel %vm19550_vm8, %v762_v6, %v942_v51  ;;  %v1187_v26 = vsel %vm19541_vm7, %v1182_v9, %v1186_v45  ;;  %v4927_v27 = vor.u32 %v4926_v16, %v4923_v11  ;;  %vm4664_vm15 = vcmask 1042434  }
  0xfc   : > { %944 = vst [vmem:[#allocation2 + $0xb4] sm:$0xf] %v943_v22  ;;  %v15118_v30 = vcombine.low %v1177_v5, %v1187_v26  ;;  %v4932_v31 = vrot.slane %v4930_v7, 5  ;;  %v4936_v32 = vrot.slane %v4934_v13, 4  ;;  %v19907_v33 = vld [vmem:[#allocation2 + $0x54] sm:$0xf]  ;;  %v770_v21 = vor.u32 %v768_v8, %v767_v23 }
  0xfd   : > { %v4928_v37 = vrot.slane %v4927_v27, 4  ;;  %v4942_v38 = vrot.slane %v4940_v17, 5  ;;  %v19909_v40 = vld [vmem:[#allocation2 + $0x58] sm:$0xf]  ;;  %v1189_v42 = vshrl.u32 %v19907_v33, 16  ;;  %v1192_v44 = vshll.u32 %v19907_v33, 16 }
  0xfe   : > { %16910 = vmatprep.mubr.bf16.mxu0 %v15118_v30  ;;  %v4937_v48 = vor.u32 %v4936_v32, %v4932_v31  ;;  %v19913_v49 = vld [vmem:[#allocation2 + $0x5c] sm:$0x1]  ;;  %v1198_v51 = vshll.u32 %v19909_v40, 16  ;;  %v1202_v45 = vshrl.u32 %v19909_v40, 16  ;;  %v771_v46 = vsel %vm19564_vm9, %v763_v18, %v770_v21  ;;  %v20027_v32 = vld [vmem:[#allocation2 + $0x80] sm:$0x1] }
  0xff   : > { %v4933_v61 = vsel %vm19541_vm7, %v4928_v37, %v4932_v31  ;;  %v1191_v62 = vrot.slane %v1189_v42, 4  ;;  %v1194_v1 = vrot.slane %v1192_v44, 5  ;;  %v1208_v3 = vshll.u32 %v19913_v49, 16  ;;  %945 = vst [vmem:[#allocation2 + $0xb8] sm:$0xf] %v771_v46  ;;  %22721 = vst [vmem:[#allocation32_spill] sm:$0xff] %v20027_v32 }
 0x100   : > { %v4938_v4 = vrot.slane %v4937_v48, 4  ;;  %v1200_v5 = vrot.slane %v1198_v51, 5  ;;  %v1204_v6 = vrot.slane %v1202_v45, 4  ;;  %v772_v55 = vrot.slane %v767_v23, 4  ;;  %v19938_v42 = vld [vmem:[#allocation2 + $0x4] sm:$0xf] }
 0x101   : > { %v1195_v8 = vor.u32 %v1194_v1, %v1191_v62  ;;  %v1210_v9 = vrot.slane %v1208_v3, 5  ;;  %v19945_v3 = vld [vmem:[#allocation2 + $0x8] sm:$0x1]  ;;  %vm4666_vm0 = vcmask 1043459   ;;  %vm4668_vm1 = vcmask 1044484  }
 0x102   : > { %v4943_v11 = vsel %vm19541_vm7, %v4938_v4, %v4942_v38  ;;  %v1205_v16 = vor.u32 %v1204_v6, %v1200_v5  ;;  %v947_v18 = vsel %vm19573_vm10, %v772_v55, %v946_v47  ;;  %v19006_v38 = vld [vmem:[#allocation2] sm:$0xf]  ;;  %v19987_v6 = vld [vmem:[#allocation2 + $0x70] sm:$0xf]  ;;  %vm4670_vm2 = vcmask 1045509  }
 0x103   : > { %v19926_v7 = vld [vmem:[#allocation2 + $0xb4] sm:$0xf]  ;;  %v15451_v13 = vcombine.low %v4933_v61, %v4943_v11  ;;  %v1196_v22 = vrot.slane %v1195_v8, 4  ;;  %948 = vst [vmem:[#allocation2 + $0xbc] sm:$0x1] %v947_v18  ;;  %v15128_v44 = vcombine.low %v19006_v38, %v19938_v42  ;;  %v22661_v38 = vrot.slane %v19938_v42, 5 }
 0x104   : > { %v4945_v26 = vshrl.u32 %v19926_v7, 16  ;;  %v4948_v27 = vshll.u32 %v19926_v7, 16  ;;  %v1206_v17 = vrot.slane %v1205_v16, 4  ;;  %v19955_v16 = vld [vmem:[#allocation2 + $0x74] sm:$0x1]  ;;  %22716 = vst [vmem:[#allocation27_spill] sm:$0xff] %v19987_v6  ;;  %v15462_v43 = vcombine.low %v19023_v34, %v19987_v6 }
 0x105   : > { %17198 = vmatprep.mubr.bf16.mxu1 %v15451_v13  ;;  %v1201_v23 = vsel %vm19541_vm7, %v1196_v22, %v1200_v5  ;;  %v19948_v5 = vld [vmem:[#allocation2 + $0x68] sm:$0x1]  ;;  %22714 = vst [vmem:[#allocation25_spill] sm:$0xff] %v19955_v16  ;;  %v19012_v13 = vld [vmem:[#allocation2 + $0xc] sm:$0xf]  ;;  %v22668_v11 = vrot.slane %v19987_v6, 5 }
 0x106   : > { %v4947_v30 = vrot.slane %v4945_v26, 4  ;;  %v4950_v31 = vrot.slane %v4948_v27, 5  ;;  %v1211_v21 = vsel %vm19541_vm7, %v1206_v17, %v1210_v9  ;;  %v19936_v37 = vld [vmem:[#allocation2 + $0xb8] sm:$0xf]  ;;  %v19952_v9 = vld [vmem:[#allocation2 + $0x14] sm:$0x1] }
 0x107   : > { %v15119_v47 = vcombine.low %v1201_v23, %v1211_v21  ;;  %v4954_v51 = vshll.u32 %v19936_v37, 16  ;;  %v4958_v45 = vshrl.u32 %v19936_v37, 16  ;;  %v19958_v22 = vld [vmem:[#allocation2 + $0x10] sm:$0xf]  ;;  %v19961_v27 = vld [vmem:[#allocation2] sm:$0xe] }
 0x108   : > { %v4951_v48 = vor.u32 %v4950_v31, %v4947_v30  ;;  %v15129_v26 = vcombine.low %v19012_v13, %v19958_v22  ;;  %v19963_v17 = vld [vmem:[#allocation2 + $0x60] sm:$0xe]  ;;  %v18290_v21 = vld [vmem:[%s22638_s1 + $0x88] sm:$0xff]   ;;  %v19984_v13 = vld [vmem:[#allocation2 + $0x1c] sm:$0xf]  ;;  %v20021_v4 = vrot.slane %v22668_v11, 4 }
 0x109   : > { %16911 = vmatmul.mubr.bf16.gmra.mrb[12].mxu0 %v15119_v47  ;;  %v4956_v61 = vrot.slane %v4954_v51, 5  ;;  %v4960_v62 = vrot.slane %v4958_v45, 4  ;;  %v19973_v47 = vld [vmem:[#allocation2 + $0x6c] sm:$0xe]  ;;  %v22663_v45 = vrot.slane %v19958_v22, 5  ;;  %v15130_v18 = vcombine.low %v19017_v0, %v19984_v13 }
 0x10a   : > { %v4952_v46 = vrot.slane %v4951_v48, 4  ;;  %v19943_v1 = vld [vmem:[#allocation2 + $0xbc] sm:$0x1]  ;;  %16930 = vmatprep.mubr.bf16.mxu0 %v15128_v44  ;;  %v19971_v44 = vld [vmem:[#allocation2 + $0xc] sm:$0xe]  ;;  %22715 = vst [vmem:[#allocation26_spill] sm:$0xff] %v19973_v47 }
 0x10b   : > { %v4961_v55 = vor.u32 %v4960_v62, %v4956_v61  ;;  %v4964_v8 = vshll.u32 %v19943_v1, 16  ;;  %v19975_v48 = vld [vmem:[#allocation2 + $0x64] sm:$0xf]  ;;  %v19979_v62 = vld [vmem:[#allocation2 + $0x18] sm:$0xe]  ;;  %v20000_v0 = vrot.slane %v22661_v38, 4 }
 0x10c   : > { %v4957_v23 = vsel %vm19541_vm7, %v4952_v46, %v4956_v61  ;;  %v22662_v51 = vrot.slane %v19975_v48, 5  ;;  %v19015_v61 = vld [vmem:[#allocation2 + $0x60] sm:$0xf]  ;;  %v20016_v38 = vld [vmem:[#allocation2 + $0x7c] sm:$0xf]  ;;  %22720 = vst [vmem:[#allocation31_spill] sm:$0xff] %v20021_v4  ;;  %v15133_v4 = vcombine.low %v19816_v14, %v19825_v29 }
 0x10d   : > { %v4962_v30 = vrot.slane %v4961_v55, 4  ;;  %v4966_v31 = vrot.slane %v4964_v8, 5  ;;  %v15461_v55 = vcombine.low %v19015_v61, %v19975_v48  ;;  %22719 = vst [vmem:[#allocation30_spill] sm:$0xff] %v20016_v38  ;;  %v19022_v61 = vld [vmem:[#allocation2 + $0x24] sm:$0xf]  ;;  %v22723_v32 = vrot.slane %v19984_v13, 5 }
 0x10e   : > { %v15131_v52 = vcombine.low %v19022_v61, %v19713_v41  ;;  %v5358_v11 = vld [vmem:[#allocation2 + $0x90] sm:$0xe]  ;;  %v1604_v61 = vld [vmem:[#allocation2 + $0x3c] sm:$0xe]  ;;  %v20057_v16 = vld [vmem:[#allocation2 + $0x2c] sm:$0x1] }
 0x10f   : > { %v4967_v46 = vsel %vm19541_vm7, %v4962_v30, %v4966_v31  ;;  %v18295_v30 = vld [vmem:[%s22638_s1 + $0x90] sm:$0xff]   ;;  %v20008_v31 = vld [vmem:[#allocation2 + $0x24] sm:$0xe]  ;;  %v20047_v34 = vrot.slane %v22723_v32, 4  ;;  %v15481_v47 = vrot.slane %v5358_v11, 9  ;;  %v22726_v32 = vrot.slane %v19713_v41, 5 }
 0x110   : > { %v15452_v8 = vcombine.low %v4957_v23, %v4967_v46  ;;  %v19995_v23 = vld [vmem:[#allocation2 + $0x78] sm:$0xe]  ;;  %22718 = vst [vmem:[#allocation29_spill] sm:$0xff] %v20008_v31  ;;  %v20023_v46 = vld [vmem:[#allocation2 + $0x20] sm:$0x1]  ;;  %v18297_v14 = vld [vmem:[%s22638_s1 + $0x90] sm:$0xff]  }
 0x111   : > { %16931 = vmatmul.mubr.bf16.vlgmr.msra.gmra.mrb[0].mxu0 %v15129_v26  ;;  %22717 = vst [vmem:[#allocation28_spill] sm:$0xff] %v19995_v23  ;;  %v20004_v26 = vrot.slane %v22662_v51, 4  ;;  %v22724_v23 = vrot.slane %v20016_v38, 5  ;;  %v20062_v6 = vrot.slane %v22726_v32, 4  ;;  %v5361_v25 = vld [vmem:[#allocation2 + $0xb4] sm:$0xe] }
 0x112   : > { %17199 = vmatmul.mubr.bf16.gmra.mrb[12].mxu1 %v15452_v8  ;;  %16947 = vmatpush3.bf16.msra.mxu0 %v19759_v39  ;;  %v20012_v8 = vrot.slane %v22663_v45, 4  ;;  %v18291_v45 = vld [vmem:[%s22638_s1 + $0x88] sm:$0xff]   ;;  %v18298_v39 = vld [vmem:[%s22638_s1 + $0x98] sm:$0xff]   ;;  %vm4672_vm3 = vcmask 1046534   ;;  %vm4674_vm4 = vcmask 1047559   ;;  %vm19204_vm5 = vmmov 0  }
 0x113   : > { %17218 = vmatprep.mubr.bf16.mxu1 %v15461_v55  ;;  %16948 = vmatprep.subr.bf16.mxu0 %v18290_v21  ;;  %v19024_v55 = vld [vmem:[#allocation2 + $0x78] sm:$0xf]  ;;  %v20051_v31 = vrot.slane %v22724_v23, 4  ;;  %22727 = vst [vmem:[#allocation35_spill] sm:$0xff] %v20062_v6  ;;  %v1605_v23 = vld [vmem:[#allocation2 + $0x48] sm:$0xe] }
 0x114   : > { %16934 = vmatprep.mubr.bf16.mxu0 %v15130_v18  ;;  %v15463_v51 = vcombine.low %v19024_v55, %v20016_v38  ;;  %v5359_v18 = vld [vmem:[#allocation2 + $0x9c] sm:$0xe]  ;;  %v5360_v55 = vld [vmem:[#allocation2 + $0xa8] sm:$0xe]  ;;  %v1663_v38 = vrot.slane %v19825_v29, 5  ;;  %v1666_v6 = vrot.slane %v19829_v35, 5 }
 0x115   : > { %22725 = vst [vmem:[#allocation34_spill] sm:$0xff] %v20051_v31  ;;  %v5408_v31 = vrot.slane %v19807_v57, 5  ;;  %v18531_v32 = vld [vmem:[#allocation8 + $0x58] sm:$0xff]   ;;  %vm10960_vm12 = vsmask.f32 7448 }
 0x116   : > { %16949 = vmatpush3.bf16.msra.mxu0 %v18290_v21  ;;  %v15132_v21 = vcombine.low %v19771_v60, %v19787_v15  ;;  %v5411_v60 = vrot.slane %v19803_v50, 5  ;;  %v15482_v50 = vrot.slane %v5359_v18, 9  ;;  %v1665_v35 = vrot.slane %v1663_v38, 4  ;;  %v18299_v18 = vld [vmem:[%s22638_s1 + $0x98] sm:$0xff]  }
 0x117   : > { %16950 = vmatprep.subr.bf16.mxu0 %v18295_v30  ;;  %v5410_v11 = vrot.slane %v5408_v31, 4 }
 0x119   : > { %16935 = vmatmul.mubr.bf16.gmra.mrb[4].mxu0 %v15131_v52  ;;  %v20087_v52 = vsel %vm20076_vm13, %v15481_v47, %v5408_v31  ;;  %v20097_v47 = vsel %vm20076_vm13, %v5410_v11, %v5411_v60  ;;  %v1606_v31 = vld [vmem:[#allocation2 + $0x54] sm:$0xe]  ;;  %v15150_v11 = vrot.slane %v1605_v23, 9  ;;  %v22730_v23 = vcombine.low %v19723_v63, %v19742_v20 }
 0x11a   : > { %17219 = vmatmul.mubr.bf16.vlgmr.msra.gmra.mrb[0].mxu1 %v15462_v43  ;;  %16951 = vmatpush3.bf16.msra.mxu0 %v18295_v30  ;;  %v15149_v43 = vrot.slane %v1604_v61, 9  ;;  %v18303_v30 = vld [vmem:[%s22638_s1 + $0xa0] sm:$0xff]   ;;  %v15483_v61 = vrot.slane %v5360_v55, 9  ;;  %v18311_v63 = vld [vmem:[%s22638_s1 + $0xb0] sm:$0xff]  }
 0x11b   : > { %17235 = vmatpush3.bf16.msra.mxu1 %v19767_v54  ;;  %17222 = vmatprep.mubr.bf16.mxu1 %v15463_v51  ;;  %v5415_v54 = vrot.slane %v19846_v12, 5  ;;  %v5418_v51 = vrot.slane %v19849_v56, 5  ;;  %v1673_v56 = vrot.slane %v19878_v28, 5 }
 0x11c   : > { %17236 = vmatprep.subr.bf16.mxu1 %v18291_v45  ;;  %16952 = vmatprep.subr.bf16.mxu0 %v18298_v39  ;;  %v20101_v29 = vsel %vm20076_vm13, %v15149_v43, %v1663_v38  ;;  %v18306_v38 = vld [vmem:[%s22638_s1 + $0xa8] sm:$0xff]   ;;  %v20117_v43 = vsel %vm20076_vm13, %v1665_v35, %v1666_v6  ;;  %v15151_v35 = vrot.slane %v1606_v31, 9  ;;  %v5429_v31 = vrot.slane %v19936_v37, 5 }
 0x11d   : > { %16938 = vmatprep.mubr.bf16.mxu0 %v15132_v21  ;;  %v20110_v21 = vsel %vm20076_vm13, %v15482_v50, %v5415_v54  ;;  %v5417_v60 = vrot.slane %v5415_v54, 4  ;;  %v5422_v50 = vrot.slane %v19896_v10, 5  ;;  %v5425_v54 = vrot.slane %v19898_v19, 5 }
 0x11e   : > { %16953 = vmatpush3.bf16.msra.mxu0 %v18298_v39  ;;  %v1670_v39 = vrot.slane %v19874_v24, 5 }
 0x11f   : > { %17237 = vmatpush3.bf16.msra.mxu1 %v18291_v45  ;;  %16954 = vmatprep.subr.bf16.mxu0 %v18303_v30  ;;  %v20125_v45 = vsel %vm20076_vm13, %v5417_v60, %v5418_v51  ;;  %v20140_v51 = vsel %vm20076_vm13, %v15483_v61, %v5422_v50  ;;  %v5424_v19 = vrot.slane %v5422_v50, 4  ;;  %v1680_v60 = vrot.slane %v19913_v49, 5  ;;  %v18305_v49 = vld [vmem:[%s22638_s1 + $0xa0] sm:$0xff]  }
 0x120   : > { %17238 = vmatprep.subr.bf16.mxu1 %v18297_v14  ;;  %v15506_v6 = vcombine.low %v20110_v21, %v20125_v45  ;;  %v20133_v28 = vsel %vm20076_vm13, %v15150_v11, %v1670_v39  ;;  %v1672_v55 = vrot.slane %v1670_v39, 4  ;;  %v22731_v11 = vcombine.low %v19794_v36, %v19807_v57  ;;  %v18335_v21 = vld [vmem:[%s22638_s1 + $0x100] sm:$0xff]   ;;  %v18525_v45 = vld [vmem:[#allocation5 + $0x228] sm:$0xff]  }
 0x121   : > { %16939 = vmatmul.mubr.bf16.gmra.mrb[8].mxu0 %v15133_v4  ;;  %v1677_v4 = vrot.slane %v19909_v40, 5  ;;  %v15484_v61 = vrot.slane %v5361_v25, 9  ;;  %v5432_v39 = vrot.slane %v19943_v1, 5  ;;  %v20163_v57 = vsel %vm20076_vm13, %v5424_v19, %v5425_v54 }
 0x122   : > { %17223 = vmatmul.mubr.bf16.gmra.mrb[4].mxu1 %v22730_v23  ;;  %16955 = vmatpush3.bf16.msra.mxu0 %v18303_v30  ;;  %v20152_v30 = vsel %vm20076_vm13, %v1672_v55, %v1673_v56  ;;  %v22732_v1 = vcombine.low %v19863_v59, %v19874_v24  ;;  %v22733_v56 = vrot.slane %v19787_v15, 5  ;;  %v15507_v50 = vcombine.low %v20140_v51, %v20163_v57  ;;  %v18307_v59 = vld [vmem:[%s22638_s1 + $0xa8] sm:$0xff]   ;;  %v18314_v24 = vld [vmem:[%s22638_s1 + $0xb8] sm:$0xff]  }
 0x123   : > { %17239 = vmatpush3.bf16.msra.mxu1 %v18297_v14  ;;  %17226 = vmatprep.mubr.bf16.mxu1 %v22731_v11  ;;  %v15174_v36 = vcombine.low %v20133_v28, %v20152_v30  ;;  %v20167_v25 = vsel %vm20076_vm13, %v15151_v35, %v1677_v4  ;;  %v1679_v14 = vrot.slane %v1677_v4, 4  ;;  %v20180_v54 = vsel %vm20076_vm13, %v15484_v61, %v5429_v31  ;;  %v18332_v28 = vld [vmem:[#allocation2 + $0xc] sm:$0xff]  }
 0x124   : > { %17240 = vmatprep.subr.bf16.mxu1 %v18299_v18  ;;  %16956 = vmatprep.subr.bf16.mxu0 %v18306_v38  ;;  %v20174_v23 = vrot.slane %v22733_v56, 4  ;;  %v5431_v55 = vrot.slane %v5429_v31, 4  ;;  %v15466_v35 = vcombine.low %v19837_v53, %v19846_v12  ;;  %v22734_v19 = vrot.slane %v19938_v42, 5 }
 0x125   : > { %16942 = vmatprep.mubr.bf16.mxu0 %v22732_v1  ;;  %v22735_v4 = vrot.slane %v19961_v27, 9  ;;  %v22736_v61 = vrot.slane %v19945_v3, 5  ;;  %v20203_v12 = vsel %vm20076_vm13, %v1679_v14, %v1680_v60  ;;  %v22738_v60 = vrot.slane %v19958_v22, 5 }
 0x126   : > { %16957 = vmatpush3.bf16.msra.mxu0 %v18306_v38  ;;  %v15467_v38 = vcombine.low %v19888_v58, %v19896_v10  ;;  %v15175_v42 = vcombine.low %v20167_v25, %v20203_v12  ;;  %v20211_v27 = vsel %vm20076_vm13, %v5431_v55, %v5432_v39  ;;  %v18316_v58 = vld [vmem:[%s22638_s1 + $0xc0] sm:$0xff]   ;;  %v18313_v10 = vld [vmem:[%s22638_s1 + $0xb0] sm:$0xff]   ;;  %v22739_v31 = vrot.slane %v19971_v44, 9 }
 0x127   : > { %v1629_v11 = vsel %vm20076_vm13, %v22735_v4, %v22734_v19  ;;  %v1632_v53 = vsel %vm20076_vm13, %v20000_v0, %v22736_v61  ;;  %17241 = vmatpush3.bf16.msra.mxu1 %v18299_v18  ;;  %16958 = vmatprep.subr.bf16.mxu0 %v18311_v63  ;;  %v15508_v3 = vcombine.low %v20180_v54, %v20211_v27  ;;  %v22741_v14 = vrot.slane %v19975_v48, 5  ;;  %v18315_v48 = vld [vmem:[%s22638_s1 + $0xb8] sm:$0xff]   ;;  %v5357_v55 = vld [vmem:[#allocation2 + $0x84] sm:$0xe] }
 0x128   : > { %17242 = vmatprep.subr.bf16.mxu1 %v18305_v49  ;;  %v22737_v0 = vcombine.low %v19907_v33, %v19909_v40  ;;  %v15168_v18 = vcombine.low %v1629_v11, %v1632_v53  ;;  %v1636_v39 = vsel %vm20076_vm13, %v22739_v31, %v22738_v60  ;;  %v22740_v33 = vrot.slane %v19952_v9, 5  ;;  %v22753_v11 = vld [vmem:[#allocation31_spill] sm:$0xff] }
 0x129   : > { %v22743_v44 = vrot.slane %v19948_v5, 5  ;;  %v22744_v5 = vrot.slane %v19984_v13, 5  ;;  %v22746_v56 = vrot.slane %v20023_v46, 5  ;;  %v22749_v13 = vld [vmem:[#allocation26_spill] sm:$0xff]  ;;  %v22754_v53 = vrot.slane %v19713_v41, 5  ;;  %v22758_v31 = vld [vmem:[#allocation35_spill] sm:$0xff] }
 0x12a   : > { %16943 = vmatmul.mubr.bf16.gmra.mrb[12].mxu0 %v22737_v0  ;;  %17227 = vmatmul.mubr.bf16.gmra.mrb[8].mxu1 %v15466_v35  ;;  %v1639_v40 = vsel %vm20076_vm13, %v20012_v8, %v22740_v33  ;;  %v15468_v8 = vcombine.low %v19926_v7, %v19936_v37  ;;  %v22747_v35 = vld [vmem:[#allocation27_spill] sm:$0xff]  ;;  %v22750_v19 = vrot.slane %v22749_v13, 9  ;;  %v22757_v60 = vrot.slane %v20057_v16, 5  ;;  %v22759_v41 = vld [vmem:[#allocation30_spill] sm:$0xff] }
 0x12b   : > { %16959 = vmatpush3.bf16.msra.mxu0 %v18311_v63  ;;  %17243 = vmatpush3.bf16.msra.mxu1 %v18305_v49  ;;  %v22742_v63 = vrot.slane %v19963_v17, 9  ;;  %v5384_v9 = vsel %vm20076_vm13, %v20004_v26, %v22743_v44  ;;  %v15169_v1 = vcombine.low %v1636_v39, %v1639_v40  ;;  %v18318_v17 = vld [vmem:[%s22638_s1 + $0xc8] sm:$0xff]   ;;  %v22745_v49 = vrot.slane %v19979_v62, 9  ;;  %v18320_v46 = vld [vmem:[%s22638_s1 + $0xd0] sm:$0xff]   ;;  %v22761_v40 = vld [vmem:[#allocation28_spill] sm:$0xff] }
 0x12c   : > { %17230 = vmatprep.mubr.bf16.mxu1 %v15467_v38  ;;  %17244 = vmatprep.subr.bf16.mxu1 %v18307_v59  ;;  %v1646_v7 = vsel %vm20076_vm13, %v20047_v34, %v22746_v56  ;;  %v22751_v34 = vld [vmem:[#allocation25_spill] sm:$0xff]  ;;  %v1653_v39 = vsel %vm20076_vm13, %v22758_v31, %v22757_v60  ;;  %v22760_v33 = vrot.slane %v22759_v41, 5  ;;  %v22765_v44 = vld [vmem:[#allocation34_spill] sm:$0xff]  ;;  %v22770_v13 = vrot.slane %v19774_v2, 5 }
 0x12d   : > { %16960 = vmatprep.subr.bf16.mxu0 %v18314_v24  ;;  %v5381_v22 = vsel %vm20076_vm13, %v22742_v63, %v22741_v14  ;;  %16962 = vmatprep.mubr.bf16.mxu0 %v15168_v18  ;;  %v1643_v26 = vsel %vm20076_vm13, %v22745_v49, %v22744_v5  ;;  %v22755_v38 = vld [vmem:[#allocation29_spill] sm:$0xff]  ;;  %v22762_v14 = vrot.slane %v22761_v40, 9  ;;  %v22763_v63 = vld [vmem:[#allocation32_spill] sm:$0xff]  ;;  %v22766_v5 = vrot.slane %v19742_v20, 5  ;;  %v18321_v31 = vld [vmem:[%s22638_s1 + $0xd0] sm:$0xff]  }
 0x12e   : > { %v15501_v37 = vcombine.low %v5381_v22, %v5384_v9  ;;  %v15170_v4 = vcombine.low %v1643_v26, %v1646_v7  ;;  %v22756_v0 = vrot.slane %v22755_v38, 9  ;;  %v22764_v22 = vrot.slane %v22763_v63, 5  ;;  %v19026_v26 = vld [vmem:[#allocation2 + $0x8c] sm:$0x1]  ;;  %v949_v60 = vld [vmem:[#allocation2 + $0xc0] sm:$0xf] }
 0x12f   : > { %16961 = vmatpush3.bf16.msra.mxu0 %v18314_v24  ;;  %17245 = vmatpush3.bf16.msra.mxu1 %v18307_v59  ;;  %v22748_v24 = vrot.slane %v22747_v35, 5  ;;  %v22752_v59 = vrot.slane %v22751_v34, 5  ;;  %v5395_v16 = vsel %vm20076_vm13, %v22762_v14, %v22760_v33  ;;  %v5403_v49 = vrot.slane %v22766_v5, 4  ;;  %v2134_v33 = vld [vmem:[#allocation2 + $0xc] sm:$0xf]  ;;  %v18323_v63 = vld [vmem:[%s22638_s1 + $0xd8] sm:$0xff]  }
 0x130   : > { %16978 = vmatprep.subr.bf16.mxu0 %v18316_v58  ;;  %17246 = vmatprep.subr.bf16.mxu1 %v18313_v10  ;;  %v1650_v18 = vsel %vm20076_vm13, %v22756_v0, %v22754_v53  ;;  %v5404_v56 = vrot.slane %v19026_v26, 5  ;;  %v22767_v7 = vrot.slane %v19787_v15, 5  ;;  %v18319_v15 = vld [vmem:[%s22638_s1 + $0xc8] sm:$0xff]   ;;  %v2136_v14 = vld [vmem:[#allocation2 + $0x14] sm:$0x1] }
 0x131   : > { %v5388_v62 = vsel %vm20076_vm13, %v22750_v19, %v22748_v24  ;;  %v5391_v61 = vsel %vm20076_vm13, %v22753_v11, %v22752_v59  ;;  %v1660_v19 = vsel %vm20076_vm13, %v20174_v23, %v22770_v13  ;;  %v5886_v26 = vld [vmem:[#allocation2 + $0x70] sm:$0xf] }
 0x132   : > { %16963 = vmatmul.mubr.bf16.vlgmr.msra.gmra.mrb[0].mxu0 %v15169_v1  ;;  %17231 = vmatmul.mubr.bf16.gmra.mrb[12].mxu1 %v15468_v8  ;;  %v15502_v9 = vcombine.low %v5388_v62, %v5391_v61  ;;  %v15171_v1 = vcombine.low %v1650_v18, %v1653_v39  ;;  %v15480_v8 = vrot.slane %v5357_v55, 9  ;;  %v513_v55 = vld [vmem:[%s19532_s14 + $0x78] sm:$0xf]  ;;  %v514_v62 = vld [vmem:[%s19532_s14 + $0x7c] sm:$0xf]  ;;  %v22771_v61 = vmov %v22766_v5 }
 0x133   : > { %16979 = vmatpush3.bf16.msra.mxu0 %v18316_v58  ;;  %17247 = vmatpush3.bf16.msra.mxu1 %v18313_v10  ;;  %v18317_v58 = vld [vmem:[%s22638_s1 + $0xc0] sm:$0xff]   ;;  %v5398_v10 = vsel %vm20076_vm13, %v22765_v44, %v22764_v22  ;;  %v774_v34 = vshrl.u32 %v513_v55, 16  ;;  %v777_v2 = vshll.u32 %v513_v55, 16  ;;  %v782_v59 = vshrl.u32 %v514_v62, 16  ;;  %v18326_v22 = vld [vmem:[%s22638_s1 + $0xe8] sm:$0xff]  }
 0x134   : > { %17250 = vmatprep.mubr.bf16.mxu1 %v15501_v37  ;;  %17248 = vmatprep.subr.bf16.mxu1 %v18315_v48  ;;  %v22768_v37 = vld [vmem:[#allocation33_spill] sm:$0xff]  ;;  %v785_v11 = vshll.u32 %v514_v62, 16  ;;  %v5402_v53 = vsel %vm20076_vm13, %v15480_v8, %v22771_v61  ;;  %v5405_v38 = vsel %vm20076_vm13, %v5403_v49, %v5404_v56  ;;  %v5885_v49 = vld [vmem:[#allocation2 + $0x6c] sm:$0xf]  ;;  %v5919_v55 = vshll.u32 %v5886_v26, 16 }
 0x135   : > { %16980 = vmatprep.subr.bf16.mxu0 %v18318_v17  ;;  %16966 = vmatprep.mubr.bf16.mxu0 %v15170_v4  ;;  %v22769_v35 = vrot.slane %v22768_v37, 9  ;;  %v18322_v4 = vld [vmem:[%s22638_s1 + $0xd8] sm:$0xff]   ;;  %v776_v0 = vrot.slane %v774_v34, 7  ;;  %v20334_v18 = vrot.slane %v782_v59, 7  ;;  %v15504_v40 = vcombine.low %v5402_v53, %v5405_v38  ;;  %v18328_v59 = vld [vmem:[%s22638_s1 + $0xf0] sm:$0xff]  }
 0x136   : > { %v2178_v37 = vshll.u32 %v2136_v14, 16  ;;  %v2137_v62 = vld [vmem:[#allocation2 + $0x18] sm:$0xf]  ;;  %v5923_v34 = vshrl.u32 %v5886_v26, 16  ;;  %v20365_v53 = vrot.slane %v5919_v55, 5  ;;  %v18327_v14 = vld [vmem:[%s22638_s1 + $0xe8] sm:$0xff]  }
 0x137   : > { %16981 = vmatpush3.bf16.msra.mxu0 %v18318_v17  ;;  %v1657_v24 = vsel %vm20076_vm13, %v22769_v35, %v22767_v7  ;;  %17249 = vmatpush3.bf16.msra.mxu1 %v18315_v48  ;;  %v15503_v17 = vcombine.low %v5395_v16, %v5398_v10  ;;  %v18324_v48 = vld [vmem:[%s22638_s1 + $0xe0] sm:$0xff]   ;;  %v779_v20 = vor.u32 %v777_v2, %v776_v0  ;;  %v780_v39 = vrot.slane %v776_v0, 4  ;;  %v5887_v35 = vld [vmem:[#allocation2 + $0x74] sm:$0x1]  ;;  %v20359_v2 = vld [vmem:[#allocation2 + $0x1c] sm:$0xf] }
 0x138   : > { %16982 = vmatprep.subr.bf16.mxu0 %v18320_v46  ;;  %17266 = vmatprep.subr.bf16.mxu1 %v18317_v58  ;;  %v15172_v23 = vcombine.low %v1657_v24, %v1660_v19  ;;  %v787_v41 = vor.u32 %v785_v11, %v20334_v18  ;;  %v2159_v16 = vshrl.u32 %v2134_v33, 16  ;;  %v5910_v24 = vshrl.u32 %v5885_v49, 16  ;;  %v2140_v55 = vld [vmem:[#allocation2 + $0x24] sm:$0xf] }
 0x139   : > { %v5929_v38 = vshll.u32 %v5887_v35, 16  ;;  %v2183_v0 = vshrl.u32 %v2137_v62, 16 }
 0x13a   : > { %16967 = vmatmul.mubr.bf16.gmra.mrb[4].mxu0 %v15171_v1  ;;  %17251 = vmatmul.mubr.bf16.vlgmr.msra.gmra.mrb[0].mxu1 %v15502_v9  ;;  %v788_v10 = vsel %vm19564_vm9, %v780_v39, %v787_v41  ;;  %v950_v1 = vsel %vm19550_vm8, %v779_v20, %v949_v60  ;;  %v2161_v56 = vrot.slane %v2159_v16, 4  ;;  %v2186_v60 = vshll.u32 %v2137_v62, 16  ;;  %v18330_v16 = vld [vmem:[%s22638_s1 + $0xf8] sm:$0xff]   ;;  %v18358_v9 = vld [vmem:[#allocation2 + $0x60] sm:$0xff]  }
 0x13b   : > { %16983 = vmatpush3.bf16.msra.mxu0 %v18320_v46  ;;  %17267 = vmatpush3.bf16.msra.mxu1 %v18317_v58  ;;  %v20340_v46 = vld [vmem:[#allocation2 + $0x10] sm:$0xf]  ;;  %v2162_v58 = vshll.u32 %v2134_v33, 16  ;;  %951 = vst [vmem:[#allocation2 + $0xc0] sm:$0xf] %v950_v1  ;;  %v20374_v39 = vrot.slane %v2178_v37, 5 }
 0x13c   : > { %17254 = vmatprep.mubr.bf16.mxu1 %v15503_v17  ;;  %17268 = vmatprep.subr.bf16.mxu1 %v18319_v15  ;;  %v2168_v8 = vshll.u32 %v20340_v46, 16  ;;  %v2172_v5 = vshrl.u32 %v20340_v46, 16  ;;  %952 = vst [vmem:[#allocation2 + $0xc4] sm:$0xf] %v788_v10  ;;  %v5913_v17 = vshll.u32 %v5885_v49, 16  ;;  %v2188_v33 = vrot.slane %v2186_v60, 5 }
 0x13d   : > { %16984 = vmatprep.subr.bf16.mxu0 %v18322_v4  ;;  %16970 = vmatprep.mubr.bf16.mxu0 %v15172_v23  ;;  %v2164_v7 = vrot.slane %v2162_v58, 5  ;;  %v20388_v58 = vld [vmem:[#allocation2 + $0x7c] sm:$0xf]  ;;  %v20395_v10 = vrot.slane %v5929_v38, 5  ;;  %v2210_v38 = vshll.u32 %v2140_v55, 16  ;;  %v18338_v60 = vld [vmem:[%s22638_s1 + $0x108] sm:$0xff]  }
 0x13e   : > { %v20354_v13 = vrot.slane %v2168_v8, 5  ;;  %v2174_v19 = vrot.slane %v2172_v5, 4  ;;  %v5915_v61 = vrot.slane %v5913_v17, 5  ;;  %v2196_v8 = vshrl.u32 %v20359_v2, 16 }
 0x13f   : > { %16985 = vmatpush3.bf16.msra.mxu0 %v18322_v4  ;;  %17269 = vmatpush3.bf16.msra.mxu1 %v18319_v15  ;;  %v22774_v4 = vcombine.low %v20101_v29, %v20117_v43  ;;  %v5912_v15 = vrot.slane %v5910_v24, 4  ;;  %v2165_v11 = vor.u32 %v2164_v7, %v2161_v56  ;;  %v22775_v29 = vcombine.low %v20087_v52, %v20097_v47  ;;  %v20380_v52 = vld [vmem:[#allocation2 + $0x20] sm:$0x1]  ;;  %v20414_v56 = vld [vmem:[%s22638_s1 + $0xf0] sm:$0xff]  }
 0x140   : > { %16986 = vmatprep.subr.bf16.mxu0 %v18324_v48  ;;  %17270 = vmatprep.subr.bf16.mxu1 %v18321_v31  ;;  %v2175_v23 = vor.u32 %v2174_v19, %v20354_v13  ;;  %v5925_v43 = vrot.slane %v5923_v34, 4  ;;  %v2185_v47 = vrot.slane %v2183_v0, 4  ;;  %v5943_v26 = vshll.u32 %v20388_v58, 16  ;;  %v20442_v34 = vld [vmem:[#allocation2 + $0x28] sm:$0xf] }
 0x141   : > { %v5916_v41 = vor.u32 %v5915_v61, %v5912_v15  ;;  %v20390_v30 = vrot.slane %v2165_v11, 4  ;;  %v2198_v37 = vrot.slane %v2196_v8, 4  ;;  %v2202_v25 = vshll.u32 %v20380_v52, 16  ;;  %v18333_v61 = vld [vmem:[#allocation2 + $0x6c] sm:$0xff]   ;;  %v18340_v8 = vld [vmem:[#allocation2 + $0x24] sm:$0xff]  }
 0x142   : > { %16971 = vmatmul.mubr.bf16.gmra.mrb[8].mxu0 %v22774_v4  ;;  %17255 = vmatmul.mubr.bf16.gmra.mrb[4].mxu1 %v15504_v40  ;;  %v5888_v40 = vld [vmem:[#allocation2 + $0x78] sm:$0xf]  ;;  %v5926_v44 = vor.u32 %v5925_v43, %v20365_v53  ;;  %v2189_v7 = vor.u32 %v2188_v33, %v2185_v47  ;;  %v20427_v24 = vrot.slane %v5943_v26, 5  ;;  %v5947_v19 = vshrl.u32 %v20388_v58, 16  ;;  %v5891_v33 = vld [vmem:[#allocation2 + $0x84] sm:$0xf] }
 0x143   : > { %16987 = vmatpush3.bf16.msra.mxu0 %v18324_v48  ;;  %17271 = vmatpush3.bf16.msra.mxu1 %v18321_v31  ;;  %v18325_v48 = vld [vmem:[%s22638_s1 + $0xe0] sm:$0xff]   ;;  %v2192_v31 = vshll.u32 %v20359_v2, 16  ;;  %v20397_v1 = vrot.slane %v5916_v41, 4  ;;  %v5934_v5 = vshrl.u32 %v5888_v40, 16  ;;  %v5937_v49 = vshll.u32 %v5888_v40, 16 }
 0x144   : > { %17258 = vmatprep.mubr.bf16.mxu1 %v22775_v29  ;;  %17272 = vmatprep.subr.bf16.mxu1 %v18323_v63  ;;  %v20434_v57 = vrot.slane %v5926_v44, 4  ;;  %v5949_v15 = vrot.slane %v5947_v19, 4  ;;  %v2207_v11 = vshrl.u32 %v2140_v55, 16  ;;  %v20451_v29 = vrot.slane %v2189_v7, 4  ;;  %v20469_v44 = vld [vmem:[#allocation2 + $0x88] sm:$0xf] }
 0x145   : > { %16988 = vmatprep.subr.bf16.mxu0 %v18326_v22  ;;  %16974 = vmatprep.mubr.bf16.mxu0 %v15174_v36  ;;  %v20392_v36 = vrot.slane %v2175_v23, 4  ;;  %v5936_v12 = vrot.slane %v5934_v5, 4  ;;  %v5939_v35 = vrot.slane %v5937_v49, 5  ;;  %v5922_v62 = vsel %vm19541_vm7, %v20397_v1, %v20365_v53  ;;  %v20449_v23 = vld [vmem:[%s22638_s1 + $0xf8] sm:$0xff]   ;;  %v18343_v5 = vld [vmem:[%s22638_s1 + $0x110] sm:$0xff]   ;;  %v18351_v1 = vld [vmem:[%s22638_s1 + $0x120] sm:$0xff]  }
 0x146   : > { %v20453_v43 = vrot.slane %v2202_v25, 5  ;;  %v2216_v0 = vshll.u32 %v20442_v34, 16  ;;  %v5950_v41 = vor.u32 %v5949_v15, %v20427_v24  ;;  %v2220_v47 = vshrl.u32 %v20442_v34, 16  ;;  %v18341_v15 = vld [vmem:[#allocation2 + $0x84] sm:$0xff]  }
 0x147   : > { %16989 = vmatpush3.bf16.msra.mxu0 %v18326_v22  ;;  %17273 = vmatpush3.bf16.msra.mxu1 %v18323_v63  ;;  %v20399_v22 = vrot.slane %v2192_v31, 5  ;;  %v20405_v63 = vld [vmem:[#allocation2 + $0x80] sm:$0x1]  ;;  %v2181_v51 = vsel %vm19541_vm7, %v20392_v36, %v20374_v39  ;;  %v5940_v4 = vor.u32 %v5939_v35, %v5936_v12  ;;  %v2209_v31 = vrot.slane %v2207_v11, 4  ;;  %v18342_v11 = vld [vmem:[#allocation2 + $0x30] sm:$0xff]  }
 0x148   : > { %16990 = vmatprep.subr.bf16.mxu0 %v18328_v59  ;;  %17274 = vmatprep.subr.bf16.mxu1 %v18325_v48  ;;  %v5953_v17 = vshll.u32 %v20405_v63, 16  ;;  %v5932_v49 = vsel %vm19541_vm7, %v20434_v57, %v20395_v10  ;;  %v5951_v26 = vrot.slane %v5950_v41, 4  ;;  %v5958_v35 = vshrl.u32 %v5891_v33, 16 }
 0x149   : > { %v20464_v40 = vrot.slane %v5940_v4, 4  ;;  %v2195_v25 = vsel %vm19541_vm7, %v20451_v29, %v20399_v22  ;;  %v5961_v19 = vshll.u32 %v5891_v33, 16  ;;  %v5971_v10 = vshrl.u32 %v20469_v44, 16  ;;  %v20505_v4 = vld [vmem:[#allocation2 + $0x34] sm:$0xf] }
 0x14a   : > { %16975 = vmatmul.mubr.bf16.gmra.mrb[12].mxu0 %v15175_v42  ;;  %17259 = vmatmul.mubr.bf16.gmra.mrb[8].mxu1 %v15506_v6  ;;  %v18334_v42 = vld [vmem:[#allocation2 + $0x18] sm:$0xff]   ;;  %v2171_v6 = vsel %vm19541_vm7, %v20390_v30, %v20354_v13  ;;  %v5955_v7 = vrot.slane %v5953_v17, 5  ;;  %v5960_v17 = vrot.slane %v5958_v35, 4  ;;  %v20544_v39 = vcombine.low %v5922_v62, %v5932_v49  ;;  %v20548_v30 = vld [vmem:[#allocation2 + $0x94] sm:$0xf] }
 0x14b   : > { %16991 = vmatpush3.bf16.msra.mxu0 %v18328_v59  ;;  %17275 = vmatpush3.bf16.msra.mxu1 %v18325_v48  ;;  %v20444_v59 = vld [vmem:[#allocation2 + $0x2c] sm:$0x1]  ;;  %v5963_v55 = vrot.slane %v5961_v19, 5  ;;  %v2244_v53 = vshrl.u32 %v20505_v4, 16  ;;  %vm10955_vm9 = vsmask.f32 1280 }
 0x14c   : > { %17262 = vmatprep.mubr.bf16.mxu1 %v15507_v50  ;;  %17276 = vmatprep.subr.bf16.mxu1 %v18327_v14  ;;  %v2199_v50 = vor.u32 %v2198_v37, %v20399_v22  ;;  %v2222_v37 = vrot.slane %v2220_v47, 4  ;;  %v18336_v22 = vld [vmem:[#allocation2 + $0x78] sm:$0xff]  }
 0x14d   : > { %16992 = vmatprep.subr.bf16.mxu0 %v18330_v16  ;;  %16994 = vmatprep.mubr.bf16.mxu0 %v18332_v28  ;;  %v20466_v28 = vrot.slane %v2216_v0, 5  ;;  %v5894_v0 = vld [vmem:[#allocation2 + $0x90] sm:$0xf] }
 0x14e   : > { %v20459_v48 = vrot.slane %v2199_v50, 4  ;;  %v2143_v50 = vld [vmem:[#allocation2 + $0x30] sm:$0xf] }
 0x14f   : > { %16993 = vmatpush3.bf16.msra.mxu0 %v18330_v16  ;;  %17277 = vmatpush3.bf16.msra.mxu1 %v18327_v14  ;;  %v2212_v16 = vrot.slane %v2210_v38, 5  ;;  %v2226_v14 = vshll.u32 %v20444_v59, 16  ;;  %v2223_v27 = vor.u32 %v2222_v37, %v20466_v28  ;;  %v5973_v38 = vrot.slane %v5971_v10, 4  ;;  %v20566_v37 = vld [vmem:[#allocation2 + $0x98] sm:$0x1] }
 0x150   : > { %17010 = vmatprep.subr.bf16.mxu0 %v18335_v21  ;;  %17278 = vmatprep.subr.bf16.mxu1 %v20414_v56  ;;  %v2205_v54 = vsel %vm19541_vm7, %v20459_v48, %v20453_v43  ;;  %v18346_v48 = vld [vmem:[%s22638_s1 + $0x118] sm:$0xff]   ;;  %v2231_v47 = vshrl.u32 %v2143_v50, 16  ;;  %v2234_v33 = vshll.u32 %v2143_v50, 16  ;;  %22777 = vst [vmem:[#allocation27_spill] sm:$0xff] %v20566_v37  ;;  %v2246_v50 = vrot.slane %v2244_v53, 4 }
 0x151   : > { %v2213_v12 = vor.u32 %v2212_v16, %v2209_v31  ;;  %v20503_v57 = vrot.slane %v2226_v14, 5  ;;  %v20521_v41 = vrot.slane %v2223_v27, 4  ;;  %v5964_v31 = vor.u32 %v5963_v55, %v5960_v17  ;;  %v18345_v27 = vld [vmem:[%s22638_s1 + $0x110] sm:$0xff]   ;;  %v18350_v55 = vld [vmem:[#allocation2 + $0x48] sm:$0xff]  }
 0x152   : > { %16995 = vmatmul.mubr.bf16.vlgmr.msra.gmra.mrb[0].mxu0 %v18334_v42  ;;  %17263 = vmatmul.mubr.bf16.gmra.mrb[12].mxu1 %v15508_v3  ;;  %v20485_v42 = vld [vmem:[#allocation2 + $0x8c] sm:$0x1]  ;;  %v5967_v3 = vshll.u32 %v20469_v44, 16  ;;  %v20546_v36 = vcombine.low %v2195_v25, %v2205_v54  ;;  %v2236_v13 = vrot.slane %v2234_v33, 5  ;;  %v5982_v25 = vshrl.u32 %v5894_v0, 16  ;;  %v18344_v17 = vld [vmem:[#allocation2 + $0x90] sm:$0xff]  }
 0x153   : > { %17011 = vmatpush3.bf16.msra.mxu0 %v18335_v21  ;;  %17279 = vmatpush3.bf16.msra.mxu1 %v20414_v56  ;;  %v18337_v21 = vld [vmem:[%s22638_s1 + $0x100] sm:$0xff]   ;;  %v5946_v56 = vsel %vm19541_vm7, %v20464_v40, %v20427_v24  ;;  %v20509_v29 = vrot.slane %v2213_v12, 4  ;;  %v20516_v24 = vld [vmem:[%s22638_s1 + $0x108] sm:$0xff]   ;;  %v5977_v14 = vshll.u32 %v20485_v42, 16  ;;  %v5985_v12 = vshll.u32 %v5894_v0, 16  ;;  %v20596_v0 = vld [vmem:[%s22638_s1 + $0x118] sm:$0xff]  }
 0x154   : > { %17282 = vmatprep.mubr.bf16.mxu1 %v18333_v61  ;;  %17280 = vmatprep.subr.bf16.mxu1 %v20449_v23  ;;  %v5956_v61 = vsel %vm19541_vm7, %v5951_v26, %v5955_v7  ;;  %v20511_v43 = vrot.slane %v5967_v3, 5  ;;  %v18348_v40 = vld [vmem:[#allocation2 + $0x3c] sm:$0xff]   ;;  %v20556_v26 = vrot.slane %v5964_v31, 4  ;;  %v20558_v7 = vld [vmem:[#allocation2 + $0x38] sm:$0x1]  ;;  %v6001_v53 = vshll.u32 %v20566_v37, 16 }
 0x155   : > { %17012 = vmatprep.subr.bf16.mxu0 %v18338_v60  ;;  %16998 = vmatprep.mubr.bf16.mxu0 %v18340_v8  ;;  %v2233_v8 = vrot.slane %v2231_v47, 4  ;;  %v20570_v19 = vrot.slane %v5977_v14, 5  ;;  %v2146_v54 = vld [vmem:[#allocation2 + $0x3c] sm:$0xf]  ;;  %v2250_v10 = vshll.u32 %v20558_v7, 16  ;;  %v18354_v47 = vld [vmem:[%s22638_s1 + $0x128] sm:$0xff]  }
 0x156   : > { %v5974_v16 = vor.u32 %v5973_v38, %v20511_v43  ;;  %v5995_v38 = vshrl.u32 %v20548_v30, 16  ;;  %v18349_v31 = vld [vmem:[#allocation2 + $0x9c] sm:$0xff]   ;;  %v2255_v14 = vshrl.u32 %v2146_v54, 16  ;;  %v2149_v3 = vld [vmem:[#allocation2 + $0x48] sm:$0xf] }
 0x157   : > { %17013 = vmatpush3.bf16.msra.mxu0 %v18338_v60  ;;  %17281 = vmatpush3.bf16.msra.mxu1 %v20449_v23  ;;  %v20534_v60 = vcombine.low %v2171_v6, %v2181_v51  ;;  %v2240_v23 = vshll.u32 %v20505_v4, 16  ;;  %v20550_v6 = vcombine.low %v5946_v56, %v5956_v61  ;;  %v2237_v62 = vor.u32 %v2236_v13, %v2233_v8  ;;  %v20582_v56 = vld [vmem:[#allocation2 + $0x40] sm:$0xf]  ;;  %v18356_v8 = vld [vmem:[#allocation2 + $0x54] sm:$0xff]   ;;  %v20673_v37 = vld [vmem:[#allocation2 + $0xac] sm:$0xf] }
 0x158   : > { %17014 = vmatprep.subr.bf16.mxu0 %v18343_v5  ;;  %17298 = vmatprep.subr.bf16.mxu1 %v18337_v21  ;;  %v20568_v35 = vrot.slane %v5974_v16, 4  ;;  %v20602_v16 = vld [vmem:[#allocation2 + $0x44] sm:$0x1]  ;;  %v5997_v13 = vrot.slane %v5995_v38, 4 }
 0x159   : > { %v20564_v49 = vrot.slane %v2240_v23, 5  ;;  %22778 = vst [vmem:[#allocation26_spill] sm:$0xff] %v20602_v16  ;;  %v2258_v23 = vshll.u32 %v2146_v54, 16  ;;  %v20614_v54 = vld [vmem:[#allocation2 + $0xa0] sm:$0xf]  ;;  %v2274_v20 = vshll.u32 %v20602_v16, 16 }
 0x15a   : > { %16999 = vmatmul.mubr.bf16.gmra.mrb[4].mxu0 %v18342_v11  ;;  %17283 = vmatmul.mubr.bf16.vlgmr.msra.gmra.mrb[0].mxu1 %v18336_v22  ;;  %v5984_v22 = vrot.slane %v5982_v25, 4  ;;  %v20588_v11 = vrot.slane %v2237_v62, 4  ;;  %v2264_v62 = vshll.u32 %v20582_v56, 16  ;;  %v5897_v25 = vld [vmem:[#allocation2 + $0x9c] sm:$0xf]  ;;  %22779 = vst [vmem:[#allocation25_spill] sm:$0xff] %v20614_v54 }
 0x15b   : > { %17015 = vmatpush3.bf16.msra.mxu0 %v18343_v5  ;;  %17299 = vmatpush3.bf16.msra.mxu1 %v18337_v21  ;;  %v5991_v5 = vshll.u32 %v20548_v30, 16  ;;  %v5987_v21 = vrot.slane %v5985_v12, 5  ;;  %v2247_v33 = vor.u32 %v2246_v50, %v20564_v49  ;;  %v20611_v12 = vrot.slane %v2250_v10, 5  ;;  %v20624_v10 = vld [vmem:[#allocation2 + $0xa4] sm:$0x1] }
 0x15c   : > { %17286 = vmatprep.mubr.bf16.mxu1 %v18341_v15  ;;  %17300 = vmatprep.subr.bf16.mxu1 %v20516_v24  ;;  %v2257_v50 = vrot.slane %v2255_v14, 4  ;;  %v20621_v38 = vrot.slane %v2264_v62, 5  ;;  %22780 = vst [vmem:[#allocation31_spill] sm:$0xff] %v20624_v10  ;;  %v18353_v14 = vld [vmem:[%s22638_s1 + $0x120] sm:$0xff]   ;;  %v6009_v51 = vshll.u32 %v5897_v25, 16 }
 0x15d   : > { %17016 = vmatprep.subr.bf16.mxu0 %v18346_v48  ;;  %17002 = vmatprep.mubr.bf16.mxu0 %v18348_v40  ;;  %v20590_v61 = vrot.slane %v5991_v5, 5  ;;  %v5988_v40 = vor.u32 %v5987_v21, %v5984_v22  ;;  %v2260_v5 = vrot.slane %v2258_v23, 5  ;;  %v20632_v23 = vrot.slane %v2247_v33, 4 }
 0x15f   : > { %17017 = vmatpush3.bf16.msra.mxu0 %v18346_v48  ;;  %17301 = vmatpush3.bf16.msra.mxu1 %v20516_v24  ;;  %v2268_v24 = vshrl.u32 %v20582_v56, 16  ;;  %v5998_v21 = vor.u32 %v5997_v13, %v20590_v61  ;;  %v20634_v22 = vrot.slane %v5988_v40, 4  ;;  %v2261_v13 = vor.u32 %v2260_v5, %v2257_v50 }
 0x160   : > { %17018 = vmatprep.subr.bf16.mxu0 %v18351_v1  ;;  %17302 = vmatprep.subr.bf16.mxu1 %v18345_v27  ;;  %v6006_v48 = vshrl.u32 %v5897_v25, 16  ;;  %v6015_v50 = vshll.u32 %v20614_v54, 16  ;;  %v20648_v5 = vrot.slane %v2274_v20, 5 }
 0x161   : > { %v2270_v62 = vrot.slane %v2268_v24, 4  ;;  %v20636_v15 = vrot.slane %v5998_v21, 4  ;;  %v20641_v33 = vrot.slane %v2261_v13, 4  ;;  %v6011_v24 = vrot.slane %v6009_v51, 5  ;;  %v18355_v13 = vld [vmem:[%s22638_s1 + $0x128] sm:$0xff]  }
 0x162   : > { %17003 = vmatmul.mubr.bf16.gmra.mrb[8].mxu0 %v18350_v55  ;;  %17287 = vmatmul.mubr.bf16.gmra.mrb[4].mxu1 %v18344_v17  ;;  %v18359_v55 = vld [vmem:[%s22638_s1 + $0x130] sm:$0xff]   ;;  %v20638_v17 = vrot.slane %v6001_v53, 5  ;;  %v6008_v25 = vrot.slane %v6006_v48, 4  ;;  %v6025_v21 = vshll.u32 %v20624_v10, 16  ;;  %v5994_v20 = vsel %vm19541_vm7, %v20634_v22, %v20590_v61  ;;  %v5900_v10 = vld [vmem:[#allocation2 + $0xa8] sm:$0xf] }
 0x163   : > { %17019 = vmatpush3.bf16.msra.mxu0 %v18351_v1  ;;  %17303 = vmatpush3.bf16.msra.mxu1 %v18345_v27  ;;  %v18352_v1 = vld [vmem:[#allocation2 + $0xa8] sm:$0xff]   ;;  %v2271_v40 = vor.u32 %v2270_v62, %v20621_v38  ;;  %v6019_v27 = vshrl.u32 %v20614_v54, 16  ;;  %v18357_v53 = vld [vmem:[#allocation2 + $0xb4] sm:$0xff]   ;;  %v2253_v62 = vsel %vm19541_vm7, %v20632_v23, %v20611_v12  ;;  %v20664_v51 = vrot.slane %v6015_v50, 5  ;;  %v20666_v48 = vld [vmem:[#allocation2 + $0x50] sm:$0x1] }
 0x164   : > { %17290 = vmatprep.mubr.bf16.mxu1 %v18349_v31  ;;  %17304 = vmatprep.subr.bf16.mxu1 %v20596_v0  ;;  %v20646_v31 = vld [vmem:[#allocation2 + $0x4c] sm:$0xf]  ;;  %v6012_v12 = vor.u32 %v6011_v24, %v6008_v25  ;;  %v2279_v54 = vshrl.u32 %v2149_v3, 16  ;;  %v18362_v61 = vld [vmem:[%s22638_s1 + $0x138] sm:$0xff]   ;;  %v2282_v22 = vshll.u32 %v2149_v3, 16 }
 0x165   : > { %17020 = vmatprep.subr.bf16.mxu0 %v18354_v47  ;;  %17006 = vmatprep.mubr.bf16.mxu0 %v18356_v8  ;;  %v20662_v8 = vrot.slane %v2271_v40, 4  ;;  %v6021_v23 = vrot.slane %v6019_v27, 4  ;;  %v2288_v40 = vshll.u32 %v20646_v31, 16  ;;  %v6027_v27 = vrot.slane %v6025_v21, 5 }
 0x166   : > { %v2281_v25 = vrot.slane %v2279_v54, 4  ;;  %v2284_v16 = vrot.slane %v2282_v22, 5  ;;  %v2298_v54 = vshll.u32 %v20666_v48, 16 }
 0x167   : > { %17021 = vmatpush3.bf16.msra.mxu0 %v18354_v47  ;;  %17305 = vmatpush3.bf16.msra.mxu1 %v20596_v0  ;;  %v6004_v47 = vsel %vm19541_vm7, %v20636_v15, %v20638_v17  ;;  %v2267_v0 = vsel %vm19541_vm7, %v20641_v33, %v20621_v38  ;;  %v2292_v15 = vshrl.u32 %v20646_v31, 16  ;;  %v6013_v17 = vrot.slane %v6012_v12, 4  ;;  %v2152_v12 = vld [vmem:[#allocation2 + $0x54] sm:$0xf] }
 0x168   : > { %17022 = vmatprep.subr.bf16.mxu0 %v18359_v55  ;;  %17306 = vmatprep.subr.bf16.mxu1 %v18353_v14  ;;  %v6022_v50 = vor.u32 %v6021_v23, %v20664_v51  ;;  %v2277_v24 = vsel %vm19541_vm7, %v20662_v8, %v20648_v5  ;;  %v20689_v38 = vrot.slane %v2288_v40, 5  ;;  %v18361_v5 = vld [vmem:[%s22638_s1 + $0x130] sm:$0xff]   ;;  %v6039_v8 = vshll.u32 %v20673_v37, 16 }
 0x169   : > { %v2294_v3 = vrot.slane %v2292_v15, 4  ;;  %v6043_v40 = vshrl.u32 %v20673_v37, 16  ;;  %v20707_v15 = vld [vmem:[#allocation2 + $0x58] sm:$0xf] }
 0x16a   : > { %17007 = vmatmul.mubr.bf16.gmra.mrb[12].mxu0 %v18358_v9  ;;  %17291 = vmatmul.mubr.bf16.gmra.mrb[8].mxu1 %v18352_v1  ;;  %v18364_v9 = vld [vmem:[%s22638_s1 + $0x140] sm:$0xff]   ;;  %v6023_v33 = vrot.slane %v6022_v50, 4  ;;  %v6030_v1 = vshrl.u32 %v5900_v10, 16 }
 0x16b   : > { %17023 = vmatpush3.bf16.msra.mxu0 %v18359_v55  ;;  %17307 = vmatpush3.bf16.msra.mxu1 %v18353_v14  ;;  %v6033_v55 = vshll.u32 %v5900_v10, 16  ;;  %v6018_v14 = vsel %vm19541_vm7, %v6013_v17, %v20664_v51  ;;  %v2295_v21 = vor.u32 %v2294_v3, %v20689_v38  ;;  %v18360_v50 = vld [vmem:[#allocation2 + $0xc0] sm:$0xff]   ;;  %v18366_v51 = vld [vmem:[%s22638_s1 + $0x148] sm:$0xff]   ;;  %v22782_v17 = vsel %vm19541_vm7, %v20509_v29, %v20466_v28  ;;  %v20746_v29 = vld [vmem:[#allocation2 + $0xb0] sm:$0x1] }
 0x16c   : > { %17294 = vmatprep.mubr.bf16.mxu1 %v18357_v53  ;;  %17308 = vmatprep.subr.bf16.mxu1 %v18355_v13  ;;  %v2285_v53 = vor.u32 %v2284_v16, %v2281_v25  ;;  %v6028_v10 = vsel %vm19541_vm7, %v6023_v33, %v6027_v27  ;;  %v6032_v23 = vrot.slane %v6030_v1, 4  ;;  %v18363_v16 = vld [vmem:[%s22638_s1 + $0x138] sm:$0xff]   ;;  %v22784_v25 = vsel %vm19541_vm7, %v20556_v26, %v20511_v43  ;;  %v5903_v1 = vld [vmem:[#allocation2 + $0xb4] sm:$0xf] }
 0x16d   : > { %17024 = vmatprep.subr.bf16.mxu0 %v18362_v61  ;;  %17026 = vmatprep.mubr.bf16.mxu0 %v20534_v60  ;;  %v6035_v22 = vrot.slane %v6033_v55, 5  ;;  %v22781_v60 = vsel %vm19541_vm7, %v20521_v41, %v20503_v57  ;;  %v22785_v57 = vsel %vm19541_vm7, %v20588_v11, %v20564_v49  ;;  %v20744_v28 = vcombine.low %v5994_v20, %v6004_v47  ;;  %v20748_v33 = vld [vmem:[#allocation2 + $0x5c] sm:$0x1]  ;;  %v20761_v47 = vld [vmem:[#allocation2 + $0xb8] sm:$0xf] }
 0x16e   : > { %v15234_v27 = vcombine.low %v22782_v17, %v22781_v60  ;;  %v20742_v41 = vcombine.low %v22785_v57, %v2253_v62  ;;  %v20752_v43 = vrot.slane %v2295_v21, 4  ;;  %v20754_v26 = vrot.slane %v2298_v54, 5  ;;  %v20789_v60 = vld [vmem:[#allocation2 + $0x64] sm:$0xf] }
 0x16f   : > { %17025 = vmatpush3.bf16.msra.mxu0 %v18362_v61  ;;  %v22783_v61 = vsel %vm19541_vm7, %v20568_v35, %v20570_v19  ;;  %17309 = vmatpush3.bf16.msra.mxu1 %v18355_v13  ;;  %v20750_v35 = vrot.slane %v2285_v53, 4  ;;  %v2303_v19 = vshrl.u32 %v2152_v12, 16  ;;  %v20756_v49 = vcombine.low %v2267_v0, %v2277_v24  ;;  %v18368_v0 = vld [vmem:[%s22638_s1 + $0x150] sm:$0xff]  }
 0x170   : > { %v20735_v3 = vcombine.low %v22784_v25, %v22783_v61  ;;  %17042 = vmatprep.subr.bf16.mxu0 %v18364_v9  ;;  %17310 = vmatprep.subr.bf16.mxu1 %v18361_v5  ;;  %v20758_v11 = vcombine.low %v6018_v14, %v6028_v10  ;;  %v2306_v62 = vshll.u32 %v2152_v12, 16  ;;  %v2312_v20 = vshll.u32 %v20707_v15, 16  ;;  %v20783_v10 = vld [vmem:[#allocation2 + $0xbc] sm:$0x1] }
 0x171   : > { %v6036_v13 = vor.u32 %v6035_v22, %v6032_v23  ;;  %v20764_v55 = vrot.slane %v6039_v8, 5  ;;  %v6045_v53 = vrot.slane %v6043_v40, 4  ;;  %v6049_v54 = vshll.u32 %v20746_v29, 16  ;;  %22786 = vst [vmem:[#allocation29_spill] sm:$0xff] %v20783_v10  ;;  %v2155_v22 = vld [vmem:[#allocation2 + $0x60] sm:$0xf] }
 0x172   : > { %17027 = vmatmul.mubr.bf16.vlgmr.msra.gmra.mrb[0].mxu0 %v20546_v36  ;;  %17295 = vmatmul.mubr.bf16.gmra.mrb[12].mxu1 %v18360_v50  ;;  %v2305_v24 = vrot.slane %v2303_v19, 4  ;;  %v2308_v14 = vrot.slane %v2306_v62, 5  ;;  %v20770_v21 = vrot.slane %v2312_v20, 5  ;;  %v2316_v12 = vshrl.u32 %v20707_v15, 16 }
 0x173   : > { %17043 = vmatpush3.bf16.msra.mxu0 %v18364_v9  ;;  %17311 = vmatpush3.bf16.msra.mxu1 %v18361_v5  ;;  %v2291_v36 = vsel %vm19541_vm7, %v20750_v35, %v20689_v38  ;;  %v2301_v9 = vsel %vm19541_vm7, %v20752_v43, %v20754_v26  ;;  %v2322_v8 = vshll.u32 %v20748_v33, 16  ;;  %v6054_v23 = vshrl.u32 %v5903_v1, 16  ;;  %v18367_v35 = vld [vmem:[%s22638_s1 + $0x148] sm:$0xff]  }
 0x174   : > { %17314 = vmatprep.mubr.bf16.mxu1 %v20544_v39  ;;  %17312 = vmatprep.subr.bf16.mxu1 %v18363_v16  ;;  %v18365_v39 = vld [vmem:[%s22638_s1 + $0x140] sm:$0xff]   ;;  %v2309_v5 = vor.u32 %v2308_v14, %v2305_v24  ;;  %v2318_v40 = vrot.slane %v2316_v12, 4  ;;  %v6057_v38 = vshll.u32 %v5903_v1, 16  ;;  %v6063_v50 = vshll.u32 %v20761_v47, 16 }
 0x175   : > { %17044 = vmatprep.subr.bf16.mxu0 %v18366_v51  ;;  %17030 = vmatprep.mubr.bf16.mxu0 %v15234_v27  ;;  %v20791_v17 = vrot.slane %v6036_v13, 4  ;;  %v20793_v61 = vrot.slane %v2322_v8, 5  ;;  %v6056_v25 = vrot.slane %v6054_v23, 4  ;;  %v6067_v57 = vshrl.u32 %v20761_v47, 16  ;;  %v20803_v27 = vld [vmem:[#allocation2 + $0x68] sm:$0x1] }
 0x176   : > { %v6046_v43 = vor.u32 %v6045_v53, %v20764_v55  ;;  %v20800_v26 = vrot.slane %v2309_v5, 4  ;;  %v2319_v19 = vor.u32 %v2318_v40, %v20770_v21  ;;  %v6059_v1 = vrot.slane %v6057_v38, 5  ;;  %v953_v38 = vld [vmem:[#allocation2 + $0xc8] sm:$0x1] }
 0x177   : > { %17045 = vmatpush3.bf16.msra.mxu0 %v18366_v51  ;;  %17313 = vmatpush3.bf16.msra.mxu1 %v18363_v16  ;;  %v20805_v62 = vrot.slane %v6063_v50, 5  ;;  %v6069_v20 = vrot.slane %v6067_v57, 4  ;;  %v6073_v13 = vshll.u32 %v20783_v10, 16  ;;  %v2327_v24 = vshrl.u32 %v2155_v22, 16  ;;  %v18370_v51 = vld [vmem:[%s22638_s1 + $0x158] sm:$0xff]  }
 0x178   : > { %17046 = vmatprep.subr.bf16.mxu0 %v18368_v0  ;;  %17330 = vmatprep.subr.bf16.mxu1 %v18365_v39  ;;  %v20811_v53 = vrot.slane %v6049_v54, 5  ;;  %v2320_v14 = vrot.slane %v2319_v19, 4  ;;  %v6060_v12 = vor.u32 %v6059_v1, %v6056_v25  ;;  %v2330_v8 = vshll.u32 %v2155_v22, 16  ;;  %v5906_v50 = vld [vmem:[#allocation2 + $0xc0] sm:$0xf]  ;;  %v18369_v54 = vld [vmem:[%s22638_s1 + $0x150] sm:$0xff]  }
 0x179   : > { %v15237_v16 = vcombine.low %v2291_v36, %v2301_v9  ;;  %v6070_v23 = vor.u32 %v6069_v20, %v20805_v62  ;;  %v2329_v5 = vrot.slane %v2327_v24, 4  ;;  %v2336_v40 = vshll.u32 %v20789_v60, 16  ;;  %v20827_v22 = vld [vmem:[#allocation2 + $0xc4] sm:$0xf]  ;;  %v2560_v24 = vld [vmem:[#allocation2 + $0xc] sm:$0xe] }
 0x17a   : > { %17031 = vmatmul.mubr.bf16.gmra.mrb[4].mxu0 %v20742_v41  ;;  %17315 = vmatmul.mubr.bf16.vlgmr.msra.gmra.mrb[0].mxu1 %v20550_v6  ;;  %v20820_v57 = vrot.slane %v6046_v43, 4  ;;  %v2315_v41 = vsel %vm19541_vm7, %v20800_v26, %v20770_v21  ;;  %v2332_v36 = vrot.slane %v2330_v8, 5  ;;  %v2340_v9 = vshrl.u32 %v20789_v60, 16  ;;  %v18372_v6 = vld [vmem:[%s22638_s1 + $0x160] sm:$0xff]  }
 0x17b   : > { %17047 = vmatpush3.bf16.msra.mxu0 %v18368_v0  ;;  %17331 = vmatpush3.bf16.msra.mxu1 %v18365_v39  ;;  %v2325_v0 = vsel %vm19541_vm7, %v2320_v14, %v20793_v61  ;;  %v6075_v25 = vrot.slane %v6073_v13, 5  ;;  %v2338_v43 = vrot.slane %v2336_v40, 5  ;;  %v2346_v21 = vshll.u32 %v20803_v27, 16 }
 0x17c   : > { %17318 = vmatprep.mubr.bf16.mxu1 %v20735_v3  ;;  %17332 = vmatprep.subr.bf16.mxu1 %v18367_v35  ;;  %v6061_v26 = vrot.slane %v6060_v12, 4  ;;  %v2333_v19 = vor.u32 %v2332_v36, %v2329_v5  ;;  %v2342_v1 = vrot.slane %v2340_v9, 4  ;;  %v22787_v39 = vrot.slane %v20334_v18, 4 }
 0x17d   : > { %17048 = vmatprep.subr.bf16.mxu0 %v18370_v51  ;;  %17034 = vmatprep.mubr.bf16.mxu0 %v20756_v49  ;;  %v6071_v8 = vrot.slane %v6070_v23, 4  ;;  %v2348_v10 = vrot.slane %v2346_v21, 5  ;;  %v6078_v61 = vshrl.u32 %v5906_v50, 16  ;;  %v6081_v13 = vshll.u32 %v5906_v50, 16  ;;  %v18371_v49 = vld [vmem:[%s22638_s1 + $0x158] sm:$0xff]  }
 0x17e   : > { %v954_v20 = vsel %vm19573_vm10, %v22787_v39, %v953_v38  ;;  %v6042_v14 = vsel %vm19541_vm7, %v20791_v17, %v20764_v55  ;;  %v2334_v12 = vrot.slane %v2333_v19, 4  ;;  %v2343_v5 = vor.u32 %v2342_v1, %v2338_v43  ;;  %v18374_v55 = vld [vmem:[%s22638_s1 + $0x168] sm:$0xff]   ;;  %v2561_v39 = vld [vmem:[#allocation2 + $0x18] sm:$0xe] }
 0x17f   : > { %955 = vst [vmem:[#allocation2 + $0xc8] sm:$0x1] %v954_v20  ;;  %17049 = vmatpush3.bf16.msra.mxu0 %v18370_v51  ;;  %v6087_v18 = vshll.u32 %v20827_v22, 16  ;;  %17333 = vmatpush3.bf16.msra.mxu1 %v18367_v35  ;;  %v6052_v51 = vsel %vm19541_vm7, %v20820_v57, %v20811_v53  ;;  %v6080_v23 = vrot.slane %v6078_v61, 4  ;;  %v6083_v40 = vrot.slane %v6081_v13, 5  ;;  %v18375_v13 = vld [vmem:[%s22638_s1 + $0x168] sm:$0xff]  }
 0x180   : > { %17050 = vmatprep.subr.bf16.mxu0 %v18372_v6  ;;  %v6091_v38 = vshrl.u32 %v20827_v22, 16  ;;  %17334 = vmatprep.subr.bf16.mxu1 %v18369_v54  ;;  %v15238_v17 = vcombine.low %v2315_v41, %v2325_v0  ;;  %v2344_v35 = vrot.slane %v2343_v5, 4  ;;  %v2594_v36 = vrot.slane %v20340_v46, 5  ;;  %v6310_v1 = vld [vmem:[#allocation2 + $0x6c] sm:$0xe] }
 0x181   : > { %v20858_v50 = vrot.slane %v6087_v18, 5  ;;  %v6066_v53 = vsel %vm19541_vm7, %v6061_v26, %v20805_v62  ;;  %v6076_v57 = vsel %vm19541_vm7, %v6071_v8, %v6075_v25  ;;  %v15248_v21 = vrot.slane %v2560_v24, 9  ;;  %v18376_v62 = vld [vmem:[%s22638_s1 + $0x170] sm:$0xff]  }
 0x182   : > { %17035 = vmatmul.mubr.bf16.gmra.mrb[8].mxu0 %v15237_v16  ;;  %v6093_v9 = vrot.slane %v6091_v38, 4  ;;  %17319 = vmatmul.mubr.bf16.gmra.mrb[4].mxu1 %v20744_v28  ;;  %v2339_v41 = vsel %vm19541_vm7, %v2334_v12, %v2338_v43  ;;  %v2349_v0 = vsel %vm19541_vm7, %v2344_v35, %v2348_v10  ;;  %v2596_v46 = vrot.slane %v2594_v36, 4  ;;  %v19027_v16 = vld [vmem:[#allocation2 + $0x14] sm:$0x1]  ;;  %v18373_v10 = vld [vmem:[%s22638_s1 + $0x160] sm:$0xff]  }
 0x183   : > { %17051 = vmatpush3.bf16.msra.mxu0 %v18372_v6  ;;  %v2597_v19 = vrot.slane %v19027_v16, 5  ;;  %17335 = vmatpush3.bf16.msra.mxu1 %v18369_v54  ;;  %v6084_v28 = vor.u32 %v6083_v40, %v6080_v23  ;;  %v15570_v25 = vcombine.low %v6042_v14, %v6052_v51  ;;  %v15571_v43 = vcombine.low %v6066_v53, %v6076_v57  ;;  %v19028_v54 = vld [vmem:[#allocation2 + $0x70] sm:$0xf]  ;;  %v18378_v14 = vld [vmem:[%s22638_s1 + $0x178] sm:$0xff]   ;;  %v2562_v40 = vld [vmem:[#allocation2 + $0x24] sm:$0xe] }
 0x184   : > { %17322 = vmatprep.mubr.bf16.mxu1 %v20758_v11  ;;  %v6094_v6 = vor.u32 %v6093_v9, %v20858_v50  ;;  %17336 = vmatprep.subr.bf16.mxu1 %v18371_v49  ;;  %v6344_v20 = vrot.slane %v19028_v54, 5  ;;  %v15239_v11 = vcombine.low %v2339_v41, %v2349_v0  ;;  %v15581_v8 = vrot.slane %v6310_v1, 9  ;;  %v6311_v23 = vld [vmem:[#allocation2 + $0x78] sm:$0xe]  ;;  %v19029_v35 = vld [vmem:[#allocation2 + $0x74] sm:$0x1] }
 0x185   : > { %17052 = vmatprep.subr.bf16.mxu0 %v18374_v55  ;;  %17038 = vmatprep.mubr.bf16.mxu0 %v15238_v17  ;;  %v15249_v61 = vrot.slane %v2561_v39, 9  ;;  %v2595_v12 = vsel %vm20076_vm13, %v15248_v21, %v2594_v36  ;;  %v2598_v5 = vsel %vm20076_vm13, %v2596_v46, %v2597_v19  ;;  %v2601_v18 = vrot.slane %v20359_v2, 5  ;;  %v2563_v16 = vld [vmem:[#allocation2 + $0x30] sm:$0xe]  ;;  %v18380_v1 = vld [vmem:[%s22638_s1 + $0x180] sm:$0xff]  }
 0x186   : > { %v20879_v26 = vld [vmem:[#allocation2 + $0xc8] sm:$0x1]  ;;  %v2604_v51 = vrot.slane %v20380_v52, 5  ;;  %v6085_v38 = vrot.slane %v6084_v28, 4  ;;  %v6347_v53 = vrot.slane %v19029_v35, 5  ;;  %v6346_v57 = vrot.slane %v6344_v20, 4 }
 0x187   : > { %v6097_v24 = vshll.u32 %v20879_v26, 16  ;;  %17053 = vmatpush3.bf16.msra.mxu0 %v18374_v55  ;;  %17337 = vmatpush3.bf16.msra.mxu1 %v18371_v49  ;;  %v6095_v55 = vrot.slane %v6094_v6, 4  ;;  %v2603_v9 = vrot.slane %v2601_v18, 4  ;;  %v6351_v36 = vrot.slane %v20388_v58, 5  ;;  %v18381_v35 = vld [vmem:[%s22638_s1 + $0x180] sm:$0xff]  }
 0x188   : > { %17054 = vmatprep.subr.bf16.mxu0 %v18376_v62  ;;  %17338 = vmatprep.subr.bf16.mxu1 %v18373_v10  ;;  %v2608_v21 = vrot.slane %v20442_v34, 5  ;;  %v15272_v2 = vcombine.low %v2595_v12, %v2598_v5  ;;  %v2602_v52 = vsel %vm20076_vm13, %v15249_v61, %v2601_v18  ;;  %v15250_v41 = vrot.slane %v2562_v40, 9  ;;  %v2564_v61 = vld [vmem:[#allocation2 + $0x3c] sm:$0xe] }
 0x189   : > { %v6099_v17 = vrot.slane %v6097_v24, 5  ;;  %v2605_v49 = vsel %vm20076_vm13, %v2603_v9, %v2604_v51  ;;  %v2611_v46 = vrot.slane %v20444_v59, 5  ;;  %v6090_v58 = vsel %vm19541_vm7, %v6085_v38, %v20858_v50  ;;  %v18377_v59 = vld [vmem:[%s22638_s1 + $0x170] sm:$0xff]  }
 0x18a   : > { %17039 = vmatmul.mubr.bf16.gmra.mrb[12].mxu0 %v15239_v11  ;;  %17323 = vmatmul.mubr.bf16.gmra.mrb[8].mxu1 %v15570_v25  ;;  %v2610_v0 = vrot.slane %v2608_v21, 4  ;;  %v6345_v19 = vsel %vm20076_vm13, %v15581_v8, %v6344_v20  ;;  %v15582_v39 = vrot.slane %v6311_v23, 9  ;;  %v6348_v50 = vsel %vm20076_vm13, %v6346_v57, %v6347_v53  ;;  %v18379_v11 = vld [vmem:[%s22638_s1 + $0x178] sm:$0xff]   ;;  %v22789_v9 = vld [vmem:[#allocation26_spill] sm:$0xff] }
 0x18b   : > { %17055 = vmatpush3.bf16.msra.mxu0 %v18376_v62  ;;  %17339 = vmatpush3.bf16.msra.mxu1 %v18373_v10  ;;  %v6100_v34 = vsel %vm19541_vm7, %v6095_v55, %v6099_v17  ;;  %v6312_v62 = vld [vmem:[#allocation2 + $0x84] sm:$0xe]  ;;  %v6353_v28 = vrot.slane %v6351_v36, 4  ;;  %v6354_v6 = vrot.slane %v20405_v63, 5  ;;  %v6358_v25 = vrot.slane %v20469_v44, 5 }
 0x18c   : > { %17326 = vmatprep.mubr.bf16.mxu1 %v15571_v43  ;;  %17340 = vmatprep.subr.bf16.mxu1 %v18375_v13  ;;  %v15273_v10 = vcombine.low %v2602_v52, %v2605_v49  ;;  %v15251_v43 = vrot.slane %v2563_v16, 9  ;;  %v2615_v54 = vrot.slane %v20505_v4, 5  ;;  %v15572_v20 = vcombine.low %v6090_v58, %v6100_v34  ;;  %v6313_v44 = vld [vmem:[#allocation2 + $0x90] sm:$0xe]  ;;  %v2565_v17 = vld [vmem:[#allocation2 + $0x48] sm:$0xe] }
 0x18d   : > { %17056 = vmatprep.subr.bf16.mxu0 %v18378_v14  ;;  %17058 = vmatprep.mubr.bf16.mxu0 %v15272_v2  ;;  %v2609_v24 = vsel %vm20076_vm13, %v15250_v41, %v2608_v21  ;;  %v2612_v8 = vsel %vm20076_vm13, %v2610_v0, %v2611_v46  ;;  %v2618_v63 = vrot.slane %v20558_v7, 5  ;;  %v15605_v12 = vcombine.low %v6345_v19, %v6348_v50  ;;  %v22790_v21 = vld [vmem:[#allocation27_spill] sm:$0xff]  ;;  %v6314_v52 = vld [vmem:[#allocation2 + $0x9c] sm:$0xe]  ;;  %v22791_v0 = vld [vmem:[#allocation25_spill] sm:$0xff] }
 0x18e   : > { %v20929_v4 = vsel %vm20076_vm13, %v15582_v39, %v6351_v36  ;;  %v2617_v5 = vrot.slane %v2615_v54, 4  ;;  %v15583_v18 = vrot.slane %v6312_v62, 9  ;;  %v6360_v51 = vrot.slane %v6358_v25, 4  ;;  %v20957_v58 = vld [vmem:[#allocation2 + $0xa8] sm:$0xe]  ;;  %v18386_v50 = vld [vmem:[%s22638_s1 + $0x198] sm:$0xff]  }
 0x18f   : > { %17057 = vmatpush3.bf16.msra.mxu0 %v18378_v14  ;;  %17341 = vmatpush3.bf16.msra.mxu1 %v18375_v13  ;;  %v18382_v14 = vld [vmem:[%s22638_s1 + $0x188] sm:$0xff]   ;;  %v6361_v23 = vrot.slane %v20485_v42, 5  ;;  %v2622_v7 = vrot.slane %v20582_v56, 5  ;;  %v6355_v13 = vsel %vm20076_vm13, %v6353_v28, %v6354_v6  ;;  %v15274_v40 = vcombine.low %v2609_v24, %v2612_v8  ;;  %v18384_v56 = vld [vmem:[%s22638_s1 + $0x190] sm:$0xff]  }
 0x190   : > { %17074 = vmatprep.subr.bf16.mxu0 %v18380_v1  ;;  %17342 = vmatprep.subr.bf16.mxu1 %v18377_v59  ;;  %v2616_v38 = vsel %vm20076_vm13, %v15251_v43, %v2615_v54  ;;  %v6365_v55 = vrot.slane %v20548_v30, 5  ;;  %v2619_v42 = vsel %vm20076_vm13, %v2617_v5, %v2618_v63  ;;  %v15252_v53 = vrot.slane %v2564_v61, 9  ;;  %v2566_v34 = vld [vmem:[#allocation2 + $0x54] sm:$0xe] }
 0x191   : > { %v2624_v57 = vrot.slane %v2622_v7, 4  ;;  %v2625_v36 = vrot.slane %v22789_v9, 5  ;;  %v15584_v30 = vrot.slane %v6313_v44, 9  ;;  %v6368_v2 = vrot.slane %v22790_v21, 5  ;;  %v20975_v24 = vld [vmem:[#allocation2 + $0xb4] sm:$0xe] }
 0x192   : > { %17059 = vmatmul.mubr.bf16.vlgmr.msra.gmra.mrb[0].mxu0 %v15273_v10  ;;  %17327 = vmatmul.mubr.bf16.gmra.mrb[12].mxu1 %v15572_v20  ;;  %v6359_v49 = vsel %vm20076_vm13, %v15583_v18, %v6358_v25  ;;  %v6362_v41 = vsel %vm20076_vm13, %v6360_v51, %v6361_v23  ;;  %v6372_v46 = vrot.slane %v22791_v0, 5  ;;  %v2629_v16 = vrot.slane %v20646_v31, 5  ;;  %v22792_v44 = vld [vmem:[#allocation31_spill] sm:$0xff]  ;;  %v18390_v9 = vld [vmem:[%s22638_s1 + $0x1a8] sm:$0xff]   ;;  %v18389_v0 = vld [vmem:[%s22638_s1 + $0x1a0] sm:$0xff]  }
 0x193   : > { %17075 = vmatpush3.bf16.msra.mxu0 %v18380_v1  ;;  %17343 = vmatpush3.bf16.msra.mxu1 %v18377_v59  ;;  %v15606_v19 = vcombine.low %v20929_v4, %v6355_v13  ;;  %v15275_v1 = vcombine.low %v2616_v38, %v2619_v42  ;;  %v6367_v39 = vrot.slane %v6365_v55, 4  ;;  %v15253_v62 = vrot.slane %v2565_v17, 9  ;;  %v18383_v59 = vld [vmem:[%s22638_s1 + $0x188] sm:$0xff]   ;;  %v18385_v5 = vld [vmem:[%s22638_s1 + $0x190] sm:$0xff]  }
 0x194   : > { %17346 = vmatprep.mubr.bf16.mxu1 %v15605_v12  ;;  %17344 = vmatprep.subr.bf16.mxu1 %v18379_v11  ;;  %v2623_v31 = vsel %vm20076_vm13, %v15252_v53, %v2622_v7  ;;  %v2626_v28 = vsel %vm20076_vm13, %v2624_v57, %v2625_v36  ;;  %v2631_v6 = vrot.slane %v2629_v16, 4  ;;  %v2632_v25 = vrot.slane %v20666_v48, 5  ;;  %v2567_v48 = vld [vmem:[#allocation2 + $0x60] sm:$0xe] }
 0x195   : > { %17076 = vmatprep.subr.bf16.mxu0 %v18382_v14  ;;  %17062 = vmatprep.mubr.bf16.mxu0 %v15274_v40  ;;  %v15607_v10 = vcombine.low %v6359_v49, %v6362_v41  ;;  %v6366_v43 = vsel %vm20076_vm13, %v15584_v30, %v6365_v55  ;;  %v6379_v54 = vrot.slane %v20673_v37, 5  ;;  %v2636_v20 = vrot.slane %v20707_v15, 5  ;;  %v18388_v37 = vld [vmem:[%s22638_s1 + $0x1a0] sm:$0xff]   ;;  %v18392_v49 = vld [vmem:[%s22638_s1 + $0x1b0] sm:$0xff]  }
 0x196   : > { %v15585_v8 = vrot.slane %v6314_v52, 9  ;;  %v6374_v63 = vrot.slane %v6372_v46, 4  ;;  %v6375_v61 = vrot.slane %v22792_v44, 5  ;;  %v6386_v12 = vrot.slane %v20761_v47, 5  ;;  %v6317_v41 = vld [vmem:[#allocation2 + $0xc0] sm:$0xe] }
 0x197   : > { %17077 = vmatpush3.bf16.msra.mxu0 %v18382_v14  ;;  %17345 = vmatpush3.bf16.msra.mxu1 %v18379_v11  ;;  %v6369_v11 = vsel %vm20076_vm13, %v6367_v39, %v6368_v2  ;;  %v15276_v4 = vcombine.low %v2623_v31, %v2626_v28  ;;  %v15586_v15 = vrot.slane %v20957_v58, 9  ;;  %v15254_v14 = vrot.slane %v2566_v34, 9  ;;  %v18402_v44 = vld [vmem:[%s22638_s1 + $0x1c8] sm:$0xff]  }
 0x198   : > { %17078 = vmatprep.subr.bf16.mxu0 %v18384_v56  ;;  %17362 = vmatprep.subr.bf16.mxu1 %v18381_v35  ;;  %v2630_v47 = vsel %vm20076_vm13, %v15253_v62, %v2629_v16  ;;  %v2633_v18 = vsel %vm20076_vm13, %v2631_v6, %v2632_v25  ;;  %v2638_v51 = vrot.slane %v2636_v20, 4  ;;  %v2639_v23 = vrot.slane %v20748_v33, 5  ;;  %v18391_v62 = vld [vmem:[%s22638_s1 + $0x1a8] sm:$0xff]   ;;  %v18394_v6 = vld [vmem:[%s22638_s1 + $0x1b8] sm:$0xff]  }
 0x199   : > { %v6381_v7 = vrot.slane %v6379_v54, 4  ;;  %v6382_v13 = vrot.slane %v20746_v29, 5  ;;  %v15587_v40 = vrot.slane %v20975_v24, 9  ;;  %v2643_v38 = vrot.slane %v20789_v60, 5  ;;  %v18387_v60 = vld [vmem:[%s22638_s1 + $0x198] sm:$0xff]  }
 0x19a   : > { %17063 = vmatmul.mubr.bf16.gmra.mrb[4].mxu0 %v15275_v1  ;;  %17347 = vmatmul.mubr.bf16.vlgmr.msra.gmra.mrb[0].mxu1 %v15606_v19  ;;  %v6373_v55 = vsel %vm20076_vm13, %v15585_v8, %v6372_v46  ;;  %v6376_v17 = vsel %vm20076_vm13, %v6374_v63, %v6375_v61  ;;  %v6388_v42 = vrot.slane %v6386_v12, 4  ;;  %v15277_v53 = vcombine.low %v2630_v47, %v2633_v18  ;;  %v18396_v25 = vld [vmem:[#allocation2 + $0x18] sm:$0xff]   ;;  %v18404_v61 = vld [vmem:[#allocation2 + $0x30] sm:$0xff]   ;;  %v21068_v18 = vld [vmem:[#allocation2 + $0x20] sm:$0x1] }
 0x19b   : > { %17079 = vmatpush3.bf16.msra.mxu0 %v18384_v56  ;;  %17363 = vmatpush3.bf16.msra.mxu1 %v18381_v35  ;;  %v22793_v56 = vld [vmem:[#allocation29_spill] sm:$0xff]  ;;  %v15608_v35 = vcombine.low %v6366_v43, %v6369_v11  ;;  %v15255_v57 = vrot.slane %v2567_v48, 9  ;;  %v2646_v29 = vrot.slane %v20803_v27, 5  ;;  %v2637_v36 = vsel %vm20076_vm13, %v15254_v14, %v2636_v20  ;;  %v18395_v8 = vld [vmem:[%s22638_s1 + $0x1b8] sm:$0xff]  }
 0x19c   : > { %17350 = vmatprep.mubr.bf16.mxu1 %v15607_v10  ;;  %17364 = vmatprep.subr.bf16.mxu1 %v18383_v59  ;;  %v6389_v33 = vrot.slane %v22793_v56, 5  ;;  %v2640_v30 = vsel %vm20076_vm13, %v2638_v51, %v2639_v23  ;;  %v2645_v21 = vrot.slane %v2643_v38, 4  ;;  %v6393_v2 = vrot.slane %v20827_v22, 5  ;;  %v18398_v20 = vld [vmem:[#allocation2 + $0x24] sm:$0xff]   ;;  %v18397_v63 = vld [vmem:[#allocation2 + $0x78] sm:$0xff]  }
 0x19d   : > { %17080 = vmatprep.subr.bf16.mxu0 %v18386_v50  ;;  %17066 = vmatprep.mubr.bf16.mxu0 %v15276_v4  ;;  %v15609_v27 = vcombine.low %v6373_v55, %v6376_v17  ;;  %v15278_v52 = vcombine.low %v2637_v36, %v2640_v30  ;;  %v2644_v22 = vsel %vm20076_vm13, %v15255_v57, %v2643_v38  ;;  %v6396_v28 = vrot.slane %v20879_v26, 5  ;;  %v18399_v26 = vld [vmem:[%s22638_s1 + $0x1c0] sm:$0xff]   ;;  %v18405_v4 = vld [vmem:[#allocation2 + $0x90] sm:$0xff]   ;;  %v18403_v14 = vld [vmem:[%s22638_s1 + $0x1c8] sm:$0xff]  }
 0x19e   : > { %v2647_v46 = vsel %vm20076_vm13, %v2645_v21, %v2646_v29  ;;  %v6380_v16 = vsel %vm20076_vm13, %v15586_v15, %v6379_v54  ;;  %v6383_v58 = vsel %vm20076_vm13, %v6381_v7, %v6382_v13  ;;  %v6387_v34 = vsel %vm20076_vm13, %v15587_v40, %v6386_v12  ;;  %v18393_v54 = vld [vmem:[%s22638_s1 + $0x1b0] sm:$0xff]   ;;  %v18400_v48 = vld [vmem:[#allocation2 + $0x84] sm:$0xff]   ;;  %v3101_v15 = vld [vmem:[#allocation2 + $0x18] sm:$0xf] }
 0x19f   : > { %17081 = vmatpush3.bf16.msra.mxu0 %v18386_v50  ;;  %17365 = vmatpush3.bf16.msra.mxu1 %v18383_v59  ;;  %v6390_v19 = vsel %vm20076_vm13, %v6388_v42, %v6389_v33  ;;  %v15279_v1 = vcombine.low %v2644_v22, %v2647_v46  ;;  %v15610_v39 = vcombine.low %v6380_v16, %v6383_v58  ;;  %v15588_v59 = vrot.slane %v6317_v41, 9  ;;  %v18407_v12 = vld [vmem:[%s22638_s1 + $0x1d0] sm:$0xff]   ;;  %v18401_v11 = vld [vmem:[%s22638_s1 + $0x1c0] sm:$0xff]   ;;  %v21066_v47 = vld [vmem:[#allocation2 + $0x1c] sm:$0xf] }
 0x1a0   : > { %17082 = vmatprep.subr.bf16.mxu0 %v18388_v37  ;;  %17366 = vmatprep.subr.bf16.mxu1 %v18385_v5  ;;  %v15611_v50 = vcombine.low %v6387_v34, %v6390_v19  ;;  %v6395_v31 = vrot.slane %v6393_v2, 4  ;;  %v3126_v51 = vshrl.u32 %v3101_v15, 16  ;;  %v3129_v23 = vshll.u32 %v3101_v15, 16  ;;  %v18412_v7 = vld [vmem:[#allocation2 + $0x48] sm:$0xff]   ;;  %v6849_v55 = vld [vmem:[#allocation2 + $0x78] sm:$0xf] }
 0x1a1   : > { %v6394_v10 = vsel %vm20076_vm13, %v15588_v59, %v6393_v2  ;;  %v3135_v13 = vshll.u32 %v21066_v47, 16  ;;  %v3139_v40 = vshrl.u32 %v21066_v47, 16  ;;  %v3145_v38 = vshll.u32 %v21068_v18, 16  ;;  %v21073_v56 = vld [vmem:[#allocation2 + $0x7c] sm:$0xf]  ;;  %v18423_v15 = vld [vmem:[%s22638_s1 + $0x1f0] sm:$0xff]  }
 0x1a2   : > { %17067 = vmatmul.mubr.bf16.gmra.mrb[8].mxu0 %v15277_v53  ;;  %17351 = vmatmul.mubr.bf16.gmra.mrb[4].mxu1 %v15608_v35  ;;  %v6397_v43 = vsel %vm20076_vm13, %v6395_v31, %v6396_v28  ;;  %v3128_v17 = vrot.slane %v3126_v51, 4  ;;  %v3131_v42 = vrot.slane %v3129_v23, 5  ;;  %v21075_v33 = vld [vmem:[#allocation2 + $0x80] sm:$0x1]  ;;  %v6874_v29 = vshrl.u32 %v6849_v55, 16  ;;  %v18411_v28 = vld [vmem:[%s22638_s1 + $0x1d8] sm:$0xff]  }
 0x1a3   : > { %17083 = vmatpush3.bf16.msra.mxu0 %v18388_v37  ;;  %17367 = vmatpush3.bf16.msra.mxu1 %v18385_v5  ;;  %v15612_v24 = vcombine.low %v6394_v10, %v6397_v43  ;;  %v18406_v37 = vld [vmem:[#allocation2 + $0x3c] sm:$0xff]   ;;  %v21077_v35 = vrot.slane %v3135_v13, 5  ;;  %v3141_v53 = vrot.slane %v3139_v40, 4  ;;  %v21079_v57 = vrot.slane %v3145_v38, 5  ;;  %v21093_v22 = vld [vmem:[#allocation2 + $0x2c] sm:$0x1] }
 0x1a4   : > { %17354 = vmatprep.mubr.bf16.mxu1 %v15609_v27  ;;  %17368 = vmatprep.subr.bf16.mxu1 %v18387_v60  ;;  %v18410_v5 = vld [vmem:[%s22638_s1 + $0x1d8] sm:$0xff]   ;;  %v3132_v36 = vor.u32 %v3131_v42, %v3128_v17  ;;  %v6877_v30 = vshll.u32 %v6849_v55, 16  ;;  %v6883_v21 = vshll.u32 %v21073_v56, 16  ;;  %v6887_v2 = vshrl.u32 %v21073_v56, 16  ;;  %v21086_v27 = vld [vmem:[#allocation2 + $0x28] sm:$0xf] }
 0x1a5   : > { %17084 = vmatprep.subr.bf16.mxu0 %v18390_v9  ;;  %17070 = vmatprep.mubr.bf16.mxu0 %v15278_v52  ;;  %v18415_v52 = vld [vmem:[%s22638_s1 + $0x1e0] sm:$0xff]   ;;  %v6876_v41 = vrot.slane %v6874_v29, 4  ;;  %v3159_v43 = vshll.u32 %v21086_v27, 16  ;;  %v18422_v17 = vld [vmem:[#allocation2 + $0x6c] sm:$0xff]  }
 0x1a6   : > { %v18408_v16 = vld [vmem:[#allocation2 + $0x9c] sm:$0xff]   ;;  %v3133_v58 = vrot.slane %v3132_v36, 4  ;;  %v6879_v34 = vrot.slane %v6877_v30, 5  ;;  %v6885_v19 = vrot.slane %v6883_v21, 5  ;;  %v3107_v21 = vld [vmem:[#allocation2 + $0x30] sm:$0xf] }
 0x1a7   : > { %17085 = vmatpush3.bf16.msra.mxu0 %v18390_v9  ;;  %17369 = vmatpush3.bf16.msra.mxu1 %v18387_v60  ;;  %v3104_v60 = vld [vmem:[#allocation2 + $0x24] sm:$0xf]  ;;  %v18409_v9 = vld [vmem:[%s22638_s1 + $0x1d0] sm:$0xff]  }
 0x1a8   : > { %17086 = vmatprep.subr.bf16.mxu0 %v18392_v49  ;;  %17370 = vmatprep.subr.bf16.mxu1 %v18389_v0  ;;  %v3150_v46 = vshrl.u32 %v3104_v60, 16  ;;  %v3153_v31 = vshll.u32 %v3104_v60, 16 }
 0x1aa   : > { %17071 = vmatmul.mubr.bf16.gmra.mrb[12].mxu0 %v15279_v1  ;;  %17355 = vmatmul.mubr.bf16.gmra.mrb[8].mxu1 %v15610_v39  ;;  %v6889_v1 = vrot.slane %v6887_v2, 4  ;;  %v18413_v39 = vld [vmem:[#allocation2 + $0xa8] sm:$0xff]  }
 0x1ab   : > { %17087 = vmatpush3.bf16.msra.mxu0 %v18392_v49  ;;  %17371 = vmatpush3.bf16.msra.mxu1 %v18389_v0  ;;  %v3142_v49 = vor.u32 %v3141_v53, %v21077_v35  ;;  %v6893_v0 = vshll.u32 %v21075_v33, 16 }
 0x1ac   : > { %17358 = vmatprep.mubr.bf16.mxu1 %v15611_v50  ;;  %17372 = vmatprep.subr.bf16.mxu1 %v18391_v62  ;;  %v3152_v50 = vrot.slane %v3150_v46, 4  ;;  %v18416_v46 = vld [vmem:[#allocation2 + $0xb4] sm:$0xff]  }
 0x1ad   : > { %17088 = vmatprep.subr.bf16.mxu0 %v18394_v6  ;;  %17090 = vmatprep.mubr.bf16.mxu0 %v18396_v25  ;;  %v3143_v59 = vrot.slane %v3142_v49, 4  ;;  %v6890_v25 = vor.u32 %v6889_v1, %v6885_v19  ;;  %v6895_v10 = vrot.slane %v6893_v0, 5  ;;  %v21135_v49 = vld [vmem:[#allocation2 + $0x34] sm:$0xf]  ;;  %v3174_v0 = vshrl.u32 %v3107_v21, 16 }
 0x1ae   : > { %v6855_v1 = vld [vmem:[#allocation2 + $0x90] sm:$0xf] }
 0x1af   : > { %17089 = vmatpush3.bf16.msra.mxu0 %v18394_v6  ;;  %17373 = vmatpush3.bf16.msra.mxu1 %v18391_v62  ;;  %v18414_v62 = vld [vmem:[#allocation2 + $0x54] sm:$0xff]   ;;  %v6880_v6 = vor.u32 %v6879_v34, %v6876_v41 }
 0x1b0   : > { %17106 = vmatprep.subr.bf16.mxu0 %v18399_v26  ;;  %17374 = vmatprep.subr.bf16.mxu1 %v18393_v54  ;;  %v21137_v41 = vld [vmem:[#allocation2 + $0x38] sm:$0x1] }
 0x1b2   : > { %17091 = vmatmul.mubr.bf16.vlgmr.msra.gmra.mrb[0].mxu0 %v18398_v20  ;;  %17359 = vmatmul.mubr.bf16.gmra.mrb[12].mxu1 %v15612_v24  ;;  %v18418_v20 = vld [vmem:[%s22638_s1 + $0x1e8] sm:$0xff]   ;;  %v3138_v24 = vsel %vm19541_vm7, %v3133_v58, %v21077_v35 }
 0x1b3   : > { %17107 = vmatpush3.bf16.msra.mxu0 %v18399_v26  ;;  %17375 = vmatpush3.bf16.msra.mxu1 %v18393_v54  ;;  %v6852_v26 = vld [vmem:[#allocation2 + $0x84] sm:$0xf]  ;;  %v21099_v54 = vld [vmem:[#allocation2 + $0x88] sm:$0xf] }
 0x1b4   : > { %17378 = vmatprep.mubr.bf16.mxu1 %v18397_v63  ;;  %17376 = vmatprep.subr.bf16.mxu1 %v18395_v8  ;;  %v3163_v63 = vshrl.u32 %v21086_v27, 16  ;;  %v6898_v23 = vshrl.u32 %v6852_v26, 16  ;;  %v6901_v38 = vshll.u32 %v6852_v26, 16  ;;  %v6907_v55 = vshll.u32 %v21099_v54, 16 }
 0x1b5   : > { %17108 = vmatprep.subr.bf16.mxu0 %v18402_v44  ;;  %17094 = vmatprep.mubr.bf16.mxu0 %v18404_v61  ;;  %v21109_v61 = vld [vmem:[#allocation2 + $0x8c] sm:$0x1]  ;;  %v6911_v36 = vshrl.u32 %v21099_v54, 16 }
 0x1b6   : > { %v6903_v29 = vrot.slane %v6901_v38, 5  ;;  %v21127_v60 = vrot.slane %v6907_v55, 5  ;;  %v6917_v30 = vshll.u32 %v21109_v61, 16  ;;  %v18425_v38 = vld [vmem:[%s22638_s1 + $0x1f0] sm:$0xff]  }
 0x1b7   : > { %17109 = vmatpush3.bf16.msra.mxu0 %v18402_v44  ;;  %17377 = vmatpush3.bf16.msra.mxu1 %v18395_v8  ;;  %v3155_v8 = vrot.slane %v3153_v31, 5  ;;  %v3169_v44 = vshll.u32 %v21093_v22, 16  ;;  %v6913_v58 = vrot.slane %v6911_v36, 4  ;;  %v3176_v31 = vrot.slane %v3174_v0, 4 }
 0x1b8   : > { %17110 = vmatprep.subr.bf16.mxu0 %v18407_v12  ;;  %17394 = vmatprep.subr.bf16.mxu1 %v18401_v11  ;;  %v6919_v34 = vrot.slane %v6917_v30, 5 }
 0x1b9   : > { %v3171_v51 = vrot.slane %v3169_v44, 5  ;;  %v3193_v44 = vshll.u32 %v21137_v41, 16 }
 0x1ba   : > { %17095 = vmatmul.mubr.bf16.gmra.mrb[4].mxu0 %v18406_v37  ;;  %17379 = vmatmul.mubr.bf16.vlgmr.msra.gmra.mrb[0].mxu1 %v18400_v48  ;;  %v3148_v48 = vsel %vm19541_vm7, %v3143_v59, %v21079_v57  ;;  %v3161_v37 = vrot.slane %v3159_v43, 5  ;;  %v6900_v57 = vrot.slane %v6898_v23, 4  ;;  %v18426_v59 = vld [vmem:[%s22638_s1 + $0x1f8] sm:$0xff]   ;;  %v6914_v43 = vor.u32 %v6913_v58, %v21127_v60  ;;  %v21181_v58 = vld [vmem:[#allocation2 + $0xa0] sm:$0xf] }
 0x1bb   : > { %17111 = vmatpush3.bf16.msra.mxu0 %v18407_v12  ;;  %17395 = vmatpush3.bf16.msra.mxu1 %v18401_v11  ;;  %v18420_v12 = vld [vmem:[#allocation2 + $0x60] sm:$0xff]   ;;  %v6881_v11 = vrot.slane %v6880_v6, 4  ;;  %v21125_v42 = vcombine.low %v3138_v24, %v3148_v48  ;;  %v3183_v6 = vshll.u32 %v21135_v49, 16  ;;  %v21152_v24 = vld [vmem:[#allocation2 + $0x98] sm:$0x1] }
 0x1bc   : > { %17382 = vmatprep.mubr.bf16.mxu1 %v18405_v4  ;;  %17396 = vmatprep.subr.bf16.mxu1 %v18403_v14  ;;  %v6891_v4 = vrot.slane %v6890_v25, 4  ;;  %v3187_v25 = vshrl.u32 %v21135_v49, 16  ;;  %v3110_v48 = vld [vmem:[#allocation2 + $0x3c] sm:$0xf]  ;;  %v6941_v30 = vshll.u32 %v21152_v24, 16 }
 0x1bd   : > { %17112 = vmatprep.subr.bf16.mxu0 %v18410_v5  ;;  %17098 = vmatprep.mubr.bf16.mxu0 %v18412_v7  ;;  %v18417_v7 = vld [vmem:[%s22638_s1 + $0x1e0] sm:$0xff]   ;;  %v6886_v13 = vsel %vm19541_vm7, %v6881_v11, %v6885_v19  ;;  %v3177_v19 = vshll.u32 %v3107_v21, 16  ;;  %v6858_v21 = vld [vmem:[#allocation2 + $0x9c] sm:$0xf] }
 0x1be   : > { %v6896_v40 = vsel %vm19541_vm7, %v6891_v4, %v6895_v10  ;;  %v6915_v4 = vrot.slane %v6914_v43, 4 }
 0x1bf   : > { %17113 = vmatpush3.bf16.msra.mxu0 %v18410_v5  ;;  %17397 = vmatpush3.bf16.msra.mxu1 %v18403_v14  ;;  %v3156_v14 = vor.u32 %v3155_v8, %v3152_v50  ;;  %v3165_v5 = vrot.slane %v3163_v63, 4  ;;  %v21131_v2 = vcombine.low %v6886_v13, %v6896_v40  ;;  %v3179_v26 = vrot.slane %v3177_v19, 5 }
 0x1c0   : > { %17114 = vmatprep.subr.bf16.mxu0 %v18415_v52  ;;  %17398 = vmatprep.subr.bf16.mxu1 %v18409_v9  ;;  %v3185_v8 = vrot.slane %v3183_v6, 5  ;;  %v3189_v63 = vrot.slane %v3187_v25, 4  ;;  %v3195_v13 = vrot.slane %v3193_v44, 5  ;;  %v6920_v55 = vsel %vm19541_vm7, %v6915_v4, %v6919_v34  ;;  %v18432_v4 = vld [vmem:[%s22638_s1 + $0x210] sm:$0xff]  }
 0x1c1   : > { %v3157_v35 = vrot.slane %v3156_v14, 4  ;;  %v3166_v53 = vor.u32 %v3165_v5, %v3161_v37  ;;  %v6925_v14 = vshll.u32 %v6855_v1, 16  ;;  %v21158_v5 = vld [vmem:[#allocation2 + $0x40] sm:$0xf]  ;;  %v6943_v19 = vrot.slane %v6941_v30, 5 }
 0x1c2   : > { %17099 = vmatmul.mubr.bf16.gmra.mrb[8].mxu0 %v18414_v62  ;;  %17383 = vmatmul.mubr.bf16.gmra.mrb[4].mxu1 %v18408_v16  ;;  %v6904_v16 = vor.u32 %v6903_v29, %v6900_v57  ;;  %v18421_v62 = vld [vmem:[#allocation2 + $0xc0] sm:$0xff]   ;;  %v3190_v23 = vor.u32 %v3189_v63, %v3185_v8  ;;  %v18424_v57 = vld [vmem:[#allocation2 + $0xcc] sm:$0xff]   ;;  %v6946_v44 = vshrl.u32 %v6858_v21, 16 }
 0x1c3   : > { %17115 = vmatpush3.bf16.msra.mxu0 %v18415_v52  ;;  %17399 = vmatpush3.bf16.msra.mxu1 %v18409_v9  ;;  %v3162_v9 = vsel %vm19541_vm7, %v3157_v35, %v3161_v37  ;;  %v3167_v52 = vrot.slane %v3166_v53, 4  ;;  %v3180_v37 = vor.u32 %v3179_v26, %v3176_v31  ;;  %v21170_v53 = vld [vmem:[#allocation2 + $0x44] sm:$0x1] }
 0x1c4   : > { %17386 = vmatprep.mubr.bf16.mxu1 %v18413_v39  ;;  %17400 = vmatprep.subr.bf16.mxu1 %v18411_v28  ;;  %v18419_v39 = vld [vmem:[%s22638_s1 + $0x1e8] sm:$0xff]   ;;  %v6905_v10 = vrot.slane %v6904_v16, 4  ;;  %v3198_v16 = vshrl.u32 %v3110_v48, 16  ;;  %v3217_v43 = vshll.u32 %v21170_v53, 16  ;;  %v21191_v26 = vld [vmem:[#allocation2 + $0xa4] sm:$0x1] }
 0x1c5   : > { %17116 = vmatprep.subr.bf16.mxu0 %v18418_v20  ;;  %17102 = vmatprep.mubr.bf16.mxu0 %v18420_v12  ;;  %v3172_v50 = vsel %vm19541_vm7, %v3167_v52, %v3171_v51  ;;  %v6922_v12 = vshrl.u32 %v6855_v1, 16  ;;  %v18428_v51 = vld [vmem:[%s22638_s1 + $0x200] sm:$0xff]   ;;  %v3201_v1 = vshll.u32 %v3110_v48, 16 }
 0x1c6   : > { %v6910_v11 = vsel %vm19541_vm7, %v6905_v10, %v21127_v60  ;;  %v3191_v60 = vrot.slane %v3190_v23, 4  ;;  %v3200_v6 = vrot.slane %v3198_v16, 4  ;;  %v3211_v10 = vshrl.u32 %v21158_v5, 16 }
 0x1c7   : > { %17117 = vmatpush3.bf16.msra.mxu0 %v18418_v20  ;;  %17401 = vmatpush3.bf16.msra.mxu1 %v18411_v28  ;;  %v15337_v28 = vcombine.low %v3162_v9, %v3172_v50  ;;  %v21150_v20 = vld [vmem:[#allocation2 + $0x94] sm:$0xf]  ;;  %v6924_v40 = vrot.slane %v6922_v12, 4  ;;  %v21173_v29 = vcombine.low %v6910_v11, %v6920_v55  ;;  %v18427_v9 = vld [vmem:[%s22638_s1 + $0x1f8] sm:$0xff]   ;;  %v3203_v25 = vrot.slane %v3201_v1, 5 }
 0x1c8   : > { %17118 = vmatprep.subr.bf16.mxu0 %v18423_v15  ;;  %17402 = vmatprep.subr.bf16.mxu1 %v18417_v7  ;;  %v6935_v35 = vshrl.u32 %v21150_v20, 16  ;;  %v3196_v34 = vsel %vm19541_vm7, %v3191_v60, %v3195_v13  ;;  %v6949_v12 = vshll.u32 %v6858_v21, 16  ;;  %v3213_v48 = vrot.slane %v3211_v10, 4 }
 0x1c9   : > { %v3219_v11 = vrot.slane %v3217_v43, 5 }
 0x1ca   : > { %17103 = vmatmul.mubr.bf16.gmra.mrb[12].mxu0 %v18422_v17  ;;  %17387 = vmatmul.mubr.bf16.gmra.mrb[8].mxu1 %v18416_v46  ;;  %v6927_v17 = vrot.slane %v6925_v14, 5  ;;  %v6937_v46 = vrot.slane %v6935_v35, 4  ;;  %v3113_v14 = vld [vmem:[#allocation2 + $0x48] sm:$0xf]  ;;  %v6951_v13 = vrot.slane %v6949_v12, 5 }
 0x1cb   : > { %17119 = vmatpush3.bf16.msra.mxu0 %v18423_v15  ;;  %17403 = vmatpush3.bf16.msra.mxu1 %v18417_v7  ;;  %v6931_v15 = vshll.u32 %v21150_v20, 16  ;;  %v3181_v7 = vrot.slane %v3180_v37, 4  ;;  %v6955_v37 = vshll.u32 %v21181_v58, 16  ;;  %v18431_v35 = vld [vmem:[%s22638_s1 + $0x208] sm:$0xff]   ;;  %v3222_v30 = vshrl.u32 %v3113_v14, 16 }
 0x1cc   : > { %17390 = vmatprep.mubr.bf16.mxu1 %v18421_v62  ;;  %17404 = vmatprep.subr.bf16.mxu1 %v18419_v39  ;;  %v6928_v0 = vor.u32 %v6927_v17, %v6924_v40  ;;  %v3207_v62 = vshll.u32 %v21158_v5, 16  ;;  %v6959_v40 = vshrl.u32 %v21181_v58, 16  ;;  %v3225_v16 = vshll.u32 %v3113_v14, 16  ;;  %v21235_v12 = vld [vmem:[#allocation2 + $0xb0] sm:$0x1] }
 0x1cd   : > { %17120 = vmatprep.subr.bf16.mxu0 %v18426_v59  ;;  %17122 = vmatprep.mubr.bf16.mxu0 %v21125_v42  ;;  %v6933_v36 = vrot.slane %v6931_v15, 5  ;;  %v3186_v52 = vsel %vm19541_vm7, %v3181_v7, %v3185_v8  ;;  %v18430_v42 = vld [vmem:[%s22638_s1 + $0x208] sm:$0xff]   ;;  %v6957_v17 = vrot.slane %v6955_v37, 5 }
 0x1ce   : > { %v6929_v50 = vrot.slane %v6928_v0, 4  ;;  %v21206_v15 = vld [vmem:[#allocation2 + $0x4c] sm:$0xf]  ;;  %v6961_v60 = vrot.slane %v6959_v40, 4  ;;  %v18434_v0 = vld [vmem:[%s22638_s1 + $0x218] sm:$0xff]  }
 0x1cf   : > { %17121 = vmatpush3.bf16.msra.mxu0 %v18426_v59  ;;  %17405 = vmatpush3.bf16.msra.mxu1 %v18419_v39  ;;  %v15338_v59 = vcombine.low %v3186_v52, %v3196_v34  ;;  %v6938_v31 = vor.u32 %v6937_v46, %v6933_v36  ;;  %v3209_v39 = vrot.slane %v3207_v62, 5  ;;  %v21217_v46 = vld [vmem:[#allocation2 + $0x50] sm:$0x1]  ;;  %v3224_v62 = vrot.slane %v3222_v30, 4 }
 0x1d0   : > { %17138 = vmatprep.subr.bf16.mxu0 %v18428_v51  ;;  %17406 = vmatprep.subr.bf16.mxu1 %v18425_v38  ;;  %v6934_v8 = vsel %vm19541_vm7, %v6929_v50, %v6933_v36  ;;  %v6965_v36 = vshll.u32 %v21191_v26, 16  ;;  %v3227_v50 = vrot.slane %v3225_v16, 5  ;;  %v6989_v30 = vshll.u32 %v21235_v12, 16 }
 0x1d1   : > { %v6939_v63 = vrot.slane %v6938_v31, 4  ;;  %v3214_v7 = vor.u32 %v3213_v48, %v3209_v39 }
 0x1d2   : > { %17123 = vmatmul.mubr.bf16.vlgmr.msra.gmra.mrb[0].mxu0 %v15337_v28  ;;  %17391 = vmatmul.mubr.bf16.gmra.mrb[12].mxu1 %v18424_v57  ;;  %v3204_v28 = vor.u32 %v3203_v25, %v3200_v6  ;;  %v6967_v1 = vrot.slane %v6965_v36, 5  ;;  %v3235_v6 = vshrl.u32 %v21206_v15, 16  ;;  %v21223_v25 = vld [vmem:[#allocation2 + $0xac] sm:$0xf] }
 0x1d3   : > { %17139 = vmatpush3.bf16.msra.mxu0 %v18428_v51  ;;  %17407 = vmatpush3.bf16.msra.mxu1 %v18425_v38  ;;  %v18429_v51 = vld [vmem:[%s22638_s1 + $0x200] sm:$0xff]   ;;  %v6944_v23 = vsel %vm19541_vm7, %v6939_v63, %v6943_v19  ;;  %v3215_v52 = vrot.slane %v3214_v7, 4  ;;  %v6962_v19 = vor.u32 %v6961_v60, %v6957_v17  ;;  %v18433_v63 = vld [vmem:[%s22638_s1 + $0x210] sm:$0xff]   ;;  %v18438_v7 = vld [vmem:[%s22638_s1 + $0x228] sm:$0xff]  }
 0x1d4   : > { %17410 = vmatprep.mubr.bf16.mxu1 %v21131_v2  ;;  %17408 = vmatprep.subr.bf16.mxu1 %v18427_v9  ;;  %v6948_v2 = vrot.slane %v6946_v44, 4  ;;  %v15671_v38 = vcombine.low %v6934_v8, %v6944_v23  ;;  %v3205_v55 = vrot.slane %v3204_v28, 4  ;;  %v3241_v44 = vshll.u32 %v21217_v46, 16 }
 0x1d5   : > { %17140 = vmatprep.subr.bf16.mxu0 %v18430_v42  ;;  %17126 = vmatprep.mubr.bf16.mxu0 %v15338_v59  ;;  %v3220_v59 = vsel %vm19541_vm7, %v3215_v52, %v3219_v11  ;;  %v6963_v8 = vrot.slane %v6962_v19, 4  ;;  %v3228_v28 = vor.u32 %v3227_v50, %v3224_v62  ;;  %v3237_v48 = vrot.slane %v3235_v6, 4  ;;  %v6864_v52 = vld [vmem:[#allocation2 + $0xb4] sm:$0xf] }
 0x1d6   : > { %v6952_v57 = vor.u32 %v6951_v13, %v6948_v2  ;;  %v3210_v21 = vsel %vm19541_vm7, %v3205_v55, %v3209_v39  ;;  %v18436_v39 = vld [vmem:[%s22638_s1 + $0x220] sm:$0xff]   ;;  %v3243_v14 = vrot.slane %v3241_v44, 5  ;;  %v6979_v23 = vshll.u32 %v21223_v25, 16  ;;  %v3116_v2 = vld [vmem:[#allocation2 + $0x54] sm:$0xf] }
 0x1d7   : > { %17141 = vmatpush3.bf16.msra.mxu0 %v18430_v42  ;;  %17409 = vmatpush3.bf16.msra.mxu1 %v18427_v9  ;;  %v3231_v42 = vshll.u32 %v21206_v15, 16  ;;  %v6861_v9 = vld [vmem:[#allocation2 + $0xa8] sm:$0xf]  ;;  %v15339_v10 = vcombine.low %v3210_v21, %v3220_v59  ;;  %v6968_v37 = vsel %vm19541_vm7, %v6963_v8, %v6967_v1  ;;  %v3229_v40 = vrot.slane %v3228_v28, 4  ;;  %v21241_v55 = vld [vmem:[#allocation2 + $0x58] sm:$0xf] }
 0x1d8   : > { %17142 = vmatprep.subr.bf16.mxu0 %v18432_v4  ;;  %17426 = vmatprep.subr.bf16.mxu1 %v18429_v51  ;;  %v6953_v34 = vrot.slane %v6952_v57, 4  ;;  %v6970_v11 = vshrl.u32 %v6861_v9, 16  ;;  %v6981_v60 = vrot.slane %v6979_v23, 5  ;;  %v21250_v21 = vld [vmem:[#allocation2 + $0x5c] sm:$0x1]  ;;  %v3249_v19 = vshll.u32 %v3116_v2, 16 }
 0x1d9   : > { %v3233_v31 = vrot.slane %v3231_v42, 5  ;;  %v21254_v1 = vld [vmem:[#allocation2 + $0xb8] sm:$0xf]  ;;  %v3255_v59 = vshll.u32 %v21241_v55, 16  ;;  %v21271_v23 = vld [vmem:[#allocation2 + $0xbc] sm:$0x1] }
 0x1da   : > { %17411 = vmatmul.mubr.bf16.vlgmr.msra.gmra.mrb[0].mxu1 %v21173_v29  ;;  %v6958_v43 = vsel %vm19541_vm7, %v6953_v34, %v6957_v17  ;;  %v6973_v29 = vshll.u32 %v6861_v9, 16  ;;  %17127 = vmatmul.mubr.bf16.gmra.mrb[4].mxu0 %v15339_v10  ;;  %v18435_v17 = vld [vmem:[%s22638_s1 + $0x218] sm:$0xff]   ;;  %v3246_v34 = vshrl.u32 %v3116_v2, 16  ;;  %v6991_v9 = vrot.slane %v6989_v30, 5 }
 0x1db   : > { %17143 = vmatpush3.bf16.msra.mxu0 %v18432_v4  ;;  %17427 = vmatpush3.bf16.msra.mxu1 %v18429_v51  ;;  %v6983_v4 = vshrl.u32 %v21223_v25, 16  ;;  %v15672_v13 = vcombine.low %v6958_v43, %v6968_v37  ;;  %v3238_v51 = vor.u32 %v3237_v48, %v3233_v31  ;;  %v3234_v16 = vsel %vm19541_vm7, %v3229_v40, %v3233_v31  ;;  %v18437_v37 = vld [vmem:[%s22638_s1 + $0x220] sm:$0xff]  }
 0x1dc   : > { %17414 = vmatprep.mubr.bf16.mxu1 %v15671_v38  ;;  %17428 = vmatprep.subr.bf16.mxu1 %v18431_v35  ;;  %v6972_v38 = vrot.slane %v6970_v11, 4  ;;  %v6975_v57 = vrot.slane %v6973_v29, 5  ;;  %v3248_v6 = vrot.slane %v3246_v34, 4  ;;  %v3259_v10 = vshrl.u32 %v21241_v55, 16  ;;  %v18439_v34 = vld [vmem:[%s22638_s1 + $0x228] sm:$0xff]  }
 0x1dd   : > { %17144 = vmatprep.subr.bf16.mxu0 %v18434_v0  ;;  %v6985_v36 = vrot.slane %v6983_v4, 4  ;;  %v3239_v42 = vrot.slane %v3238_v51, 4  ;;  %v3257_v44 = vrot.slane %v3255_v59, 5  ;;  %v3265_v11 = vshll.u32 %v21250_v21, 16 }
 0x1de   : > { %v3261_v48 = vrot.slane %v3259_v10, 4  ;;  %v6994_v29 = vshrl.u32 %v6864_v52, 16  ;;  %v6997_v4 = vshll.u32 %v6864_v52, 16  ;;  %v7003_v2 = vshll.u32 %v21254_v1, 16  ;;  %v18442_v52 = vld [vmem:[%s22638_s1 + $0x238] sm:$0xff]  }
 0x1df   : > { %17145 = vmatpush3.bf16.msra.mxu0 %v18434_v0  ;;  %17429 = vmatpush3.bf16.msra.mxu1 %v18431_v35  ;;  %v6976_v0 = vor.u32 %v6975_v57, %v6972_v38  ;;  %v6986_v62 = vor.u32 %v6985_v36, %v6981_v60  ;;  %v3244_v50 = vsel %vm19541_vm7, %v3239_v42, %v3243_v14  ;;  %v3251_v35 = vrot.slane %v3249_v19, 5  ;;  %v18440_v14 = vld [vmem:[%s22638_s1 + $0x230] sm:$0xff]   ;;  %v21274_v36 = vld [vmem:[#allocation2 + $0x64] sm:$0xf]  ;;  %v6867_v10 = vld [vmem:[#allocation2 + $0xc0] sm:$0xf] }
 0x1e0   : > { %17146 = vmatprep.subr.bf16.mxu0 %v18436_v39  ;;  %17430 = vmatprep.subr.bf16.mxu1 %v18433_v63  ;;  %v15340_v31 = vcombine.low %v3234_v16, %v3244_v50  ;;  %v3262_v38 = vor.u32 %v3261_v48, %v3257_v44  ;;  %v3267_v57 = vrot.slane %v3265_v11, 5  ;;  %v6996_v30 = vrot.slane %v6994_v29, 4 }
 0x1e1   : > { %v6977_v43 = vrot.slane %v6976_v0, 4  ;;  %v6987_v8 = vrot.slane %v6986_v62, 4  ;;  %v3252_v28 = vor.u32 %v3251_v35, %v3248_v6  ;;  %v6999_v16 = vrot.slane %v6997_v4, 5 }
 0x1e2   : > { %17415 = vmatmul.mubr.bf16.gmra.mrb[4].mxu1 %v15672_v13  ;;  %17130 = vmatprep.mubr.bf16.mxu0 %v15340_v31  ;;  %v3119_v13 = vld [vmem:[#allocation2 + $0x60] sm:$0xf]  ;;  %v7005_v42 = vrot.slane %v7003_v2, 5  ;;  %v3263_v0 = vrot.slane %v3262_v38, 4  ;;  %v7013_v62 = vshll.u32 %v21271_v23, 16 }
 0x1e3   : > { %17147 = vmatpush3.bf16.msra.mxu0 %v18436_v39  ;;  %17431 = vmatpush3.bf16.msra.mxu1 %v18433_v63  ;;  %v6982_v39 = vsel %vm19541_vm7, %v6977_v43, %v6981_v60  ;;  %v6992_v63 = vsel %vm19541_vm7, %v6987_v8, %v6991_v9  ;;  %v3253_v51 = vrot.slane %v3252_v28, 4  ;;  %v7007_v60 = vshrl.u32 %v21254_v1, 16  ;;  %v21286_v9 = vld [vmem:[#allocation2 + $0x68] sm:$0x1] }
 0x1e4   : > { %17148 = vmatprep.subr.bf16.mxu0 %v18438_v7  ;;  %17432 = vmatprep.subr.bf16.mxu1 %v18435_v17  ;;  %v15673_v40 = vcombine.low %v6982_v39, %v6992_v63  ;;  %v3270_v59 = vshrl.u32 %v3119_v13, 16  ;;  %v7000_v50 = vor.u32 %v6999_v16, %v6996_v30  ;;  %v3273_v35 = vshll.u32 %v3119_v13, 16  ;;  %v18441_v39 = vld [vmem:[%s22638_s1 + $0x230] sm:$0xff]   ;;  %v21298_v13 = vld [vmem:[#allocation2 + $0xc8] sm:$0x1] }
 0x1e5   : > { %v3258_v19 = vsel %vm19541_vm7, %v3253_v51, %v3257_v44  ;;  %v7009_v6 = vrot.slane %v7007_v60, 4  ;;  %v7015_v31 = vrot.slane %v7013_v62, 5  ;;  %v3283_v8 = vshrl.u32 %v21274_v36, 16  ;;  %v21292_v44 = vld [vmem:[#allocation2 + $0xc4] sm:$0xf] }
 0x1e6   : > { %17418 = vmatprep.mubr.bf16.mxu1 %v15673_v40  ;;  %v3272_v43 = vrot.slane %v3270_v59, 4  ;;  %v7001_v48 = vrot.slane %v7000_v50, 4  ;;  %v3275_v29 = vrot.slane %v3273_v35, 5  ;;  %v3289_v2 = vshll.u32 %v21286_v9, 16  ;;  %v3122_v16 = vld [vmem:[#allocation2 + $0x6c] sm:$0xf] }
 0x1e7   : > { %17149 = vmatpush3.bf16.msra.mxu0 %v18438_v7  ;;  %17433 = vmatpush3.bf16.msra.mxu1 %v18435_v17  ;;  %v3279_v7 = vshll.u32 %v21274_v36, 16  ;;  %v3268_v17 = vsel %vm19541_vm7, %v3263_v0, %v3267_v57  ;;  %v7010_v11 = vor.u32 %v7009_v6, %v7005_v42  ;;  %v3285_v4 = vrot.slane %v3283_v8, 4  ;;  %v21302_v60 = vld [vmem:[#allocation2 + $0x70] sm:$0xf]  ;;  %v18443_v35 = vld [vmem:[%s22638_s1 + $0x238] sm:$0xff]  }
 0x1e8   : > { %17434 = vmatprep.subr.bf16.mxu1 %v18437_v37  ;;  %17150 = vmatprep.subr.bf16.mxu0 %v18440_v14  ;;  %v15341_v28 = vcombine.low %v3258_v19, %v3268_v17  ;;  %v7018_v40 = vshrl.u32 %v6867_v10, 16  ;;  %v7006_v51 = vsel %vm19541_vm7, %v7001_v48, %v7005_v42  ;;  %v3276_v57 = vor.u32 %v3275_v29, %v3272_v43  ;;  %v21308_v42 = vld [vmem:[#allocation2 + $0x74] sm:$0x1]  ;;  %v6870_v8 = vld [vmem:[#allocation2 + $0xcc] sm:$0xf] }
 0x1e9   : > { %v3281_v63 = vrot.slane %v3279_v7, 5  ;;  %v7011_v38 = vrot.slane %v7010_v11, 4  ;;  %v7021_v30 = vshll.u32 %v6867_v10, 16  ;;  %v7027_v0 = vshll.u32 %v21292_v44, 16 }
 0x1ea   : > { %17131 = vmatmul.mubr.bf16.gmra.mrb[8].mxu0 %v15341_v28  ;;  %v7020_v19 = vrot.slane %v7018_v40, 4  ;;  %v3277_v59 = vrot.slane %v3276_v57, 4  ;;  %v7031_v6 = vshrl.u32 %v21292_v44, 16  ;;  %v7037_v43 = vshll.u32 %v21298_v13, 16  ;;  %v21319_v57 = vld [vmem:[#allocation2 + $0xd0] sm:$0xf] }
 0x1eb   : > { %17151 = vmatpush3.bf16.msra.mxu0 %v18440_v14  ;;  %17435 = vmatpush3.bf16.msra.mxu1 %v18437_v37  ;;  %v3286_v37 = vor.u32 %v3285_v4, %v3281_v63  ;;  %v3291_v14 = vrot.slane %v3289_v2, 5  ;;  %v7016_v62 = vsel %vm19541_vm7, %v7011_v38, %v7015_v31  ;;  %v7023_v50 = vrot.slane %v7021_v30, 5 }
 0x1ec   : > { %17152 = vmatprep.subr.bf16.mxu0 %v18442_v52  ;;  %17436 = vmatprep.subr.bf16.mxu1 %v18439_v34  ;;  %v15674_v7 = vcombine.low %v7006_v51, %v7016_v62  ;;  %v7029_v17 = vrot.slane %v7027_v0, 5  ;;  %v3282_v31 = vsel %vm19541_vm7, %v3277_v59, %v3281_v63  ;;  %v7033_v48 = vrot.slane %v7031_v6, 4  ;;  %v21325_v0 = vld [vmem:[#allocation2 + $0xd4] sm:$0x1] }
 0x1ed   : > { %v3287_v10 = vrot.slane %v3286_v37, 4  ;;  %v7024_v28 = vor.u32 %v7023_v50, %v7020_v19  ;;  %v3294_v11 = vshrl.u32 %v3122_v16, 16  ;;  %v7039_v4 = vrot.slane %v7037_v43, 5  ;;  %v3527_v43 = vld [vmem:[#allocation2 + $0x18] sm:$0xe] }
 0x1ee   : > { %17419 = vmatmul.mubr.bf16.gmra.mrb[8].mxu1 %v15674_v7  ;;  %v7034_v51 = vor.u32 %v7033_v48, %v7029_v17  ;;  %v3307_v37 = vshrl.u32 %v21302_v60, 16  ;;  %v3313_v19 = vshll.u32 %v21308_v42, 16  ;;  %v7042_v62 = vshrl.u32 %v6870_v8, 16 }
 0x1ef   : > { %17153 = vmatpush3.bf16.msra.mxu0 %v18442_v52  ;;  %17437 = vmatpush3.bf16.msra.mxu1 %v18439_v34  ;;  %v3292_v29 = vsel %vm19541_vm7, %v3287_v10, %v3291_v14  ;;  %v3297_v52 = vshll.u32 %v3122_v16, 16  ;;  %v3303_v34 = vshll.u32 %v21302_v60, 16  ;;  %v7025_v40 = vrot.slane %v7024_v28, 4 }
 0x1f0   : > { %17438 = vmatprep.subr.bf16.mxu1 %v18441_v39  ;;  %v15342_v2 = vcombine.low %v3282_v31, %v3292_v29  ;;  %v3296_v38 = vrot.slane %v3294_v11, 4  ;;  %v7035_v16 = vrot.slane %v7034_v51, 4  ;;  %v7045_v59 = vshll.u32 %v6870_v8, 16  ;;  %v7274_v8 = vld [vmem:[#allocation2 + $0x78] sm:$0xe] }
 0x1f1   : > { %v3299_v30 = vrot.slane %v3297_v52, 5  ;;  %v3305_v63 = vrot.slane %v3303_v34, 5  ;;  %v7030_v14 = vsel %vm19541_vm7, %v7025_v40, %v7029_v17  ;;  %v3309_v6 = vrot.slane %v3307_v37, 4 }
 0x1f2   : > { %17134 = vmatprep.mubr.bf16.mxu0 %v15342_v2  ;;  %v3315_v7 = vrot.slane %v3313_v19, 5  ;;  %v7051_v10 = vshll.u32 %v21319_v57, 16  ;;  %v7040_v31 = vsel %vm19541_vm7, %v7035_v16, %v7039_v4  ;;  %v7047_v28 = vrot.slane %v7045_v59, 5 }
 0x1f3   : > { %17439 = vmatpush3.bf16.msra.mxu1 %v18441_v39  ;;  %v3300_v50 = vor.u32 %v3299_v30, %v3296_v38  ;;  %v7044_v39 = vrot.slane %v7042_v62, 4  ;;  %v7055_v48 = vshrl.u32 %v21319_v57, 16  ;;  %v15675_v17 = vcombine.low %v7030_v14, %v7040_v31  ;;  %v7275_v31 = vld [vmem:[#allocation2 + $0x84] sm:$0xe] }
 0x1f4   : > { %17440 = vmatprep.subr.bf16.mxu1 %v18443_v35  ;;  %v3310_v29 = vor.u32 %v3309_v6, %v3305_v63  ;;  %v7053_v52 = vrot.slane %v7051_v10, 5  ;;  %v7061_v40 = vshll.u32 %v21325_v0, 16  ;;  %v15352_v51 = vrot.slane %v3527_v43, 9 }
 0x1f5   : > { %v3301_v11 = vrot.slane %v3300_v50, 4  ;;  %v7048_v34 = vor.u32 %v7047_v28, %v7044_v39  ;;  %v7057_v2 = vrot.slane %v7055_v48, 4  ;;  %17422 = vmatprep.mubr.bf16.mxu1 %v15675_v17  ;;  %v3561_v30 = vrot.slane %v21066_v47, 5  ;;  %v3529_v17 = vld [vmem:[#allocation2 + $0x30] sm:$0xe] }
 0x1f6   : > { %v3311_v4 = vrot.slane %v3310_v29, 4  ;;  %v3564_v37 = vrot.slane %v21068_v18, 5  ;;  %v7063_v16 = vrot.slane %v7061_v40, 5  ;;  %v15685_v62 = vrot.slane %v7274_v8, 9 }
 0x1f7   : > { %17441 = vmatpush3.bf16.msra.mxu1 %v18443_v35  ;;  %v3306_v38 = vsel %vm19541_vm7, %v3301_v11, %v3305_v63  ;;  %v7049_v19 = vrot.slane %v7048_v34, 4  ;;  %v7058_v14 = vor.u32 %v7057_v2, %v7053_v52  ;;  %v3528_v35 = vld [vmem:[#allocation2 + $0x24] sm:$0xe]  ;;  %v3562_v50 = vsel %vm20076_vm13, %v15352_v51, %v3561_v30  ;;  %v7276_v11 = vld [vmem:[#allocation2 + $0x90] sm:$0xe] }
 0x1f8   : > { %v3316_v59 = vsel %vm19541_vm7, %v3311_v4, %v3315_v7  ;;  %v3563_v6 = vrot.slane %v3561_v30, 4  ;;  %v7308_v10 = vrot.slane %v21073_v56, 5  ;;  %v7311_v18 = vrot.slane %v21075_v33, 5 }
 0x1f9   : > { %v15343_v63 = vcombine.low %v3306_v38, %v3316_v59  ;;  %v7054_v47 = vsel %vm19541_vm7, %v7049_v19, %v7053_v52  ;;  %v7059_v43 = vrot.slane %v7058_v14, 4  ;;  %v15353_v48 = vrot.slane %v3528_v35, 9 }
 0x1fa   : > { %v3565_v39 = vsel %vm20076_vm13, %v3563_v6, %v3564_v37  ;;  %v7309_v7 = vsel %vm20076_vm13, %v15685_v62, %v7308_v10  ;;  %v7310_v28 = vrot.slane %v7308_v10, 4  ;;  %v3568_v52 = vrot.slane %v21086_v27, 5  ;;  %v3530_v37 = vld [vmem:[#allocation2 + $0x3c] sm:$0xe] }
 0x1fb   : > { %17135 = vmatmul.mubr.bf16.gmra.mrb[12].mxu0 %v15343_v63  ;;  %v7064_v56 = vsel %vm19541_vm7, %v7059_v43, %v7063_v16  ;;  %v15376_v29 = vcombine.low %v3562_v50, %v3565_v39  ;;  %v3571_v33 = vrot.slane %v21093_v22, 5  ;;  %v15686_v2 = vrot.slane %v7275_v31, 9  ;;  %v7277_v16 = vld [vmem:[#allocation2 + $0x9c] sm:$0xe]  ;;  %v3531_v63 = vld [vmem:[#allocation2 + $0x48] sm:$0xe] }
 0x1fc   : > { %v15676_v8 = vcombine.low %v7054_v47, %v7064_v56  ;;  %v7312_v34 = vsel %vm20076_vm13, %v7310_v28, %v7311_v18  ;;  %v7315_v40 = vrot.slane %v21099_v54, 5  ;;  %v3569_v38 = vsel %vm20076_vm13, %v15353_v48, %v3568_v52 }
 0x1fd   : > { %17154 = vmatprep.mubr.bf16.mxu0 %v15376_v29  ;;  %v15709_v51 = vcombine.low %v7309_v7, %v7312_v34  ;;  %v3570_v4 = vrot.slane %v3568_v52, 4  ;;  %v7318_v30 = vrot.slane %v21109_v61, 5  ;;  %v15354_v19 = vrot.slane %v3529_v17, 9 }
 0x1fe   : > { %17423 = vmatmul.mubr.bf16.gmra.mrb[12].mxu1 %v15676_v8  ;;  %v7316_v27 = vsel %vm20076_vm13, %v15686_v2, %v7315_v40  ;;  %v7317_v22 = vrot.slane %v7315_v40, 4  ;;  %v3575_v14 = vrot.slane %v21135_v49, 5  ;;  %v3578_v62 = vrot.slane %v21137_v41, 5  ;;  %v7278_v41 = vld [vmem:[#allocation2 + $0xa8] sm:$0xe] }
 0x1ff   : > { %17442 = vmatprep.mubr.bf16.mxu1 %v15709_v51  ;;  %v3572_v54 = vsel %vm20076_vm13, %v3570_v4, %v3571_v33  ;;  %v15687_v35 = vrot.slane %v7276_v11, 9  ;;  %v7322_v59 = vrot.slane %v21150_v20, 5  ;;  %v7325_v18 = vrot.slane %v21152_v24, 5  ;;  %v3532_v33 = vld [vmem:[#allocation2 + $0x54] sm:$0xe] }
 0x200   : > { %v15377_v61 = vcombine.low %v3569_v38, %v3572_v54  ;;  %v7319_v50 = vsel %vm20076_vm13, %v7317_v22, %v7318_v30  ;;  %v3576_v6 = vsel %vm20076_vm13, %v15354_v19, %v3575_v14  ;;  %v3577_v10 = vrot.slane %v3575_v14, 4  ;;  %v7279_v2 = vld [vmem:[#allocation2 + $0xb4] sm:$0xe]  ;;  %v7280_v14 = vld [vmem:[#allocation2 + $0xc0] sm:$0xe] }
 0x201   : > { %v15710_v49 = vcombine.low %v7316_v27, %v7319_v50  ;;  %v7323_v47 = vsel %vm20076_vm13, %v15687_v35, %v7322_v59  ;;  %v7324_v43 = vrot.slane %v7322_v59, 4  ;;  %v15355_v31 = vrot.slane %v3530_v37, 9 }
 0x202   : > { %v3579_v20 = vsel %vm20076_vm13, %v3577_v10, %v3578_v62  ;;  %v3582_v39 = vrot.slane %v21158_v5, 5  ;;  %v3585_v7 = vrot.slane %v21170_v53, 5  ;;  %v15688_v17 = vrot.slane %v7277_v16, 9 }
 0x203   : > { %17155 = vmatmul.mubr.bf16.vlgmr.msra.gmra.mrb[0].mxu0 %v15377_v61  ;;  %v15378_v28 = vcombine.low %v3576_v6, %v3579_v20  ;;  %v7326_v48 = vsel %vm20076_vm13, %v7324_v43, %v7325_v18  ;;  %v7329_v11 = vrot.slane %v21181_v58, 5  ;;  %v7332_v52 = vrot.slane %v21191_v26, 5  ;;  %v7281_v43 = vld [vmem:[#allocation2 + $0xcc] sm:$0xe] }
 0x204   : > { %v15711_v56 = vcombine.low %v7323_v47, %v7326_v48  ;;  %v3583_v24 = vsel %vm20076_vm13, %v15355_v31, %v3582_v39  ;;  %v3584_v29 = vrot.slane %v3582_v39, 4  ;;  %v15356_v8 = vrot.slane %v3531_v63, 9 }
 0x205   : > { %17158 = vmatprep.mubr.bf16.mxu0 %v15378_v28  ;;  %v7330_v5 = vsel %vm20076_vm13, %v15688_v17, %v7329_v11  ;;  %v7331_v53 = vrot.slane %v7329_v11, 4  ;;  %v3589_v34 = vrot.slane %v21206_v15, 5  ;;  %v3592_v40 = vrot.slane %v21217_v46, 5  ;;  %v3533_v15 = vld [vmem:[#allocation2 + $0x60] sm:$0xe] }
 0x206   : > { %17443 = vmatmul.mubr.bf16.vlgmr.msra.gmra.mrb[0].mxu1 %v15710_v49  ;;  %v3586_v58 = vsel %vm20076_vm13, %v3584_v29, %v3585_v7  ;;  %v15689_v51 = vrot.slane %v7278_v41, 9  ;;  %v7336_v38 = vrot.slane %v21223_v25, 5  ;;  %v7339_v46 = vrot.slane %v21235_v12, 5  ;;  %v3534_v49 = vld [vmem:[#allocation2 + $0x6c] sm:$0xe] }
 0x207   : > { %17446 = vmatprep.mubr.bf16.mxu1 %v15711_v56  ;;  %v15379_v26 = vcombine.low %v3583_v24, %v3586_v58  ;;  %v7333_v4 = vsel %vm20076_vm13, %v7331_v53, %v7332_v52  ;;  %v3590_v30 = vsel %vm20076_vm13, %v15356_v8, %v3589_v34  ;;  %v3591_v37 = vrot.slane %v3589_v34, 4 }
 0x208   : > { %v15712_v27 = vcombine.low %v7330_v5, %v7333_v4  ;;  %v7337_v22 = vsel %vm20076_vm13, %v15689_v51, %v7336_v38  ;;  %v7338_v19 = vrot.slane %v7336_v38, 4  ;;  %v15357_v16 = vrot.slane %v3532_v33, 9 }
 0x209   : > { %v3593_v25 = vsel %vm20076_vm13, %v3591_v37, %v3592_v40  ;;  %v3596_v54 = vrot.slane %v21241_v55, 5  ;;  %v3599_v62 = vrot.slane %v21250_v21, 5  ;;  %v15690_v61 = vrot.slane %v7279_v2, 9 }
 0x20a   : > { %v15380_v35 = vcombine.low %v3590_v30, %v3593_v25  ;;  %v7340_v59 = vsel %vm20076_vm13, %v7338_v19, %v7339_v46  ;;  %v7343_v50 = vrot.slane %v21254_v1, 5  ;;  %v7346_v63 = vrot.slane %v21271_v23, 5  ;;  %v21441_v30 = vld [vmem:[%s22639_s2] ss:$0 sm:$0xff] }
 0x20b   : > { %17159 = vmatmul.mubr.bf16.gmra.mrb[4].mxu0 %v15379_v26  ;;  %v15713_v6 = vcombine.low %v7337_v22, %v7340_v59  ;;  %v3597_v12 = vsel %vm20076_vm13, %v15357_v16, %v3596_v54  ;;  %v3598_v10 = vrot.slane %v3596_v54, 4  ;;  %v15358_v47 = vrot.slane %v3533_v15, 9 }
 0x20c   : > { %17162 = vmatprep.mubr.bf16.mxu0 %v15380_v35  ;;  %v7345_v55 = vrot.slane %v7343_v50, 4  ;;  %v3603_v21 = vrot.slane %v21274_v36, 5  ;;  %v3606_v1 = vrot.slane %v21286_v9, 5  ;;  %v15691_v41 = vrot.slane %v7280_v14, 9 }
 0x20d   : > { %v3600_v18 = vsel %vm20076_vm13, %v3598_v10, %v3599_v62  ;;  %v7350_v20 = vrot.slane %v21292_v44, 5  ;;  %v7344_v23 = vsel %vm20076_vm13, %v15690_v61, %v7343_v50  ;;  %v7353_v48 = vrot.slane %v21298_v13, 5 }
 0x20e   : > { %17447 = vmatmul.mubr.bf16.gmra.mrb[4].mxu1 %v15712_v27  ;;  %v15381_v31 = vcombine.low %v3597_v12, %v3600_v18  ;;  %v3604_v39 = vsel %vm20076_vm13, %v15358_v47, %v3603_v21  ;;  %v3605_v7 = vrot.slane %v3603_v21, 4  ;;  %v7347_v36 = vsel %vm20076_vm13, %v7345_v55, %v7346_v63 }
 0x20f   : > { %17450 = vmatprep.mubr.bf16.mxu1 %v15713_v6  ;;  %v7351_v28 = vsel %vm20076_vm13, %v15691_v41, %v7350_v20  ;;  %v7352_v9 = vrot.slane %v7350_v20, 4  ;;  %v15359_v17 = vrot.slane %v3534_v49, 9  ;;  %v3610_v11 = vrot.slane %v21302_v60, 5 }
 0x210   : > { %v3607_v44 = vsel %vm20076_vm13, %v3605_v7, %v3606_v1  ;;  %v3613_v56 = vrot.slane %v21308_v42, 5  ;;  %v15692_v52 = vrot.slane %v7281_v43, 9  ;;  %v7357_v33 = vrot.slane %v21319_v57, 5 }
 0x211   : > { %v15382_v24 = vcombine.low %v3604_v39, %v3607_v44  ;;  %v7354_v29 = vsel %vm20076_vm13, %v7352_v9, %v7353_v48  ;;  %v15714_v5 = vcombine.low %v7344_v23, %v7347_v36  ;;  %v3612_v53 = vrot.slane %v3610_v11, 4 }
 0x212   : > { %v7360_v8 = vrot.slane %v21325_v0, 5  ;;  %v15715_v13 = vcombine.low %v7351_v28, %v7354_v29  ;;  %v7359_v34 = vrot.slane %v7357_v33, 4  ;;  %v3611_v60 = vsel %vm20076_vm13, %v15359_v17, %v3610_v11 }
 0x213   : > { %17163 = vmatmul.mubr.bf16.gmra.mrb[8].mxu0 %v15381_v31  ;;  %v3614_v42 = vsel %vm20076_vm13, %v3612_v53, %v3613_v56  ;;  %v7358_v57 = vsel %vm20076_vm13, %v15692_v52, %v7357_v33  ;;  %v19202_v40 = vmov 1983009808   ;;  %v3883_v38 = vlaneseq }
 0x214   : > { %17166 = vmatprep.mubr.bf16.mxu0 %v15382_v24  ;;  %v15383_v2 = vcombine.low %v3611_v60, %v3614_v42  ;;  %v7361_v58 = vsel %vm20076_vm13, %v7359_v34, %v7360_v8  ;;  %v3881_v51 = vunpack.c.l.s4 %v19202_v40 }
 0x215   : > { %v15716_v0 = vcombine.low %v7358_v57, %v7361_v58  ;;  %v21436_v4 = vshrl.u32 %v3883_v38, 7 }
 0x216   : > { %17451 = vmatmul.mubr.bf16.gmra.mrb[8].mxu1 %v15714_v5  ;;  %v3882_v26 = vunpack.c.0.s8 %v3881_v51 }
 0x217   : > { %17454 = vmatprep.mubr.bf16.mxu1 %v15715_v13 }
 0x218   : > { %v21445_v27 = vsub.s32 %v3882_v26, %v21436_v4 }
 0x21b   : > { %17167 = vmatmul.mubr.bf16.gmra.mrb[12].mxu0 %v15383_v2 }
 0x21e   : > { %17455 = vmatmul.mubr.bf16.gmra.mrb[12].mxu1 %v15716_v0 }
 0x2d6   : > { %v17156_v37 = vpop.f32.mrb[0].mxu0 }
 0x2d7   : > { %v3833_v15 = vadd.f32 %v17156_v37, %v21441_v30  ;;  %v3746_v22 = vpop.f32.mrb[1].mxu0 }
 0x2d8   : > { %v3831_v19 = vadd.f32 %v21441_v30, %v3746_v22  ;;  %v17157_v46 = vpop.f32.mrb[2].mxu0 }
 0x2d9   : > { %v3849_v14 = vmax.f32 %v3833_v15, 0.0  ;;  %v17444_v25 = vpop.f32.mrb[0].mxu1  ;;  %v3834_v16 = vadd.f32 %v17157_v46, %v21441_v30  ;;  %v3749_v54 = vpop.f32.mrb[3].mxu0 }
 0x2da   : > { %v7573_v62 = vadd.f32 %v17444_v25, %v21441_v30  ;;  %v3847_v35 = vmax.f32 %v3831_v19, 0.0  ;;  %v7492_v59 = vpop.f32.mrb[1].mxu1  ;;  %v21451_v61 = vadd.f32 %v21441_v30, %v3749_v54 }
 0x2db   : > { %v3913_v50 = vcombine.high %v3849_v14, %v3849_v14  ;;  %v3920_v6 = vrot.slane %v3849_v14, %v21445_v27  ;;  %v7571_v12 = vadd.f32 %v21441_v30, %v7492_v59  ;;  %v21455_v10 = vmax.f32 %v3834_v16, 0.0  ;;  %v17445_v63 = vpop.f32.mrb[2].mxu1 }
 0x2dc   : > { %v7589_v49 = vmax.f32 %v7573_v62, 0.0  ;;  %v3879_v55 = vcombine.high %v3847_v35, %v3847_v35  ;;  %v3886_v47 = vrot.slane %v3847_v35, %v21445_v27  ;;  %v21459_v21 = vadd.f32 %v17445_v63, %v21441_v30  ;;  %v21461_v43 = vpop.f32.mrb[3].mxu1 }
 0x2dd   : > { %v3927_v18 = vrot.slane %v3913_v50, %v21445_v27  ;;  %v3928_v1 = vcombine.high %v3920_v6, %v3920_v6  ;;  %v4217_v41 = vsel %vm4215_vm14, %v3920_v6, -inf  ;;  %v7587_v20 = vmax.f32 %v7571_v12, 0.0 }
 0x2de   : > { %v7653_v31 = vcombine.high %v7589_v49, %v7589_v49  ;;  %v7660_v23 = vrot.slane %v7589_v49, %v21445_v27  ;;  %v3893_v39 = vrot.slane %v3879_v55, %v21445_v27  ;;  %v3894_v7 = vcombine.high %v3886_v47, %v3886_v47  ;;  %v21467_v36 = vpop.f32.mrb[4].mxu0 }
 0x2df   : > { %v3929_v28 = vcombine.high %v3927_v18, %v3927_v18  ;;  %v4226_v9 = vsel %vm4215_vm14, %v3928_v1, -inf  ;;  %v4235_v48 = vsel %vm4215_vm14, %v3927_v18, -inf  ;;  %v4216_v44 = vsel %vm4215_vm14, %v3886_v47, -inf  ;;  %v21472_v17 = vpop.f32.mrb[5].mxu0 }
 0x2e0   : > { %v7667_v11 = vrot.slane %v7653_v31, %v21445_v27  ;;  %v7668_v56 = vcombine.high %v7660_v23, %v7660_v23  ;;  %v7956_v24 = vsel %vm4215_vm14, %v7660_v23, -inf  ;;  %v3895_v29 = vcombine.high %v3893_v39, %v3893_v39  ;;  %v21476_v52 = vpop.f32.mrb[6].mxu0 }
 0x2e1   : > { %v4244_v33 = vsel %vm4215_vm14, %v3929_v28, -inf  ;;  %v4218_v5 = vmax.f32 %v4216_v44, %v4217_v41  ;;  %v4225_v53 = vsel %vm4215_vm14, %v3894_v7, -inf  ;;  %v4234_v8 = vsel %vm4215_vm14, %v3893_v39, -inf  ;;  %v21481_v13 = vpop.f32.mrb[4].mxu1  ;;  %v21483_v34 = vpop.f32.mrb[7].mxu0 }
 0x2e2   : > { %v7669_v60 = vcombine.high %v7667_v11, %v7667_v11  ;;  %v7965_v42 = vsel %vm4215_vm14, %v7668_v56, -inf  ;;  %v7974_v2 = vsel %vm4215_vm14, %v7667_v11, -inf  ;;  %v4227_v57 = vmax.f32 %v4225_v53, %v4226_v9  ;;  %v21487_v58 = vpop.f32.mrb[5].mxu1 }
 0x2e3   : > { %v4219_v0 = vrot.slane %v4218_v5, 4  ;;  %v4236_v40 = vmax.f32 %v4234_v8, %v4235_v48  ;;  %v4243_v51 = vsel %vm4215_vm14, %v3895_v29, -inf  ;;  %v7619_v38 = vcombine.high %v7587_v20, %v7587_v20  ;;  %v21490_v26 = vpop.f32.mrb[6].mxu1 }
 0x2e4   : > { %v7983_v37 = vsel %vm4215_vm14, %v7669_v60, -inf  ;;  %v4228_v15 = vrot.slane %v4227_v57, 4  ;;  %v4245_v22 = vmax.f32 %v4243_v51, %v4244_v33  ;;  %v7626_v19 = vrot.slane %v7587_v20, %v21445_v27  ;;  %v21494_v46 = vpop.f32.mrb[7].mxu1 }
 0x2e5   : > { %v4220_v14 = vmax.f32 %v4218_v5, %v4219_v0  ;;  %v4237_v25 = vrot.slane %v4236_v40, 4  ;;  %v7633_v16 = vrot.slane %v7619_v38, %v21445_v27  ;;  %v3930_v54 = vcombine.high %v21455_v10, %v21455_v10 }
 0x2e6   : > { %v4229_v62 = vmax.f32 %v4227_v57, %v4228_v15  ;;  %v4246_v35 = vrot.slane %v4245_v22, 4  ;;  %v7634_v59 = vcombine.high %v7626_v19, %v7626_v19  ;;  %v7955_v50 = vsel %vm4215_vm14, %v7626_v19, -inf  ;;  %v21500_v6 = vpop.f32.mrb[8].mxu0 }
 0x2e7   : > { %v4221_v12 = vrot.slane %v4220_v14, 2  ;;  %v4238_v63 = vmax.f32 %v4236_v40, %v4237_v25  ;;  %v7635_v49 = vcombine.high %v7633_v16, %v7633_v16  ;;  %v7957_v55 = vmax.f32 %v7955_v50, %v7956_v24  ;;  %v21502_v47 = vpop.f32.mrb[9].mxu0 }
 0x2e8   : > { %v4230_v18 = vrot.slane %v4229_v62, 2  ;;  %v4247_v1 = vmax.f32 %v4245_v22, %v4246_v35  ;;  %v7964_v41 = vsel %vm4215_vm14, %v7634_v59, -inf  ;;  %v7973_v20 = vsel %vm4215_vm14, %v7633_v16, -inf  ;;  %v21506_v31 = vpop.f32.mrb[10].mxu0 }
 0x2e9   : > { %v4222_v23 = vmax.f32 %v4220_v14, %v4221_v12  ;;  %v4239_v39 = vrot.slane %v4238_v63, 2  ;;  %v7958_v7 = vrot.slane %v7957_v55, 4  ;;  %v7966_v28 = vmax.f32 %v7964_v41, %v7965_v42  ;;  %v21508_v9 = vpop.f32.mrb[8].mxu1 }
 0x2ea   : > { %v4231_v48 = vmax.f32 %v4229_v62, %v4230_v18  ;;  %v4248_v44 = vrot.slane %v4247_v1, 2  ;;  %v7975_v11 = vmax.f32 %v7973_v20, %v7974_v2  ;;  %v7982_v56 = vsel %vm4215_vm14, %v7635_v49, -inf  ;;  %v21511_v24 = vpop.f32.mrb[9].mxu1 }
 0x2eb   : > { %v4223_v29 = vrot.slane %v4222_v23, 1  ;;  %v4240_v33 = vmax.f32 %v4238_v63, %v4239_v39  ;;  %v7959_v5 = vmax.f32 %v7957_v55, %v7958_v7  ;;  %v7967_v53 = vrot.slane %v7966_v28, 4  ;;  %v21513_v40 = vpop.f32.mrb[10].mxu1 }
 0x2ec   : > { %v4232_v8 = vrot.slane %v4231_v48, 1  ;;  %v4249_v60 = vmax.f32 %v4247_v1, %v4248_v44  ;;  %v7976_v57 = vrot.slane %v7975_v11, 4  ;;  %v7984_v0 = vmax.f32 %v7982_v56, %v7983_v37  ;;  %v21517_v44 = vpop.f32.mrb[11].mxu0 }
 0x2ed   : > { %v4224_v42 = vmax.f32 %v4222_v23, %v4223_v29  ;;  %v4241_v51 = vrot.slane %v4240_v33, 1  ;;  %v7960_v38 = vrot.slane %v7959_v5, 2  ;;  %v7968_v15 = vmax.f32 %v7966_v28, %v7967_v53 }
 0x2ee   : > { %v4233_v22 = vmax.f32 %v4231_v48, %v4232_v8  ;;  %v4250_v2 = vrot.slane %v4249_v60, 1  ;;  %v7977_v19 = vmax.f32 %v7975_v11, %v7976_v57  ;;  %v7985_v14 = vrot.slane %v7984_v0, 4  ;;  %v21525_v57 = vpop.f32.mrb[11].mxu1 }
 0x2ef   : > { %v4242_v25 = vmax.f32 %v4240_v33, %v4241_v51  ;;  %v16295_v16 = vpack.c.bf16 %v4224_v42, %v4224_v42  ;;  %v7961_v62 = vmax.f32 %v7959_v5, %v7960_v38  ;;  %v7969_v35 = vrot.slane %v7968_v15, 2 }
 0x2f0   : > { %v4251_v59 = vmax.f32 %v4249_v60, %v4250_v2  ;;  %v16296_v50 = vpack.c.bf16 %v4233_v22, %v4233_v22  ;;  %v7978_v12 = vrot.slane %v7977_v19, 2  ;;  %v7986_v63 = vmax.f32 %v7984_v0, %v7985_v14 }
 0x2f1   : > { %v16297_v37 = vpack.c.bf16 %v4242_v25, %v4242_v25  ;;  %v4632_v49 = vunpack.c.l.b16 %v16295_v16  ;;  %v7962_v55 = vrot.slane %v7961_v62, 1  ;;  %v7970_v18 = vmax.f32 %v7968_v15, %v7969_v35 }
 0x2f2   : > { %v16298_v1 = vpack.c.bf16 %v4251_v59, %v4251_v59  ;;  %v4633_v41 = vunpack.c.l.b16 %v16296_v50  ;;  %v7979_v20 = vmax.f32 %v7977_v19, %v7978_v12  ;;  %v7987_v23 = vrot.slane %v7986_v63, 2 }
 0x2f3   : > { %v4634_v39 = vunpack.c.l.b16 %v16297_v37  ;;  %v7963_v7 = vmax.f32 %v7961_v62, %v7962_v55  ;;  %v7971_v28 = vrot.slane %v7970_v18, 1  ;;  %v3937_v48 = vrot.slane %v21455_v10, %v21445_v27 }
 0x2f4   : > { %v4635_v11 = vunpack.c.l.b16 %v16298_v1  ;;  %v4665_v56 = vsel %vm4664_vm15, %v4633_v41, %v4632_v49  ;;  %v7980_v29 = vrot.slane %v7979_v20, 1  ;;  %v7988_v33 = vmax.f32 %v7986_v63, %v7987_v23 }
 0x2f5   : > { %v4667_v5 = vsel %vm4666_vm0, %v4634_v39, %v4665_v56  ;;  %v7972_v53 = vmax.f32 %v7970_v18, %v7971_v28  ;;  %v16331_v8 = vpack.c.bf16 %v7963_v7, %v7963_v7  ;;  %v3944_v60 = vrot.slane %v3930_v54, %v21445_v27 }
 0x2f6   : > { %v7981_v0 = vmax.f32 %v7979_v20, %v7980_v29  ;;  %v7989_v42 = vrot.slane %v7988_v33, 1  ;;  %v3945_v51 = vcombine.high %v3937_v48, %v3937_v48  ;;  %v4253_v38 = vsel %vm4215_vm14, %v3937_v48, -inf }
 0x2f7   : > { %v16332_v15 = vpack.c.bf16 %v7972_v53, %v7972_v53  ;;  %v8371_v22 = vunpack.c.l.b16 %v16331_v8  ;;  %v3946_v2 = vcombine.high %v3944_v60, %v3944_v60  ;;  %v4271_v19 = vsel %vm4215_vm14, %v3944_v60, -inf }
 0x2f8   : > { %v7990_v14 = vmax.f32 %v7988_v33, %v7989_v42  ;;  %v16333_v25 = vpack.c.bf16 %v7981_v0, %v7981_v0  ;;  %v4262_v16 = vsel %vm4215_vm14, %v3945_v51, -inf  ;;  %v7590_v62 = vmax.f32 %v21459_v21, 0.0 }
 0x2f9   : > { %v8372_v10 = vunpack.c.l.b16 %v16332_v15  ;;  %v4280_v54 = vsel %vm4215_vm14, %v3946_v2, -inf  ;;  %v3848_v35 = vmax.f32 %v21451_v61, 0.0  ;;  %v21534_v59 = vsel %vm4668_vm1, %v4635_v11, %v4667_v5 }
 0x2fa   : > { %v16334_v50 = vpack.c.bf16 %v7990_v14, %v7990_v14  ;;  %v8373_v12 = vunpack.c.l.b16 %v16333_v25  ;;  %v7670_v63 = vcombine.high %v7590_v62, %v7590_v62  ;;  %v7677_v37 = vrot.slane %v7590_v62, %v21445_v27 }
 0x2fb   : > { %v8403_v49 = vsel %vm4664_vm15, %v8372_v10, %v8371_v22  ;;  %v3896_v55 = vcombine.high %v3848_v35, %v3848_v35  ;;  %v3903_v18 = vrot.slane %v3848_v35, %v21445_v27  ;;  %v7572_v21 = vadd.f32 %v21441_v30, %v21461_v43  ;;  %v21548_v43 = vpop.f32.mrb[12].mxu0 }
 0x2fc   : > { %v8374_v1 = vunpack.c.l.b16 %v16334_v50  ;;  %v8404_v41 = vsel %vm4666_vm0, %v8373_v12, %v8403_v49  ;;  %v7684_v61 = vrot.slane %v7670_v63, %v21445_v27  ;;  %v7685_v20 = vcombine.high %v7677_v37, %v7677_v37 }
 0x2fd   : > { %v7992_v23 = vsel %vm4215_vm14, %v7677_v37, -inf  ;;  %v3910_v39 = vrot.slane %v3896_v55, %v21445_v27  ;;  %v3911_v7 = vcombine.high %v3903_v18, %v3903_v18  ;;  %v4252_v28 = vsel %vm4215_vm14, %v3903_v18, -inf }
 0x2fe   : > { %v7686_v48 = vcombine.high %v7684_v61, %v7684_v61  ;;  %v8001_v11 = vsel %vm4215_vm14, %v7685_v20, -inf  ;;  %v8010_v56 = vsel %vm4215_vm14, %v7684_v61, -inf  ;;  %v4254_v29 = vmax.f32 %v4252_v28, %v4253_v38 }
 0x2ff   : > { %v3912_v33 = vcombine.high %v3910_v39, %v3910_v39  ;;  %v4261_v5 = vsel %vm4215_vm14, %v3911_v7, -inf  ;;  %v4270_v53 = vsel %vm4215_vm14, %v3910_v39, -inf  ;;  %v7588_v8 = vmax.f32 %v7572_v21, 0.0 }
 0x300   : > { %v8019_v60 = vsel %vm4215_vm14, %v7686_v48, -inf  ;;  %v4255_v0 = vrot.slane %v4254_v29, 4  ;;  %v4263_v42 = vmax.f32 %v4261_v5, %v4262_v16  ;;  %v4272_v51 = vmax.f32 %v4270_v53, %v4271_v19 }
 0x301   : > { %v4279_v15 = vsel %vm4215_vm14, %v3912_v33, -inf  ;;  %v7636_v22 = vcombine.high %v7588_v8, %v7588_v8  ;;  %v7643_v2 = vrot.slane %v7588_v8, %v21445_v27  ;;  %v21556_v38 = vsel %vm4668_vm1, %v8374_v1, %v8404_v41 }
 0x302   : > { %v4256_v14 = vmax.f32 %v4254_v29, %v4255_v0  ;;  %v4264_v25 = vrot.slane %v4263_v42, 4  ;;  %v4273_v62 = vrot.slane %v4272_v51, 4  ;;  %v4281_v10 = vmax.f32 %v4279_v15, %v4280_v54 }
 0x303   : > { %v7650_v35 = vrot.slane %v7636_v22, %v21445_v27  ;;  %v7651_v50 = vcombine.high %v7643_v2, %v7643_v2  ;;  %v7991_v12 = vsel %vm4215_vm14, %v7643_v2, -inf  ;;  %v21562_v19 = vadd.f32 %v21467_v36, %v21441_v30 }
 0x304   : > { %v4257_v16 = vrot.slane %v4256_v14, 2  ;;  %v4265_v63 = vmax.f32 %v4263_v42, %v4264_v25  ;;  %v4274_v37 = vmax.f32 %v4272_v51, %v4273_v62  ;;  %v4282_v49 = vrot.slane %v4281_v10, 4 }
 0x305   : > { %v7652_v55 = vcombine.high %v7650_v35, %v7650_v35  ;;  %v7993_v18 = vmax.f32 %v7991_v12, %v7992_v23  ;;  %v8000_v21 = vsel %vm4215_vm14, %v7651_v50, -inf  ;;  %v8009_v54 = vsel %vm4215_vm14, %v7650_v35, -inf }
 0x306   : > { %v4258_v1 = vmax.f32 %v4256_v14, %v4257_v16  ;;  %v4266_v41 = vrot.slane %v4265_v63, 2  ;;  %v4275_v61 = vrot.slane %v4274_v37, 2  ;;  %v4283_v20 = vmax.f32 %v4281_v10, %v4282_v49 }
 0x307   : > { %v7994_v39 = vrot.slane %v7993_v18, 4  ;;  %v8002_v7 = vmax.f32 %v8000_v21, %v8001_v11  ;;  %v8011_v36 = vmax.f32 %v8009_v54, %v8010_v56  ;;  %v8018_v28 = vsel %vm4215_vm14, %v7652_v55, -inf  ;;  %v4714_v21 = vld [vmem:[#allocation3 + $0xc] sm:$0x1] }
 0x308   : > { %v4259_v48 = vrot.slane %v4258_v1, 1  ;;  %v4267_v29 = vmax.f32 %v4265_v63, %v4266_v41  ;;  %v4276_v33 = vmax.f32 %v4274_v37, %v4275_v61  ;;  %v4284_v5 = vrot.slane %v4283_v20, 2  ;;  %v21567_v37 = vpop.f32.mrb[12].mxu1 }
 0x309   : > { %v7995_v23 = vmax.f32 %v7993_v18, %v7994_v39  ;;  %v8003_v53 = vrot.slane %v8002_v7, 4  ;;  %v8012_v8 = vrot.slane %v8011_v36, 4  ;;  %v8020_v0 = vmax.f32 %v8018_v28, %v8019_v60 }
 0x30a   : > { %v4260_v42 = vmax.f32 %v4258_v1, %v4259_v48  ;;  %v4268_v51 = vrot.slane %v4267_v29, 1  ;;  %v4277_v15 = vrot.slane %v4276_v33, 1  ;;  %v4285_v22 = vmax.f32 %v4283_v20, %v4284_v5 }
 0x30b   : > { %v7996_v2 = vrot.slane %v7995_v23, 2  ;;  %v8004_v14 = vmax.f32 %v8002_v7, %v8003_v53  ;;  %v8013_v25 = vmax.f32 %v8011_v36, %v8012_v8  ;;  %v8021_v11 = vrot.slane %v8020_v0, 4 }
 0x30c   : > { %v4269_v56 = vmax.f32 %v4267_v29, %v4268_v51  ;;  %v4278_v62 = vmax.f32 %v4276_v33, %v4277_v15  ;;  %v4286_v10 = vrot.slane %v4285_v22, 1  ;;  %v16299_v35 = vpack.c.bf16 %v4260_v42, %v4260_v42 }
 0x30d   : > { %v7997_v50 = vmax.f32 %v7995_v23, %v7996_v2  ;;  %v8005_v12 = vrot.slane %v8004_v14, 2  ;;  %v8014_v16 = vrot.slane %v8013_v25, 2  ;;  %v8022_v63 = vmax.f32 %v8020_v0, %v8021_v11  ;;  %v21577_v0 = vpop.f32.mrb[13].mxu0 }
 0x30e   : > { %v4287_v49 = vmax.f32 %v4285_v22, %v4286_v10  ;;  %v16300_v60 = vpack.c.bf16 %v4269_v56, %v4269_v56  ;;  %v16301_v55 = vpack.c.bf16 %v4278_v62, %v4278_v62  ;;  %v4636_v18 = vunpack.c.l.b16 %v16299_v35  ;;  %v21581_v56 = vpop.f32.mrb[13].mxu1 }
 0x30f   : > { %v7998_v54 = vrot.slane %v7997_v50, 1  ;;  %v8006_v1 = vmax.f32 %v8004_v14, %v8005_v12  ;;  %v8015_v41 = vmax.f32 %v8013_v25, %v8014_v16  ;;  %v8023_v61 = vrot.slane %v8022_v63, 2  ;;  %v8447_v16 = vld [vmem:[#allocation3 + $0x2c] sm:$0x1] }
 0x310   : > { %v4637_v20 = vunpack.c.l.b16 %v16300_v60  ;;  %v4638_v39 = vunpack.c.l.b16 %v16301_v55  ;;  %v4671_v7 = vsel %vm4670_vm2, %v4636_v18, %v21534_v59  ;;  %v16327_v36 = vpack.c.bf16 %v4287_v49, %v4287_v49  ;;  %v4711_v59 = vld [vmem:[#allocation3 + $0x8] sm:$0xf] }
 0x311   : > { %v7999_v28 = vmax.f32 %v7997_v50, %v7998_v54  ;;  %v8007_v48 = vrot.slane %v8006_v1, 1  ;;  %v8016_v29 = vrot.slane %v8015_v41, 1  ;;  %v8024_v33 = vmax.f32 %v8022_v63, %v8023_v61 }
 0x312   : > { %v4673_v5 = vsel %vm4672_vm3, %v4637_v20, %v4671_v7  ;;  %v4715_v23 = vsel %vm19573_vm10, %v16327_v36, %v4714_v21  ;;  %v3853_v53 = vmax.f32 %v21562_v19, 0.0  ;;  %v7577_v8 = vadd.f32 %v21481_v13, %v21441_v30 }
 0x313   : > { %v4675_v42 = vsel %vm4674_vm4, %v4638_v39, %v4673_v5  ;;  %4716 = vst [vmem:[#allocation3 + $0xc] sm:$0x1] %v4715_v23  ;;  %v8008_v51 = vmax.f32 %v8006_v1, %v8007_v48  ;;  %v8017_v15 = vmax.f32 %v8015_v41, %v8016_v29  ;;  %v8025_v22 = vrot.slane %v8024_v33, 1  ;;  %v8444_v48 = vld [vmem:[#allocation3 + $0x28] sm:$0xf]  ;;  %v21601_v5 = vpop.f32.mrb[14].mxu0 }
 0x314   : > { %v4694_v2 = vpack.c.b16 %v4675_v42, %v4675_v42  ;;  %v16335_v14 = vpack.c.bf16 %v7999_v28, %v7999_v28  ;;  %v3981_v25 = vcombine.high %v3853_v53, %v3853_v53  ;;  %v3988_v11 = vrot.slane %v3853_v53, %v21445_v27 }
 0x315   : > { %v8026_v19 = vmax.f32 %v8024_v33, %v8025_v22  ;;  %v16336_v62 = vpack.c.bf16 %v8008_v51, %v8008_v51  ;;  %v16337_v10 = vpack.c.bf16 %v8017_v15, %v8017_v15  ;;  %v7593_v13 = vmax.f32 %v7577_v8, 0.0 }
 0x316   : > { %v4712_v50 = vsel %vm19550_vm8, %v4694_v2, %v4711_v59  ;;  %v8375_v12 = vunpack.c.l.b16 %v16335_v14  ;;  %v3995_v63 = vrot.slane %v3981_v25, %v21445_v27  ;;  %v3996_v49 = vcombine.high %v3988_v11, %v3988_v11 }
 0x317   : > { %4713 = vst [vmem:[#allocation3 + $0x8] sm:$0xf] %v4712_v50  ;;  %v8376_v60 = vunpack.c.l.b16 %v16336_v62  ;;  %v8377_v55 = vunpack.c.l.b16 %v16337_v10  ;;  %v16363_v18 = vpack.c.bf16 %v8026_v19, %v8026_v19  ;;  %v4289_v21 = vsel %vm4215_vm14, %v3988_v11, -inf }
 0x318   : > { %v8406_v54 = vsel %vm4670_vm2, %v8375_v12, %v21556_v38  ;;  %v3997_v1 = vcombine.high %v3995_v63, %v3995_v63  ;;  %v4298_v41 = vsel %vm4215_vm14, %v3996_v49, -inf  ;;  %v4307_v61 = vsel %vm4215_vm14, %v3995_v63, -inf }
 0x319   : > { %v8407_v20 = vsel %vm4672_vm3, %v8376_v60, %v8406_v54  ;;  %v8448_v39 = vsel %vm19573_vm10, %v16363_v18, %v8447_v16  ;;  %v7721_v7 = vcombine.high %v7593_v13, %v7593_v13  ;;  %v7728_v36 = vrot.slane %v7593_v13, %v21445_v27 }
 0x31a   : > { %v8408_v28 = vsel %vm4674_vm4, %v8377_v55, %v8407_v20  ;;  %8449 = vst [vmem:[#allocation3 + $0x2c] sm:$0x1] %v8448_v39  ;;  %v4316_v29 = vsel %vm4215_vm14, %v3997_v1, -inf  ;;  %v3835_v38 = vadd.f32 %v21441_v30, %v21472_v17  ;;  %v7575_v33 = vadd.f32 %v21441_v30, %v21487_v58 }
 0x31b   : > { %v8427_v23 = vpack.c.b16 %v8408_v28, %v8408_v28  ;;  %v7735_v53 = vrot.slane %v7721_v7, %v21445_v27  ;;  %v7736_v8 = vcombine.high %v7728_v36, %v7728_v36  ;;  %v8028_v42 = vsel %vm4215_vm14, %v7728_v36, -inf }
 0x31c   : > { %v3851_v59 = vmax.f32 %v3835_v38, 0.0  ;;  %v7591_v51 = vmax.f32 %v7575_v33, 0.0  ;;  %v3838_v15 = vadd.f32 %v21476_v52, %v21441_v30  ;;  %v7578_v22 = vadd.f32 %v21490_v26, %v21441_v30 }
 0x31d   : > { %v8445_v17 = vsel %vm19550_vm8, %v8427_v23, %v8444_v48  ;;  %v7737_v58 = vcombine.high %v7735_v53, %v7735_v53  ;;  %v8037_v2 = vsel %vm4215_vm14, %v7736_v8, -inf  ;;  %v8046_v14 = vsel %vm4215_vm14, %v7735_v53, -inf }
 0x31e   : > { %8446 = vst [vmem:[#allocation3 + $0x28] sm:$0xf] %v8445_v17  ;;  %v3947_v25 = vcombine.high %v3851_v59, %v3851_v59  ;;  %v3954_v11 = vrot.slane %v3851_v59, %v21445_v27  ;;  %v7687_v19 = vcombine.high %v7591_v51, %v7591_v51  ;;  %v7694_v62 = vrot.slane %v7591_v51, %v21445_v27 }
 0x31f   : > { %v8055_v52 = vsel %vm4215_vm14, %v7737_v58, -inf  ;;  %v21616_v10 = vmax.f32 %v3838_v15, 0.0  ;;  %v21618_v26 = vmax.f32 %v7578_v22, 0.0  ;;  %v21622_v13 = vadd.f32 %v21441_v30, %v21483_v34 }
 0x320   : > { %v3961_v50 = vrot.slane %v3947_v25, %v21445_v27  ;;  %v3962_v12 = vcombine.high %v3954_v11, %v3954_v11  ;;  %v4288_v16 = vsel %vm4215_vm14, %v3954_v11, -inf  ;;  %v7701_v63 = vrot.slane %v7687_v19, %v21445_v27 }
 0x321   : > { %v4290_v49 = vmax.f32 %v4288_v16, %v4289_v21  ;;  %v7702_v60 = vcombine.high %v7694_v62, %v7694_v62  ;;  %v8027_v55 = vsel %vm4215_vm14, %v7694_v62, -inf  ;;  %v3998_v18 = vcombine.high %v21616_v10, %v21616_v10 }
 0x322   : > { %v3963_v54 = vcombine.high %v3961_v50, %v3961_v50  ;;  %v4297_v1 = vsel %vm4215_vm14, %v3962_v12, -inf  ;;  %v4306_v34 = vsel %vm4215_vm14, %v3961_v50, -inf  ;;  %v7703_v20 = vcombine.high %v7701_v63, %v7701_v63 }
 0x323   : > { %v4291_v39 = vrot.slane %v4290_v49, 4  ;;  %v4299_v7 = vmax.f32 %v4297_v1, %v4298_v41  ;;  %v4308_v36 = vmax.f32 %v4306_v34, %v4307_v61  ;;  %v8029_v28 = vmax.f32 %v8027_v55, %v8028_v42  ;;  %v21636_v1 = vpop.f32.mrb[14].mxu1 }
 0x324   : > { %v4315_v48 = vsel %vm4215_vm14, %v3963_v54, -inf  ;;  %v8036_v21 = vsel %vm4215_vm14, %v7702_v60, -inf  ;;  %v8045_v38 = vsel %vm4215_vm14, %v7701_v63, -inf  ;;  %v8054_v33 = vsel %vm4215_vm14, %v7703_v20, -inf }
 0x325   : > { %v4292_v23 = vmax.f32 %v4290_v49, %v4291_v39  ;;  %v4300_v53 = vrot.slane %v4299_v7, 4  ;;  %v4309_v8 = vrot.slane %v4308_v36, 4  ;;  %v4317_v59 = vmax.f32 %v4315_v48, %v4316_v29 }
 0x326   : > { %v8030_v51 = vrot.slane %v8029_v28, 4  ;;  %v8038_v15 = vmax.f32 %v8036_v21, %v8037_v2  ;;  %v8047_v22 = vmax.f32 %v8045_v38, %v8046_v14  ;;  %v8056_v17 = vmax.f32 %v8054_v33, %v8055_v52 }
 0x327   : > { %v4293_v58 = vrot.slane %v4292_v23, 2  ;;  %v4301_v41 = vmax.f32 %v4299_v7, %v4300_v53  ;;  %v4310_v61 = vmax.f32 %v4308_v36, %v4309_v8  ;;  %v4318_v42 = vrot.slane %v4317_v59, 4 }
 0x328   : > { %v8031_v25 = vmax.f32 %v8029_v28, %v8030_v51  ;;  %v8039_v11 = vrot.slane %v8038_v15, 4  ;;  %v8048_v19 = vrot.slane %v8047_v22, 4  ;;  %v8057_v62 = vrot.slane %v8056_v17, 4 }
 0x329   : > { %v4294_v50 = vmax.f32 %v4292_v23, %v4293_v58  ;;  %v4302_v12 = vrot.slane %v4301_v41, 2  ;;  %v4311_v16 = vrot.slane %v4310_v61, 2  ;;  %v4319_v63 = vmax.f32 %v4317_v59, %v4318_v42 }
 0x32a   : > { %v8032_v49 = vrot.slane %v8031_v25, 2  ;;  %v8040_v60 = vmax.f32 %v8038_v15, %v8039_v11  ;;  %v8049_v55 = vmax.f32 %v8047_v22, %v8048_v19  ;;  %v8058_v29 = vmax.f32 %v8056_v17, %v8057_v62 }
 0x32b   : > { %v4295_v54 = vrot.slane %v4294_v50, 1  ;;  %v4303_v2 = vmax.f32 %v4301_v41, %v4302_v12  ;;  %v4312_v14 = vmax.f32 %v4310_v61, %v4311_v16  ;;  %v4320_v52 = vrot.slane %v4319_v63, 2  ;;  %v21638_v61 = vpop.f32.mrb[15].mxu0 }
 0x32c   : > { %v8033_v34 = vmax.f32 %v8031_v25, %v8032_v49  ;;  %v8041_v20 = vrot.slane %v8040_v60, 2  ;;  %v8050_v39 = vrot.slane %v8049_v55, 2  ;;  %v8059_v7 = vrot.slane %v8058_v29, 2 }
 0x32d   : > { %v4296_v36 = vmax.f32 %v4294_v50, %v4295_v54  ;;  %v4304_v28 = vrot.slane %v4303_v2, 1  ;;  %v4313_v48 = vrot.slane %v4312_v14, 1  ;;  %v4321_v21 = vmax.f32 %v4319_v63, %v4320_v52 }
 0x32e   : > { %v8034_v38 = vrot.slane %v8033_v34, 1  ;;  %v8042_v33 = vmax.f32 %v8040_v60, %v8041_v20  ;;  %v8051_v23 = vmax.f32 %v8049_v55, %v8050_v39  ;;  %v8060_v53 = vmax.f32 %v8058_v29, %v8059_v7  ;;  %v21642_v29 = vpop.f32.mrb[15].mxu1 }
 0x32f   : > { %v4305_v8 = vmax.f32 %v4303_v2, %v4304_v28  ;;  %v4314_v59 = vmax.f32 %v4312_v14, %v4313_v48  ;;  %v4322_v51 = vrot.slane %v4321_v21, 1  ;;  %v16303_v15 = vpack.c.bf16 %v4296_v36, %v4296_v36 }
 0x330   : > { %v8035_v22 = vmax.f32 %v8033_v34, %v8034_v38  ;;  %v8043_v17 = vrot.slane %v8042_v33, 1  ;;  %v8052_v58 = vrot.slane %v8051_v23, 1  ;;  %v8061_v41 = vrot.slane %v8060_v53, 1 }
 0x331   : > { %v4323_v42 = vmax.f32 %v4321_v21, %v4322_v51  ;;  %v16304_v25 = vpack.c.bf16 %v4305_v8, %v4305_v8  ;;  %v16305_v11 = vpack.c.bf16 %v4314_v59, %v4314_v59  ;;  %v4640_v19 = vunpack.c.l.b16 %v16303_v15 }
 0x332   : > { %v8044_v62 = vmax.f32 %v8042_v33, %v8043_v17  ;;  %v8053_v50 = vmax.f32 %v8051_v23, %v8052_v58  ;;  %v8062_v12 = vmax.f32 %v8060_v53, %v8061_v41  ;;  %v16339_v16 = vpack.c.bf16 %v8035_v22, %v8035_v22 }
 0x333   : > { %v16306_v63 = vpack.c.bf16 %v4323_v42, %v4323_v42  ;;  %v4641_v49 = vunpack.c.l.b16 %v16304_v25  ;;  %v4642_v60 = vunpack.c.l.b16 %v16305_v11  ;;  %v4005_v55 = vrot.slane %v21616_v10, %v21445_v27 }
 0x334   : > { %v16340_v54 = vpack.c.bf16 %v8044_v62, %v8044_v62  ;;  %v16341_v2 = vpack.c.bf16 %v8053_v50, %v8053_v50  ;;  %v16342_v14 = vpack.c.bf16 %v8062_v12, %v8062_v12  ;;  %v8379_v52 = vunpack.c.l.b16 %v16339_v16 }
 0x335   : > { %v4643_v34 = vunpack.c.l.b16 %v16306_v63  ;;  %v4676_v20 = vsel %vm4664_vm15, %v4641_v49, %v4640_v19  ;;  %v4012_v39 = vrot.slane %v3998_v18, %v21445_v27  ;;  %v4013_v7 = vcombine.high %v4005_v55, %v4005_v55 }
 0x336   : > { %v4677_v36 = vsel %vm4666_vm0, %v4642_v60, %v4676_v20  ;;  %v8380_v28 = vunpack.c.l.b16 %v16340_v54  ;;  %v8381_v48 = vunpack.c.l.b16 %v16341_v2  ;;  %v8382_v21 = vunpack.c.l.b16 %v16342_v14 }
 0x337   : > { %v4014_v38 = vcombine.high %v4012_v39, %v4012_v39  ;;  %v4325_v33 = vsel %vm4215_vm14, %v4005_v55, -inf  ;;  %v4334_v23 = vsel %vm4215_vm14, %v4013_v7, -inf  ;;  %v4343_v53 = vsel %vm4215_vm14, %v4012_v39, -inf }
 0x338   : > { %v8409_v8 = vsel %vm4664_vm15, %v8380_v28, %v8379_v52  ;;  %v7738_v59 = vcombine.high %v21618_v26, %v21618_v26  ;;  %v7745_v10 = vrot.slane %v21618_v26, %v21445_v27  ;;  %v3852_v18 = vmax.f32 %v21622_v13, 0.0 }
 0x339   : > { %v8410_v51 = vsel %vm4666_vm0, %v8381_v48, %v8409_v8  ;;  %v4352_v15 = vsel %vm4215_vm14, %v4014_v38, -inf  ;;  %v21662_v22 = vsel %vm4668_vm1, %v4643_v34, %v4677_v36  ;;  %v7576_v17 = vadd.f32 %v21441_v30, %v21494_v46  ;;  %v18444_v8 = vld [vmem:[#allocation5 + $0x40] sm:$0xff]  }
 0x33a   : > { %v7752_v58 = vrot.slane %v7738_v59, %v21445_v27  ;;  %v7753_v41 = vcombine.high %v7745_v10, %v7745_v10  ;;  %v8064_v42 = vsel %vm4215_vm14, %v7745_v10, -inf  ;;  %v3964_v25 = vcombine.high %v3852_v18, %v3852_v18  ;;  %17458 = vmatprep.subr.bf16.mxu0 %v18444_v8 }
 0x33b   : > { %v3971_v26 = vrot.slane %v3852_v18, %v21445_v27  ;;  %v7592_v11 = vmax.f32 %v7576_v17, 0.0  ;;  %v21670_v13 = vsel %vm4668_vm1, %v8382_v21, %v8410_v51  ;;  %v21674_v19 = vadd.f32 %v21500_v6, %v21441_v30  ;;  %17459 = vmatpush3.bf16.msra.mxu0 %v18444_v8 }
 0x33c   : > { %v7754_v62 = vcombine.high %v7752_v58, %v7752_v58  ;;  %v8073_v50 = vsel %vm4215_vm14, %v7753_v41, -inf  ;;  %v8082_v46 = vsel %vm4215_vm14, %v7752_v58, -inf  ;;  %v3978_v12 = vrot.slane %v3964_v25, %v21445_v27 }
 0x33d   : > { %v3979_v16 = vcombine.high %v3971_v26, %v3971_v26  ;;  %v4324_v63 = vsel %vm4215_vm14, %v3971_v26, -inf  ;;  %v7704_v49 = vcombine.high %v7592_v11, %v7592_v11  ;;  %v7711_v60 = vrot.slane %v7592_v11, %v21445_v27 }
 0x33e   : > { %v8091_v55 = vsel %vm4215_vm14, %v7754_v62, -inf  ;;  %v3980_v54 = vcombine.high %v3978_v12, %v3978_v12  ;;  %v4326_v2 = vmax.f32 %v4324_v63, %v4325_v33  ;;  %v4342_v30 = vsel %vm4215_vm14, %v3978_v12, -inf  ;;  %v18445_v12 = vld [vmem:[#allocation5 + $0x48] sm:$0xff]  }
 0x33f   : > { %v4333_v6 = vsel %vm4215_vm14, %v3979_v16, -inf  ;;  %v4344_v14 = vmax.f32 %v4342_v30, %v4343_v53  ;;  %v7718_v52 = vrot.slane %v7704_v49, %v21445_v27  ;;  %v7719_v34 = vcombine.high %v7711_v60, %v7711_v60  ;;  %17460 = vmatprep.subr.bf16.mxu0 %v18445_v12 }
 0x340   : > { %v4327_v20 = vrot.slane %v4326_v2, 4  ;;  %v4335_v39 = vmax.f32 %v4333_v6, %v4334_v23  ;;  %v4351_v7 = vsel %vm4215_vm14, %v3980_v54, -inf  ;;  %v8063_v36 = vsel %vm4215_vm14, %v7711_v60, -inf  ;;  %17461 = vmatpush3.bf16.msra.mxu0 %v18445_v12 }
 0x341   : > { %v4345_v28 = vrot.slane %v4344_v14, 4  ;;  %v4353_v48 = vmax.f32 %v4351_v7, %v4352_v15  ;;  %v7720_v21 = vcombine.high %v7718_v52, %v7718_v52  ;;  %v8065_v38 = vmax.f32 %v8063_v36, %v8064_v42  ;;  %v18446_v36 = vld [vmem:[#allocation5 + $0x50] sm:$0xff]  }
 0x342   : > { %v4328_v33 = vmax.f32 %v4326_v2, %v4327_v20  ;;  %v4336_v59 = vrot.slane %v4335_v39, 4  ;;  %v8072_v10 = vsel %vm4215_vm14, %v7719_v34, -inf  ;;  %v8081_v53 = vsel %vm4215_vm14, %v7718_v52, -inf  ;;  %17462 = vmatprep.subr.bf16.mxu0 %v18446_v36 }
 0x343   : > { %v4346_v18 = vmax.f32 %v4344_v14, %v4345_v28  ;;  %v4354_v51 = vrot.slane %v4353_v48, 4  ;;  %v8066_v17 = vrot.slane %v8065_v38, 4  ;;  %v8074_v58 = vmax.f32 %v8072_v10, %v8073_v50 }
 0x344   : > { %v4329_v23 = vrot.slane %v4328_v33, 2  ;;  %v4337_v41 = vmax.f32 %v4335_v39, %v4336_v59  ;;  %v8083_v25 = vmax.f32 %v8081_v53, %v8082_v46  ;;  %v8090_v26 = vsel %vm4215_vm14, %v7720_v21, -inf  ;;  %17463 = vmatpush3.bf16.msra.mxu0 %v18446_v36 }
 0x345   : > { %v4347_v15 = vrot.slane %v4346_v18, 2  ;;  %v4355_v42 = vmax.f32 %v4353_v48, %v4354_v51  ;;  %v8067_v11 = vmax.f32 %v8065_v38, %v8066_v17  ;;  %v8075_v62 = vrot.slane %v8074_v58, 4 }
 0x346   : > { %v4330_v16 = vmax.f32 %v4328_v33, %v4329_v23  ;;  %v4338_v63 = vrot.slane %v4337_v41, 2  ;;  %v8084_v49 = vrot.slane %v8083_v25, 4  ;;  %v8092_v60 = vmax.f32 %v8090_v26, %v8091_v55 }
 0x347   : > { %v4348_v54 = vmax.f32 %v4346_v18, %v4347_v15  ;;  %v4356_v2 = vrot.slane %v4355_v42, 2  ;;  %v8068_v30 = vrot.slane %v8067_v11, 2  ;;  %v8076_v50 = vmax.f32 %v8074_v58, %v8075_v62 }
 0x348   : > { %v4331_v6 = vrot.slane %v4330_v16, 1  ;;  %v4339_v14 = vmax.f32 %v4337_v41, %v4338_v63  ;;  %v8085_v46 = vmax.f32 %v8083_v25, %v8084_v49  ;;  %v8093_v52 = vrot.slane %v8092_v60, 4  ;;  %v18447_v25 = vld [vmem:[#allocation5 + $0x58] sm:$0xff]  }
 0x349   : > { %v4349_v34 = vrot.slane %v4348_v54, 1  ;;  %v4357_v20 = vmax.f32 %v4355_v42, %v4356_v2  ;;  %v8069_v39 = vmax.f32 %v8067_v11, %v8068_v30  ;;  %v8077_v7 = vrot.slane %v8076_v50, 2  ;;  %v4720_v42 = vld [vmem:[#allocation3 + $0x14] sm:$0x1]  ;;  %17464 = vmatprep.subr.bf16.mxu0 %v18447_v25 }
 0x34a   : > { %v4332_v28 = vmax.f32 %v4330_v16, %v4331_v6  ;;  %v4340_v48 = vrot.slane %v4339_v14, 1  ;;  %v8086_v21 = vrot.slane %v8085_v46, 2  ;;  %v8094_v38 = vmax.f32 %v8092_v60, %v8093_v52  ;;  %17465 = vmatpush3.bf16.msra.mxu0 %v18447_v25  ;;  %v18448_v52 = vld [vmem:[#allocation5 + $0x60] sm:$0xff]  }
 0x34b   : > { %v4350_v55 = vmax.f32 %v4348_v54, %v4349_v34  ;;  %v4358_v8 = vrot.slane %v4357_v20, 1  ;;  %v8070_v33 = vrot.slane %v8069_v39, 1  ;;  %v8078_v59 = vmax.f32 %v8076_v50, %v8077_v7  ;;  %17466 = vmatprep.subr.bf16.mxu0 %v18448_v52 }
 0x34c   : > { %v4341_v10 = vmax.f32 %v4339_v14, %v4340_v48  ;;  %v16307_v53 = vpack.c.bf16 %v4332_v28, %v4332_v28  ;;  %v8087_v18 = vmax.f32 %v8085_v46, %v8086_v21  ;;  %v8095_v51 = vrot.slane %v8094_v38, 2  ;;  %v4717_v28 = vld [vmem:[#allocation3 + $0x10] sm:$0xf]  ;;  %v8453_v21 = vld [vmem:[#allocation3 + $0x34] sm:$0x1] }
 0x34d   : > { %v4359_v17 = vmax.f32 %v4357_v20, %v4358_v8  ;;  %v16309_v58 = vpack.c.bf16 %v4350_v55, %v4350_v55  ;;  %v8071_v23 = vmax.f32 %v8069_v39, %v8070_v33  ;;  %v8079_v41 = vrot.slane %v8078_v59, 1 }
 0x34e   : > { %v16308_v26 = vpack.c.bf16 %v4341_v10, %v4341_v10  ;;  %v4644_v15 = vunpack.c.l.b16 %v16307_v53  ;;  %v8088_v11 = vrot.slane %v8087_v18, 1  ;;  %v8096_v62 = vmax.f32 %v8094_v38, %v8095_v51  ;;  %17467 = vmatpush3.bf16.msra.mxu0 %v18448_v52 }
 0x34f   : > { %v4646_v12 = vunpack.c.l.b16 %v16309_v58  ;;  %v16328_v16 = vpack.c.bf16 %v4359_v17, %v4359_v17  ;;  %v8080_v63 = vmax.f32 %v8078_v59, %v8079_v41  ;;  %v16343_v49 = vpack.c.bf16 %v8071_v23, %v8071_v23  ;;  %v8450_v17 = vld [vmem:[#allocation3 + $0x30] sm:$0xf] }
 0x350   : > { %v4645_v60 = vunpack.c.l.b16 %v16308_v26  ;;  %v4679_v54 = vsel %vm4670_vm2, %v4644_v15, %v21662_v22  ;;  %v8089_v2 = vmax.f32 %v8087_v18, %v8088_v11  ;;  %v8097_v30 = vrot.slane %v8096_v62, 1  ;;  %v21699_v22 = vld [vmem:[%s22639_s2] ss:$0 sm:$0xff] }
 0x351   : > { %v4721_v50 = vsel %vm19573_vm10, %v16328_v16, %v4720_v42  ;;  %v16344_v6 = vpack.c.bf16 %v8080_v63, %v8080_v63  ;;  %v8383_v14 = vunpack.c.l.b16 %v16343_v49  ;;  %v3857_v46 = vmax.f32 %v21674_v19, 0.0 }
 0x352   : > { %v4680_v34 = vsel %vm4672_vm3, %v4645_v60, %v4679_v54  ;;  %4722 = vst [vmem:[#allocation3 + $0x14] sm:$0x1] %v4721_v50  ;;  %v8098_v20 = vmax.f32 %v8096_v62, %v8097_v30  ;;  %v16345_v39 = vpack.c.bf16 %v8089_v2, %v8089_v2  ;;  %v7581_v7 = vadd.f32 %v21699_v22, %v21508_v9 }
 0x353   : > { %v4681_v36 = vsel %vm4674_vm4, %v4646_v12, %v4680_v34  ;;  %v8384_v48 = vunpack.c.l.b16 %v16344_v6  ;;  %v8412_v19 = vsel %vm4670_vm2, %v8383_v14, %v21670_v13  ;;  %v4049_v38 = vcombine.high %v3857_v46, %v3857_v46 }
 0x354   : > { %v4696_v55 = vpack.c.b16 %v4681_v36, %v4681_v36  ;;  %v8385_v8 = vunpack.c.l.b16 %v16345_v39  ;;  %v16364_v33 = vpack.c.bf16 %v8098_v20, %v8098_v20  ;;  %v4056_v59 = vrot.slane %v3857_v46, %v21445_v27 }
 0x355   : > { %v8413_v10 = vsel %vm4672_vm3, %v8384_v48, %v8412_v19  ;;  %v4063_v9 = vrot.slane %v4049_v38, %v21445_v27  ;;  %v7597_v53 = vmax.f32 %v7581_v7, 0.0  ;;  %v3839_v18 = vadd.f32 %v21699_v22, %v21502_v47  ;;  %v18450_v48 = vld [vmem:[#allocation5 + $0x70] sm:$0xff]  }
 0x356   : > { %v4718_v13 = vsel %vm19550_vm8, %v4696_v55, %v4717_v28  ;;  %v8414_v51 = vsel %vm4674_vm4, %v8385_v8, %v8413_v10  ;;  %v8454_v58 = vsel %vm19573_vm10, %v16364_v33, %v8453_v21  ;;  %v4064_v23 = vcombine.high %v4056_v59, %v4056_v59  ;;  %v18449_v28 = vld [vmem:[#allocation5 + $0x68] sm:$0xff]  }
 0x357   : > { %4719 = vst [vmem:[#allocation3 + $0x10] sm:$0xf] %v4718_v13  ;;  %v8429_v41 = vpack.c.b16 %v8414_v51, %v8414_v51  ;;  %8455 = vst [vmem:[#allocation3 + $0x34] sm:$0x1] %v8454_v58  ;;  %v4065_v25 = vcombine.high %v4063_v9, %v4063_v9  ;;  %v4361_v26 = vsel %vm4215_vm14, %v4056_v59, -inf  ;;  %v4379_v15 = vsel %vm4215_vm14, %v4063_v9, -inf  ;;  %17468 = vmatprep.subr.bf16.mxu0 %v18449_v28 }
 0x358   : > { %v4370_v47 = vsel %vm4215_vm14, %v4064_v23, -inf  ;;  %v7789_v42 = vcombine.high %v7597_v53, %v7597_v53  ;;  %v7796_v11 = vrot.slane %v7597_v53, %v21445_v27  ;;  %v3855_v62 = vmax.f32 %v3839_v18, 0.0  ;;  %17469 = vmatpush3.bf16.msra.mxu0 %v18449_v28  ;;  %v18451_v23 = vld [vmem:[#allocation5 + $0x78] sm:$0xff]  }
 0x359   : > { %v8451_v12 = vsel %vm19550_vm8, %v8429_v41, %v8450_v17  ;;  %v4388_v16 = vsel %vm4215_vm14, %v4065_v25, -inf  ;;  %v7579_v63 = vadd.f32 %v21699_v22, %v21511_v24  ;;  %v3842_v49 = vadd.f32 %v21699_v22, %v21506_v31  ;;  %17470 = vmatprep.subr.bf16.mxu0 %v18450_v48 }
 0x35a   : > { %8452 = vst [vmem:[#allocation3 + $0x30] sm:$0xf] %v8451_v12  ;;  %v7803_v60 = vrot.slane %v7789_v42, %v21445_v27  ;;  %v7804_v54 = vcombine.high %v7796_v11, %v7796_v11  ;;  %v8100_v2 = vsel %vm4215_vm14, %v7796_v11, -inf  ;;  %v4015_v30 = vcombine.high %v3855_v62, %v3855_v62 }
 0x35b   : > { %v4022_v50 = vrot.slane %v3855_v62, %v21445_v27  ;;  %v7595_v6 = vmax.f32 %v7579_v63, 0.0  ;;  %v21730_v14 = vmax.f32 %v3842_v49, 0.0  ;;  %v21734_v46 = vadd.f32 %v21699_v22, %v21513_v40 }
 0x35c   : > { %v7805_v24 = vcombine.high %v7803_v60, %v7803_v60  ;;  %v8109_v52 = vsel %vm4215_vm14, %v7804_v54, -inf  ;;  %v8118_v31 = vsel %vm4215_vm14, %v7803_v60, -inf  ;;  %v4029_v34 = vrot.slane %v4015_v30, %v21445_v27  ;;  %17471 = vmatpush3.bf16.msra.mxu0 %v18450_v48 }
 0x35d   : > { %v4030_v20 = vcombine.high %v4022_v50, %v4022_v50  ;;  %v4360_v39 = vsel %vm4215_vm14, %v4022_v50, -inf  ;;  %v7755_v7 = vcombine.high %v7595_v6, %v7595_v6  ;;  %v7762_v36 = vrot.slane %v7595_v6, %v21445_v27  ;;  %17472 = vmatprep.subr.bf16.mxu0 %v18451_v23  ;;  %v18452_v50 = vld [vmem:[#allocation5] sm:$0xff]  }
 0x35e   : > { %v8127_v19 = vsel %vm4215_vm14, %v7805_v24, -inf  ;;  %v4031_v21 = vcombine.high %v4029_v34, %v4029_v34  ;;  %v4362_v40 = vmax.f32 %v4360_v39, %v4361_v26  ;;  %v4378_v38 = vsel %vm4215_vm14, %v4029_v34, -inf }
 0x35f   : > { %v4369_v55 = vsel %vm4215_vm14, %v4030_v20, -inf  ;;  %v4380_v8 = vmax.f32 %v4378_v38, %v4379_v15  ;;  %v7769_v33 = vrot.slane %v7755_v7, %v21445_v27  ;;  %v7770_v59 = vcombine.high %v7762_v36, %v7762_v36 }
 0x360   : > { %v4363_v10 = vrot.slane %v4362_v40, 4  ;;  %v4371_v9 = vmax.f32 %v4369_v55, %v4370_v47  ;;  %v4387_v53 = vsel %vm4215_vm14, %v4031_v21, -inf  ;;  %v8099_v18 = vsel %vm4215_vm14, %v7762_v36, -inf  ;;  %17473 = vmatpush3.bf16.msra.mxu0 %v18451_v23 }
 0x361   : > { %v4381_v13 = vrot.slane %v4380_v8, 4  ;;  %v4389_v51 = vmax.f32 %v4387_v53, %v4388_v16  ;;  %v7771_v17 = vcombine.high %v7769_v33, %v7769_v33  ;;  %v8101_v58 = vmax.f32 %v8099_v18, %v8100_v2  ;;  %17482 = vmatprep.subr.bf16.mxu0 %v18452_v50 }
 0x362   : > { %v4364_v41 = vmax.f32 %v4362_v40, %v4363_v10  ;;  %v4372_v25 = vrot.slane %v4371_v9, 4  ;;  %v8108_v26 = vsel %vm4215_vm14, %v7770_v59, -inf  ;;  %v8117_v15 = vsel %vm4215_vm14, %v7769_v33, -inf }
 0x363   : > { %v4382_v42 = vmax.f32 %v4380_v8, %v4381_v13  ;;  %v4390_v11 = vrot.slane %v4389_v51, 4  ;;  %v8102_v47 = vrot.slane %v8101_v58, 4  ;;  %v8110_v62 = vmax.f32 %v8108_v26, %v8109_v52 }
 0x364   : > { %v4365_v12 = vrot.slane %v4364_v41, 2  ;;  %v4373_v63 = vmax.f32 %v4371_v9, %v4372_v25  ;;  %v8119_v49 = vmax.f32 %v8117_v15, %v8118_v31  ;;  %v8126_v60 = vsel %vm4215_vm14, %v7771_v17, -inf }
 0x365   : > { %v4383_v16 = vrot.slane %v4382_v42, 2  ;;  %v4391_v54 = vmax.f32 %v4389_v51, %v4390_v11  ;;  %v8103_v2 = vmax.f32 %v8101_v58, %v8102_v47  ;;  %v8111_v30 = vrot.slane %v8110_v62, 4 }
 0x366   : > { %v4366_v6 = vmax.f32 %v4364_v41, %v4365_v12  ;;  %v4374_v24 = vrot.slane %v4373_v63, 2  ;;  %v8120_v34 = vrot.slane %v8119_v49, 4  ;;  %v8128_v20 = vmax.f32 %v8126_v60, %v8127_v19 }
 0x367   : > { %v4384_v39 = vmax.f32 %v4382_v42, %v4383_v16  ;;  %v4392_v7 = vrot.slane %v4391_v54, 2  ;;  %v8104_v36 = vrot.slane %v8103_v2, 2  ;;  %v8112_v52 = vmax.f32 %v8110_v62, %v8111_v30 }
 0x368   : > { %v4367_v28 = vrot.slane %v4366_v6, 1  ;;  %v4375_v21 = vmax.f32 %v4373_v63, %v4374_v24  ;;  %v8121_v31 = vmax.f32 %v8119_v49, %v8120_v34  ;;  %v8129_v40 = vrot.slane %v8128_v20, 4 }
 0x369   : > { %v4385_v48 = vrot.slane %v4384_v39, 1  ;;  %v4393_v38 = vmax.f32 %v4391_v54, %v4392_v7  ;;  %v8105_v55 = vmax.f32 %v8103_v2, %v8104_v36  ;;  %v8113_v8 = vrot.slane %v8112_v52, 2 }
 0x36a   : > { %v4368_v33 = vmax.f32 %v4366_v6, %v4367_v28  ;;  %v4376_v59 = vrot.slane %v4375_v21, 1  ;;  %v8122_v10 = vrot.slane %v8121_v31, 2  ;;  %v8130_v9 = vmax.f32 %v8128_v20, %v8129_v40 }
 0x36b   : > { %v4386_v53 = vmax.f32 %v4384_v39, %v4385_v48  ;;  %v4394_v19 = vrot.slane %v4393_v38, 1  ;;  %v8106_v18 = vrot.slane %v8105_v55, 1  ;;  %v8114_v13 = vmax.f32 %v8112_v52, %v8113_v8 }
 0x36c   : > { %v4377_v51 = vmax.f32 %v4375_v21, %v4376_v59  ;;  %v16311_v17 = vpack.c.bf16 %v4368_v33, %v4368_v33  ;;  %v8123_v58 = vmax.f32 %v8121_v31, %v8122_v10  ;;  %v8131_v41 = vrot.slane %v8130_v9, 2 }
 0x36d   : > { %v4395_v25 = vmax.f32 %v4393_v38, %v4394_v19  ;;  %v16313_v26 = vpack.c.bf16 %v4386_v53, %v4386_v53  ;;  %v8107_v23 = vmax.f32 %v8105_v55, %v8106_v18  ;;  %v8115_v15 = vrot.slane %v8114_v13, 1 }
 0x36e   : > { %v16312_v42 = vpack.c.bf16 %v4377_v51, %v4377_v51  ;;  %v4648_v11 = vunpack.c.l.b16 %v16311_v17  ;;  %v8124_v47 = vrot.slane %v8123_v58, 1  ;;  %v8132_v62 = vmax.f32 %v8130_v9, %v8131_v41 }
 0x36f   : > { %v16314_v12 = vpack.c.bf16 %v4395_v25, %v4395_v25  ;;  %v4650_v63 = vunpack.c.l.b16 %v16313_v26  ;;  %v8116_v49 = vmax.f32 %v8114_v13, %v8115_v15  ;;  %v16347_v60 = vpack.c.bf16 %v8107_v23, %v8107_v23 }
 0x370   : > { %v4649_v16 = vunpack.c.l.b16 %v16312_v42  ;;  %v8125_v54 = vmax.f32 %v8123_v58, %v8124_v47  ;;  %v8133_v2 = vrot.slane %v8132_v62, 1  ;;  %v4066_v30 = vcombine.high %v21730_v14, %v21730_v14 }
 0x371   : > { %v4651_v50 = vunpack.c.l.b16 %v16314_v12  ;;  %v16348_v6 = vpack.c.bf16 %v8116_v49, %v8116_v49  ;;  %v8387_v24 = vunpack.c.l.b16 %v16347_v60  ;;  %v4073_v34 = vrot.slane %v21730_v14, %v21445_v27 }
 0x372   : > { %v4682_v20 = vsel %vm4664_vm15, %v4649_v16, %v4648_v11  ;;  %v8134_v39 = vmax.f32 %v8132_v62, %v8133_v2  ;;  %v16349_v7 = vpack.c.bf16 %v8125_v54, %v8125_v54  ;;  %v4080_v36 = vrot.slane %v4066_v30, %v21445_v27 }
 0x373   : > { %v4683_v52 = vsel %vm4666_vm0, %v4650_v63, %v4682_v20  ;;  %v8388_v28 = vunpack.c.l.b16 %v16348_v6  ;;  %v4081_v21 = vcombine.high %v4073_v34, %v4073_v34  ;;  %v4397_v31 = vsel %vm4215_vm14, %v4073_v34, -inf }
 0x374   : > { %v16350_v40 = vpack.c.bf16 %v8134_v39, %v8134_v39  ;;  %v8389_v48 = vunpack.c.l.b16 %v16349_v7  ;;  %v4082_v38 = vcombine.high %v4080_v36, %v4080_v36  ;;  %v4415_v55 = vsel %vm4215_vm14, %v4080_v36, -inf }
 0x375   : > { %v8415_v8 = vsel %vm4664_vm15, %v8388_v28, %v8387_v24  ;;  %v4406_v14 = vsel %vm4215_vm14, %v4081_v21, -inf  ;;  %v7598_v33 = vmax.f32 %v21734_v46, 0.0  ;;  %v3840_v59 = vadd.f32 %v21699_v22, %v21517_v44 }
 0x376   : > { %v8390_v10 = vunpack.c.l.b16 %v16350_v40  ;;  %v8416_v9 = vsel %vm4666_vm0, %v8389_v48, %v8415_v8  ;;  %v4424_v53 = vsel %vm4215_vm14, %v4082_v38, -inf  ;;  %v21767_v19 = vsel %vm4668_vm1, %v4651_v50, %v4683_v52 }
 0x377   : > { %v7806_v18 = vcombine.high %v7598_v33, %v7598_v33  ;;  %v7813_v13 = vrot.slane %v7598_v33, %v21445_v27  ;;  %v3856_v51 = vmax.f32 %v3840_v59, 0.0  ;;  %v7580_v17 = vadd.f32 %v21699_v22, %v21525_v57 }
 0x378   : > { %v21773_v46 = vsel %vm4668_vm1, %v8390_v10, %v8416_v9  ;;  %v3845_v44 = vadd.f32 %v21699_v22, %v21548_v43  ;;  %v7585_v58 = vadd.f32 %v21699_v22, %v21567_v37  ;;  %v21781_v41 = vadd.f32 %v21699_v22, %v21577_v0 }
 0x379   : > { %v7820_v25 = vrot.slane %v7806_v18, %v21445_v27  ;;  %v7821_v26 = vcombine.high %v7813_v13, %v7813_v13  ;;  %v8136_v23 = vsel %vm4215_vm14, %v7813_v13, -inf  ;;  %v4032_v15 = vcombine.high %v3856_v51, %v3856_v51 }
 0x37a   : > { %v4039_v57 = vrot.slane %v3856_v51, %v21445_v27  ;;  %v7596_v42 = vmax.f32 %v7580_v17, 0.0  ;;  %v21786_v11 = vmax.f32 %v3845_v44, 0.0  ;;  %v21788_v47 = vmax.f32 %v7585_v58, 0.0 }
 0x37b   : > { %v7822_v43 = vcombine.high %v7820_v25, %v7820_v25  ;;  %v8145_v37 = vsel %vm4215_vm14, %v7821_v26, -inf  ;;  %v8154_v62 = vsel %vm4215_vm14, %v7820_v25, -inf  ;;  %v4046_v0 = vrot.slane %v4032_v15, %v21445_v27 }
 0x37c   : > { %v4047_v12 = vcombine.high %v4039_v57, %v4039_v57  ;;  %v4396_v63 = vsel %vm4215_vm14, %v4039_v57, -inf  ;;  %v7772_v49 = vcombine.high %v7596_v42, %v7596_v42  ;;  %v7779_v60 = vrot.slane %v7596_v42, %v21445_v27 }
 0x37d   : > { %v8163_v16 = vsel %vm4215_vm14, %v7822_v43, -inf  ;;  %v4048_v54 = vcombine.high %v4046_v0, %v4046_v0  ;;  %v4398_v2 = vmax.f32 %v4396_v63, %v4397_v31  ;;  %v4414_v30 = vsel %vm4215_vm14, %v4046_v0, -inf }
 0x37e   : > { %v4405_v50 = vsel %vm4215_vm14, %v4047_v12, -inf  ;;  %v4416_v6 = vmax.f32 %v4414_v30, %v4415_v55  ;;  %v7786_v24 = vrot.slane %v7772_v49, %v21445_v27  ;;  %v7787_v34 = vcombine.high %v7779_v60, %v7779_v60 }
 0x37f   : > { %v4399_v20 = vrot.slane %v4398_v2, 4  ;;  %v4407_v39 = vmax.f32 %v4405_v50, %v4406_v14  ;;  %v4423_v7 = vsel %vm4215_vm14, %v4048_v54, -inf  ;;  %v8135_v36 = vsel %vm4215_vm14, %v7779_v60, -inf }
 0x380   : > { %v4417_v52 = vrot.slane %v4416_v6, 4  ;;  %v4425_v28 = vmax.f32 %v4423_v7, %v4424_v53  ;;  %v7788_v21 = vcombine.high %v7786_v24, %v7786_v24  ;;  %v8137_v40 = vmax.f32 %v8135_v36, %v8136_v23 }
 0x381   : > { %v4400_v48 = vmax.f32 %v4398_v2, %v4399_v20  ;;  %v4408_v31 = vrot.slane %v4407_v39, 4  ;;  %v8144_v38 = vsel %vm4215_vm14, %v7787_v34, -inf  ;;  %v8153_v8 = vsel %vm4215_vm14, %v7786_v24, -inf }
 0x382   : > { %v4418_v55 = vmax.f32 %v4416_v6, %v4417_v52  ;;  %v4426_v33 = vrot.slane %v4425_v28, 4  ;;  %v8138_v59 = vrot.slane %v8137_v40, 4  ;;  %v8146_v10 = vmax.f32 %v8144_v38, %v8145_v37 }
 0x383   : > { %v4401_v9 = vrot.slane %v4400_v48, 2  ;;  %v4409_v14 = vmax.f32 %v4407_v39, %v4408_v31  ;;  %v8155_v18 = vmax.f32 %v8153_v8, %v8154_v62  ;;  %v8162_v13 = vsel %vm4215_vm14, %v7788_v21, -inf  ;;  %v4726_v8 = vld [vmem:[#allocation3 + $0x1c] sm:$0x1] }
 0x384   : > { %v4419_v51 = vrot.slane %v4418_v55, 2  ;;  %v4427_v17 = vmax.f32 %v4425_v28, %v4426_v33  ;;  %v8139_v53 = vmax.f32 %v8137_v40, %v8138_v59  ;;  %v8147_v44 = vrot.slane %v8146_v10, 4 }
 0x385   : > { %v4402_v58 = vmax.f32 %v4400_v48, %v4401_v9  ;;  %v4410_v25 = vrot.slane %v4409_v14, 2  ;;  %v8156_v26 = vrot.slane %v8155_v18, 4  ;;  %v8164_v23 = vmax.f32 %v8162_v13, %v8163_v16 }
 0x386   : > { %v4420_v15 = vmax.f32 %v4418_v55, %v4419_v51  ;;  %v4428_v57 = vrot.slane %v4427_v17, 2  ;;  %v8140_v42 = vrot.slane %v8139_v53, 2  ;;  %v8148_v43 = vmax.f32 %v8146_v10, %v8147_v44 }
 0x387   : > { %v4403_v0 = vrot.slane %v4402_v58, 1  ;;  %v4411_v12 = vmax.f32 %v4409_v14, %v4410_v25  ;;  %v8157_v37 = vmax.f32 %v8155_v18, %v8156_v26  ;;  %v8165_v63 = vrot.slane %v8164_v23, 4 }
 0x388   : > { %v4421_v49 = vrot.slane %v4420_v15, 1  ;;  %v4429_v62 = vmax.f32 %v4427_v17, %v4428_v57  ;;  %v8141_v60 = vmax.f32 %v8139_v53, %v8140_v42  ;;  %v8149_v54 = vrot.slane %v8148_v43, 2  ;;  %v4723_v42 = vld [vmem:[#allocation3 + $0x18] sm:$0xf] }
 0x389   : > { %v4404_v2 = vmax.f32 %v4402_v58, %v4403_v0  ;;  %v4412_v30 = vrot.slane %v4411_v12, 1  ;;  %v8158_v50 = vrot.slane %v8157_v37, 2  ;;  %v8166_v6 = vmax.f32 %v8164_v23, %v8165_v63 }
 0x38a   : > { %v4422_v24 = vmax.f32 %v4420_v15, %v4421_v49  ;;  %v4430_v34 = vrot.slane %v4429_v62, 1  ;;  %v8142_v20 = vrot.slane %v8141_v60, 1  ;;  %v8150_v16 = vmax.f32 %v8148_v43, %v8149_v54 }
 0x38b   : > { %v4413_v39 = vmax.f32 %v4411_v12, %v4412_v30  ;;  %v16315_v7 = vpack.c.bf16 %v4404_v2, %v4404_v2  ;;  %v8159_v36 = vmax.f32 %v8157_v37, %v8158_v50  ;;  %v8167_v52 = vrot.slane %v8166_v6, 2  ;;  %v8459_v12 = vld [vmem:[#allocation3 + $0x3c] sm:$0x1] }
 0x38c   : > { %v4431_v28 = vmax.f32 %v4429_v62, %v4430_v34  ;;  %v16317_v21 = vpack.c.bf16 %v4422_v24, %v4422_v24  ;;  %v8143_v40 = vmax.f32 %v8141_v60, %v8142_v20  ;;  %v8151_v48 = vrot.slane %v8150_v16, 1 }
 0x38d   : > { %v16316_v31 = vpack.c.bf16 %v4413_v39, %v4413_v39  ;;  %v4652_v38 = vunpack.c.l.b16 %v16315_v7  ;;  %v8160_v55 = vrot.slane %v8159_v36, 1  ;;  %v8168_v33 = vmax.f32 %v8166_v6, %v8167_v52 }
 0x38e   : > { %v4654_v59 = vunpack.c.l.b16 %v16317_v21  ;;  %v16329_v10 = vpack.c.bf16 %v4431_v28, %v4431_v28  ;;  %v8152_v9 = vmax.f32 %v8150_v16, %v8151_v48  ;;  %v16351_v14 = vpack.c.bf16 %v8143_v40, %v8143_v40 }
 0x38f   : > { %v4653_v18 = vunpack.c.l.b16 %v16316_v31  ;;  %v4685_v13 = vsel %vm4670_vm2, %v4652_v38, %v21767_v19  ;;  %v8161_v51 = vmax.f32 %v8159_v36, %v8160_v55  ;;  %v8169_v17 = vrot.slane %v8168_v33, 1 }
 0x390   : > { %v4727_v53 = vsel %vm19573_vm10, %v16329_v10, %v4726_v8  ;;  %v16352_v44 = vpack.c.bf16 %v8152_v9, %v8152_v9  ;;  %v8391_v58 = vunpack.c.l.b16 %v16351_v14  ;;  %v4117_v25 = vcombine.high %v21786_v11, %v21786_v11 }
 0x391   : > { %v4686_v26 = vsel %vm4672_vm3, %v4653_v18, %v4685_v13  ;;  %4728 = vst [vmem:[#allocation3 + $0x1c] sm:$0x1] %v4727_v53  ;;  %v8170_v23 = vmax.f32 %v8168_v33, %v8169_v17  ;;  %v16353_v15 = vpack.c.bf16 %v8161_v51, %v8161_v51  ;;  %v4124_v57 = vrot.slane %v21786_v11, %v21445_v27 }
 0x392   : > { %v4687_v19 = vsel %vm4674_vm4, %v4654_v59, %v4686_v26  ;;  %v8392_v43 = vunpack.c.l.b16 %v16352_v44  ;;  %v8418_v0 = vsel %vm4670_vm2, %v8391_v58, %v21773_v46  ;;  %v4131_v37 = vrot.slane %v4117_v25, %v21445_v27  ;;  %v8456_v46 = vld [vmem:[#allocation3 + $0x38] sm:$0xf] }
 0x393   : > { %v4698_v63 = vpack.c.b16 %v4687_v19, %v4687_v19  ;;  %v8393_v49 = vunpack.c.l.b16 %v16353_v15  ;;  %v16365_v62 = vpack.c.bf16 %v8170_v23, %v8170_v23  ;;  %v4132_v60 = vcombine.high %v4124_v57, %v4124_v57 }
 0x394   : > { %v8419_v54 = vsel %vm4672_vm3, %v8392_v43, %v8418_v0  ;;  %v4133_v2 = vcombine.high %v4131_v37, %v4131_v37  ;;  %v4433_v30 = vsel %vm4215_vm14, %v4124_v57, -inf  ;;  %v4451_v11 = vsel %vm4215_vm14, %v4131_v37, -inf }
 0x395   : > { %v4724_v50 = vsel %vm19550_vm8, %v4698_v63, %v4723_v42  ;;  %v8420_v6 = vsel %vm4674_vm4, %v8393_v49, %v8419_v54  ;;  %v8460_v24 = vsel %vm19573_vm10, %v16365_v62, %v8459_v12  ;;  %v4442_v34 = vsel %vm4215_vm14, %v4132_v60, -inf }
 0x396   : > { %4725 = vst [vmem:[#allocation3 + $0x18] sm:$0xf] %v4724_v50  ;;  %v8431_v20 = vpack.c.b16 %v8420_v6, %v8420_v6  ;;  %8461 = vst [vmem:[#allocation3 + $0x3c] sm:$0x1] %v8460_v24  ;;  %v4460_v16 = vsel %vm4215_vm14, %v4133_v2, -inf  ;;  %v7857_v39 = vcombine.high %v21788_v47, %v21788_v47  ;;  %v7864_v7 = vrot.slane %v21788_v47, %v21445_v27 }
 0x397   : > { %v3859_v36 = vmax.f32 %v21781_v41, 0.0  ;;  %v7583_v52 = vadd.f32 %v21699_v22, %v21581_v56  ;;  %v3846_v28 = vadd.f32 %v21699_v22, %v21601_v5  ;;  %v7586_v21 = vadd.f32 %v21699_v22, %v21636_v1 }
 0x398   : > { %v8457_v40 = vsel %vm19550_vm8, %v8431_v20, %v8456_v46  ;;  %v7871_v48 = vrot.slane %v7857_v39, %v21445_v27  ;;  %v7872_v31 = vcombine.high %v7864_v7, %v7864_v7  ;;  %v8172_v38 = vsel %vm4215_vm14, %v7864_v7, -inf }
 0x399   : > { %8458 = vst [vmem:[#allocation3 + $0x38] sm:$0xf] %v8457_v40  ;;  %v4083_v47 = vcombine.high %v3859_v36, %v3859_v36  ;;  %v4090_v41 = vrot.slane %v3859_v36, %v21445_v27  ;;  %v7599_v8 = vmax.f32 %v7583_v52, 0.0  ;;  %v21843_v56 = vmax.f32 %v3846_v28, 0.0 }
 0x39a   : > { %v7873_v55 = vcombine.high %v7871_v48, %v7871_v48  ;;  %v8181_v5 = vsel %vm4215_vm14, %v7872_v31, -inf  ;;  %v8190_v1 = vsel %vm4215_vm14, %v7871_v48, -inf  ;;  %v21847_v33 = vmax.f32 %v7586_v21, 0.0 }
 0x39b   : > { %v4097_v59 = vrot.slane %v4083_v47, %v21445_v27  ;;  %v4098_v10 = vcombine.high %v4090_v41, %v4090_v41  ;;  %v4432_v9 = vsel %vm4215_vm14, %v4090_v41, -inf  ;;  %v7823_v14 = vcombine.high %v7599_v8, %v7599_v8 }
 0x39c   : > { %v8199_v18 = vsel %vm4215_vm14, %v7873_v55, -inf  ;;  %v4434_v13 = vmax.f32 %v4432_v9, %v4433_v30  ;;  %v7830_v51 = vrot.slane %v7599_v8, %v21445_v27  ;;  %v4134_v17 = vcombine.high %v21843_v56, %v21843_v56 }
 0x39d   : > { %v4099_v53 = vcombine.high %v4097_v59, %v4097_v59  ;;  %v4441_v44 = vsel %vm4215_vm14, %v4098_v10, -inf  ;;  %v4450_v58 = vsel %vm4215_vm14, %v4097_v59, -inf  ;;  %v7837_v25 = vrot.slane %v7823_v14, %v21445_v27 }
 0x39e   : > { %v4435_v26 = vrot.slane %v4434_v13, 4  ;;  %v4443_v23 = vmax.f32 %v4441_v44, %v4442_v34  ;;  %v4452_v15 = vmax.f32 %v4450_v58, %v4451_v11  ;;  %v7838_v57 = vcombine.high %v7830_v51, %v7830_v51 }
 0x39f   : > { %v4459_v19 = vsel %vm4215_vm14, %v4099_v53, -inf  ;;  %v7839_v42 = vcombine.high %v7837_v25, %v7837_v25  ;;  %v8171_v43 = vsel %vm4215_vm14, %v7830_v51, -inf  ;;  %v8189_v0 = vsel %vm4215_vm14, %v7837_v25, -inf }
 0x3a0   : > { %v4436_v12 = vmax.f32 %v4434_v13, %v4435_v26  ;;  %v4444_v37 = vrot.slane %v4443_v23, 4  ;;  %v4453_v63 = vrot.slane %v4452_v15, 4  ;;  %v4461_v49 = vmax.f32 %v4459_v19, %v4460_v16 }
 0x3a1   : > { %v8173_v62 = vmax.f32 %v8171_v43, %v8172_v38  ;;  %v8180_v60 = vsel %vm4215_vm14, %v7838_v57, -inf  ;;  %v8191_v54 = vmax.f32 %v8189_v0, %v8190_v1  ;;  %v8198_v2 = vsel %vm4215_vm14, %v7839_v42, -inf }
 0x3a2   : > { %v4437_v30 = vrot.slane %v4436_v12, 2  ;;  %v4445_v11 = vmax.f32 %v4443_v23, %v4444_v37  ;;  %v4454_v50 = vmax.f32 %v4452_v15, %v4453_v63  ;;  %v4462_v6 = vrot.slane %v4461_v49, 4 }
 0x3a3   : > { %v8174_v46 = vrot.slane %v8173_v62, 4  ;;  %v8182_v24 = vmax.f32 %v8180_v60, %v8181_v5  ;;  %v8192_v34 = vrot.slane %v8191_v54, 4  ;;  %v8200_v20 = vmax.f32 %v8198_v2, %v8199_v18 }
 0x3a4   : > { %v4438_v39 = vmax.f32 %v4436_v12, %v4437_v30  ;;  %v4446_v7 = vrot.slane %v4445_v11, 2  ;;  %v4455_v36 = vrot.slane %v4454_v50, 2  ;;  %v4463_v52 = vmax.f32 %v4461_v49, %v4462_v6 }
 0x3a5   : > { %v8175_v28 = vmax.f32 %v8173_v62, %v8174_v46  ;;  %v8183_v16 = vrot.slane %v8182_v24, 4  ;;  %v8193_v21 = vmax.f32 %v8191_v54, %v8192_v34  ;;  %v8201_v40 = vrot.slane %v8200_v20, 4 }
 0x3a6   : > { %v4439_v48 = vrot.slane %v4438_v39, 1  ;;  %v4447_v31 = vmax.f32 %v4445_v11, %v4446_v7  ;;  %v4456_v38 = vmax.f32 %v4454_v50, %v4455_v36  ;;  %v4464_v47 = vrot.slane %v4463_v52, 2 }
 0x3a7   : > { %v8176_v41 = vrot.slane %v8175_v28, 2  ;;  %v8184_v8 = vmax.f32 %v8182_v24, %v8183_v16  ;;  %v8194_v55 = vrot.slane %v8193_v21, 2  ;;  %v8202_v1 = vmax.f32 %v8200_v20, %v8201_v40  ;;  %v21872_v40 = vld [vmem:[#allocation3] sm:$0xf] }
 0x3a8   : > { %v4440_v59 = vmax.f32 %v4438_v39, %v4439_v48  ;;  %v4448_v5 = vrot.slane %v4447_v31, 1  ;;  %v4457_v10 = vrot.slane %v4456_v38, 1  ;;  %v4465_v9 = vmax.f32 %v4463_v52, %v4464_v47 }
 0x3a9   : > { %v8177_v14 = vmax.f32 %v8175_v28, %v8176_v41  ;;  %v8185_v18 = vrot.slane %v8184_v8, 2  ;;  %v8195_v13 = vmax.f32 %v8193_v21, %v8194_v55  ;;  %v8203_v51 = vrot.slane %v8202_v1, 2 }
 0x3aa   : > { %v4449_v53 = vmax.f32 %v4447_v31, %v4448_v5  ;;  %v4458_v44 = vmax.f32 %v4456_v38, %v4457_v10  ;;  %v4466_v58 = vrot.slane %v4465_v9, 1  ;;  %v16319_v25 = vpack.c.bf16 %v4440_v59, %v4440_v59 }
 0x3ab   : > { %v8178_v26 = vrot.slane %v8177_v14, 1  ;;  %v8186_v23 = vmax.f32 %v8184_v8, %v8185_v18  ;;  %v8196_v15 = vrot.slane %v8195_v13, 1  ;;  %v8204_v57 = vmax.f32 %v8202_v1, %v8203_v51 }
 0x3ac   : > { %v4467_v19 = vmax.f32 %v4465_v9, %v4466_v58  ;;  %v16320_v42 = vpack.c.bf16 %v4449_v53, %v4449_v53  ;;  %v16321_v43 = vpack.c.bf16 %v4458_v44, %v4458_v44  ;;  %v4656_v0 = vunpack.c.l.b16 %v16319_v25 }
 0x3ad   : > { %v8179_v12 = vmax.f32 %v8177_v14, %v8178_v26  ;;  %v8187_v37 = vrot.slane %v8186_v23, 1  ;;  %v8197_v63 = vmax.f32 %v8195_v13, %v8196_v15  ;;  %v8205_v49 = vrot.slane %v8204_v57, 1 }
 0x3ae   : > { %v16322_v62 = vpack.c.bf16 %v4467_v19, %v4467_v19  ;;  %v4657_v60 = vunpack.c.l.b16 %v16320_v42  ;;  %v4658_v54 = vunpack.c.l.b16 %v16321_v43  ;;  %v4141_v2 = vrot.slane %v21843_v56, %v21445_v27 }
 0x3af   : > { %v8188_v30 = vmax.f32 %v8186_v23, %v8187_v37  ;;  %v8206_v11 = vmax.f32 %v8204_v57, %v8205_v49  ;;  %v16355_v50 = vpack.c.bf16 %v8179_v12, %v8179_v12  ;;  %v16357_v6 = vpack.c.bf16 %v8197_v63, %v8197_v63 }
 0x3b0   : > { %v4659_v46 = vunpack.c.l.b16 %v16322_v62  ;;  %v4688_v24 = vsel %vm4664_vm15, %v4657_v60, %v4656_v0  ;;  %v4148_v34 = vrot.slane %v4134_v17, %v21445_v27  ;;  %v4149_v20 = vcombine.high %v4141_v2, %v4141_v2 }
 0x3b1   : > { %v4689_v39 = vsel %vm4666_vm0, %v4658_v54, %v4688_v24  ;;  %v16356_v7 = vpack.c.bf16 %v8188_v30, %v8188_v30  ;;  %v16358_v36 = vpack.c.bf16 %v8206_v11, %v8206_v11  ;;  %v8395_v52 = vunpack.c.l.b16 %v16355_v50 }
 0x3b2   : > { %v8397_v28 = vunpack.c.l.b16 %v16357_v6  ;;  %v4150_v16 = vcombine.high %v4148_v34, %v4148_v34  ;;  %v4469_v21 = vsel %vm4215_vm14, %v4141_v2, -inf  ;;  %v4478_v38 = vsel %vm4215_vm14, %v4149_v20, -inf }
 0x3b3   : > { %v8396_v48 = vunpack.c.l.b16 %v16356_v7  ;;  %v8398_v31 = vunpack.c.l.b16 %v16358_v36  ;;  %v7874_v56 = vcombine.high %v21847_v33, %v21847_v33  ;;  %v4487_v17 = vsel %vm4215_vm14, %v4148_v34, -inf }
 0x3b4   : > { %v7881_v47 = vrot.slane %v21847_v33, %v21445_v27  ;;  %v3844_v41 = vadd.f32 %v21699_v22, %v21638_v61  ;;  %v21883_v8 = vsel %vm4668_vm1, %v4659_v46, %v4689_v39  ;;  %v7584_v59 = vadd.f32 %v21699_v22, %v21642_v29 }
 0x3b5   : > { %v8421_v55 = vsel %vm4664_vm15, %v8396_v48, %v8395_v52  ;;  %v7888_v1 = vrot.slane %v7874_v56, %v21445_v27  ;;  %v8508_v5 = vshrl.u32 %v21872_v40, 16  ;;  %v4496_v9 = vsel %vm4215_vm14, %v4150_v16, -inf }
 0x3b6   : > { %v8422_v10 = vsel %vm4666_vm0, %v8397_v28, %v8421_v55  ;;  %v7889_v33 = vcombine.high %v7881_v47, %v7881_v47  ;;  %v3860_v14 = vmax.f32 %v3844_v41, 0.0  ;;  %v8208_v61 = vsel %vm4215_vm14, %v7881_v47, -inf }
 0x3b7   : > { %v7890_v18 = vcombine.high %v7888_v1, %v7888_v1  ;;  %v7600_v13 = vmax.f32 %v7584_v59, 0.0  ;;  %v21894_v51 = vsel %vm4668_vm1, %v8398_v31, %v8422_v10  ;;  %v8226_v44 = vsel %vm4215_vm14, %v7888_v1, -inf }
 0x3b8   : > { %v8217_v53 = vsel %vm4215_vm14, %v7889_v33, -inf  ;;  %v4100_v29 = vcombine.high %v3860_v14, %v3860_v14  ;;  %v4107_v22 = vrot.slane %v3860_v14, %v21445_v27  ;;  %v21901_v23 = vrot.slane %v8508_v5, 4 }
 0x3b9   : > { %v8235_v58 = vsel %vm4215_vm14, %v7890_v18, -inf  ;;  %v7840_v25 = vcombine.high %v7600_v13, %v7600_v13  ;;  %v7847_v26 = vrot.slane %v7600_v13, %v21445_v27  ;;  %v8511_v42 = vshll.u32 %v21872_v40, 16 }
 0x3ba   : > { %v4114_v15 = vrot.slane %v4100_v29, %v21445_v27  ;;  %v4115_v57 = vcombine.high %v4107_v22, %v4107_v22  ;;  %v4468_v19 = vsel %vm4215_vm14, %v4107_v22, -inf }
 0x3bb   : > { %v4470_v43 = vmax.f32 %v4468_v19, %v4469_v21  ;;  %v7854_v0 = vrot.slane %v7840_v25, %v21445_v27  ;;  %v7855_v12 = vcombine.high %v7847_v26, %v7847_v26  ;;  %v8207_v37 = vsel %vm4215_vm14, %v7847_v26, -inf }
 0x3bc   : > { %v4116_v63 = vcombine.high %v4114_v15, %v4114_v15  ;;  %v4477_v49 = vsel %vm4215_vm14, %v4115_v57, -inf  ;;  %v4486_v62 = vsel %vm4215_vm14, %v4114_v15, -inf  ;;  %v8209_v60 = vmax.f32 %v8207_v37, %v8208_v61 }
 0x3bd   : > { %v4471_v54 = vrot.slane %v4470_v43, 4  ;;  %v4479_v2 = vmax.f32 %v4477_v49, %v4478_v38  ;;  %v4488_v30 = vmax.f32 %v4486_v62, %v4487_v17  ;;  %v7856_v11 = vcombine.high %v7854_v0, %v7854_v0 }
 0x3be   : > { %v4495_v50 = vsel %vm4215_vm14, %v4116_v63, -inf  ;;  %v8210_v6 = vrot.slane %v8209_v60, 4  ;;  %v8216_v46 = vsel %vm4215_vm14, %v7855_v12, -inf  ;;  %v8225_v24 = vsel %vm4215_vm14, %v7854_v0, -inf }
 0x3bf   : > { %v4472_v34 = vmax.f32 %v4470_v43, %v4471_v54  ;;  %v4480_v20 = vrot.slane %v4479_v2, 4  ;;  %v4489_v39 = vrot.slane %v4488_v30, 4  ;;  %v4497_v7 = vmax.f32 %v4495_v50, %v4496_v9 }
 0x3c0   : > { %v8211_v36 = vmax.f32 %v8209_v60, %v8210_v6  ;;  %v8218_v52 = vmax.f32 %v8216_v46, %v8217_v53  ;;  %v8227_v28 = vmax.f32 %v8225_v24, %v8226_v44  ;;  %v8234_v16 = vsel %vm4215_vm14, %v7856_v11, -inf  ;;  %v4732_v24 = vld [vmem:[#allocation3 + $0x24] sm:$0x1] }
 0x3c1   : > { %v4473_v21 = vrot.slane %v4472_v34, 2  ;;  %v4481_v48 = vmax.f32 %v4479_v2, %v4480_v20  ;;  %v4490_v31 = vmax.f32 %v4488_v30, %v4489_v39  ;;  %v4498_v38 = vrot.slane %v4497_v7, 4 }
 0x3c2   : > { %v8212_v56 = vrot.slane %v8211_v36, 2  ;;  %v8219_v17 = vrot.slane %v8218_v52, 4  ;;  %v8228_v47 = vrot.slane %v8227_v28, 4  ;;  %v8236_v41 = vmax.f32 %v8234_v16, %v8235_v58 }
 0x3c3   : > { %v4474_v55 = vmax.f32 %v4472_v34, %v4473_v21  ;;  %v4482_v1 = vrot.slane %v4481_v48, 2  ;;  %v4491_v59 = vrot.slane %v4490_v31, 2  ;;  %v4499_v5 = vmax.f32 %v4497_v7, %v4498_v38 }
 0x3c4   : > { %v8213_v10 = vmax.f32 %v8211_v36, %v8212_v56  ;;  %v8220_v33 = vmax.f32 %v8218_v52, %v8219_v17  ;;  %v8229_v9 = vmax.f32 %v8227_v28, %v8228_v47  ;;  %v8237_v14 = vrot.slane %v8236_v41, 4  ;;  %v21918_v56 = vld [vmem:[#allocation3 + $0x8] sm:$0xf]  ;;  %v21920_v17 = vld [vmem:[#allocation3 + $0x4] sm:$0x1] }
 0x3c5   : > { %v4475_v18 = vrot.slane %v4474_v55, 1  ;;  %v4483_v61 = vmax.f32 %v4481_v48, %v4482_v1  ;;  %v4492_v13 = vmax.f32 %v4490_v31, %v4491_v59  ;;  %v4500_v53 = vrot.slane %v4499_v5, 2  ;;  %v21928_v59 = vld [vmem:[#allocation3 + $0x10] sm:$0xf] }
 0x3c6   : > { %v8214_v44 = vrot.slane %v8213_v10, 1  ;;  %v8221_v29 = vrot.slane %v8220_v33, 2  ;;  %v8230_v22 = vrot.slane %v8229_v9, 2  ;;  %v8238_v25 = vmax.f32 %v8236_v41, %v8237_v14 }
 0x3c7   : > { %v4476_v26 = vmax.f32 %v4474_v55, %v4475_v18  ;;  %v4484_v15 = vrot.slane %v4483_v61, 1  ;;  %v4493_v57 = vrot.slane %v4492_v13, 1  ;;  %v4501_v58 = vmax.f32 %v4499_v5, %v4500_v53  ;;  %v8465_v55 = vld [vmem:[#allocation3 + $0x44] sm:$0x1]  ;;  %v21931_v18 = vld [vmem:[#allocation3 + $0xc] sm:$0x1] }
 0x3c8   : > { %v8215_v19 = vmax.f32 %v8213_v10, %v8214_v44  ;;  %v8222_v43 = vmax.f32 %v8220_v33, %v8221_v29  ;;  %v8231_v0 = vmax.f32 %v8229_v9, %v8230_v22  ;;  %v8239_v12 = vrot.slane %v8238_v25, 2  ;;  %v21939_v29 = vld [vmem:[#allocation3 + $0x18] sm:$0xf]  ;;  %v21941_v22 = vld [vmem:[#allocation3 + $0x14] sm:$0x1] }
 0x3c9   : > { %v4485_v37 = vmax.f32 %v4483_v61, %v4484_v15  ;;  %v4494_v63 = vmax.f32 %v4492_v13, %v4493_v57  ;;  %v4502_v49 = vrot.slane %v4501_v58, 1  ;;  %v16323_v62 = vpack.c.bf16 %v4476_v26, %v4476_v26  ;;  %v8462_v15 = vld [vmem:[#allocation3 + $0x40] sm:$0xf] }
 0x3ca   : > { %v8223_v60 = vrot.slane %v8222_v43, 1  ;;  %v8232_v54 = vrot.slane %v8231_v0, 1  ;;  %v8240_v2 = vmax.f32 %v8238_v25, %v8239_v12  ;;  %v16359_v30 = vpack.c.bf16 %v8215_v19, %v8215_v19  ;;  %v21947_v19 = vld [vmem:[#allocation3 + $0x1c] sm:$0x1] }
 0x3cb   : > { %v4503_v11 = vmax.f32 %v4501_v58, %v4502_v49  ;;  %v16324_v50 = vpack.c.bf16 %v4485_v37, %v4485_v37  ;;  %v16325_v6 = vpack.c.bf16 %v4494_v63, %v4494_v63  ;;  %v4660_v46 = vunpack.c.l.b16 %v16323_v62  ;;  %v21950_v37 = vld [vmem:[#allocation3 + $0x28] sm:$0xf] }
 0x3cc   : > { %v8224_v34 = vmax.f32 %v8222_v43, %v8223_v60  ;;  %v8233_v20 = vmax.f32 %v8231_v0, %v8232_v54  ;;  %v8241_v39 = vrot.slane %v8240_v2, 1  ;;  %v8399_v7 = vunpack.c.l.b16 %v16359_v30 }
 0x3cd   : > { %v4661_v36 = vunpack.c.l.b16 %v16324_v50  ;;  %v4662_v52 = vunpack.c.l.b16 %v16325_v6  ;;  %v4691_v28 = vsel %vm4670_vm2, %v4660_v46, %v21883_v8  ;;  %v16330_v16 = vpack.c.bf16 %v4503_v11, %v4503_v11 }
 0x3ce   : > { %v8242_v21 = vmax.f32 %v8240_v2, %v8241_v39  ;;  %v16360_v48 = vpack.c.bf16 %v8224_v34, %v8224_v34  ;;  %v16361_v31 = vpack.c.bf16 %v8233_v20, %v8233_v20  ;;  %v8424_v38 = vsel %vm4670_vm2, %v8399_v7, %v21894_v51  ;;  %v4729_v51 = vld [vmem:[#allocation3 + $0x20] sm:$0xf]  ;;  %vm22294_vm2 = vmor %vm846_vm6, %vm4664_vm15 }
 0x3cf   : > { %v4692_v47 = vsel %vm4672_vm3, %v4661_v36, %v4691_v28  ;;  %v4733_v41 = vsel %vm19573_vm10, %v16330_v16, %v4732_v24  ;;  %v8513_v8 = vrot.slane %v8511_v42, 5  ;;  %v8517_v1 = vshll.u32 %v21920_v17, 16  ;;  %v21960_v24 = vld [vmem:[#allocation3 + $0x30] sm:$0xf]  ;;  %v21966_v28 = vld [vmem:[#allocation3 + $0x2c] sm:$0x1]  ;;  %vm11296_vm6 = vmor %vm22294_vm2, %vm4668_vm1 }
 0x3d0   : > { %v4693_v5 = vsel %vm4674_vm4, %v4662_v52, %v4692_v47  ;;  %4734 = vst [vmem:[#allocation3 + $0x24] sm:$0x1] %v4733_v41  ;;  %v8400_v10 = vunpack.c.l.b16 %v16360_v48  ;;  %v8401_v33 = vunpack.c.l.b16 %v16361_v31  ;;  %v16366_v9 = vpack.c.bf16 %v8242_v21, %v8242_v21  ;;  %v21971_v47 = vld [vmem:[#allocation3 + $0x38] sm:$0xf] }
 0x3d1   : > { %v4700_v14 = vpack.c.b16 %v4693_v5, %v4693_v5  ;;  %v8514_v61 = vor.u32 %v8513_v8, %v21901_v23  ;;  %v8522_v13 = vshrl.u32 %v21918_v56, 16  ;;  %v8525_v42 = vshll.u32 %v21918_v56, 16 }
 0x3d2   : > { %v8425_v53 = vsel %vm4672_vm3, %v8400_v10, %v8424_v38  ;;  %v8466_v44 = vsel %vm19573_vm10, %v16366_v9, %v8465_v55  ;;  %v8536_v25 = vshrl.u32 %v21928_v59, 16  ;;  %v8519_v57 = vrot.slane %v8517_v1, 5 }
 0x3d3   : > { %v4730_v26 = vsel %vm19550_vm8, %v4700_v14, %v4729_v51  ;;  %v8426_v23 = vsel %vm4674_vm4, %v8401_v33, %v8425_v53  ;;  %8467 = vst [vmem:[#allocation3 + $0x44] sm:$0x1] %v8466_v44  ;;  %v8524_v58 = vrot.slane %v8522_v13, 4  ;;  %v8515_v43 = vrot.slane %v8514_v61, 4 }
 0x3d4   : > { %4731 = vst [vmem:[#allocation3 + $0x20] sm:$0xf] %v4730_v26  ;;  %v8433_v3 = vpack.c.b16 %v8426_v23, %v8426_v23  ;;  %v8527_v0 = vrot.slane %v8525_v42, 5  ;;  %v8531_v12 = vshll.u32 %v21931_v18, 16  ;;  %v8538_v63 = vrot.slane %v8536_v25, 4 }
 0x3d5   : > { %v8539_v49 = vshll.u32 %v21928_v59, 16  ;;  %v8545_v62 = vshll.u32 %v21941_v22, 16  ;;  %v8550_v60 = vshrl.u32 %v21939_v29, 16  ;;  %v8553_v30 = vshll.u32 %v21939_v29, 16 }
 0x3d6   : > { %v8463_v54 = vsel %vm19550_vm8, %v8433_v3, %v8462_v15  ;;  %v8528_v2 = vor.u32 %v8527_v0, %v8524_v58  ;;  %v8559_v11 = vshll.u32 %v21947_v19, 16  ;;  %v8578_v46 = vshrl.u32 %v21950_v37, 16  ;;  %v8505_v58 = vld [vmem:[#allocation3 + $0x34] sm:$0x1]  ;;  %v8506_v3 = vld [vmem:[#allocation3 + $0x3c] sm:$0x1] }
 0x3d7   : > { %8464 = vst [vmem:[#allocation3 + $0x40] sm:$0xf] %v8463_v54  ;;  %v8541_v50 = vrot.slane %v8539_v49, 5  ;;  %v8552_v6 = vrot.slane %v8550_v60, 4  ;;  %v8520_v34 = vsel %vm19541_vm7, %v8515_v43, %v8519_v57  ;;  %v8533_v39 = vrot.slane %v8531_v12, 5  ;;  %v18453_v57 = vld [vmem:[#allocation5 + $0x8] sm:$0xff]  }
 0x3d8   : > { %v8529_v20 = vrot.slane %v8528_v2, 4  ;;  %v8555_v7 = vrot.slane %v8553_v30, 5  ;;  %v21964_v35 = vld [vmem:[#allocation3 + $0x24] sm:$0x1]  ;;  %v8547_v52 = vrot.slane %v8545_v62, 5  ;;  %v8580_v16 = vrot.slane %v8578_v46, 4 }
 0x3d9   : > { %v8542_v36 = vor.u32 %v8541_v50, %v8538_v63  ;;  %v8581_v21 = vshll.u32 %v21950_v37, 16  ;;  %v8561_v38 = vrot.slane %v8559_v11, 5  ;;  %v8592_v41 = vshrl.u32 %v21960_v24, 16  ;;  %v19031_v2 = vld [vmem:[#allocation5] sm:$0xff]   ;;  %v8904_v46 = vld [vmem:[#allocation3 + $0x10] sm:$0xe] }
 0x3da   : > { %v8534_v48 = vsel %vm19541_vm7, %v8529_v20, %v8533_v39  ;;  %v8556_v31 = vor.u32 %v8555_v7, %v8552_v6  ;;  %v8573_v5 = vshll.u32 %v21964_v35, 16  ;;  %v8587_v14 = vshll.u32 %v21966_v28, 16  ;;  %v8905_v20 = vld [vmem:[#allocation3 + $0x18] sm:$0xe] }
 0x3db   : > { %v15761_v55 = vcombine.low %v8520_v34, %v8534_v48  ;;  %v8543_v8 = vrot.slane %v8542_v36, 4  ;;  %v21974_v1 = vld [vmem:[#allocation3 + $0x20] sm:$0xf]  ;;  %v8583_v51 = vrot.slane %v8581_v21, 5  ;;  %v8594_v42 = vrot.slane %v8592_v41, 4  ;;  %v18454_v34 = vld [vmem:[#allocation5 + $0x10] sm:$0xff]  }
 0x3dc   : > { %v8557_v10 = vrot.slane %v8556_v31, 4  ;;  %v8564_v33 = vshrl.u32 %v21974_v1, 16  ;;  %v8567_v9 = vshll.u32 %v21974_v1, 16  ;;  %v8595_v53 = vshll.u32 %v21960_v24, 16 }
 0x3dd   : > { %17474 = vmatprep.mubr.bf16.mxu0 %v15761_v55  ;;  %v8548_v61 = vsel %vm19541_vm7, %v8543_v8, %v8547_v52  ;;  %v8584_v13 = vor.u32 %v8583_v51, %v8580_v16  ;;  %v8606_v23 = vshrl.u32 %v21971_v47, 16  ;;  %v8609_v49 = vshll.u32 %v21971_v47, 16  ;;  %v8908_v55 = vld [vmem:[#allocation3 + $0x30] sm:$0xe]  ;;  %v18456_v8 = vld [vmem:[#allocation5 + $0x18] sm:$0xff]  }
 0x3de   : > { %v8562_v44 = vsel %vm19541_vm7, %v8557_v10, %v8561_v38  ;;  %v8566_v25 = vrot.slane %v8564_v33, 4  ;;  %v8569_v26 = vrot.slane %v8567_v9, 5  ;;  %v8597_v43 = vrot.slane %v8595_v53, 5  ;;  %v8909_v10 = vld [vmem:[#allocation3 + $0x38] sm:$0xe] }
 0x3df   : > { %v15762_v15 = vcombine.low %v8548_v61, %v8562_v44  ;;  %v8585_v12 = vrot.slane %v8584_v13, 4  ;;  %v8608_v63 = vrot.slane %v8606_v23, 4  ;;  %v8575_v62 = vrot.slane %v8573_v5, 5  ;;  %v18457_v44 = vld [vmem:[#allocation5 + $0x20] sm:$0xff]  }
 0x3e0   : > { %v8570_v0 = vor.u32 %v8569_v26, %v8566_v25  ;;  %v8589_v60 = vrot.slane %v8587_v14, 5  ;;  %v8598_v54 = vor.u32 %v8597_v43, %v8594_v42  ;;  %v8601_v11 = vshll.u32 %v8505_v58, 16  ;;  %v8902_v43 = vld [vmem:[#allocation3] sm:$0xe] }
 0x3e1   : > { %17475 = vmatmul.mubr.bf16.vlgmr.msra.gmra.mrb[16].mxu0 %v15762_v15  ;;  %v8611_v50 = vrot.slane %v8609_v49, 5  ;;  %v8615_v6 = vshll.u32 %v8506_v3, 16  ;;  %v15787_v21 = vrot.slane %v8904_v46, 9  ;;  %v15788_v41 = vrot.slane %v8905_v20, 9  ;;  %v18471_v46 = vld [vmem:[#allocation5 + $0xb8] sm:$0xff]  }
 0x3e2   : > { %17483 = vmatpush3.bf16.msra.mxu0 %v19031_v2  ;;  %v8571_v30 = vrot.slane %v8570_v0, 4  ;;  %v8590_v7 = vsel %vm19541_vm7, %v8585_v12, %v8589_v60  ;;  %v8599_v36 = vrot.slane %v8598_v54, 4  ;;  %v8603_v48 = vrot.slane %v8601_v11, 5  ;;  %v8903_v0 = vld [vmem:[#allocation3 + $0x8] sm:$0xe]  ;;  %v18466_v2 = vld [vmem:[#allocation5 + $0x90] sm:$0xff]  }
 0x3e3   : > { %17484 = vmatprep.subr.bf16.mxu0 %v18453_v57  ;;  %v8612_v52 = vor.u32 %v8611_v50, %v8608_v63  ;;  %v8617_v38 = vrot.slane %v8615_v6, 5  ;;  %v8936_v5 = vrot.slane %v21941_v22, 5  ;;  %v8940_v51 = vrot.slane %v21947_v19, 5  ;;  %v18464_v63 = vld [vmem:[#allocation5 + $0x88] sm:$0xff]   ;;  %v18470_v50 = vld [vmem:[#allocation5 + $0xb0] sm:$0xff]  }
 0x3e4   : > { %v8576_v39 = vsel %vm19541_vm7, %v8571_v30, %v8575_v62  ;;  %v8604_v33 = vsel %vm19541_vm7, %v8599_v36, %v8603_v48  ;;  %v15791_v42 = vrot.slane %v8908_v55, 9  ;;  %v15773_v22 = vcombine.low %v21872_v40, %v21918_v56  ;;  %v18458_v56 = vld [vmem:[#allocation5 + $0x28] sm:$0xff]   ;;  %v8906_v6 = vld [vmem:[#allocation3 + $0x20] sm:$0xe]  ;;  %v18479_v55 = vld [vmem:[#allocation5 + $0xf0] sm:$0xff]  }
 0x3e5   : > { %v15763_v16 = vcombine.low %v8576_v39, %v8590_v7  ;;  %v8613_v31 = vrot.slane %v8612_v52, 4  ;;  %v21999_v61 = vsel %vm20076_vm13, %v15787_v21, %v8936_v5  ;;  %v22003_v13 = vsel %vm20076_vm13, %v15788_v41, %v8940_v51  ;;  %v18476_v48 = vld [vmem:[#allocation5 + $0xd8] sm:$0xff]   ;;  %v9284_v41 = vld [vmem:[#allocation3 + $0x10] sm:$0xf] }
 0x3e6   : > { %17485 = vmatpush3.bf16.msra.mxu0 %v18453_v57  ;;  %v15794_v19 = vcombine.low %v21999_v61, %v22003_v13  ;;  %v15792_v53 = vrot.slane %v8909_v10, 9  ;;  %v8952_v25 = vrot.slane %v8505_v58, 5  ;;  %v8956_v26 = vrot.slane %v8506_v3, 5  ;;  %v18459_v57 = vld [vmem:[#allocation5 + $0x30] sm:$0xff]   ;;  %v18460_v58 = vld [vmem:[#allocation5 + $0x38] sm:$0xff]   ;;  %v18462_v3 = vld [vmem:[#allocation5 + $0x80] sm:$0xff]  }
 0x3e7   : > { %17486 = vmatprep.subr.bf16.mxu0 %v18454_v34  ;;  %17478 = vmatprep.mubr.bf16.mxu0 %v15763_v16  ;;  %v8618_v9 = vsel %vm19541_vm7, %v8613_v31, %v8617_v38  ;;  %v15774_v12 = vcombine.low %v21928_v59, %v21939_v29  ;;  %v15775_v49 = vcombine.low %v21974_v1, %v21950_v37  ;;  %v15785_v62 = vrot.slane %v8902_v43, 9  ;;  %v18467_v37 = vld [vmem:[#allocation5 + $0x98] sm:$0xff]   ;;  %v18468_v1 = vld [vmem:[#allocation5 + $0xa0] sm:$0xff]   ;;  %v18473_v16 = vld [vmem:[#allocation5 + $0xc8] sm:$0xff]  }
 0x3e8   : > { %v15764_v14 = vcombine.low %v8604_v33, %v8618_v9  ;;  %v22011_v23 = vsel %vm20076_vm13, %v15791_v42, %v8952_v25  ;;  %v22015_v15 = vsel %vm20076_vm13, %v15792_v53, %v8956_v26  ;;  %v8928_v60 = vrot.slane %v21920_v17, 5  ;;  %v18475_v31 = vld [vmem:[#allocation3 + $0x8] ss:$8 sps:$4 sm:$0xff]   ;;  %v18480_v10 = vld [vmem:[#allocation5 + $0xf8] sm:$0xff]  }
 0x3e9   : > { %v15796_v40 = vcombine.low %v22011_v23, %v22015_v15  ;;  %v15786_v54 = vrot.slane %v8903_v0, 9  ;;  %v8932_v30 = vrot.slane %v21931_v18, 5  ;;  %v15776_v29 = vcombine.low %v21960_v24, %v21971_v47  ;;  %v18469_v18 = vld [vmem:[#allocation5 + $0xa8] sm:$0xff]   ;;  %v18472_v47 = vld [vmem:[#allocation5 + $0xc0] sm:$0xff]   ;;  %v18481_v25 = vld [vmem:[#allocation3 + $0x18] ss:$8 sps:$4 sm:$0xff]  }
 0x3ea   : > { %17487 = vmatpush3.bf16.msra.mxu0 %v18454_v34  ;;  %v8929_v11 = vsel %vm20076_vm13, %v15785_v62, %v8928_v60  ;;  %v8907_v34 = vld [vmem:[#allocation3 + $0x28] sm:$0xe]  ;;  %v15789_v24 = vrot.slane %v8906_v6, 9  ;;  %v8944_v20 = vrot.slane %v21964_v35, 5  ;;  %v8948_v36 = vrot.slane %v21966_v28, 5  ;;  %v18474_v35 = vld [vmem:[#allocation5 + $0xd0] sm:$0xff]  }
 0x3eb   : > { %17479 = vmatmul.mubr.bf16.gmra.mrb[20].mxu0 %v15764_v14  ;;  %17488 = vmatprep.subr.bf16.mxu0 %v18456_v8  ;;  %v8933_v59 = vsel %vm20076_vm13, %v15786_v54, %v8932_v30  ;;  %v15790_v39 = vrot.slane %v8907_v34, 9  ;;  %v18477_v28 = vld [vmem:[#allocation5 + $0xe0] sm:$0xff]   ;;  %v18478_v38 = vld [vmem:[#allocation5 + $0xe8] sm:$0xff]   ;;  %v9313_v5 = vshrl.u32 %v9284_v41, 16  ;;  %v9316_v51 = vshll.u32 %v9284_v41, 16  ;;  %v18487_v62 = vld [vmem:[#allocation5 + $0x118] sm:$0xff]  }
 0x3ec   : > { %17498 = vmatprep.mubr.bf16.mxu0 %v15773_v22  ;;  %v15793_v17 = vcombine.low %v8929_v11, %v8933_v59  ;;  %v8945_v7 = vsel %vm20076_vm13, %v15789_v24, %v8944_v20  ;;  %v18482_v13 = vld [vmem:[#allocation5 + $0x100] sm:$0xff]   ;;  %v18484_v26 = vld [vmem:[#allocation5 + $0x108] sm:$0xff]   ;;  %v9288_v54 = vld [vmem:[#allocation3 + $0x20] sm:$0xf]  ;;  %vm10956_vm10 = vsmask.f32 3336 }
 0x3ed   : > { %v8949_v52 = vsel %vm20076_vm13, %v15790_v39, %v8948_v36  ;;  %v9315_v14 = vrot.slane %v9313_v5, 4  ;;  %v9318_v61 = vrot.slane %v9316_v51, 5  ;;  %v18488_v30 = vld [vmem:[#allocation5 + $0x120] sm:$0xff]   ;;  %v9286_v11 = vld [vmem:[#allocation3 + $0x18] sm:$0xf]  ;;  %v9341_v59 = vshrl.u32 %v9288_v54, 16 }
 0x3ee   : > { %17489 = vmatpush3.bf16.msra.mxu0 %v18456_v8  ;;  %v15795_v21 = vcombine.low %v8945_v7, %v8949_v52  ;;  %v9282_v8 = vld [vmem:[#allocation3 + $0x8] sm:$0xf]  ;;  %v18489_v6 = vld [vmem:[#allocation5 + $0x128] sm:$0xff]   ;;  %v9296_v7 = vld [vmem:[#allocation3 + $0x40] sm:$0xf] }
 0x3ef   : > { %17490 = vmatprep.subr.bf16.mxu0 %v18457_v44  ;;  %v9299_v33 = vshrl.u32 %v9282_v8, 16  ;;  %v9302_v9 = vshll.u32 %v9282_v8, 16  ;;  %v9319_v53 = vor.u32 %v9318_v61, %v9315_v14  ;;  %v9343_v24 = vrot.slane %v9341_v59, 4  ;;  %v22057_v8 = vld [vmem:[#allocation3 + $0x1c] sm:$0x1]  ;;  %v18491_v61 = vld [vmem:[#allocation5 + $0x138] sm:$0xff]  }
 0x3f0   : > { %v9397_v41 = vshrl.u32 %v9296_v7, 16 }
 0x3f1   : > { %v9301_v42 = vrot.slane %v9299_v33, 4  ;;  %v9304_v22 = vrot.slane %v9302_v9, 5  ;;  %v22060_v33 = vld [vmem:[#allocation3 + $0x2c] sm:$0x1] }
 0x3f2   : > { %17491 = vmatpush3.bf16.msra.mxu0 %v18457_v44  ;;  %v22045_v44 = vld [vmem:[#allocation3 + $0xc] sm:$0x1] }
 0x3f3   : > { %17492 = vmatprep.subr.bf16.mxu0 %v18458_v56  ;;  %v9305_v23 = vor.u32 %v9304_v22, %v9301_v42  ;;  %v9336_v22 = vshll.u32 %v22057_v8, 16 }
 0x3f6   : > { %17493 = vmatpush3.bf16.msra.mxu0 %v18458_v56  ;;  %v9308_v56 = vshll.u32 %v22045_v44, 16 }
 0x3f7   : > { %17494 = vmatprep.subr.bf16.mxu0 %v18459_v57 }
 0x3f8   : > { %v9310_v0 = vrot.slane %v9308_v56, 5 }
 0x3fa   : > { %17495 = vmatpush3.bf16.msra.mxu0 %v18459_v57  ;;  %v9320_v57 = vrot.slane %v9319_v53, 4 }
 0x3fb   : > { %17496 = vmatprep.subr.bf16.mxu0 %v18460_v58 }
 0x3fe   : > { %17497 = vmatpush3.bf16.msra.mxu0 %v18460_v58  ;;  %v18486_v58 = vld [vmem:[#allocation5 + $0x110] sm:$0xff]  }
 0x3ff   : > { %17506 = vmatprep.subr.bf16.mxu0 %v18462_v3 }
 0x401   : > { %17499 = vmatmul.mubr.bf16.vlgmr.msra.gmra.mrb[16].mxu0 %v15774_v12 }
 0x402   : > { %17502 = vmatprep.mubr.bf16.mxu0 %v15775_v49  ;;  %17507 = vmatpush3.bf16.msra.mxu0 %v18462_v3  ;;  %v9306_v3 = vrot.slane %v9305_v23, 4  ;;  %v9364_v23 = vshll.u32 %v22060_v33, 16 }
 0x403   : > { %17508 = vmatprep.subr.bf16.mxu0 %v18464_v63 }
 0x404   : > { %v9311_v49 = vsel %vm19541_vm7, %v9306_v3, %v9310_v0  ;;  %v18492_v3 = vld [vmem:[#allocation5 + $0x140] sm:$0xff]  }
 0x406   : > { %17509 = vmatpush3.bf16.msra.mxu0 %v18464_v63  ;;  %v18485_v63 = vld [vmem:[#allocation3 + $0x38] ss:$8 sps:$4 sm:$0xff]  }
 0x407   : > { %17510 = vmatprep.subr.bf16.mxu0 %v18466_v2 }
 0x409   : > { %17503 = vmatmul.mubr.bf16.gmra.mrb[20].mxu0 %v15776_v29  ;;  %v9344_v29 = vshll.u32 %v9288_v54, 16 }
 0x40a   : > { %17511 = vmatpush3.bf16.msra.mxu0 %v18466_v2  ;;  %17522 = vmatprep.mubr.bf16.mxu0 %v15793_v17  ;;  %v9292_v2 = vld [vmem:[#allocation3 + $0x30] sm:$0xf] }
 0x40b   : > { %17512 = vmatprep.subr.bf16.mxu0 %v18467_v37  ;;  %v9369_v17 = vshrl.u32 %v9292_v2, 16 }
 0x40d   : > { %v9371_v20 = vrot.slane %v9369_v17, 4 }
 0x40e   : > { %17513 = vmatpush3.bf16.msra.mxu0 %v18467_v37  ;;  %v9290_v37 = vld [vmem:[#allocation3 + $0x28] sm:$0xf] }
 0x40f   : > { %17514 = vmatprep.subr.bf16.mxu0 %v18468_v1  ;;  %v9358_v34 = vshll.u32 %v9290_v37, 16 }
 0x412   : > { %17515 = vmatpush3.bf16.msra.mxu0 %v18468_v1  ;;  %v9372_v1 = vshll.u32 %v9292_v2, 16  ;;  %v22071_v2 = vld [vmem:[#allocation3 + $0x3c] sm:$0x1] }
 0x413   : > { %17516 = vmatprep.subr.bf16.mxu0 %v18469_v18 }
 0x414   : > { %v9374_v39 = vrot.slane %v9372_v1, 5  ;;  %v18493_v1 = vld [vmem:[#allocation5 + $0x148] sm:$0xff]  }
 0x416   : > { %17517 = vmatpush3.bf16.msra.mxu0 %v18469_v18  ;;  %v9327_v18 = vshrl.u32 %v9286_v11, 16  ;;  %v9375_v5 = vor.u32 %v9374_v39, %v9371_v20  ;;  %v18494_v20 = vld [vmem:[#allocation5 + $0x150] sm:$0xff]  }
 0x417   : > { %17518 = vmatprep.subr.bf16.mxu0 %v18470_v50 }
 0x418   : > { %v9329_v36 = vrot.slane %v9327_v18, 4 }
 0x41a   : > { %17519 = vmatpush3.bf16.msra.mxu0 %v18470_v50  ;;  %v9330_v50 = vshll.u32 %v9286_v11, 16 }
 0x41b   : > { %17520 = vmatprep.subr.bf16.mxu0 %v18471_v46 }
 0x41c   : > { %v9332_v52 = vrot.slane %v9330_v50, 5  ;;  %v9392_v50 = vshll.u32 %v22071_v2, 16 }
 0x41e   : > { %17521 = vmatpush3.bf16.msra.mxu0 %v18471_v46  ;;  %v9355_v46 = vshrl.u32 %v9290_v37, 16  ;;  %v9333_v51 = vor.u32 %v9332_v52, %v9329_v36  ;;  %v9394_v36 = vrot.slane %v9392_v50, 5 }
 0x41f   : > { %17530 = vmatprep.subr.bf16.mxu0 %v18472_v47 }
 0x421   : > { %17523 = vmatmul.mubr.bf16.vlgmr.msra.gmra.mrb[16].mxu0 %v15794_v19  ;;  %v22043_v19 = vld [vmem:[#allocation3 + $0x14] sm:$0x1] }
 0x422   : > { %17526 = vmatprep.mubr.bf16.mxu0 %v15795_v21  ;;  %17531 = vmatpush3.bf16.msra.mxu0 %v18472_v47  ;;  %v9322_v15 = vshll.u32 %v22043_v19, 16  ;;  %v9346_v47 = vrot.slane %v9344_v29, 5  ;;  %v18490_v21 = vld [vmem:[#allocation5 + $0x130] sm:$0xff]   ;;  %v9565_v29 = vld [vmem:[#allocation3 + $0x10] sm:$0xe] }
 0x423   : > { %17532 = vmatprep.subr.bf16.mxu0 %v18473_v16 }
 0x424   : > { %v9324_v43 = vrot.slane %v9322_v15, 5  ;;  %v9376_v15 = vrot.slane %v9375_v5, 4  ;;  %v18498_v5 = vld [vmem:[#allocation5 + $0x170] sm:$0xff]  }
 0x426   : > { %17533 = vmatpush3.bf16.msra.mxu0 %v18473_v16  ;;  %v9325_v12 = vsel %vm19541_vm7, %v9320_v57, %v9324_v43  ;;  %v9294_v16 = vld [vmem:[#allocation3 + $0x38] sm:$0xf] }
 0x427   : > { %17534 = vmatprep.subr.bf16.mxu0 %v18474_v35  ;;  %v15817_v60 = vcombine.low %v9311_v49, %v9325_v12  ;;  %v9383_v9 = vshrl.u32 %v9294_v16, 16  ;;  %v9386_v14 = vshll.u32 %v9294_v16, 16  ;;  %v22065_v12 = vld [vmem:[#allocation3 + $0x44] sm:$0x1]  ;;  %v9590_v16 = vrot.slane %v22045_v44, 5  ;;  %v18497_v44 = vld [vmem:[#allocation5 + $0x168] sm:$0xff]  }
 0x428   : > { %v9406_v59 = vshll.u32 %v22065_v12, 16 }
 0x429   : > { %17527 = vmatmul.mubr.bf16.gmra.mrb[20].mxu0 %v15796_v40  ;;  %v18483_v40 = vld [vmem:[#allocation3 + $0x28] ss:$8 sps:$4 sm:$0xff]   ;;  %v9385_v57 = vrot.slane %v9383_v9, 4  ;;  %v18499_v9 = vld [vmem:[#allocation5 + $0x178] sm:$0xff]  }
 0x42a   : > { %17535 = vmatpush3.bf16.msra.mxu0 %v18474_v35  ;;  %17546 = vmatprep.mubr.bf16.mxu0 %v18475_v31  ;;  %v22053_v35 = vld [vmem:[#allocation3 + $0x24] sm:$0x1]  ;;  %v9360_v31 = vrot.slane %v9358_v34, 5  ;;  %v15830_v34 = vrot.slane %v9565_v29, 9  ;;  %v18503_v29 = vld [vmem:[#allocation3 + $0x10] ss:$8 sps:$4 sm:$0xff]  }
 0x42b   : > { %17536 = vmatprep.subr.bf16.mxu0 %v18476_v48 }
 0x42e   : > { %17537 = vmatpush3.bf16.msra.mxu0 %v18476_v48  ;;  %v9357_v48 = vrot.slane %v9355_v46, 4  ;;  %v9564_v46 = vld [vmem:[#allocation3 + $0x8] sm:$0xe] }
 0x42f   : > { %17538 = vmatprep.subr.bf16.mxu0 %v18477_v28  ;;  %v15829_v39 = vrot.slane %v9564_v46, 9 }
 0x432   : > { %17539 = vmatpush3.bf16.msra.mxu0 %v18477_v28  ;;  %v9347_v28 = vor.u32 %v9346_v47, %v9343_v24  ;;  %v9408_v47 = vrot.slane %v9406_v59, 5  ;;  %v18504_v59 = vld [vmem:[#allocation5 + $0x198] sm:$0xff]  }
 0x433   : > { %17540 = vmatprep.subr.bf16.mxu0 %v18478_v38 }
 0x434   : > { %v9348_v53 = vrot.slane %v9347_v28, 4  ;;  %v9591_v28 = vsel %vm20076_vm13, %v15829_v39, %v9590_v16  ;;  %v22109_v16 = vld [vmem:[#allocation3 + $0x14] sm:$0x1] }
 0x436   : > { %17541 = vmatpush3.bf16.msra.mxu0 %v18478_v38  ;;  %v22055_v38 = vld [vmem:[#allocation3 + $0x34] sm:$0x1] }
 0x437   : > { %17542 = vmatprep.subr.bf16.mxu0 %v18479_v55  ;;  %v9378_v42 = vshll.u32 %v22055_v38, 16 }
 0x439   : > { %v9380_v0 = vrot.slane %v9378_v42, 5 }
 0x43a   : > { %17543 = vmatpush3.bf16.msra.mxu0 %v18479_v55  ;;  %v9400_v55 = vshll.u32 %v9296_v7, 16  ;;  %v9594_v7 = vrot.slane %v22043_v19, 5 }
 0x43b   : > { %17544 = vmatprep.subr.bf16.mxu0 %v18480_v10  ;;  %v9381_v54 = vsel %vm19541_vm7, %v9376_v15, %v9380_v0  ;;  %v9598_v15 = vrot.slane %v22057_v8, 5  ;;  %v9570_v8 = vld [vmem:[#allocation3 + $0x38] sm:$0xe] }
 0x43e   : > { %17545 = vmatpush3.bf16.msra.mxu0 %v18480_v10  ;;  %v9350_v10 = vshll.u32 %v22053_v35, 16 }
 0x43f   : > { %17554 = vmatprep.subr.bf16.mxu0 %v18482_v13 }
 0x440   : > { %v9352_v56 = vrot.slane %v9350_v10, 5  ;;  %v9569_v10 = vld [vmem:[#allocation3 + $0x30] sm:$0xe] }
 0x441   : > { %17547 = vmatmul.mubr.bf16.vlgmr.msra.gmra.mrb[16].mxu0 %v18481_v25  ;;  %v9399_v25 = vrot.slane %v9397_v41, 4  ;;  %v18495_v41 = vld [vmem:[#allocation5 + $0x158] sm:$0xff]   ;;  %v15834_v42 = vrot.slane %v9569_v10, 9 }
 0x442   : > { %17550 = vmatprep.mubr.bf16.mxu0 %v18483_v40  ;;  %17555 = vmatpush3.bf16.msra.mxu0 %v18482_v13  ;;  %v9361_v13 = vor.u32 %v9360_v31, %v9357_v48  ;;  %v9334_v40 = vrot.slane %v9333_v51, 4  ;;  %v9353_v49 = vsel %vm19541_vm7, %v9348_v53, %v9352_v56  ;;  %v9567_v51 = vld [vmem:[#allocation3 + $0x20] sm:$0xe]  ;;  %v9602_v53 = vrot.slane %v22053_v35, 5 }
 0x443   : > { %17556 = vmatprep.subr.bf16.mxu0 %v18484_v26  ;;  %v9606_v56 = vrot.slane %v22060_v33, 5  ;;  %v15835_v33 = vrot.slane %v9570_v8, 9 }
 0x444   : > { %v9362_v43 = vrot.slane %v9361_v13, 4  ;;  %v9568_v13 = vld [vmem:[#allocation3 + $0x28] sm:$0xe] }
 0x446   : > { %17557 = vmatpush3.bf16.msra.mxu0 %v18484_v26  ;;  %v9402_v26 = vrot.slane %v9400_v55, 5  ;;  %v18496_v55 = vld [vmem:[#allocation5 + $0x160] sm:$0xff]  }
 0x447   : > { %17558 = vmatprep.subr.bf16.mxu0 %v18486_v58 }
 0x449   : > { %17551 = vmatmul.mubr.bf16.gmra.mrb[20].mxu0 %v18485_v63  ;;  %v9338_v63 = vrot.slane %v9336_v22, 5 }
 0x44a   : > { %17559 = vmatpush3.bf16.msra.mxu0 %v18486_v58  ;;  %17570 = vmatprep.mubr.bf16.mxu0 %v15817_v60  ;;  %v9388_v58 = vrot.slane %v9386_v14, 5  ;;  %v9366_v60 = vrot.slane %v9364_v23, 5  ;;  %v9566_v14 = vld [vmem:[#allocation3 + $0x18] sm:$0xe]  ;;  %v9610_v23 = vrot.slane %v22055_v38, 5 }
 0x44b   : > { %17560 = vmatprep.subr.bf16.mxu0 %v18487_v62  ;;  %v15831_v22 = vrot.slane %v9566_v14, 9  ;;  %v18513_v14 = vld [vmem:[#allocation3 + $0x40] ss:$8 sps:$4 sm:$0xff]  }
 0x44c   : > { %v9389_v11 = vor.u32 %v9388_v58, %v9385_v57  ;;  %v9367_v17 = vsel %vm19541_vm7, %v9362_v43, %v9366_v60  ;;  %v9611_v57 = vsel %vm20076_vm13, %v15834_v42, %v9610_v23  ;;  %v9571_v58 = vld [vmem:[#allocation3 + $0x40] sm:$0xe]  ;;  %v18501_v43 = vld [vmem:[#allocation5 + $0x188] sm:$0xff]   ;;  %v9614_v60 = vrot.slane %v22071_v2, 5  ;;  %v9947_v2 = vld [vmem:[#allocation3 + $0x18] sm:$0xf] }
 0x44d   : > { %v15819_v18 = vcombine.low %v9367_v17, %v9381_v54  ;;  %v9599_v35 = vsel %vm20076_vm13, %v15831_v22, %v9598_v15  ;;  %v18507_v17 = vld [vmem:[#allocation5 + $0x1b0] sm:$0xff]   ;;  %v9979_v50 = vshll.u32 %v9947_v2, 16  ;;  %v9949_v22 = vld [vmem:[#allocation3 + $0x20] sm:$0xf] }
 0x44e   : > { %17561 = vmatpush3.bf16.msra.mxu0 %v18487_v62  ;;  %v9403_v62 = vor.u32 %v9402_v26, %v9399_v25  ;;  %v9390_v24 = vrot.slane %v9389_v11, 4  ;;  %v18500_v25 = vld [vmem:[#allocation5 + $0x180] sm:$0xff]   ;;  %v15833_v26 = vrot.slane %v9568_v13, 9  ;;  %v18515_v13 = vld [vmem:[#allocation5 + $0x1d8] sm:$0xff]   ;;  %v9990_v23 = vshrl.u32 %v9949_v22, 16 }
 0x44f   : > { %17562 = vmatprep.subr.bf16.mxu0 %v18488_v30  ;;  %v9993_v15 = vshll.u32 %v9949_v22, 16 }
 0x450   : > { %v9395_v48 = vsel %vm19541_vm7, %v9390_v24, %v9394_v36  ;;  %v9607_v38 = vsel %vm20076_vm13, %v15833_v26, %v9606_v56  ;;  %v22107_v36 = vld [vmem:[#allocation3 + $0x1c] sm:$0x1]  ;;  %v9951_v26 = vld [vmem:[#allocation3 + $0x28] sm:$0xf] }
 0x451   : > { %v15839_v0 = vcombine.low %v9607_v38, %v9611_v57  ;;  %v9992_v38 = vrot.slane %v9990_v23, 4 }
 0x452   : > { %17563 = vmatpush3.bf16.msra.mxu0 %v18488_v30  ;;  %v9339_v30 = vsel %vm19541_vm7, %v9334_v40, %v9338_v63  ;;  %v15836_v63 = vrot.slane %v9571_v58, 9  ;;  %v10004_v58 = vshrl.u32 %v9951_v26, 16 }
 0x453   : > { %17564 = vmatprep.subr.bf16.mxu0 %v18489_v6  ;;  %v15818_v37 = vcombine.low %v9339_v30, %v9353_v49  ;;  %v9618_v49 = vrot.slane %v22065_v12, 5  ;;  %v9615_v30 = vsel %vm20076_vm13, %v15835_v33, %v9614_v60  ;;  %v18505_v12 = vld [vmem:[#allocation5 + $0x1a0] sm:$0xff]  }
 0x454   : > { %v22117_v60 = vld [vmem:[#allocation3 + $0x2c] sm:$0x1] }
 0x455   : > { %v9619_v54 = vsel %vm20076_vm13, %v15836_v63, %v9618_v49  ;;  %v9957_v49 = vld [vmem:[#allocation3 + $0x40] sm:$0xf] }
 0x456   : > { %17565 = vmatpush3.bf16.msra.mxu0 %v18489_v6  ;;  %v9404_v6 = vrot.slane %v9403_v62, 4  ;;  %v18502_v62 = vld [vmem:[#allocation5 + $0x190] sm:$0xff]   ;;  %v15840_v11 = vcombine.low %v9615_v30, %v9619_v54  ;;  %v10006_v54 = vrot.slane %v10004_v58, 4  ;;  %v18521_v58 = vld [vmem:[#allocation5 + $0x208] sm:$0xff]  }
 0x457   : > { %17566 = vmatprep.subr.bf16.mxu0 %v18490_v21 }
 0x458   : > { %v9409_v52 = vsel %vm19541_vm7, %v9404_v6, %v9408_v47  ;;  %v18508_v6 = vld [vmem:[#allocation5 + $0x1b8] sm:$0xff]   ;;  %v9981_v47 = vrot.slane %v9979_v50, 5 }
 0x459   : > { %v15820_v31 = vcombine.low %v9395_v48, %v9409_v52  ;;  %v18512_v48 = vld [vmem:[#allocation5 + $0x1c8] sm:$0xff]  }
 0x45a   : > { %17567 = vmatpush3.bf16.msra.mxu0 %v18490_v21  ;;  %v9595_v21 = vsel %vm20076_vm13, %v15830_v34, %v9594_v7 }
 0x45b   : > { %17568 = vmatprep.subr.bf16.mxu0 %v18491_v61  ;;  %v15837_v19 = vcombine.low %v9591_v28, %v9595_v21  ;;  %v18509_v21 = vld [vmem:[#allocation3 + $0x20] ss:$8 sps:$4 sm:$0xff]   ;;  %v9985_v28 = vshll.u32 %v22107_v36, 16 }
 0x45e   : > { %17569 = vmatpush3.bf16.msra.mxu0 %v18491_v61  ;;  %v15832_v61 = vrot.slane %v9567_v51, 9  ;;  %v9987_v51 = vrot.slane %v9985_v28, 5 }
 0x45f   : > { %17578 = vmatprep.subr.bf16.mxu0 %v18492_v3 }
 0x460   : > { %v9603_v40 = vsel %vm20076_vm13, %v15832_v61, %v9602_v53  ;;  %v9955_v53 = vld [vmem:[#allocation3 + $0x38] sm:$0xf] }
 0x461   : > { %17571 = vmatmul.mubr.bf16.vlgmr.msra.gmra.mrb[16].mxu0 %v15818_v37  ;;  %v18506_v37 = vld [vmem:[#allocation5 + $0x1a8] sm:$0xff]   ;;  %v10032_v56 = vshrl.u32 %v9955_v53, 16  ;;  %v10035_v57 = vshll.u32 %v9955_v53, 16 }
 0x462   : > { %17574 = vmatprep.mubr.bf16.mxu0 %v15819_v18  ;;  %17579 = vmatpush3.bf16.msra.mxu0 %v18492_v3  ;;  %v15838_v3 = vcombine.low %v9599_v35, %v9603_v40  ;;  %v9976_v18 = vshrl.u32 %v9947_v2, 16  ;;  %v9953_v40 = vld [vmem:[#allocation3 + $0x30] sm:$0xf]  ;;  %v10007_v35 = vshll.u32 %v9951_v26, 16  ;;  %v22121_v2 = vld [vmem:[#allocation3 + $0x3c] sm:$0x1] }
 0x463   : > { %17580 = vmatprep.subr.bf16.mxu0 %v18493_v1  ;;  %v10018_v8 = vshrl.u32 %v9953_v40, 16  ;;  %v10034_v63 = vrot.slane %v10032_v56, 4  ;;  %v10037_v33 = vrot.slane %v10035_v57, 5 }
 0x464   : > { %v9978_v24 = vrot.slane %v9976_v18, 4  ;;  %v10009_v30 = vrot.slane %v10007_v35, 5 }
 0x466   : > { %17581 = vmatpush3.bf16.msra.mxu0 %v18493_v1  ;;  %v9945_v1 = vld [vmem:[#allocation3 + $0x10] sm:$0xf]  ;;  %v9982_v52 = vor.u32 %v9981_v47, %v9978_v24  ;;  %v22124_v24 = vld [vmem:[#allocation3 + $0x34] sm:$0x1]  ;;  %v18519_v47 = vld [vmem:[#allocation5 + $0x1f8] sm:$0xff]  }
 0x467   : > { %17582 = vmatprep.subr.bf16.mxu0 %v18494_v20  ;;  %v9962_v46 = vshrl.u32 %v9945_v1, 16  ;;  %v9965_v34 = vshll.u32 %v9945_v1, 16  ;;  %v10049_v1 = vshll.u32 %v9957_v49, 16 }
 0x469   : > { %17575 = vmatmul.mubr.bf16.gmra.mrb[20].mxu0 %v15820_v31  ;;  %v9964_v39 = vrot.slane %v9962_v46, 4  ;;  %v9967_v7 = vrot.slane %v9965_v34, 5  ;;  %v10010_v34 = vor.u32 %v10009_v30, %v10006_v54 }
 0x46a   : > { %17583 = vmatpush3.bf16.msra.mxu0 %v18494_v20  ;;  %17594 = vmatprep.mubr.bf16.mxu0 %v15837_v19  ;;  %v18510_v20 = vld [vmem:[#allocation5 + $0x1c0] sm:$0xff]   ;;  %v9971_v19 = vshll.u32 %v22109_v16, 16 }
 0x46b   : > { %17584 = vmatprep.subr.bf16.mxu0 %v18495_v41  ;;  %v9968_v31 = vor.u32 %v9967_v7, %v9964_v39  ;;  %v10013_v39 = vshll.u32 %v22117_v60, 16 }
 0x46c   : > { %v9973_v10 = vrot.slane %v9971_v19, 5 }
 0x46e   : > { %17585 = vmatpush3.bf16.msra.mxu0 %v18495_v41  ;;  %v18511_v41 = vld [vmem:[#allocation3 + $0x30] ss:$8 sps:$4 sm:$0xff]  }
 0x46f   : > { %17586 = vmatprep.subr.bf16.mxu0 %v18496_v55 }
 0x472   : > { %17587 = vmatpush3.bf16.msra.mxu0 %v18496_v55  ;;  %v9983_v55 = vrot.slane %v9982_v52, 4  ;;  %v10041_v52 = vshll.u32 %v22121_v2, 16 }
 0x473   : > { %17588 = vmatprep.subr.bf16.mxu0 %v18497_v44 }
 0x476   : > { %17589 = vmatpush3.bf16.msra.mxu0 %v18497_v44  ;;  %v18514_v44 = vld [vmem:[#allocation5 + $0x1d0] sm:$0xff]  }
 0x477   : > { %17590 = vmatprep.subr.bf16.mxu0 %v18498_v5 }
 0x47a   : > { %17591 = vmatpush3.bf16.msra.mxu0 %v18498_v5  ;;  %v9969_v5 = vrot.slane %v9968_v31, 4 }
 0x47b   : > { %17592 = vmatprep.subr.bf16.mxu0 %v18499_v9 }
 0x47c   : > { %v9974_v61 = vsel %vm19541_vm7, %v9969_v5, %v9973_v10  ;;  %v22129_v5 = vld [vmem:[#allocation3 + $0x4c] sm:$0x1] }
 0x47d   : > { %v18520_v10 = vld [vmem:[#allocation5 + $0x200] sm:$0xff]   ;;  %v10069_v53 = vshll.u32 %v22129_v5, 16 }
 0x47e   : > { %17593 = vmatpush3.bf16.msra.mxu0 %v18499_v9  ;;  %v9988_v9 = vsel %vm19541_vm7, %v9983_v55, %v9987_v51  ;;  %v10015_v51 = vrot.slane %v10013_v39, 5 }
 0x47f   : > { %17602 = vmatprep.subr.bf16.mxu0 %v18500_v25  ;;  %v15861_v42 = vcombine.low %v9974_v61, %v9988_v9  ;;  %v22131_v61 = vld [vmem:[#allocation3 + $0x44] sm:$0x1] }
 0x481   : > { %17595 = vmatmul.mubr.bf16.vlgmr.msra.gmra.mrb[16].mxu0 %v15838_v3  ;;  %v18517_v3 = vld [vmem:[#allocation5 + $0x1e8] sm:$0xff]  }
 0x482   : > { %17598 = vmatprep.mubr.bf16.mxu0 %v15839_v0  ;;  %17603 = vmatpush3.bf16.msra.mxu0 %v18500_v25  ;;  %v18516_v25 = vld [vmem:[#allocation5 + $0x1e0] sm:$0xff]   ;;  %v10021_v0 = vshll.u32 %v9953_v40, 16  ;;  %v10228_v40 = vld [vmem:[#allocation3 + $0x18] sm:$0xe] }
 0x483   : > { %17604 = vmatprep.subr.bf16.mxu0 %v18501_v43 }
 0x486   : > { %17605 = vmatpush3.bf16.msra.mxu0 %v18501_v43  ;;  %v9995_v43 = vrot.slane %v9993_v15, 5  ;;  %v10055_v15 = vshll.u32 %v22131_v61, 16 }
 0x487   : > { %17606 = vmatprep.subr.bf16.mxu0 %v18502_v62 }
 0x489   : > { %17599 = vmatmul.mubr.bf16.gmra.mrb[20].mxu0 %v15840_v11  ;;  %v18518_v11 = vld [vmem:[#allocation5 + $0x1f0] sm:$0xff]  }
 0x48a   : > { %17607 = vmatpush3.bf16.msra.mxu0 %v18502_v62  ;;  %17618 = vmatprep.mubr.bf16.mxu0 %v18503_v29  ;;  %v9959_v62 = vld [vmem:[#allocation3 + $0x48] sm:$0xf]  ;;  %v9996_v29 = vor.u32 %v9995_v43, %v9992_v38  ;;  %v10071_v43 = vrot.slane %v10069_v53, 5 }
 0x48b   : > { %17608 = vmatprep.subr.bf16.mxu0 %v18504_v59  ;;  %v10060_v18 = vshrl.u32 %v9959_v62, 16  ;;  %v10063_v50 = vshll.u32 %v9959_v62, 16  ;;  %v10257_v62 = vrot.slane %v22107_v36, 5  ;;  %v18524_v36 = vld [vmem:[#allocation5 + $0x220] sm:$0xff]  }
 0x48c   : > { %v18528_v53 = vld [vmem:[#allocation8 + $0x40] sm:$0xff]  }
 0x48d   : > { %v10062_v31 = vrot.slane %v10060_v18, 4  ;;  %v10065_v28 = vrot.slane %v10063_v50, 5  ;;  %v10229_v18 = vld [vmem:[#allocation3 + $0x20] sm:$0xe]  ;;  %v10232_v50 = vld [vmem:[#allocation3 + $0x38] sm:$0xe] }
 0x48e   : > { %17609 = vmatpush3.bf16.msra.mxu0 %v18504_v59  ;;  %v22119_v59 = vld [vmem:[#allocation3 + $0x24] sm:$0x1] }
 0x48f   : > { %17610 = vmatprep.subr.bf16.mxu0 %v18505_v12  ;;  %v9999_v46 = vshll.u32 %v22119_v59, 16  ;;  %v10066_v22 = vor.u32 %v10065_v28, %v10062_v31  ;;  %v10261_v39 = vrot.slane %v22119_v59, 5  ;;  %v10265_v31 = vrot.slane %v22117_v60, 5 }
 0x490   : > { %v10269_v28 = vrot.slane %v22124_v24, 5  ;;  %v10281_v60 = vrot.slane %v22129_v5, 5  ;;  %v18529_v5 = vld [vmem:[#allocation8 + $0x48] sm:$0xff]  }
 0x491   : > { %v10001_v55 = vrot.slane %v9999_v46, 5  ;;  %v10067_v38 = vrot.slane %v10066_v22, 4  ;;  %v10230_v46 = vld [vmem:[#allocation3 + $0x28] sm:$0xe]  ;;  %v22795_v22 = vmov 0  }
 0x492   : > { %17611 = vmatpush3.bf16.msra.mxu0 %v18505_v12  ;;  %v10020_v12 = vrot.slane %v10018_v8, 4  ;;  %v10227_v8 = vld [vmem:[#allocation3 + $0x10] sm:$0xe] }
 0x493   : > { %17612 = vmatprep.subr.bf16.mxu0 %v18506_v37  ;;  %v10072_v30 = vsel %vm19541_vm7, %v10067_v38, %v10071_v43 }
 0x496   : > { %17613 = vmatpush3.bf16.msra.mxu0 %v18506_v37  ;;  %v10023_v37 = vrot.slane %v10021_v0, 5  ;;  %v15874_v0 = vrot.slane %v10228_v40, 9  ;;  %v18535_v40 = vld [vmem:[#allocation8 + $0x78] sm:$0xff]  }
 0x497   : > { %17614 = vmatprep.subr.bf16.mxu0 %v18507_v17 }
 0x498   : > { %v10024_v7 = vor.u32 %v10023_v37, %v10020_v12 }
 0x49a   : > { %17615 = vmatpush3.bf16.msra.mxu0 %v18507_v17  ;;  %v10046_v17 = vshrl.u32 %v9957_v49, 16  ;;  %v10025_v9 = vrot.slane %v10024_v7, 4  ;;  %v15873_v49 = vrot.slane %v10227_v8, 9  ;;  %v15876_v7 = vrot.slane %v10230_v46, 9 }
 0x49b   : > { %17616 = vmatprep.subr.bf16.mxu0 %v18508_v6 }
 0x49c   : > { %v10266_v59 = vsel %vm20076_vm13, %v15876_v7, %v10265_v31 }
 0x49e   : > { %17617 = vmatpush3.bf16.msra.mxu0 %v18508_v6  ;;  %v10038_v6 = vor.u32 %v10037_v33, %v10034_v63  ;;  %v10057_v63 = vrot.slane %v10055_v15, 5  ;;  %v18522_v33 = vld [vmem:[#allocation5 + $0x210] sm:$0xff]  }
 0x49f   : > { %17626 = vmatprep.subr.bf16.mxu0 %v18510_v20  ;;  %v18534_v15 = vld [vmem:[#allocation8 + $0x70] sm:$0xff]  }
 0x4a0   : > { %v10039_v19 = vrot.slane %v10038_v6, 4  ;;  %v18527_v6 = vld [vmem:[#allocation5 + $0x238] sm:$0xff]  }
 0x4a1   : > { %17619 = vmatmul.mubr.bf16.vlgmr.msra.gmra.mrb[16].mxu0 %v18509_v21  ;;  %v10048_v21 = vrot.slane %v10046_v17, 4  ;;  %v18523_v17 = vld [vmem:[#allocation5 + $0x218] sm:$0xff]  }
 0x4a2   : > { %17622 = vmatprep.mubr.bf16.mxu0 %v18511_v41  ;;  %17627 = vmatpush3.bf16.msra.mxu0 %v18510_v20  ;;  %v9997_v20 = vrot.slane %v9996_v29, 4  ;;  %v10027_v41 = vshll.u32 %v22124_v24, 16  ;;  %v10258_v29 = vsel %vm20076_vm13, %v15874_v0, %v10257_v62  ;;  %v10277_v24 = vrot.slane %v22131_v61, 5  ;;  %v18530_v61 = vld [vmem:[#allocation8 + $0x50] sm:$0xff]  }
 0x4a3   : > { %17628 = vmatprep.subr.bf16.mxu0 %v18512_v48 }
 0x4a6   : > { %17629 = vmatpush3.bf16.msra.mxu0 %v18512_v48  ;;  %v10051_v48 = vrot.slane %v10049_v1, 5 }
 0x4a7   : > { %17630 = vmatprep.subr.bf16.mxu0 %v18514_v44 }
 0x4a9   : > { %17623 = vmatmul.mubr.bf16.gmra.mrb[20].mxu0 %v18513_v14  ;;  %v10043_v14 = vrot.slane %v10041_v52, 5 }
 0x4aa   : > { %17631 = vmatpush3.bf16.msra.mxu0 %v18514_v44  ;;  %17642 = vmatprep.mubr.bf16.mxu0 %v15861_v42  ;;  %v10011_v44 = vrot.slane %v10010_v34, 4  ;;  %v10052_v42 = vor.u32 %v10051_v48, %v10048_v21  ;;  %v15875_v34 = vrot.slane %v10229_v18, 9  ;;  %v10273_v21 = vrot.slane %v22121_v2, 5 }
 0x4ab   : > { %17632 = vmatprep.subr.bf16.mxu0 %v18515_v13  ;;  %v10044_v26 = vsel %vm19541_vm7, %v10039_v19, %v10043_v14  ;;  %v10233_v19 = vld [vmem:[#allocation3 + $0x40] sm:$0xe] }
 0x4ac   : > { %v10016_v23 = vsel %vm19541_vm7, %v10011_v44, %v10015_v51  ;;  %v10262_v48 = vsel %vm20076_vm13, %v15875_v34, %v10261_v39 }
 0x4ad   : > { %v15882_v44 = vcombine.low %v10262_v48, %v10266_v59 }
 0x4ae   : > { %17633 = vmatpush3.bf16.msra.mxu0 %v18515_v13  ;;  %v10002_v13 = vsel %vm19541_vm7, %v9997_v20, %v10001_v55  ;;  %v15878_v20 = vrot.slane %v10232_v50, 9  ;;  %v10234_v55 = vld [vmem:[#allocation3 + $0x48] sm:$0xe] }
 0x4af   : > { %17634 = vmatprep.subr.bf16.mxu0 %v18516_v25  ;;  %v15862_v56 = vcombine.low %v10002_v13, %v10016_v23  ;;  %v18533_v23 = vld [vmem:[#allocation8 + $0x68] sm:$0xff]  }
 0x4b2   : > { %17635 = vmatpush3.bf16.msra.mxu0 %v18516_v25  ;;  %v10029_v25 = vrot.slane %v10027_v41, 5  ;;  %v10274_v41 = vsel %vm20076_vm13, %v15878_v20, %v10273_v21 }
 0x4b3   : > { %17636 = vmatprep.subr.bf16.mxu0 %v18517_v3 }
 0x4b4   : > { %v10030_v57 = vsel %vm19541_vm7, %v10025_v9, %v10029_v25  ;;  %v15880_v9 = vrot.slane %v10234_v55, 9  ;;  %v19203_v25 = vmov 0.0  }
 0x4b5   : > { %v15863_v35 = vcombine.low %v10030_v57, %v10044_v26  ;;  %17674 = vmatprep.subr.bf16.mxu1 %v19203_v25  ;;  %17690 = vmatprep.mubr.msk.bf16.mxu1 %vm19204_vm5, %v19203_v25  ;;  %v18532_v26 = vld [vmem:[#allocation8 + $0x60] sm:$0xff]  }
 0x4b6   : > { %17637 = vmatpush3.bf16.msra.mxu0 %v18517_v3  ;;  %v10053_v3 = vrot.slane %v10052_v42, 4  ;;  %v10282_v13 = vsel %vm20076_vm13, %v15880_v9, %v10281_v60  ;;  %17675 = vmatpush3.bf16.msra.mxu1 %v18528_v53 }
 0x4b7   : > { %17638 = vmatprep.subr.bf16.mxu0 %v18518_v11  ;;  %17676 = vmatprep.subr.bf16.mxu1 %v19203_v25 }
 0x4b8   : > { %v10058_v54 = vsel %vm19541_vm7, %v10053_v3, %v10057_v63  ;;  %vm10880_vm7 = vsmask.f32 2306 }
 0x4b9   : > { %v15864_v12 = vcombine.low %v10058_v54, %v10072_v30  ;;  %v22193_v30 = vld.sshfl [vmem:[#allocation4] sm:$0x13 pattern:$0x76325410]  ;;  %vm22239_vm8 = vmand %vm1623_vm11, %vm10880_vm7  ;;  %vm10958_vm11 = vsmask.f32 5392 }
 0x4ba   : > { %17639 = vmatpush3.bf16.msra.mxu0 %v18518_v11  ;;  %v10253_v11 = vrot.slane %v22109_v16, 5  ;;  %v18526_v16 = vld [vmem:[#allocation5 + $0x230] sm:$0xff]   ;;  %17677 = vmatpush3.bf16.msra.mxu1 %v18529_v5 }
 0x4bb   : > { %17640 = vmatprep.subr.bf16.mxu0 %v18519_v47  ;;  %17678 = vmatprep.subr.bf16.mxu1 %v19203_v25 }
 0x4bc   : > { %v10254_v37 = vsel %vm20076_vm13, %v15873_v49, %v10253_v11 }
 0x4bd   : > { %v15881_v1 = vcombine.low %v10254_v37, %v10258_v29  ;;  %v10930_v37 = vcombine.high %v22193_v30, %v22193_v30 }
 0x4be   : > { %17641 = vmatpush3.bf16.msra.mxu0 %v18519_v47  ;;  %v10231_v47 = vld [vmem:[#allocation3 + $0x30] sm:$0xe]  ;;  %17679 = vmatpush3.bf16.msra.mxu1 %v18530_v61 }
 0x4bf   : > { %17650 = vmatprep.subr.bf16.mxu0 %v18520_v10  ;;  %v15877_v52 = vrot.slane %v10231_v47, 9  ;;  %17680 = vmatprep.subr.bf16.mxu1 %v19203_v25 }
 0x4c1   : > { %17643 = vmatmul.mubr.bf16.vlgmr.msra.gmra.mrb[16].mxu0 %v15862_v56  ;;  %v10270_v2 = vsel %vm20076_vm13, %v15877_v52, %v10269_v28  ;;  %v22186_v56 = vld [vmem:[%s22641_s4] ss:$0 sm:$0xff] }
 0x4c2   : > { %17646 = vmatprep.mubr.bf16.mxu0 %v15863_v35  ;;  %17651 = vmatpush3.bf16.msra.mxu0 %v18520_v10  ;;  %v15883_v51 = vcombine.low %v10270_v2, %v10274_v41  ;;  %v15879_v10 = vrot.slane %v10233_v19, 9 }
 0x4c3   : > { %17652 = vmatprep.subr.bf16.mxu0 %v18521_v58  ;;  %17681 = vmatpush3.bf16.msra.mxu1 %v18531_v32 }
 0x4c4   : > { %v10278_v14 = vsel %vm20076_vm13, %v15879_v10, %v10277_v24  ;;  %17682 = vmatprep.subr.bf16.mxu1 %v19203_v25  ;;  %vm10957_vm13 = vmor %vm10955_vm9, %vm10956_vm10 }
 0x4c5   : > { %v15884_v42 = vcombine.low %v10278_v14, %v10282_v13 }
 0x4c6   : > { %17653 = vmatpush3.bf16.msra.mxu0 %v18521_v58 }
 0x4c7   : > { %17654 = vmatprep.subr.bf16.mxu0 %v18522_v33  ;;  %17683 = vmatpush3.bf16.msra.mxu1 %v18532_v26 }
 0x4c8   : > { %17684 = vmatprep.subr.bf16.mxu1 %v19203_v25 }
 0x4c9   : > { %17647 = vmatmul.mubr.bf16.gmra.mrb[20].mxu0 %v15864_v12 }
 0x4ca   : > { %17655 = vmatpush3.bf16.msra.mxu0 %v18522_v33  ;;  %17666 = vmatprep.mubr.bf16.mxu0 %v15881_v1 }
 0x4cb   : > { %17656 = vmatprep.subr.bf16.mxu0 %v18523_v17  ;;  %17685 = vmatpush3.bf16.msra.mxu1 %v18533_v23 }
 0x4cc   : > { %17686 = vmatprep.subr.bf16.mxu1 %v19203_v25 }
 0x4ce   : > { %17657 = vmatpush3.bf16.msra.mxu0 %v18523_v17 }
 0x4cf   : > { %17658 = vmatprep.subr.bf16.mxu0 %v18524_v36  ;;  %17687 = vmatpush3.bf16.msra.mxu1 %v18534_v15 }
 0x4d0   : > { %17688 = vmatprep.subr.bf16.mxu1 %v19203_v25 }
 0x4d2   : > { %17659 = vmatpush3.bf16.msra.mxu0 %v18524_v36 }
 0x4d3   : > { %17660 = vmatprep.subr.bf16.mxu0 %v18525_v45  ;;  %17689 = vmatpush3.bf16.msra.mxu1 %v18535_v40 }
 0x4d4   : > { %17694 = vmatprep.subr.bf16.mxu1 %v19203_v25 }
 0x4d6   : > { %17661 = vmatpush3.bf16.msra.mxu0 %v18525_v45 }
 0x4d7   : > { %17662 = vmatprep.subr.bf16.mxu0 %v18526_v16 }
 0x4da   : > { %17663 = vmatpush3.bf16.msra.mxu0 %v18526_v16 }
 0x4db   : > { %17664 = vmatprep.subr.bf16.mxu0 %v18527_v6 }
 0x4de   : > { %17665 = vmatpush3.bf16.msra.mxu0 %v18527_v6 }
 0x4e1   : > { %17667 = vmatmul.mubr.bf16.vlgmr.msra.gmra.mrb[16].mxu0 %v15882_v44 }
 0x4e2   : > { %17670 = vmatprep.mubr.bf16.mxu0 %v15883_v51 }
 0x4e9   : > { %17671 = vmatmul.mubr.bf16.gmra.mrb[20].mxu0 %v15884_v42 }
 0x4ea   : > { %12678 = vmatprep.mubr.bf16.mxu0 %v22795_v22 }
 0x5b4   : > { %v17668_v57 = vpop.f32.mrb[16].mxu0 }
 0x5b5   : > { %v10445_v58 = vadd.f32 %v17668_v57, %v22186_v56  ;;  %v10398_v35 = vpop.f32.mrb[17].mxu0 }
 0x5b6   : > { %v10443_v3 = vadd.f32 %v22186_v56, %v10398_v35  ;;  %v17669_v38 = vpop.f32.mrb[18].mxu0 }
 0x5b7   : > { %v10453_v43 = vmax.f32 %v10445_v58, 0.0  ;;  %v10446_v8 = vadd.f32 %v17669_v38, %v22186_v56  ;;  %v10401_v0 = vpop.f32.mrb[19].mxu0 }
 0x5b8   : > { %v10451_v63 = vmax.f32 %v10443_v3, 0.0  ;;  %v10444_v33 = vadd.f32 %v22186_v56, %v10401_v0 }
 0x5b9   : > { %v10501_v49 = vcombine.high %v10453_v43, %v10453_v43  ;;  %v10508_v62 = vrot.slane %v10453_v43, %v21445_v27  ;;  %v10454_v54 = vmax.f32 %v10446_v8, 0.0 }
 0x5ba   : > { %v10467_v11 = vcombine.high %v10451_v63, %v10451_v63  ;;  %v10474_v29 = vrot.slane %v10451_v63, %v21445_v27  ;;  %v10452_v12 = vmax.f32 %v10444_v33, 0.0 }
 0x5bb   : > { %v10515_v17 = vrot.slane %v10501_v49, %v21445_v27  ;;  %v10516_v1 = vcombine.high %v10508_v62, %v10508_v62  ;;  %v10671_v36 = vsel %vm4215_vm14, %v10508_v62, -inf  ;;  %v10518_v45 = vcombine.high %v10454_v54, %v10454_v54 }
 0x5bc   : > { %v10481_v16 = vrot.slane %v10467_v11, %v21445_v27  ;;  %v10482_v18 = vcombine.high %v10474_v29, %v10474_v29  ;;  %v10635_v50 = vsel %vm4215_vm14, %v10474_v29, -inf  ;;  %v10525_v6 = vrot.slane %v10454_v54, %v21445_v27  ;;  %v17672_v46 = vpop.f32.mrb[20].mxu0 }
 0x5bd   : > { %v10517_v34 = vcombine.high %v10515_v17, %v10515_v17  ;;  %v10680_v47 = vsel %vm4215_vm14, %v10516_v1, -inf  ;;  %v10689_v20 = vsel %vm4215_vm14, %v10515_v17, -inf  ;;  %v10532_v39 = vrot.slane %v10518_v45, %v21445_v27  ;;  %v22206_v7 = vpop.f32.mrb[21].mxu0 }
 0x5be   : > { %v10483_v52 = vcombine.high %v10481_v16, %v10481_v16  ;;  %v10644_v21 = vsel %vm4215_vm14, %v10482_v18, -inf  ;;  %v10653_v48 = vsel %vm4215_vm14, %v10481_v16, -inf  ;;  %v10533_v31 = vcombine.high %v10525_v6, %v10525_v6  ;;  %v22210_v28 = vpop.f32.mrb[22].mxu0 }
 0x5bf   : > { %v10698_v41 = vsel %vm4215_vm14, %v10517_v34, -inf  ;;  %v10534_v19 = vcombine.high %v10532_v39, %v10532_v39  ;;  %v10672_v55 = vsel %vm4215_vm14, %v10525_v6, -inf  ;;  %v10690_v59 = vsel %vm4215_vm14, %v10532_v39, -inf  ;;  %v22215_v44 = vpop.f32.mrb[23].mxu0 }
 0x5c0   : > { %v10662_v2 = vsel %vm4215_vm14, %v10483_v52, -inf  ;;  %v10673_v51 = vmax.f32 %v10671_v36, %v10672_v55  ;;  %v10681_v10 = vsel %vm4215_vm14, %v10533_v31, -inf  ;;  %v10691_v9 = vmax.f32 %v10689_v20, %v10690_v59 }
 0x5c1   : > { %v10682_v60 = vmax.f32 %v10680_v47, %v10681_v10  ;;  %v10699_v24 = vsel %vm4215_vm14, %v10534_v19, -inf  ;;  %v10484_v14 = vcombine.high %v10452_v12, %v10452_v12  ;;  %v10491_v13 = vrot.slane %v10452_v12, %v21445_v27 }
 0x5c2   : > { %v10674_v42 = vrot.slane %v10673_v51, 4  ;;  %v10692_v53 = vrot.slane %v10691_v9, 4  ;;  %v10700_v5 = vmax.f32 %v10698_v41, %v10699_v24  ;;  %v22222_v61 = vadd.f32 %v17672_v46, %v22186_v56 }
 0x5c3   : > { %v10683_v32 = vrot.slane %v10682_v60, 4  ;;  %v10498_v26 = vrot.slane %v10484_v14, %v21445_v27  ;;  %v10499_v23 = vcombine.high %v10491_v13, %v10491_v13  ;;  %v10636_v15 = vsel %vm4215_vm14, %v10491_v13, -inf }
 0x5c4   : > { %v10675_v40 = vmax.f32 %v10673_v51, %v10674_v42  ;;  %v10693_v57 = vmax.f32 %v10691_v9, %v10692_v53  ;;  %v10701_v58 = vrot.slane %v10700_v5, 4  ;;  %v10637_v35 = vmax.f32 %v10635_v50, %v10636_v15 }
 0x5c5   : > { %v10684_v3 = vmax.f32 %v10682_v60, %v10683_v32  ;;  %v10500_v38 = vcombine.high %v10498_v26, %v10498_v26  ;;  %v10645_v43 = vsel %vm4215_vm14, %v10499_v23, -inf  ;;  %v10654_v8 = vsel %vm4215_vm14, %v10498_v26, -inf }
 0x5c6   : > { %v10676_v0 = vrot.slane %v10675_v40, 2  ;;  %v10694_v63 = vrot.slane %v10693_v57, 2  ;;  %v10702_v33 = vmax.f32 %v10700_v5, %v10701_v58  ;;  %v10638_v49 = vrot.slane %v10637_v35, 4 }
 0x5c7   : > { %v10685_v62 = vrot.slane %v10684_v3, 2  ;;  %v10646_v54 = vmax.f32 %v10644_v21, %v10645_v43  ;;  %v10655_v11 = vmax.f32 %v10653_v48, %v10654_v8  ;;  %v10663_v29 = vsel %vm4215_vm14, %v10500_v38, -inf }
 0x5c8   : > { %v10677_v12 = vmax.f32 %v10675_v40, %v10676_v0  ;;  %v10695_v17 = vmax.f32 %v10693_v57, %v10694_v63  ;;  %v10703_v1 = vrot.slane %v10702_v33, 2  ;;  %v10639_v36 = vmax.f32 %v10637_v35, %v10638_v49 }
 0x5c9   : > { %v10686_v45 = vmax.f32 %v10684_v3, %v10685_v62  ;;  %v10647_v16 = vrot.slane %v10646_v54, 4  ;;  %v10656_v18 = vrot.slane %v10655_v11, 4  ;;  %v10664_v50 = vmax.f32 %v10662_v2, %v10663_v29 }
 0x5ca   : > { %v10678_v6 = vrot.slane %v10677_v12, 1  ;;  %v10696_v46 = vrot.slane %v10695_v17, 1  ;;  %v10704_v34 = vmax.f32 %v10702_v33, %v10703_v1  ;;  %v10640_v47 = vrot.slane %v10639_v36, 2 }
 0x5cb   : > { %v10687_v20 = vrot.slane %v10686_v45, 1  ;;  %v10648_v39 = vmax.f32 %v10646_v54, %v10647_v16  ;;  %v10657_v52 = vmax.f32 %v10655_v11, %v10656_v18  ;;  %v10665_v21 = vrot.slane %v10664_v50, 4 }
 0x5cc   : > { %v10679_v48 = vmax.f32 %v10677_v12, %v10678_v6  ;;  %v10697_v31 = vmax.f32 %v10695_v17, %v10696_v46  ;;  %v10705_v41 = vrot.slane %v10704_v34, 1  ;;  %v10641_v19 = vmax.f32 %v10639_v36, %v10640_v47 }
 0x5cd   : > { %v10688_v55 = vmax.f32 %v10686_v45, %v10687_v20  ;;  %v10649_v59 = vrot.slane %v10648_v39, 2  ;;  %v10658_v51 = vrot.slane %v10657_v52, 2  ;;  %v10666_v10 = vmax.f32 %v10664_v50, %v10665_v21 }
 0x5ce   : > { %v10706_v9 = vmax.f32 %v10704_v34, %v10705_v41  ;;  %v16371_v60 = vpack.c.bf16 %v10679_v48, %v10679_v48  ;;  %v16373_v2 = vpack.c.bf16 %v10697_v31, %v10697_v31  ;;  %v10642_v24 = vrot.slane %v10641_v19, 1 }
 0x5cf   : > { %v16372_v14 = vpack.c.bf16 %v10688_v55, %v10688_v55  ;;  %v10650_v13 = vmax.f32 %v10648_v39, %v10649_v59  ;;  %v10659_v42 = vmax.f32 %v10657_v52, %v10658_v51  ;;  %v10667_v53 = vrot.slane %v10666_v10, 2 }
 0x5d0   : > { %v16374_v5 = vpack.c.bf16 %v10706_v9, %v10706_v9  ;;  %v10847_v32 = vunpack.c.l.b16 %v16371_v60  ;;  %v10849_v26 = vunpack.c.l.b16 %v16373_v2  ;;  %v10643_v23 = vmax.f32 %v10641_v19, %v10642_v24  ;;  %v10882_v9 = vld [vmem:[#allocation4 + $0x4] sm:$0x7] }
 0x5d1   : > { %v10848_v15 = vunpack.c.l.b16 %v16372_v14  ;;  %v10651_v40 = vrot.slane %v10650_v13, 1  ;;  %v10660_v57 = vrot.slane %v10659_v42, 1  ;;  %v10668_v58 = vmax.f32 %v10666_v10, %v10667_v53 }
 0x5d2   : > { %v10850_v35 = vunpack.c.l.b16 %v16374_v5  ;;  %v16367_v3 = vpack.c.bf16 %v10643_v23, %v10643_v23  ;;  %v10457_v38 = vmax.f32 %v22222_v61, 0.0  ;;  %v10447_v43 = vadd.f32 %v22186_v56, %v22206_v7  ;;  %v10885_v7 = vld [vmem:[#allocation4 + $0x8] sm:$0x7] }
 0x5d3   : > { %v10862_v8 = vsel %vm4664_vm15, %v10848_v15, %v10847_v32  ;;  %v10652_v0 = vmax.f32 %v10650_v13, %v10651_v40  ;;  %v10661_v63 = vmax.f32 %v10659_v42, %v10660_v57  ;;  %v10669_v33 = vrot.slane %v10668_v58, 1 }
 0x5d4   : > { %v10863_v49 = vsel %vm4666_vm0, %v10849_v26, %v10862_v8  ;;  %v10569_v62 = vcombine.high %v10457_v38, %v10457_v38  ;;  %v10576_v54 = vrot.slane %v10457_v38, %v21445_v27  ;;  %v10963_v11 = vshrl.u32 %v22193_v30, 16 }
 0x5d5   : > { %v10864_v29 = vsel %vm4668_vm1, %v10850_v35, %v10863_v49  ;;  %v10670_v12 = vmax.f32 %v10668_v58, %v10669_v33  ;;  %v16368_v17 = vpack.c.bf16 %v10652_v0, %v10652_v0  ;;  %v16369_v1 = vpack.c.bf16 %v10661_v63, %v10661_v63 }
 0x5d6   : > { %v10872_v36 = vpack.c.b16 %v10864_v29, %v10864_v29  ;;  %v10843_v45 = vunpack.c.l.b16 %v16367_v3  ;;  %v10583_v16 = vrot.slane %v10569_v62, %v21445_v27  ;;  %v10966_v18 = vshll.u32 %v22193_v30, 16  ;;  %v18555_v30 = vld [vmem:[#allocation8 + $0xc8] sm:$0xff]  }
 0x5d7   : > { %v16370_v50 = vpack.c.bf16 %v10670_v12, %v10670_v12  ;;  %v10844_v6 = vunpack.c.l.b16 %v16368_v17  ;;  %v10845_v46 = vunpack.c.l.b16 %v16369_v1  ;;  %v10455_v34 = vmax.f32 %v10447_v43, 0.0 }
 0x5d8   : > { %v10886_v47 = vsel %vm22239_vm8, %v10872_v36, %v10885_v7  ;;  %v10584_v20 = vcombine.high %v10576_v54, %v10576_v54  ;;  %v10585_v39 = vcombine.high %v10583_v16, %v10583_v16  ;;  %v22247_v52 = vrot.slane %v10963_v11, 6 }
 0x5d9   : > { %10887 = vst [vmem:[#allocation4 + $0x8] sm:$0x7] %v10886_v47  ;;  %v10846_v21 = vunpack.c.l.b16 %v16370_v50  ;;  %v10859_v48 = vsel %vm4664_vm15, %v10844_v6, %v10843_v45  ;;  %v10535_v31 = vcombine.high %v10455_v34, %v10455_v34  ;;  %v10542_v41 = vrot.slane %v10455_v34, %v21445_v27 }
 0x5da   : > { %v10860_v19 = vsel %vm4666_vm0, %v10845_v46, %v10859_v48  ;;  %v10450_v55 = vadd.f32 %v22210_v28, %v22186_v56  ;;  %v10448_v59 = vadd.f32 %v22186_v56, %v22215_v44  ;;  %v22256_v51 = vrot.slane %v10966_v18, 7 }
 0x5db   : > { %v10861_v10 = vsel %vm4668_vm1, %v10846_v21, %v10860_v19  ;;  %v10743_v60 = vsel %vm4215_vm14, %v10576_v54, -inf  ;;  %v10549_v2 = vrot.slane %v10535_v31, %v21445_v27  ;;  %v10550_v24 = vcombine.high %v10542_v41, %v10542_v41 }
 0x5dc   : > { %v10871_v14 = vpack.c.b16 %v10861_v10, %v10861_v10  ;;  %v10752_v13 = vsel %vm4215_vm14, %v10584_v20, -inf  ;;  %v10458_v42 = vmax.f32 %v10450_v55, 0.0  ;;  %v10456_v53 = vmax.f32 %v10448_v59, 0.0 }
 0x5dd   : > { %v10761_v28 = vsel %vm4215_vm14, %v10583_v16, -inf  ;;  %v10770_v5 = vsel %vm4215_vm14, %v10585_v39, -inf  ;;  %v10551_v56 = vcombine.high %v10549_v2, %v10549_v2  ;;  %v10707_v44 = vsel %vm4215_vm14, %v10542_v41, -inf }
 0x5de   : > { %v10883_v32 = vsel %vm22239_vm8, %v10871_v14, %v10882_v9  ;;  %v10586_v26 = vcombine.high %v10458_v42, %v10458_v42  ;;  %v10593_v23 = vrot.slane %v10458_v42, %v21445_v27  ;;  %v10552_v15 = vcombine.high %v10456_v53, %v10456_v53 }
 0x5df   : > { %10884 = vst [vmem:[#allocation4 + $0x4] sm:$0x7] %v10883_v32  ;;  %v10716_v40 = vsel %vm4215_vm14, %v10550_v24, -inf  ;;  %v10725_v57 = vsel %vm4215_vm14, %v10549_v2, -inf  ;;  %v10734_v58 = vsel %vm4215_vm14, %v10551_v56, -inf  ;;  %v10559_v35 = vrot.slane %v10456_v53, %v21445_v27 }
 0x5e0   : > { %v10600_v3 = vrot.slane %v10586_v26, %v21445_v27  ;;  %v10601_v38 = vcombine.high %v10593_v23, %v10593_v23  ;;  %v10744_v43 = vsel %vm4215_vm14, %v10593_v23, -inf  ;;  %v10566_v8 = vrot.slane %v10552_v15, %v21445_v27  ;;  %v22275_v0 = vld.sshfl [vmem:[#allocation4 + $0x8] sm:$0x13 pattern:$0x76325410] }
 0x5e1   : > { %v10745_v63 = vmax.f32 %v10743_v60, %v10744_v43  ;;  %v10567_v33 = vcombine.high %v10559_v35, %v10559_v35  ;;  %v10708_v49 = vsel %vm4215_vm14, %v10559_v35, -inf  ;;  %v10946_v62 = vcombine.high %v22275_v0, %v22275_v0 }
 0x5e2   : > { %v10602_v54 = vcombine.high %v10600_v3, %v10600_v3  ;;  %v10753_v11 = vsel %vm4215_vm14, %v10601_v38, -inf  ;;  %v10762_v29 = vsel %vm4215_vm14, %v10600_v3, -inf  ;;  %v10568_v7 = vcombine.high %v10566_v8, %v10566_v8 }
 0x5e3   : > { %v10746_v12 = vrot.slane %v10745_v63, 4  ;;  %v10754_v17 = vmax.f32 %v10752_v13, %v10753_v11  ;;  %v10763_v1 = vmax.f32 %v10761_v28, %v10762_v29  ;;  %v10709_v36 = vmax.f32 %v10707_v44, %v10708_v49 }
 0x5e4   : > { %v10771_v45 = vsel %vm4215_vm14, %v10602_v54, -inf  ;;  %v10717_v16 = vsel %vm4215_vm14, %v10567_v33, -inf  ;;  %v10726_v18 = vsel %vm4215_vm14, %v10566_v8, -inf  ;;  %v10735_v50 = vsel %vm4215_vm14, %v10568_v7, -inf  ;;  %vm10959_vm14 = vmor %vm10957_vm13, %vm10958_vm11 }
 0x5e5   : > { %v10747_v6 = vmax.f32 %v10745_v63, %v10746_v12  ;;  %v10755_v46 = vrot.slane %v10754_v17, 4  ;;  %v10764_v34 = vrot.slane %v10763_v1, 4  ;;  %v10772_v47 = vmax.f32 %v10770_v5, %v10771_v45  ;;  %vm22303_vm4 = vmor %vm10959_vm14, %vm10960_vm12 }
 0x5e6   : > { %v10710_v20 = vrot.slane %v10709_v36, 4  ;;  %v10718_v39 = vmax.f32 %v10716_v40, %v10717_v16  ;;  %v10727_v21 = vmax.f32 %v10725_v57, %v10726_v18  ;;  %v10736_v48 = vmax.f32 %v10734_v58, %v10735_v50  ;;  %v15911_v7 = vld.sshfl [vmem:[#allocation4 + $0x4] sm:$0x13 pattern:$0x76325410] }
 0x5e7   : > { %v10748_v31 = vrot.slane %v10747_v6, 2  ;;  %v10756_v41 = vmax.f32 %v10754_v17, %v10755_v46  ;;  %v10765_v19 = vmax.f32 %v10763_v1, %v10764_v34  ;;  %v10773_v55 = vrot.slane %v10772_v47, 4 }
 0x5e8   : > { %v10711_v59 = vmax.f32 %v10709_v36, %v10710_v20  ;;  %v10719_v10 = vrot.slane %v10718_v39, 4  ;;  %v10728_v9 = vrot.slane %v10727_v21, 4  ;;  %v10737_v60 = vrot.slane %v10736_v48, 4 }
 0x5e9   : > { %v10749_v2 = vmax.f32 %v10747_v6, %v10748_v31  ;;  %v10757_v24 = vrot.slane %v10756_v41, 2  ;;  %v10766_v14 = vrot.slane %v10765_v19, 2  ;;  %v10774_v13 = vmax.f32 %v10772_v47, %v10773_v55 }
 0x5ea   : > { %v10712_v42 = vrot.slane %v10711_v59, 2  ;;  %v10720_v53 = vmax.f32 %v10718_v39, %v10719_v10  ;;  %v10729_v28 = vmax.f32 %v10727_v21, %v10728_v9  ;;  %v10738_v5 = vmax.f32 %v10736_v48, %v10737_v60 }
 0x5eb   : > { %v10750_v56 = vrot.slane %v10749_v2, 1  ;;  %v10758_v44 = vmax.f32 %v10756_v41, %v10757_v24  ;;  %v10767_v32 = vmax.f32 %v10765_v19, %v10766_v14  ;;  %v10775_v26 = vrot.slane %v10774_v13, 2 }
 0x5ec   : > { %v10713_v23 = vmax.f32 %v10711_v59, %v10712_v42  ;;  %v10721_v15 = vrot.slane %v10720_v53, 2  ;;  %v10730_v40 = vrot.slane %v10729_v28, 2  ;;  %v10739_v57 = vrot.slane %v10738_v5, 2 }
 0x5ed   : > { %v10751_v58 = vmax.f32 %v10749_v2, %v10750_v56  ;;  %v10759_v35 = vrot.slane %v10758_v44, 1  ;;  %v10768_v3 = vrot.slane %v10767_v32, 1  ;;  %v10776_v38 = vmax.f32 %v10774_v13, %v10775_v26 }
 0x5ee   : > { %v10714_v43 = vrot.slane %v10713_v23, 1  ;;  %v10722_v8 = vmax.f32 %v10720_v53, %v10721_v15  ;;  %v10731_v63 = vmax.f32 %v10729_v28, %v10730_v40  ;;  %v10740_v33 = vmax.f32 %v10738_v5, %v10739_v57  ;;  %v10891_v53 = vld [vmem:[#allocation4 + $0x10] sm:$0x7] }
 0x5ef   : > { %v10760_v49 = vmax.f32 %v10758_v44, %v10759_v35  ;;  %v10769_v54 = vmax.f32 %v10767_v32, %v10768_v3  ;;  %v10777_v11 = vrot.slane %v10776_v38, 1  ;;  %v16379_v29 = vpack.c.bf16 %v10751_v58, %v10751_v58  ;;  %v15932_v40 = vld.sshfl [vmem:[#allocation4 + $0x8] sm:$0x12 pattern:$0x76325410] }
 0x5f0   : > { %v10715_v12 = vmax.f32 %v10713_v23, %v10714_v43  ;;  %v10723_v17 = vrot.slane %v10722_v8, 1  ;;  %v10732_v1 = vrot.slane %v10731_v63, 1  ;;  %v10741_v36 = vrot.slane %v10740_v33, 1 }
 0x5f1   : > { %v10778_v45 = vmax.f32 %v10776_v38, %v10777_v11  ;;  %v16380_v16 = vpack.c.bf16 %v10760_v49, %v10760_v49  ;;  %v16381_v18 = vpack.c.bf16 %v10769_v54, %v10769_v54  ;;  %v10855_v50 = vunpack.c.l.b16 %v16379_v29  ;;  %v15931_v38 = vld.sshfl [vmem:[#allocation4 + $0x4] sm:$0x12 pattern:$0x76325410] }
 0x5f2   : > { %v10724_v6 = vmax.f32 %v10722_v8, %v10723_v17  ;;  %v10733_v46 = vmax.f32 %v10731_v63, %v10732_v1  ;;  %v10742_v34 = vmax.f32 %v10740_v33, %v10741_v36  ;;  %v16375_v47 = vpack.c.bf16 %v10715_v12, %v10715_v12  ;;  %v10888_v63 = vld [vmem:[#allocation4 + $0xc] sm:$0x7] }
 0x5f3   : > { %v16382_v20 = vpack.c.bf16 %v10778_v45, %v10778_v45  ;;  %v10856_v39 = vunpack.c.l.b16 %v16380_v16  ;;  %v10857_v21 = vunpack.c.l.b16 %v16381_v18  ;;  %v10938_v48 = vcombine.high %v15911_v7, %v15911_v7 }
 0x5f4   : > { %v16376_v31 = vpack.c.bf16 %v10724_v6, %v10724_v6  ;;  %v16377_v41 = vpack.c.bf16 %v10733_v46, %v10733_v46  ;;  %v16378_v19 = vpack.c.bf16 %v10742_v34, %v10742_v34  ;;  %v10851_v55 = vunpack.c.l.b16 %v16375_v47 }
 0x5f5   : > { %v10858_v59 = vunpack.c.l.b16 %v16382_v20  ;;  %v10868_v10 = vsel %vm4664_vm15, %v10856_v39, %v10855_v50  ;;  %v10977_v9 = vshrl.u32 %v15911_v7, 16  ;;  %v10980_v60 = vshll.u32 %v15911_v7, 16  ;;  %v15993_v39 = vld.sshfl [vmem:[#allocation4 + $0x14] sm:$0x13 pattern:$0x76325410] }
 0x5f6   : > { %v10869_v2 = vsel %vm4666_vm0, %v10857_v21, %v10868_v10  ;;  %v10852_v24 = vunpack.c.l.b16 %v16376_v31  ;;  %v10853_v14 = vunpack.c.l.b16 %v16377_v41  ;;  %v10854_v13 = vunpack.c.l.b16 %v16378_v19  ;;  %v16005_v10 = vld.sshfl [vmem:[#allocation4 + $0x14] sm:$0x12 pattern:$0x76325410] }
 0x5f7   : > { %v10870_v42 = vsel %vm4668_vm1, %v10858_v59, %v10869_v2  ;;  %v10979_v28 = vrot.slane %v10977_v9, 6  ;;  %v10982_v5 = vrot.slane %v10980_v60, 7  ;;  %v10986_v56 = vshll.u32 %v10938_v48, 16 }
 0x5f8   : > { %v10874_v32 = vpack.c.b16 %v10870_v42, %v10870_v42  ;;  %v10865_v26 = vsel %vm4664_vm15, %v10852_v24, %v10851_v55  ;;  %v10991_v23 = vshrl.u32 %v22275_v0, 16  ;;  %v10994_v15 = vshll.u32 %v22275_v0, 16  ;;  %vm22328_vm15 = vmor %vm11296_vm6, %vm4672_vm3 }
 0x5f9   : > { %v10866_v57 = vsel %vm4666_vm0, %v10853_v14, %v10865_v26  ;;  %v10983_v35 = vor.u32 %v10982_v5, %v10979_v28  ;;  %v11000_v3 = vshll.u32 %v10946_v62, 16  ;;  %v10972_v0 = vshll.u32 %v10930_v37, 16 }
 0x5fa   : > { %v10892_v43 = vsel %vm22239_vm8, %v10874_v32, %v10891_v53  ;;  %v10867_v8 = vsel %vm4668_vm1, %v10854_v13, %v10866_v57  ;;  %v10993_v33 = vrot.slane %v10991_v23, 6  ;;  %v10996_v49 = vrot.slane %v10994_v15, 7 }
 0x5fb   : > { %10893 = vst [vmem:[#allocation4 + $0x10] sm:$0x7] %v10892_v43  ;;  %v10873_v54 = vpack.c.b16 %v10867_v8, %v10867_v8  ;;  %v10984_v62 = vrot.slane %v10983_v35, 2  ;;  %v10988_v11 = vrot.slane %v10986_v56, 7  ;;  %v10969_v29 = vor.u32 %v22256_v51, %v22247_v52 }
 0x5fc   : > { %v10997_v7 = vor.u32 %v10996_v49, %v10993_v33  ;;  %v11276_v12 = vcombine.high %v15931_v38, %v15931_v38  ;;  %v11284_v17 = vcombine.high %v15932_v40, %v15932_v40  ;;  %v11002_v45 = vrot.slane %v11000_v3, 7 }
 0x5fd   : > { %v10889_v1 = vsel %vm22239_vm8, %v10873_v54, %v10888_v63  ;;  %v22325_v36 = vsel %vm22303_vm4, %v10984_v62, %v10988_v11  ;;  %v15935_v37 = vrot.slane %v15931_v38, 9  ;;  %v15936_v51 = vrot.slane %v15932_v40, 9 }
 0x5fe   : > { %10890 = vst [vmem:[#allocation4 + $0xc] sm:$0x7] %v10889_v1  ;;  %v10998_v16 = vrot.slane %v10997_v7, 2  ;;  %v11305_v52 = vrot.slane %v11276_v12, 7  ;;  %v11309_v18 = vrot.slane %v11284_v17, 7  ;;  %v10974_v50 = vrot.slane %v10972_v0, 7 }
 0x5ff   : > { %v10970_v6 = vrot.slane %v10969_v29, 2  ;;  %v12197_v19 = vshrl.u32 %v15993_v39, 16  ;;  %v12153_v59 = vcombine.high %v15993_v39, %v15993_v39  ;;  %v12200_v26 = vshll.u32 %v15993_v39, 16 }
 0x600   : > { %v22334_v61 = vsel %vm22303_vm4, %v10998_v16, %v11002_v45  ;;  %v22338_v46 = vsel %vm22328_vm15, %v15935_v37, %v11305_v52  ;;  %v22342_v34 = vsel %vm22328_vm15, %v15936_v51, %v11309_v18  ;;  %v12375_v35 = vcombine.high %v16005_v10, %v16005_v10 }
 0x601   : > { %v11688_v47 = vcombine.low %v22325_v36, %v22334_v61  ;;  %v11870_v20 = vcombine.low %v22338_v46, %v22342_v34  ;;  %v10975_v48 = vsel %vm22303_vm4, %v10970_v6, %v10974_v50  ;;  %v12206_v23 = vshll.u32 %v12153_v59, 16 }
 0x602   : > { %v15957_v21 = vld.sshfl [vmem:[#allocation4 + $0x10] sm:$0x13 pattern:$0x76325410]  ;;  %v11035_v14 = vcombine.low %v10975_v48, %v22325_v36  ;;  %v12199_v57 = vrot.slane %v12197_v19, 6  ;;  %v12202_v29 = vrot.slane %v12200_v26, 7 }
 0x603   : > { %v11658_v31 = vshrl.u32 %v15957_v21, 16  ;;  %v15969_v41 = vld.sshfl [vmem:[#allocation4 + $0x10] sm:$0x12 pattern:$0x76325410]  ;;  %v11661_v24 = vshll.u32 %v15957_v21, 16  ;;  %v11614_v42 = vcombine.high %v15957_v21, %v15957_v21  ;;  %v22355_v11 = vrot.slane %v11870_v20, %v21445_v27 }
 0x604   : > { %v11836_v56 = vcombine.high %v15969_v41, %v15969_v41  ;;  %v15973_v49 = vrot.slane %v15969_v41, 9  ;;  %v11043_v0 = vrot.slane %v11035_v14, %v21445_v27  ;;  %v12203_v37 = vor.u32 %v12202_v29, %v12199_v57  ;;  %v18536_v48 = vld [vmem:[#allocation8] sm:$0xff]   ;;  %v18549_v57 = vld [vmem:[#allocation8 + $0x98] sm:$0xff]  }
 0x605   : > { %v15913_v55 = vld.sshfl [vmem:[#allocation4 + $0xc] sm:$0x13 pattern:$0x76325410]  ;;  %v11660_v32 = vrot.slane %v11658_v31, 6  ;;  %v11663_v40 = vrot.slane %v11661_v24, 7 }
 0x606   : > { %v10954_v9 = vcombine.high %v15913_v55, %v15913_v55  ;;  %v11005_v60 = vshrl.u32 %v15913_v55, 16  ;;  %v11008_v2 = vshll.u32 %v15913_v55, 16  ;;  %v15933_v13 = vld.sshfl [vmem:[#allocation4 + $0xc] sm:$0x12 pattern:$0x76325410] }
 0x607   : > { %v11292_v44 = vcombine.high %v15933_v13, %v15933_v13  ;;  %v15937_v38 = vrot.slane %v15933_v13, 9  ;;  %v11667_v8 = vshll.u32 %v11614_v42, 16  ;;  %v11664_v33 = vor.u32 %v11663_v40, %v11660_v32  ;;  %v18538_v13 = vld [vmem:[#allocation8 + $0x10] sm:$0xff]   ;;  %v18539_v42 = vld [vmem:[#allocation8 + $0x18] sm:$0xff]   ;;  %v18546_v26 = vld [vmem:[#allocation8 + $0x80] sm:$0xff]  }
 0x608   : > { %v11007_v53 = vrot.slane %v11005_v60, 6  ;;  %v11010_v28 = vrot.slane %v11008_v2, 7  ;;  %v11014_v5 = vshll.u32 %v10954_v9, 16  ;;  %v11851_v54 = vrot.slane %v11836_v56, 7  ;;  %v18537_v60 = vld [vmem:[#allocation8 + $0x8] sm:$0xff]   ;;  %v18543_v32 = vld [vmem:[#allocation8 + $0x38] sm:$0xff]  }
 0x609   : > { %v11313_v43 = vrot.slane %v11292_v44, 7  ;;  %v11665_v12 = vrot.slane %v11664_v33, 2  ;;  %v11669_v17 = vrot.slane %v11667_v8, 7  ;;  %v12208_v16 = vrot.slane %v12206_v23, 7  ;;  %v18548_v40 = vld [vmem:[#allocation8 + $0x90] sm:$0xff]   ;;  %v18554_v29 = vld [vmem:[#allocation8 + $0xc0] sm:$0xff]  }
 0x60a   : > { %v11011_v15 = vor.u32 %v11010_v28, %v11007_v53  ;;  %v11016_v3 = vrot.slane %v11014_v5, 7  ;;  %v11852_v1 = vsel %vm22328_vm15, %v15973_v49, %v11851_v54  ;;  %v16009_v18 = vrot.slane %v16005_v10, 9  ;;  %v18540_v53 = vld [vmem:[#allocation8 + $0x20] sm:$0xff]   ;;  %v18541_v28 = vld [vmem:[#allocation8 + $0x28] sm:$0xff]   ;;  %v18542_v5 = vld [vmem:[#allocation8 + $0x30] sm:$0xff]  }
 0x60b   : > { %v11314_v62 = vsel %vm22328_vm15, %v15937_v38, %v11313_v43  ;;  %v11670_v51 = vsel %vm22303_vm4, %v11665_v12, %v11669_v17  ;;  %v12390_v50 = vrot.slane %v12375_v35, 7  ;;  %v12204_v21 = vrot.slane %v12203_v37, 2  ;;  %v19032_v56 = vld.sshfl [vmem:[#allocation4 + $0x8] sm:$0xf pattern:$0x76325410] }
 0x60c   : > { %v11012_v63 = vrot.slane %v11011_v15, 2  ;;  %v11871_v45 = vcombine.low %v11314_v62, %v11852_v1  ;;  %v11333_v52 = vcombine.low %v22342_v34, %v11314_v62  ;;  %v19033_v44 = vld.sshfl [vmem:[#allocation4] sm:$0xf pattern:$0x76325410]  ;;  %v18552_v33 = vld [vmem:[#allocation8 + $0xb0] sm:$0xff]  }
 0x60d   : > { %v12391_v34 = vsel %vm22328_vm15, %v16009_v18, %v12390_v50  ;;  %v12209_v55 = vsel %vm22303_vm4, %v12204_v21, %v12208_v16  ;;  %v11162_v23 = vcombine.low %v19033_v44, %v19032_v56  ;;  %v18547_v15 = vld [vmem:[#allocation8 + $0x88] sm:$0xff]   ;;  %v18558_v12 = vld [vmem:[#allocation8 + $0xe0] sm:$0xff]   ;;  %v18561_v37 = vld [vmem:[#allocation8 + $0xf8] sm:$0xff]  }
 0x60e   : > { %v11017_v7 = vsel %vm22303_vm4, %v11012_v63, %v11016_v3  ;;  %v22369_v39 = vrot.slane %v11871_v45, %v21445_v27  ;;  %v22385_v59 = vrot.slane %v11333_v52, %v21445_v27  ;;  %v12228_v10 = vcombine.low %v11670_v51, %v12209_v55  ;;  %v15930_v35 = vld.sshfl [vmem:[#allocation4] sm:$0x12 pattern:$0x76325410]  ;;  %v18550_v3 = vld [vmem:[#allocation8 + $0xa0] sm:$0xff]   ;;  %v18566_v18 = vld [vmem:[#allocation8 + $0x110] sm:$0xff]  }
 0x60f   : > { %v11036_v36 = vcombine.low %v22334_v61, %v11017_v7  ;;  %v11689_v20 = vcombine.low %v11017_v7, %v11670_v51  ;;  %v22372_v61 = vrot.slane %v11688_v47, %v21445_v27  ;;  %v12410_v47 = vcombine.low %v11852_v1, %v12391_v34  ;;  %v18551_v43 = vld [vmem:[#allocation8 + $0xa8] sm:$0xff]   ;;  %v18560_v1 = vld [vmem:[#allocation8 + $0xf0] sm:$0xff]   ;;  %v18564_v16 = vld [vmem:[#allocation8 + $0x100] sm:$0xff]  }
 0x610   : > { %v11886_v19 = vcombine.low %v22355_v11, %v22369_v39  ;;  %v22392_v2 = vrot.slane %v12228_v10, %v21445_v27  ;;  %v11268_v38 = vcombine.high %v15930_v35, %v15930_v35  ;;  %v15934_v8 = vrot.slane %v15930_v35, 9  ;;  %v18559_v17 = vld [vmem:[#allocation8 + $0xe8] sm:$0xff]   ;;  %v18567_v50 = vld [vmem:[#allocation8 + $0x118] sm:$0xff]   ;;  %v18574_v10 = vld [vmem:[#allocation8 + $0x150] sm:$0xff]  }
 0x611   : > { %v22366_v6 = vrot.slane %v11036_v36, %v21445_v27  ;;  %v22378_v41 = vrot.slane %v11689_v20, %v21445_v27  ;;  %v22395_v58 = vrot.slane %v12410_v47, %v21445_v27  ;;  %v19034_v36 = vld.sshfl [vmem:[#allocation4 + $0xc] sm:$0xf pattern:$0x76325410]  ;;  %v18565_v51 = vld [vmem:[#allocation8 + $0x108] sm:$0xff]   ;;  %v18568_v20 = vld [vmem:[#allocation8 + $0x120] sm:$0xff]  }
 0x612   : > { %v11301_v63 = vrot.slane %v11268_v38, 7  ;;  %v19035_v45 = vld.sshfl [vmem:[#allocation4 + $0x4] sm:$0xf pattern:$0x76325410]  ;;  %v18571_v34 = vld [vmem:[#allocation8 + $0x138] sm:$0xff]  }
 0x613   : > { %v11051_v31 = vcombine.low %v11043_v0, %v22366_v6  ;;  %v11704_v9 = vcombine.low %v22372_v61, %v22378_v41  ;;  %v12243_v24 = vcombine.low %v22366_v6, %v22392_v2  ;;  %v12425_v14 = vcombine.low %v22385_v59, %v22395_v58  ;;  %v18553_v0 = vld [vmem:[#allocation8 + $0xb8] sm:$0xff]   ;;  %v18569_v21 = vld [vmem:[#allocation8 + $0x128] sm:$0xff]   ;;  %v18578_v41 = vld [vmem:[#allocation8 + $0x170] sm:$0xff]  }
 0x614   : > { %v11302_v49 = vsel %vm22328_vm15, %v15934_v8, %v11301_v63  ;;  %v11482_v52 = vcombine.low %v19035_v45, %v19034_v36  ;;  %v18573_v55 = vld [vmem:[#allocation8 + $0x148] sm:$0xff]   ;;  %v18575_v47 = vld [vmem:[#allocation8 + $0x158] sm:$0xff]   ;;  %v18586_v39 = vld [vmem:[#allocation8 + $0x1b0] sm:$0xff]  }
 0x615   : > { %17691 = vmatmul.mubr.bf16.vlgmr.msra.gmra.mrb[16].mxu1 %v11051_v31  ;;  %v11332_v54 = vcombine.low %v11302_v49, %v22338_v46  ;;  %v18556_v46 = vld [vmem:[#allocation8 + $0xd0] sm:$0xff]   ;;  %v18572_v31 = vld [vmem:[#allocation8 + $0x140] sm:$0xff]   ;;  %v18577_v61 = vld [vmem:[#allocation8 + $0x168] sm:$0xff]  }
 0x616   : > { %17695 = vmatpush3.bf16.msra.mxu1 %v18536_v48  ;;  %17710 = vmatprep.mubr.msk.bf16.mxu1 %vm19204_vm5, %v19203_v25  ;;  %v18570_v48 = vld [vmem:[#allocation8 + $0x130] sm:$0xff]   ;;  %v18585_v11 = vld [vmem:[#allocation8 + $0x1a8] sm:$0xff]   ;;  %v19037_v56 = vld.sshfl [vmem:[#allocation4 + $0x10] sm:$0xf pattern:$0x76325410] }
 0x617   : > { %17696 = vmatprep.subr.bf16.mxu1 %v19203_v25  ;;  %v11340_v62 = vrot.slane %v11332_v54, %v21445_v27  ;;  %v18557_v27 = vld [vmem:[#allocation8 + $0xd8] sm:$0xff]   ;;  %v18595_v35 = vld [vmem:[#allocation8 + $0x1e8] sm:$0xff]   ;;  %v18596_v8 = vld [vmem:[#allocation8 + $0x1f0] sm:$0xff]  }
 0x618   : > { %v18587_v44 = vld [vmem:[#allocation8 + $0x1b8] sm:$0xff]   ;;  %v18598_v49 = vld [vmem:[#allocation8 + $0x200] sm:$0xff]   ;;  %v18599_v54 = vld [vmem:[#allocation8 + $0x208] sm:$0xff]  }
 0x619   : > { %v11348_v7 = vcombine.low %v11340_v62, %v22385_v59  ;;  %v18601_v62 = vld [vmem:[#allocation8 + $0x218] sm:$0xff]   ;;  %v18603_v6 = vld [vmem:[#allocation8 + $0x228] sm:$0xff]  }
 0x61a   : > { %17697 = vmatpush3.bf16.msra.mxu1 %v18537_v60  ;;  %v18576_v60 = vld [vmem:[#allocation8 + $0x160] sm:$0xff]   ;;  %v18614_v59 = vld [vmem:[#allocation10 + $0x14] ss:$8 sps:$4 sm:$0xff]  }
 0x61b   : > { %17698 = vmatprep.subr.bf16.mxu1 %v19203_v25  ;;  %v18617_v58 = vld [vmem:[#allocation10 + $0x94] ss:$8 sps:$4 sm:$0xff]  }
 0x61e   : > { %17699 = vmatpush3.bf16.msra.mxu1 %v18538_v13  ;;  %v18580_v13 = vld [vmem:[#allocation8 + $0x180] sm:$0xff]  }
 0x61f   : > { %17700 = vmatprep.subr.bf16.mxu1 %v19203_v25 }
 0x622   : > { %17701 = vmatpush3.bf16.msra.mxu1 %v18539_v42  ;;  %v18581_v42 = vld [vmem:[#allocation8 + $0x188] sm:$0xff]  }
 0x623   : > { %17702 = vmatprep.subr.bf16.mxu1 %v19203_v25 }
 0x626   : > { %17703 = vmatpush3.bf16.msra.mxu1 %v18540_v53  ;;  %v18582_v53 = vld [vmem:[#allocation8 + $0x190] sm:$0xff]  }
 0x627   : > { %17704 = vmatprep.subr.bf16.mxu1 %v19203_v25 }
 0x62a   : > { %17705 = vmatpush3.bf16.msra.mxu1 %v18541_v28  ;;  %v18583_v28 = vld [vmem:[#allocation8 + $0x198] sm:$0xff]  }
 0x62b   : > { %17706 = vmatprep.subr.bf16.mxu1 %v19203_v25 }
 0x62e   : > { %17707 = vmatpush3.bf16.msra.mxu1 %v18542_v5  ;;  %v18584_v5 = vld [vmem:[#allocation8 + $0x1a0] sm:$0xff]  }
 0x62f   : > { %17708 = vmatprep.subr.bf16.mxu1 %v19203_v25 }
 0x632   : > { %17709 = vmatpush3.bf16.msra.mxu1 %v18543_v32  ;;  %v18590_v32 = vld [vmem:[#allocation8 + $0x1c0] sm:$0xff]  }
 0x633   : > { %17714 = vmatprep.subr.bf16.mxu1 %v19203_v25 }
 0x635   : > { %17711 = vmatmul.mubr.bf16.vlgmr.msra.gmra.mrb[20].mxu1 %v11162_v23  ;;  %v18591_v23 = vld [vmem:[#allocation8 + $0x1c8] sm:$0xff]  }
 0x636   : > { %17715 = vmatpush3.bf16.msra.mxu1 %v18546_v26  ;;  %17730 = vmatprep.mubr.msk.bf16.mxu1 %vm19204_vm5, %v19203_v25 }
 0x637   : > { %17716 = vmatprep.subr.bf16.mxu1 %v19203_v25 }
 0x63a   : > { %17717 = vmatpush3.bf16.msra.mxu1 %v18547_v15  ;;  %v18592_v15 = vld [vmem:[#allocation8 + $0x1d0] sm:$0xff]  }
 0x63b   : > { %17718 = vmatprep.subr.bf16.mxu1 %v19203_v25 }
 0x63e   : > { %17719 = vmatpush3.bf16.msra.mxu1 %v18548_v40  ;;  %v18593_v40 = vld [vmem:[#allocation8 + $0x1d8] sm:$0xff]  }
 0x63f   : > { %17720 = vmatprep.subr.bf16.mxu1 %v19203_v25 }
 0x642   : > { %17721 = vmatpush3.bf16.msra.mxu1 %v18549_v57  ;;  %v18594_v57 = vld [vmem:[#allocation8 + $0x1e0] sm:$0xff]  }
 0x643   : > { %17722 = vmatprep.subr.bf16.mxu1 %v19203_v25 }
 0x646   : > { %17723 = vmatpush3.bf16.msra.mxu1 %v18550_v3 }
 0x647   : > { %17724 = vmatprep.subr.bf16.mxu1 %v19203_v25 }
 0x64a   : > { %17725 = vmatpush3.bf16.msra.mxu1 %v18551_v43 }
 0x64b   : > { %17726 = vmatprep.subr.bf16.mxu1 %v19203_v25 }
 0x64e   : > { %17727 = vmatpush3.bf16.msra.mxu1 %v18552_v33  ;;  %v18597_v33 = vld [vmem:[#allocation8 + $0x1f8] sm:$0xff]  }
 0x64f   : > { %17728 = vmatprep.subr.bf16.mxu1 %v19203_v25 }
 0x652   : > { %17729 = vmatpush3.bf16.msra.mxu1 %v18553_v0  ;;  %v18600_v0 = vld [vmem:[#allocation8 + $0x210] sm:$0xff]  }
 0x653   : > { %17734 = vmatprep.subr.bf16.mxu1 %v19203_v25 }
 0x655   : > { %17731 = vmatmul.mubr.bf16.vlgmr.msra.gmra.mrb[24].mxu1 %v11348_v7 }
 0x656   : > { %17735 = vmatpush3.bf16.msra.mxu1 %v18554_v29  ;;  %17750 = vmatprep.mubr.msk.bf16.mxu1 %vm19204_vm5, %v19203_v25  ;;  %v18602_v29 = vld [vmem:[#allocation8 + $0x220] sm:$0xff]  }
 0x657   : > { %17736 = vmatprep.subr.bf16.mxu1 %v19203_v25 }
 0x65a   : > { %17737 = vmatpush3.bf16.msra.mxu1 %v18555_v30 }
 0x65b   : > { %17738 = vmatprep.subr.bf16.mxu1 %v19203_v25 }
 0x65e   : > { %17739 = vmatpush3.bf16.msra.mxu1 %v18556_v46  ;;  %v18604_v46 = vld [vmem:[#allocation8 + $0x230] sm:$0xff]  }
 0x65f   : > { %17740 = vmatprep.subr.bf16.mxu1 %v19203_v25 }
 0x662   : > { %17741 = vmatpush3.bf16.msra.mxu1 %v18557_v27 }
 0x663   : > { %17742 = vmatprep.subr.bf16.mxu1 %v19203_v25 }
 0x666   : > { %17743 = vmatpush3.bf16.msra.mxu1 %v18558_v12 }
 0x667   : > { %17744 = vmatprep.subr.bf16.mxu1 %v19203_v25 }
 0x66a   : > { %17745 = vmatpush3.bf16.msra.mxu1 %v18559_v17  ;;  %v18605_v17 = vld [vmem:[#allocation8 + $0x238] sm:$0xff]  }
 0x66b   : > { %17746 = vmatprep.subr.bf16.mxu1 %v19203_v25 }
 0x66e   : > { %17747 = vmatpush3.bf16.msra.mxu1 %v18560_v1 }
 0x66f   : > { %17748 = vmatprep.subr.bf16.mxu1 %v19203_v25 }
 0x672   : > { %17749 = vmatpush3.bf16.msra.mxu1 %v18561_v37 }
 0x673   : > { %17754 = vmatprep.subr.bf16.mxu1 %v19203_v25 }
 0x675   : > { %17751 = vmatmul.mubr.bf16.vlgmr.msra.gmra.mrb[28].mxu1 %v11482_v52 }
 0x676   : > { %17755 = vmatpush3.bf16.msra.mxu1 %v18564_v16  ;;  %17770 = vmatprep.mubr.msk.bf16.mxu1 %vm19204_vm5, %v19203_v25 }
 0x677   : > { %17756 = vmatprep.subr.bf16.mxu1 %v19203_v25 }
 0x67a   : > { %17757 = vmatpush3.bf16.msra.mxu1 %v18565_v51 }
 0x67b   : > { %17758 = vmatprep.subr.bf16.mxu1 %v19203_v25 }
 0x67e   : > { %17759 = vmatpush3.bf16.msra.mxu1 %v18566_v18 }
 0x67f   : > { %17760 = vmatprep.subr.bf16.mxu1 %v19203_v25 }
 0x682   : > { %17761 = vmatpush3.bf16.msra.mxu1 %v18567_v50 }
 0x683   : > { %17762 = vmatprep.subr.bf16.mxu1 %v19203_v25 }
 0x686   : > { %17763 = vmatpush3.bf16.msra.mxu1 %v18568_v20 }
 0x687   : > { %17764 = vmatprep.subr.bf16.mxu1 %v19203_v25 }
 0x68a   : > { %17765 = vmatpush3.bf16.msra.mxu1 %v18569_v21 }
 0x68b   : > { %17766 = vmatprep.subr.bf16.mxu1 %v19203_v25 }
 0x68e   : > { %17767 = vmatpush3.bf16.msra.mxu1 %v18570_v48 }
 0x68f   : > { %17768 = vmatprep.subr.bf16.mxu1 %v19203_v25 }
 0x692   : > { %17769 = vmatpush3.bf16.msra.mxu1 %v18571_v34  ;;  %v18608_v34 = vld [vmem:[#allocation10 + $0x4] ss:$8 sps:$4 sm:$0xff]  }
 0x693   : > { %17774 = vmatprep.subr.bf16.mxu1 %v19203_v25 }
 0x695   : > { %17771 = vmatmul.mubr.bf16.vlgmr.msra.gmra.mrb[32].mxu1 %v11704_v9  ;;  %v18579_v9 = vld [vmem:[#allocation8 + $0x178] sm:$0xff]  }
 0x696   : > { %17775 = vmatpush3.bf16.msra.mxu1 %v18572_v31  ;;  %17790 = vmatprep.mubr.msk.bf16.mxu1 %vm19204_vm5, %v19203_v25  ;;  %v18609_v31 = vld [vmem:[#allocation10 + $0x80] ss:$8 sps:$4 sm:$0xff]  }
 0x697   : > { %17776 = vmatprep.subr.bf16.mxu1 %v19203_v25 }
 0x69a   : > { %17777 = vmatpush3.bf16.msra.mxu1 %v18573_v55  ;;  %v18611_v55 = vld [vmem:[#allocation10 + $0x84] ss:$8 sps:$4 sm:$0xff]  }
 0x69b   : > { %17778 = vmatprep.subr.bf16.mxu1 %v19203_v25  ;;  %12646 = vmatprep.subr.bf16.mxu0 %v18611_v55 }
 0x69c   : > { %12647 = vmatpush1.bf16.msra.mxu0 %v18609_v31 }
 0x69d   : > { %12648 = vmatprep.subr.bf16.mxu0 %v18617_v58 }
 0x69e   : > { %17779 = vmatpush3.bf16.msra.mxu1 %v18574_v10  ;;  %v18615_v10 = vld [vmem:[#allocation10 + $0x90] ss:$8 sps:$4 sm:$0xff]  }
 0x69f   : > { %17780 = vmatprep.subr.bf16.mxu1 %v19203_v25 }
 0x6a0   : > { %12649 = vmatpush1.bf16.msra.mxu0 %v18615_v10  ;;  %v18654_v10 = vld [vmem:[#allocation10 + $0x180] ss:$8 sps:$4 sm:$0xff]  }
 0x6a2   : > { %17781 = vmatpush3.bf16.msra.mxu1 %v18575_v47  ;;  %v18620_v47 = vld [vmem:[#allocation10 + $0x24] ss:$8 sps:$4 sm:$0xff]  }
 0x6a3   : > { %17782 = vmatprep.subr.bf16.mxu1 %v19203_v25 }
 0x6a6   : > { %17783 = vmatpush3.bf16.msra.mxu1 %v18576_v60  ;;  %v18623_v60 = vld [vmem:[#allocation10 + $0xa4] ss:$8 sps:$4 sm:$0xff]  }
 0x6a7   : > { %17784 = vmatprep.subr.bf16.mxu1 %v19203_v25  ;;  %12650 = vmatprep.subr.bf16.mxu0 %v18623_v60  ;;  %v18662_v60 = vld [vmem:[#allocation10 + $0x194] ss:$8 sps:$4 sm:$0xff]  }
 0x6aa   : > { %17785 = vmatpush3.bf16.msra.mxu1 %v18577_v61  ;;  %v18618_v61 = vld [vmem:[#allocation10 + $0x20] ss:$8 sps:$4 sm:$0xff]  }
 0x6ab   : > { %17786 = vmatprep.subr.bf16.mxu1 %v19203_v25 }
 0x6ae   : > { %17787 = vmatpush3.bf16.msra.mxu1 %v18578_v41  ;;  %v18621_v41 = vld [vmem:[#allocation10 + $0xa0] ss:$8 sps:$4 sm:$0xff]  }
 0x6af   : > { %17788 = vmatprep.subr.bf16.mxu1 %v19203_v25  ;;  %12651 = vmatpush1.bf16.msra.mxu0 %v18621_v41 }
 0x6b2   : > { %17789 = vmatpush3.bf16.msra.mxu1 %v18579_v9  ;;  %v18626_v9 = vld [vmem:[#allocation10 + $0x34] ss:$8 sps:$4 sm:$0xff]  }
 0x6b3   : > { %17794 = vmatprep.subr.bf16.mxu1 %v19203_v25 }
 0x6b5   : > { %17791 = vmatmul.mubr.bf16.vlgmr.msra.gmra.mrb[36].mxu1 %v11886_v19  ;;  %v19036_v19 = vld.sshfl [vmem:[#allocation4 + $0x8] sm:$0xf pattern:$0x76325410] }
 0x6b6   : > { %17795 = vmatpush3.bf16.msra.mxu1 %v18580_v13  ;;  %17810 = vmatprep.mubr.msk.bf16.mxu1 %vm19204_vm5, %v19203_v25  ;;  %v12021_v26 = vcombine.low %v19036_v19, %v19037_v56  ;;  %v18629_v13 = vld [vmem:[#allocation10 + $0xb4] ss:$8 sps:$4 sm:$0xff]   ;;  %v18636_v56 = vld [vmem:[#allocation10 + $0x50] ss:$8 sps:$4 sm:$0xff]  }
 0x6b7   : > { %17796 = vmatprep.subr.bf16.mxu1 %v19203_v25  ;;  %12652 = vmatprep.subr.bf16.mxu0 %v18629_v13  ;;  %v18638_v19 = vld [vmem:[#allocation10 + $0x54] ss:$8 sps:$4 sm:$0xff]   ;;  %v18660_v13 = vld [vmem:[#allocation10 + $0x190] ss:$8 sps:$4 sm:$0xff]  }
 0x6ba   : > { %17797 = vmatpush3.bf16.msra.mxu1 %v18581_v42  ;;  %v18624_v42 = vld [vmem:[#allocation10 + $0x30] ss:$8 sps:$4 sm:$0xff]  }
 0x6bb   : > { %17798 = vmatprep.subr.bf16.mxu1 %v19203_v25 }
 0x6be   : > { %17799 = vmatpush3.bf16.msra.mxu1 %v18582_v53  ;;  %v18627_v53 = vld [vmem:[#allocation10 + $0xb0] ss:$8 sps:$4 sm:$0xff]  }
 0x6bf   : > { %17800 = vmatprep.subr.bf16.mxu1 %v19203_v25  ;;  %12653 = vmatpush1.bf16.msra.mxu0 %v18627_v53  ;;  %v18663_v53 = vld [vmem:[#allocation10 + $0x110] ss:$8 sps:$4 sm:$0xff]  }
 0x6c2   : > { %17801 = vmatpush3.bf16.msra.mxu1 %v18583_v28  ;;  %v18632_v28 = vld [vmem:[#allocation10 + $0x44] ss:$8 sps:$4 sm:$0xff]  }
 0x6c3   : > { %17802 = vmatprep.subr.bf16.mxu1 %v19203_v25 }
 0x6c6   : > { %17803 = vmatpush3.bf16.msra.mxu1 %v18584_v5  ;;  %v18635_v5 = vld [vmem:[#allocation10 + $0xc4] ss:$8 sps:$4 sm:$0xff]  }
 0x6c7   : > { %17804 = vmatprep.subr.bf16.mxu1 %v19203_v25  ;;  %12654 = vmatprep.subr.bf16.mxu0 %v18635_v5  ;;  %v18666_v5 = vld [vmem:[#allocation10 + $0x1a0] ss:$8 sps:$4 sm:$0xff]  }
 0x6ca   : > { %17805 = vmatpush3.bf16.msra.mxu1 %v18585_v11  ;;  %v18630_v11 = vld [vmem:[#allocation10 + $0x40] ss:$8 sps:$4 sm:$0xff]  }
 0x6cb   : > { %17806 = vmatprep.subr.bf16.mxu1 %v19203_v25 }
 0x6ce   : > { %17807 = vmatpush3.bf16.msra.mxu1 %v18586_v39  ;;  %v18633_v39 = vld [vmem:[#allocation10 + $0xc0] ss:$8 sps:$4 sm:$0xff]  }
 0x6cf   : > { %17808 = vmatprep.subr.bf16.mxu1 %v19203_v25  ;;  %12655 = vmatpush1.bf16.msra.mxu0 %v18633_v39  ;;  %v18669_v39 = vld [vmem:[#allocation10 + $0x120] ss:$8 sps:$4 sm:$0xff]  }
 0x6d2   : > { %17809 = vmatpush3.bf16.msra.mxu1 %v18587_v44 }
 0x6d3   : > { %17814 = vmatprep.subr.bf16.mxu1 %v19203_v25 }
 0x6d5   : > { %17811 = vmatmul.mubr.bf16.vlgmr.msra.gmra.mrb[40].mxu1 %v12021_v26 }
 0x6d6   : > { %17815 = vmatpush3.bf16.msra.mxu1 %v18590_v32  ;;  %17830 = vmatprep.mubr.msk.bf16.mxu1 %vm19204_vm5, %v19203_v25 }
 0x6d7   : > { %17816 = vmatprep.subr.bf16.mxu1 %v19203_v25 }
 0x6da   : > { %17817 = vmatpush3.bf16.msra.mxu1 %v18591_v23 }
 0x6db   : > { %17818 = vmatprep.subr.bf16.mxu1 %v19203_v25 }
 0x6de   : > { %17819 = vmatpush3.bf16.msra.mxu1 %v18592_v15 }
 0x6df   : > { %17820 = vmatprep.subr.bf16.mxu1 %v19203_v25 }
 0x6e2   : > { %17821 = vmatpush3.bf16.msra.mxu1 %v18593_v40 }
 0x6e3   : > { %17822 = vmatprep.subr.bf16.mxu1 %v19203_v25 }
 0x6e6   : > { %17823 = vmatpush3.bf16.msra.mxu1 %v18594_v57  ;;  %v18639_v57 = vld [vmem:[#allocation10 + $0xd0] ss:$8 sps:$4 sm:$0xff]  }
 0x6e7   : > { %17824 = vmatprep.subr.bf16.mxu1 %v19203_v25 }
 0x6e8   : > { %v11135_v3 = vpop.f32.mrb[16].mxu1 }
 0x6e9   : > { %v17692_v38 = vpop.f32.mrb[17].mxu1 }
 0x6ea   : > { %17825 = vmatpush3.bf16.msra.mxu1 %v18595_v35  ;;  %v11138_v43 = vpop.f32.mrb[18].mxu1  ;;  %v18641_v35 = vld [vmem:[#allocation10 + $0xd4] ss:$8 sps:$4 sm:$0xff]   ;;  %v18644_v38 = vld [vmem:[#allocation10 + $0x64] ss:$8 sps:$4 sm:$0xff]  }
 0x6eb   : > { %v17693_v63 = vpop.f32.mrb[19].mxu1  ;;  %17826 = vmatprep.subr.bf16.mxu1 %v19203_v25  ;;  %12656 = vmatprep.subr.bf16.mxu0 %v18641_v35  ;;  %v18684_v35 = vld [vmem:[#allocation10 + $0x1d0] ss:$8 sps:$4 sm:$0xff]  }
 0x6ec   : > { %12657 = vmatpush1.bf16.msra.mxu0 %v18639_v57  ;;  %v18650_v63 = vld [vmem:[#allocation10 + $0x74] ss:$8 sps:$4 sm:$0xff]  }
 0x6ed   : > { %v18689_v57 = vld [vmem:[#allocation10 + $0x154] ss:$8 sps:$4 sm:$0xff]  }
 0x6ee   : > { %17827 = vmatpush3.bf16.msra.mxu1 %v18596_v8  ;;  %v18647_v8 = vld [vmem:[#allocation10 + $0xe4] ss:$8 sps:$4 sm:$0xff]  }
 0x6ef   : > { %17828 = vmatprep.subr.bf16.mxu1 %v19203_v25  ;;  %12658 = vmatprep.subr.bf16.mxu0 %v18647_v8  ;;  %v18690_v8 = vld [vmem:[#allocation10 + $0x1e0] ss:$8 sps:$4 sm:$0xff]  }
 0x6f2   : > { %17829 = vmatpush3.bf16.msra.mxu1 %v18597_v33  ;;  %v18653_v33 = vld [vmem:[#allocation10 + $0xf4] ss:$8 sps:$4 sm:$0xff]  }
 0x6f3   : > { %17834 = vmatprep.subr.bf16.mxu1 %v19203_v25 }
 0x6f5   : > { %17831 = vmatmul.mubr.bf16.vlgmr.msra.gmra.mrb[44].mxu1 %v12243_v24 }
 0x6f6   : > { %17835 = vmatpush3.bf16.msra.mxu1 %v18598_v49  ;;  %17850 = vmatprep.mubr.msk.bf16.mxu1 %vm19204_vm5, %v19203_v25  ;;  %v18648_v49 = vld [vmem:[#allocation10 + $0x70] ss:$8 sps:$4 sm:$0xff]  }
 0x6f7   : > { %17836 = vmatprep.subr.bf16.mxu1 %v19203_v25 }
 0x6fa   : > { %17837 = vmatpush3.bf16.msra.mxu1 %v18599_v54  ;;  %v18651_v54 = vld [vmem:[#allocation10 + $0xf0] ss:$8 sps:$4 sm:$0xff]  }
 0x6fb   : > { %17838 = vmatprep.subr.bf16.mxu1 %v19203_v25 }
 0x6fe   : > { %17839 = vmatpush3.bf16.msra.mxu1 %v18600_v0  ;;  %v18656_v0 = vld [vmem:[#allocation10 + $0x184] ss:$8 sps:$4 sm:$0xff]  }
 0x6ff   : > { %17840 = vmatprep.subr.bf16.mxu1 %v19203_v25 }
 0x702   : > { %17841 = vmatpush3.bf16.msra.mxu1 %v18601_v62  ;;  %v18659_v62 = vld [vmem:[#allocation10 + $0x104] ss:$8 sps:$4 sm:$0xff]  }
 0x703   : > { %17842 = vmatprep.subr.bf16.mxu1 %v19203_v25 }
 0x706   : > { %17843 = vmatpush3.bf16.msra.mxu1 %v18602_v29 }
 0x707   : > { %17844 = vmatprep.subr.bf16.mxu1 %v19203_v25 }
 0x708   : > { %v11246_v2 = vpop.f32.mrb[20].mxu1 }
 0x709   : > { %v11247_v24 = vadd.f32 %v11246_v2, %v11135_v3  ;;  %v17712_v7 = vpop.f32.mrb[21].mxu1  ;;  %v18642_v3 = vld [vmem:[#allocation10 + $0x60] ss:$8 sps:$4 sm:$0xff]  }
 0x70a   : > { %v11249_v30 = vpop.f32.mrb[22].mxu1  ;;  %17845 = vmatpush3.bf16.msra.mxu1 %v18603_v6 }
 0x70b   : > { %v11250_v27 = vadd.f32 %v11249_v30, %v11138_v43  ;;  %v17713_v12 = vpop.f32.mrb[23].mxu1  ;;  %17846 = vmatprep.subr.bf16.mxu1 %v19203_v25  ;;  %v18645_v43 = vld [vmem:[#allocation10 + $0xe0] ss:$8 sps:$4 sm:$0xff]  }
 0x70c   : > { %12659 = vmatpush1.bf16.msra.mxu0 %v18645_v43  ;;  %v18695_v43 = vld [vmem:[#allocation10 + $0x164] ss:$8 sps:$4 sm:$0xff]  }
 0x70d   : > { %12660 = vmatprep.subr.bf16.mxu0 %v18653_v33  ;;  %v18693_v33 = vld [vmem:[#allocation10 + $0x160] ss:$8 sps:$4 sm:$0xff]  }
 0x70e   : > { %17847 = vmatpush3.bf16.msra.mxu1 %v18604_v46 }
 0x70f   : > { %17848 = vmatprep.subr.bf16.mxu1 %v19203_v25  ;;  %v18606_v25 = vld [vmem:[#allocation10] ss:$8 sps:$4 sm:$0xff]  }
 0x710   : > { %12661 = vmatpush1.bf16.msra.mxu0 %v18651_v54  ;;  %v18696_v54 = vld [vmem:[#allocation10 + $0x1f0] ss:$8 sps:$4 sm:$0xff]  }
 0x711   : > { %12908 = vmatprep.subr.bf16.mxu0 %v18659_v62  ;;  %v18699_v62 = vld [vmem:[#allocation10 + $0x170] ss:$8 sps:$4 sm:$0xff]  }
 0x712   : > { %17849 = vmatpush3.bf16.msra.mxu1 %v18605_v17 }
 0x713   : > { %12767 = vmatprep.subr.bf16.mxu1 %v18608_v34 }
 0x715   : > { %17851 = vmatmul.mubr.bf16.vlgmr.msra.gmra.mrb[48].mxu1 %v12425_v14  ;;  %v18612_v14 = vld [vmem:[#allocation10 + $0x10] ss:$8 sps:$4 sm:$0xff]  }
 0x716   : > { %12799 = vmatprep.mubr.bf16.mxu1 %v22795_v22  ;;  %12768 = vmatpush1.bf16.msra.mxu1 %v18606_v25 }
 0x717   : > { %12769 = vmatprep.subr.bf16.mxu1 %v18614_v59 }
 0x71a   : > { %12770 = vmatpush1.bf16.msra.mxu1 %v18612_v14 }
 0x71b   : > { %12771 = vmatprep.subr.bf16.mxu1 %v18620_v47 }
 0x71e   : > { %12772 = vmatpush1.bf16.msra.mxu1 %v18618_v61  ;;  %v18657_v61 = vld [vmem:[#allocation10 + $0x100] ss:$8 sps:$4 sm:$0xff]  }
 0x71f   : > { %12773 = vmatprep.subr.bf16.mxu1 %v18626_v9  ;;  %v18665_v9 = vld [vmem:[#allocation10 + $0x114] ss:$8 sps:$4 sm:$0xff]  }
 0x722   : > { %12774 = vmatpush1.bf16.msra.mxu1 %v18624_v42  ;;  %v18668_v42 = vld [vmem:[#allocation10 + $0x1a4] ss:$8 sps:$4 sm:$0xff]  }
 0x723   : > { %12775 = vmatprep.subr.bf16.mxu1 %v18632_v28  ;;  %v18671_v28 = vld [vmem:[#allocation10 + $0x124] ss:$8 sps:$4 sm:$0xff]  }
 0x726   : > { %12776 = vmatpush1.bf16.msra.mxu1 %v18630_v11  ;;  %v18674_v11 = vld [vmem:[#allocation10 + $0x1b4] ss:$8 sps:$4 sm:$0xff]  }
 0x727   : > { %12777 = vmatprep.subr.bf16.mxu1 %v18638_v19  ;;  %v18677_v19 = vld [vmem:[#allocation10 + $0x134] ss:$8 sps:$4 sm:$0xff]  }
 0x728   : > { %v11432_v1 = vpop.f32.mrb[24].mxu1 }
 0x729   : > { %v11439_v36 = vadd.f32 %v11432_v1, %v11247_v24  ;;  %v17732_v45 = vpop.f32.mrb[25].mxu1 }
 0x72a   : > { %v11435_v37 = vpop.f32.mrb[26].mxu1  ;;  %12778 = vmatpush1.bf16.msra.mxu1 %v18636_v56  ;;  %v18672_v56 = vld [vmem:[#allocation10 + $0x1b0] ss:$8 sps:$4 sm:$0xff]  }
 0x72b   : > { %v11440_v16 = vadd.f32 %v11435_v37, %v11250_v27  ;;  %v17733_v52 = vpop.f32.mrb[27].mxu1  ;;  %12779 = vmatprep.subr.bf16.mxu1 %v18644_v38  ;;  %v18687_v38 = vld [vmem:[#allocation10 + $0x150] ss:$8 sps:$4 sm:$0xff]  }
 0x72e   : > { %12780 = vmatpush1.bf16.msra.mxu1 %v18642_v3  ;;  %v18692_v3 = vld [vmem:[#allocation10 + $0x1e4] ss:$8 sps:$4 sm:$0xff]  }
 0x72f   : > { %12781 = vmatprep.subr.bf16.mxu1 %v18650_v63  ;;  %v18698_v63 = vld [vmem:[#allocation10 + $0x1f4] ss:$8 sps:$4 sm:$0xff]  }
 0x732   : > { %12782 = vmatpush1.bf16.msra.mxu1 %v18648_v49  ;;  %v18701_v49 = vld [vmem:[#allocation10 + $0x174] ss:$8 sps:$4 sm:$0xff]  }
 0x733   : > { %13050 = vmatprep.subr.bf16.mxu1 %v18656_v0  ;;  %v18704_v0 = vld [vmem:[#allocation10 + $0x284] ss:$8 sps:$4 sm:$0xff]  }
 0x748   : > { %v11566_v51 = vpop.f32.mrb[28].mxu1 }
 0x749   : > { %v11573_v18 = vadd.f32 %v11566_v51, %v11439_v36  ;;  %v17752_v50 = vpop.f32.mrb[29].mxu1 }
 0x74a   : > { %v11569_v20 = vpop.f32.mrb[30].mxu1  ;;  %v16018_v50 = vld [vmem:[%s22643_s6] ss:$0 sm:$0xff] }
 0x74b   : > { %v11574_v21 = vadd.f32 %v11569_v20, %v11440_v16  ;;  %v17753_v48 = vpop.f32.mrb[31].mxu1 }
 0x768   : > { %v11788_v44 = vpop.f32.mrb[32].mxu1 }
 0x769   : > { %v11795_v32 = vadd.f32 %v11788_v44, %v11573_v18  ;;  %v17772_v26 = vpop.f32.mrb[33].mxu1  ;;  %v18680_v44 = vld [vmem:[#allocation10 + $0x1c4] ss:$8 sps:$4 sm:$0xff]  }
 0x76a   : > { %v11791_v23 = vpop.f32.mrb[34].mxu1  ;;  %v18683_v26 = vld [vmem:[#allocation10 + $0x144] ss:$8 sps:$4 sm:$0xff]  }
 0x76b   : > { %v11796_v15 = vadd.f32 %v11791_v23, %v11574_v21  ;;  %v17773_v40 = vpop.f32.mrb[35].mxu1  ;;  %v18678_v23 = vld [vmem:[#allocation10 + $0x1c0] ss:$8 sps:$4 sm:$0xff]  }
 0x76c   : > { %v18681_v40 = vld [vmem:[#allocation10 + $0x140] ss:$8 sps:$4 sm:$0xff]  }
 0x788   : > { %v11970_v29 = vpop.f32.mrb[36].mxu1 }
 0x789   : > { %v11977_v6 = vadd.f32 %v11970_v29, %v11795_v32  ;;  %v17792_v2 = vpop.f32.mrb[37].mxu1  ;;  %v18675_v32 = vld [vmem:[#allocation10 + $0x130] ss:$8 sps:$4 sm:$0xff]   ;;  %v18707_v29 = vld [vmem:[#allocation10 + $0x204] ss:$8 sps:$4 sm:$0xff]  }
 0x78a   : > { %v11973_v24 = vpop.f32.mrb[38].mxu1 }
 0x78b   : > { %v11978_v7 = vadd.f32 %v11973_v24, %v11796_v15  ;;  %v17793_v30 = vpop.f32.mrb[39].mxu1  ;;  %v18686_v15 = vld [vmem:[#allocation10 + $0x1d4] ss:$8 sps:$4 sm:$0xff]  }
 0x78c   : > { %v18710_v24 = vld [vmem:[#allocation10 + $0x294] ss:$8 sps:$4 sm:$0xff]  }
 0x7a8   : > { %v12105_v46 = vpop.f32.mrb[40].mxu1 }
 0x7a9   : > { %v12112_v27 = vadd.f32 %v12105_v46, %v11977_v6  ;;  %v17812_v12 = vpop.f32.mrb[41].mxu1  ;;  %v18702_v6 = vld [vmem:[#allocation10 + $0x280] ss:$8 sps:$4 sm:$0xff]   ;;  %v18713_v46 = vld [vmem:[#allocation10 + $0x214] ss:$8 sps:$4 sm:$0xff]  }
 0x7aa   : > { %v12108_v17 = vpop.f32.mrb[42].mxu1  ;;  %v18716_v12 = vld [vmem:[#allocation10 + $0x2a4] ss:$8 sps:$4 sm:$0xff]  }
 0x7ab   : > { %v12113_v1 = vadd.f32 %v12108_v17, %v11978_v7  ;;  %v17813_v36 = vpop.f32.mrb[43].mxu1  ;;  %v18705_v7 = vld [vmem:[#allocation10 + $0x200] ss:$8 sps:$4 sm:$0xff]   ;;  %v18711_v17 = vld [vmem:[#allocation10 + $0x210] ss:$8 sps:$4 sm:$0xff]  }
 0x7ac   : > { %v18714_v36 = vld [vmem:[#allocation10 + $0x2a0] ss:$8 sps:$4 sm:$0xff]  }
 0x7c8   : > { %v12327_v45 = vpop.f32.mrb[44].mxu1 }
 0x7c9   : > { %v12334_v37 = vadd.f32 %v12327_v45, %v12112_v27  ;;  %v17832_v16 = vpop.f32.mrb[45].mxu1  ;;  %v18708_v27 = vld [vmem:[#allocation10 + $0x290] ss:$8 sps:$4 sm:$0xff]   ;;  %v18722_v45 = vld [vmem:[#allocation10 + $0x2b4] ss:$8 sps:$4 sm:$0xff]  }
 0x7ca   : > { %v12330_v52 = vpop.f32.mrb[46].mxu1  ;;  %v18725_v16 = vld [vmem:[#allocation10 + $0x234] ss:$8 sps:$4 sm:$0xff]  }
 0x7cb   : > { %v12335_v51 = vadd.f32 %v12330_v52, %v12113_v1  ;;  %v17833_v18 = vpop.f32.mrb[47].mxu1  ;;  %v18719_v1 = vld [vmem:[#allocation10 + $0x224] ss:$8 sps:$4 sm:$0xff]   ;;  %v18720_v52 = vld [vmem:[#allocation10 + $0x2b0] ss:$8 sps:$4 sm:$0xff]  }
 0x7cc   : > { %v18723_v18 = vld [vmem:[#allocation10 + $0x230] ss:$8 sps:$4 sm:$0xff]  }
 0x7e8   : > { %v12509_v20 = vpop.f32.mrb[48].mxu1 }
 0x7e9   : > { %v12516_v21 = vadd.f32 %v12509_v20, %v12334_v37  ;;  %v17852_v48 = vpop.f32.mrb[49].mxu1  ;;  %v18717_v37 = vld [vmem:[#allocation10 + $0x220] ss:$8 sps:$4 sm:$0xff]  }
 0x7ea   : > { %v12512_v25 = vpop.f32.mrb[50].mxu1  ;;  %v18726_v20 = vld [vmem:[#allocation10 + $0x2c0] ss:$8 sps:$4 sm:$0xff]  }
 0x7eb   : > { %v12524_v34 = vadd.f32 %v16018_v50, %v12516_v21  ;;  %v12517_v31 = vadd.f32 %v12512_v25, %v12335_v51  ;;  %v17853_v55 = vpop.f32.mrb[51].mxu1  ;;  %v18728_v51 = vld [vmem:[#allocation10 + $0x2c4] ss:$8 sps:$4 sm:$0xff]   ;;  %v18734_v21 = vld [vmem:[#allocation10 + $0x2d4] ss:$8 sps:$4 sm:$0xff]  }
 0x7ec   : > { %v18729_v48 = vld [vmem:[#allocation10 + $0x240] ss:$8 sps:$4 sm:$0xff]   ;;  %v18737_v25 = vld [vmem:[#allocation10 + $0x254] ss:$8 sps:$4 sm:$0xff]   ;;  %v18735_v55 = vld [vmem:[#allocation10 + $0x250] ss:$8 sps:$4 sm:$0xff]  }
 0x7ed   : > { %v12525_v59 = vadd.f32 %v16018_v50, %v12517_v31  ;;  %v12526_v58 = vmax.f32 %v12524_v34, 0.0  ;;  %v18731_v50 = vld [vmem:[#allocation10 + $0x244] ss:$8 sps:$4 sm:$0xff]   ;;  %v18732_v34 = vld [vmem:[#allocation10 + $0x2d0] ss:$8 sps:$4 sm:$0xff]  }
 0x7ee   : > { %v18740_v31 = vld [vmem:[#allocation10 + $0x2e4] ss:$8 sps:$4 sm:$0xff]  }
 0x7ef   : > { %v12527_v14 = vmax.f32 %v12525_v59, 0.0  ;;  %v18743_v59 = vld [vmem:[#allocation10 + $0x264] ss:$8 sps:$4 sm:$0xff]  }
 0x7f1   : > { %v22499_v47 = vpack.c.bf16 %v12527_v14, %v12526_v58  ;;  %v18738_v58 = vld [vmem:[#allocation10 + $0x2e0] ss:$8 sps:$4 sm:$0xff]   ;;  %v18746_v14 = vld [vmem:[#allocation10 + $0x2f4] ss:$8 sps:$4 sm:$0xff]  }
 0x7f3   : > { %12800 = vmatmul.mubr.bf16.vlgmr.msra.gmra.mrb[52].mxu1 %v22499_v47  ;;  %v22503_v41 = vshrl.u32 %v22499_v47, 16  ;;  %v12826_v30 = vrot.slane %v22499_v47, 1 }
 0x7f4   : > { %13051 = vmatpush1.bf16.msra.mxu1 %v18654_v10  ;;  %13082 = vmatprep.mubr.bf16.mxu1 %v22795_v22  ;;  %v18741_v10 = vld [vmem:[#allocation10 + $0x260] ss:$8 sps:$4 sm:$0xff]  }
 0x7f5   : > { %12679 = vmatmul.mubr.bf16.vlgmr.msra.gmra.mrb[24].mxu0 %v22503_v41  ;;  %13052 = vmatprep.subr.bf16.mxu1 %v18662_v60  ;;  %v12968_v2 = vrot.slane %v22503_v41, 1  ;;  %v18749_v60 = vld [vmem:[#allocation10 + $0x274] ss:$8 sps:$4 sm:$0xff]  }
 0x7f6   : > { %12909 = vmatpush1.bf16.msra.mxu0 %v18657_v61  ;;  %12940 = vmatprep.mubr.bf16.mxu0 %v22795_v22  ;;  %v18744_v61 = vld [vmem:[#allocation10 + $0x2f0] ss:$8 sps:$4 sm:$0xff]  }
 0x7f7   : > { %12910 = vmatprep.subr.bf16.mxu0 %v18665_v9  ;;  %v18752_v9 = vld [vmem:[#allocation10 + $0x384] ss:$8 sps:$4 sm:$0xff]  }
 0x7f8   : > { %13053 = vmatpush1.bf16.msra.mxu1 %v18660_v13  ;;  %v18747_v13 = vld [vmem:[#allocation10 + $0x270] ss:$8 sps:$4 sm:$0xff]  }
 0x7f9   : > { %13054 = vmatprep.subr.bf16.mxu1 %v18668_v42  ;;  %v18755_v42 = vld [vmem:[#allocation10 + $0x304] ss:$8 sps:$4 sm:$0xff]  }
 0x7fa   : > { %12911 = vmatpush1.bf16.msra.mxu0 %v18663_v53  ;;  %v18750_v53 = vld [vmem:[#allocation10 + $0x380] ss:$8 sps:$4 sm:$0xff]  }
 0x7fb   : > { %12912 = vmatprep.subr.bf16.mxu0 %v18671_v28  ;;  %v13252_v28 = vrot.slane %v22503_v41, 2 }
 0x7fc   : > { %13055 = vmatpush1.bf16.msra.mxu1 %v18666_v5  ;;  %v18758_v5 = vld [vmem:[#allocation10 + $0x394] ss:$8 sps:$4 sm:$0xff]  }
 0x7fd   : > { %13056 = vmatprep.subr.bf16.mxu1 %v18674_v11  ;;  %v18753_v11 = vld [vmem:[#allocation10 + $0x300] ss:$8 sps:$4 sm:$0xff]  }
 0x7fe   : > { %12913 = vmatpush1.bf16.msra.mxu0 %v18669_v39  ;;  %v13110_v39 = vrot.slane %v22499_v47, 2 }
 0x7ff   : > { %12914 = vmatprep.subr.bf16.mxu0 %v18677_v19  ;;  %v18761_v19 = vld [vmem:[#allocation10 + $0x314] ss:$8 sps:$4 sm:$0xff]  }
 0x800   : > { %13057 = vmatpush1.bf16.msra.mxu1 %v18672_v56  ;;  %v18756_v56 = vld [vmem:[#allocation10 + $0x390] ss:$8 sps:$4 sm:$0xff]  }
 0x801   : > { %13058 = vmatprep.subr.bf16.mxu1 %v18680_v44  ;;  %v18764_v44 = vld [vmem:[#allocation10 + $0x3a4] ss:$8 sps:$4 sm:$0xff]  }
 0x802   : > { %12915 = vmatpush1.bf16.msra.mxu0 %v18675_v32  ;;  %v18759_v32 = vld [vmem:[#allocation10 + $0x310] ss:$8 sps:$4 sm:$0xff]  }
 0x803   : > { %12916 = vmatprep.subr.bf16.mxu0 %v18683_v26  ;;  %v18767_v26 = vld [vmem:[#allocation10 + $0x324] ss:$8 sps:$4 sm:$0xff]  }
 0x804   : > { %13059 = vmatpush1.bf16.msra.mxu1 %v18678_v23  ;;  %v18762_v23 = vld [vmem:[#allocation10 + $0x3a0] ss:$8 sps:$4 sm:$0xff]  }
 0x805   : > { %13060 = vmatprep.subr.bf16.mxu1 %v18686_v15  ;;  %v18770_v15 = vld [vmem:[#allocation10 + $0x3b4] ss:$8 sps:$4 sm:$0xff]  }
 0x806   : > { %12917 = vmatpush1.bf16.msra.mxu0 %v18681_v40  ;;  %v18765_v40 = vld [vmem:[#allocation10 + $0x320] ss:$8 sps:$4 sm:$0xff]  }
 0x807   : > { %12918 = vmatprep.subr.bf16.mxu0 %v18689_v57  ;;  %v18773_v57 = vld [vmem:[#allocation10 + $0x334] ss:$8 sps:$4 sm:$0xff]  }
 0x808   : > { %13061 = vmatpush1.bf16.msra.mxu1 %v18684_v35  ;;  %v18768_v35 = vld [vmem:[#allocation10 + $0x3b0] ss:$8 sps:$4 sm:$0xff]  }
 0x809   : > { %13062 = vmatprep.subr.bf16.mxu1 %v18692_v3  ;;  %v18776_v3 = vld [vmem:[#allocation10 + $0x3c4] ss:$8 sps:$4 sm:$0xff]  }
 0x80a   : > { %12919 = vmatpush1.bf16.msra.mxu0 %v18687_v38  ;;  %v18771_v38 = vld [vmem:[#allocation10 + $0x330] ss:$8 sps:$4 sm:$0xff]  }
 0x80b   : > { %12920 = vmatprep.subr.bf16.mxu0 %v18695_v43  ;;  %v18779_v43 = vld [vmem:[#allocation10 + $0x344] ss:$8 sps:$4 sm:$0xff]  }
 0x80c   : > { %13063 = vmatpush1.bf16.msra.mxu1 %v18690_v8  ;;  %v18774_v8 = vld [vmem:[#allocation10 + $0x3c0] ss:$8 sps:$4 sm:$0xff]  }
 0x80d   : > { %13064 = vmatprep.subr.bf16.mxu1 %v18698_v63  ;;  %v18782_v63 = vld [vmem:[#allocation10 + $0x3d4] ss:$8 sps:$4 sm:$0xff]  }
 0x80e   : > { %12921 = vmatpush1.bf16.msra.mxu0 %v18693_v33  ;;  %v18777_v33 = vld [vmem:[#allocation10 + $0x340] ss:$8 sps:$4 sm:$0xff]  }
 0x80f   : > { %12922 = vmatprep.subr.bf16.mxu0 %v18701_v49  ;;  %v18785_v49 = vld [vmem:[#allocation10 + $0x354] ss:$8 sps:$4 sm:$0xff]  }
 0x810   : > { %13065 = vmatpush1.bf16.msra.mxu1 %v18696_v54  ;;  %v18780_v54 = vld [vmem:[#allocation10 + $0x3d0] ss:$8 sps:$4 sm:$0xff]  }
 0x811   : > { %13334 = vmatprep.subr.bf16.mxu1 %v18704_v0  ;;  %v18788_v0 = vld [vmem:[#allocation10 + $0x3e4] ss:$8 sps:$4 sm:$0xff]  }
 0x812   : > { %12923 = vmatpush1.bf16.msra.mxu0 %v18699_v62  ;;  %v18783_v62 = vld [vmem:[#allocation10 + $0x350] ss:$8 sps:$4 sm:$0xff]  }
 0x813   : > { %13083 = vmatmul.mubr.bf16.vlgmr.msra.gmra.mrb[56].mxu1 %v12968_v2  ;;  %13192 = vmatprep.subr.bf16.mxu0 %v18707_v29  ;;  %v18791_v29 = vld [vmem:[#allocation10 + $0x364] ss:$8 sps:$4 sm:$0xff]   ;;  %v18794_v2 = vld [vmem:[#allocation10 + $0x3f4] ss:$8 sps:$4 sm:$0xff]  }
 0x814   : > { %13335 = vmatpush1.bf16.msra.mxu1 %v18702_v6  ;;  %13366 = vmatprep.mubr.bf16.mxu1 %v22795_v22  ;;  %v18786_v6 = vld [vmem:[#allocation10 + $0x3e0] ss:$8 sps:$4 sm:$0xff]  }
 0x815   : > { %12941 = vmatmul.mubr.bf16.vlgmr.msra.gmra.mrb[28].mxu0 %v12826_v30  ;;  %13336 = vmatprep.subr.bf16.mxu1 %v18710_v24  ;;  %v18789_v24 = vld [vmem:[#allocation10 + $0x360] ss:$8 sps:$4 sm:$0xff]   ;;  %v18792_v30 = vld [vmem:[#allocation10 + $0x3f0] ss:$8 sps:$4 sm:$0xff]  }
 0x816   : > { %13193 = vmatpush1.bf16.msra.mxu0 %v18705_v7  ;;  %13224 = vmatprep.mubr.bf16.mxu0 %v22795_v22  ;;  %v18797_v7 = vld [vmem:[#allocation10 + $0x374] ss:$8 sps:$4 sm:$0xff]  }
 0x817   : > { %13194 = vmatprep.subr.bf16.mxu0 %v18713_v46  ;;  %v18800_v46 = vld [vmem:[#allocation10 + $0x484] ss:$8 sps:$4 sm:$0xff]  }
 0x818   : > { %13337 = vmatpush1.bf16.msra.mxu1 %v18708_v27  ;;  %v18795_v27 = vld [vmem:[#allocation10 + $0x370] ss:$8 sps:$4 sm:$0xff]  }
 0x819   : > { %13338 = vmatprep.subr.bf16.mxu1 %v18716_v12  ;;  %v18803_v12 = vld [vmem:[#allocation10 + $0x404] ss:$8 sps:$4 sm:$0xff]  }
 0x81a   : > { %13195 = vmatpush1.bf16.msra.mxu0 %v18711_v17  ;;  %v18798_v17 = vld [vmem:[#allocation10 + $0x480] ss:$8 sps:$4 sm:$0xff]  }
 0x81b   : > { %13196 = vmatprep.subr.bf16.mxu0 %v18719_v1  ;;  %v13536_v1 = vrot.slane %v22503_v41, 3 }
 0x81c   : > { %13339 = vmatpush1.bf16.msra.mxu1 %v18714_v36  ;;  %v18806_v36 = vld [vmem:[#allocation10 + $0x494] ss:$8 sps:$4 sm:$0xff]  }
 0x81d   : > { %13340 = vmatprep.subr.bf16.mxu1 %v18722_v45  ;;  %v18801_v45 = vld [vmem:[#allocation10 + $0x400] ss:$8 sps:$4 sm:$0xff]  }
 0x81e   : > { %13197 = vmatpush1.bf16.msra.mxu0 %v18717_v37  ;;  %v13394_v37 = vrot.slane %v22499_v47, 3 }
 0x81f   : > { %13198 = vmatprep.subr.bf16.mxu0 %v18725_v16  ;;  %v18809_v16 = vld [vmem:[#allocation10 + $0x414] ss:$8 sps:$4 sm:$0xff]  }
 0x820   : > { %13341 = vmatpush1.bf16.msra.mxu1 %v18720_v52  ;;  %v18804_v52 = vld [vmem:[#allocation10 + $0x490] ss:$8 sps:$4 sm:$0xff]  }
 0x821   : > { %13342 = vmatprep.subr.bf16.mxu1 %v18728_v51  ;;  %v18812_v51 = vld [vmem:[#allocation10 + $0x4a4] ss:$8 sps:$4 sm:$0xff]  }
 0x822   : > { %13199 = vmatpush1.bf16.msra.mxu0 %v18723_v18  ;;  %v18807_v18 = vld [vmem:[#allocation10 + $0x410] ss:$8 sps:$4 sm:$0xff]  }
 0x823   : > { %13200 = vmatprep.subr.bf16.mxu0 %v18731_v50  ;;  %v18815_v50 = vld [vmem:[#allocation10 + $0x424] ss:$8 sps:$4 sm:$0xff]  }
 0x824   : > { %13343 = vmatpush1.bf16.msra.mxu1 %v18726_v20  ;;  %v18810_v20 = vld [vmem:[#allocation10 + $0x4a0] ss:$8 sps:$4 sm:$0xff]  }
 0x825   : > { %13344 = vmatprep.subr.bf16.mxu1 %v18734_v21  ;;  %v18818_v21 = vld [vmem:[#allocation10 + $0x4b4] ss:$8 sps:$4 sm:$0xff]  }
 0x826   : > { %13201 = vmatpush1.bf16.msra.mxu0 %v18729_v48  ;;  %v18813_v48 = vld [vmem:[#allocation10 + $0x420] ss:$8 sps:$4 sm:$0xff]  }
 0x827   : > { %13202 = vmatprep.subr.bf16.mxu0 %v18737_v25  ;;  %v18821_v25 = vld [vmem:[#allocation10 + $0x434] ss:$8 sps:$4 sm:$0xff]  }
 0x828   : > { %13345 = vmatpush1.bf16.msra.mxu1 %v18732_v34  ;;  %v18816_v34 = vld [vmem:[#allocation10 + $0x4b0] ss:$8 sps:$4 sm:$0xff]  }
 0x829   : > { %13346 = vmatprep.subr.bf16.mxu1 %v18740_v31  ;;  %v18824_v31 = vld [vmem:[#allocation10 + $0x4c4] ss:$8 sps:$4 sm:$0xff]  }
 0x82a   : > { %13203 = vmatpush1.bf16.msra.mxu0 %v18735_v55  ;;  %v18819_v55 = vld [vmem:[#allocation10 + $0x430] ss:$8 sps:$4 sm:$0xff]  }
 0x82b   : > { %13204 = vmatprep.subr.bf16.mxu0 %v18743_v59  ;;  %v18827_v59 = vld [vmem:[#allocation10 + $0x444] ss:$8 sps:$4 sm:$0xff]  }
 0x82c   : > { %13347 = vmatpush1.bf16.msra.mxu1 %v18738_v58  ;;  %v18822_v58 = vld [vmem:[#allocation10 + $0x4c0] ss:$8 sps:$4 sm:$0xff]  }
 0x82d   : > { %13348 = vmatprep.subr.bf16.mxu1 %v18746_v14  ;;  %v18830_v14 = vld [vmem:[#allocation10 + $0x4d4] ss:$8 sps:$4 sm:$0xff]  }
 0x82e   : > { %13205 = vmatpush1.bf16.msra.mxu0 %v18741_v10  ;;  %v18825_v10 = vld [vmem:[#allocation10 + $0x440] ss:$8 sps:$4 sm:$0xff]  }
 0x82f   : > { %13206 = vmatprep.subr.bf16.mxu0 %v18749_v60  ;;  %v18833_v60 = vld [vmem:[#allocation10 + $0x454] ss:$8 sps:$4 sm:$0xff]  }
 0x830   : > { %13349 = vmatpush1.bf16.msra.mxu1 %v18744_v61  ;;  %v18828_v61 = vld [vmem:[#allocation10 + $0x4d0] ss:$8 sps:$4 sm:$0xff]  }
 0x831   : > { %13618 = vmatprep.subr.bf16.mxu1 %v18752_v9  ;;  %v18836_v9 = vld [vmem:[#allocation10 + $0x4e4] ss:$8 sps:$4 sm:$0xff]  }
 0x832   : > { %13207 = vmatpush1.bf16.msra.mxu0 %v18747_v13  ;;  %v18831_v13 = vld [vmem:[#allocation10 + $0x450] ss:$8 sps:$4 sm:$0xff]  }
 0x833   : > { %13367 = vmatmul.mubr.bf16.vlgmr.msra.gmra.mrb[60].mxu1 %v13252_v28  ;;  %13476 = vmatprep.subr.bf16.mxu0 %v18755_v42  ;;  %v18839_v42 = vld [vmem:[#allocation10 + $0x464] ss:$8 sps:$4 sm:$0xff]   ;;  %v18842_v28 = vld [vmem:[#allocation10 + $0x4f4] ss:$8 sps:$4 sm:$0xff]  }
 0x834   : > { %13619 = vmatpush1.bf16.msra.mxu1 %v18750_v53  ;;  %13650 = vmatprep.mubr.bf16.mxu1 %v22795_v22  ;;  %v18834_v53 = vld [vmem:[#allocation10 + $0x4e0] ss:$8 sps:$4 sm:$0xff]  }
 0x835   : > { %13225 = vmatmul.mubr.bf16.vlgmr.msra.gmra.mrb[32].mxu0 %v13110_v39  ;;  %13620 = vmatprep.subr.bf16.mxu1 %v18758_v5  ;;  %v18837_v5 = vld [vmem:[#allocation10 + $0x460] ss:$8 sps:$4 sm:$0xff]   ;;  %v18840_v39 = vld [vmem:[#allocation10 + $0x4f0] ss:$8 sps:$4 sm:$0xff]  }
 0x836   : > { %13477 = vmatpush1.bf16.msra.mxu0 %v18753_v11  ;;  %13508 = vmatprep.mubr.bf16.mxu0 %v22795_v22  ;;  %v18845_v11 = vld [vmem:[#allocation10 + $0x474] ss:$8 sps:$4 sm:$0xff]  }
 0x837   : > { %13478 = vmatprep.subr.bf16.mxu0 %v18761_v19  ;;  %v18848_v19 = vld [vmem:[#allocation10 + $0x584] ss:$8 sps:$4 sm:$0xff]  }
 0x838   : > { %13621 = vmatpush1.bf16.msra.mxu1 %v18756_v56  ;;  %v18843_v56 = vld [vmem:[#allocation10 + $0x470] ss:$8 sps:$4 sm:$0xff]  }
 0x839   : > { %13622 = vmatprep.subr.bf16.mxu1 %v18764_v44  ;;  %v18851_v44 = vld [vmem:[#allocation10 + $0x504] ss:$8 sps:$4 sm:$0xff]  }
 0x83a   : > { %13479 = vmatpush1.bf16.msra.mxu0 %v18759_v32  ;;  %v18846_v32 = vld [vmem:[#allocation10 + $0x580] ss:$8 sps:$4 sm:$0xff]  }
 0x83b   : > { %13480 = vmatprep.subr.bf16.mxu0 %v18767_v26  ;;  %v13820_v26 = vrot.slane %v22503_v41, 4 }
 0x83c   : > { %13623 = vmatpush1.bf16.msra.mxu1 %v18762_v23  ;;  %v18854_v23 = vld [vmem:[#allocation10 + $0x594] ss:$8 sps:$4 sm:$0xff]  }
 0x83d   : > { %13624 = vmatprep.subr.bf16.mxu1 %v18770_v15  ;;  %v18849_v15 = vld [vmem:[#allocation10 + $0x500] ss:$8 sps:$4 sm:$0xff]  }
 0x83e   : > { %13481 = vmatpush1.bf16.msra.mxu0 %v18765_v40  ;;  %v13678_v40 = vrot.slane %v22499_v47, 4 }
 0x83f   : > { %13482 = vmatprep.subr.bf16.mxu0 %v18773_v57  ;;  %v18857_v57 = vld [vmem:[#allocation10 + $0x514] ss:$8 sps:$4 sm:$0xff]  }
 0x840   : > { %13625 = vmatpush1.bf16.msra.mxu1 %v18768_v35  ;;  %v18852_v35 = vld [vmem:[#allocation10 + $0x590] ss:$8 sps:$4 sm:$0xff]  }
 0x841   : > { %13626 = vmatprep.subr.bf16.mxu1 %v18776_v3  ;;  %v18860_v3 = vld [vmem:[#allocation10 + $0x5a4] ss:$8 sps:$4 sm:$0xff]  }
 0x842   : > { %13483 = vmatpush1.bf16.msra.mxu0 %v18771_v38  ;;  %v18855_v38 = vld [vmem:[#allocation10 + $0x510] ss:$8 sps:$4 sm:$0xff]  }
 0x843   : > { %13484 = vmatprep.subr.bf16.mxu0 %v18779_v43  ;;  %v18863_v43 = vld [vmem:[#allocation10 + $0x524] ss:$8 sps:$4 sm:$0xff]  }
 0x844   : > { %13627 = vmatpush1.bf16.msra.mxu1 %v18774_v8  ;;  %v18858_v8 = vld [vmem:[#allocation10 + $0x5a0] ss:$8 sps:$4 sm:$0xff]  }
 0x845   : > { %13628 = vmatprep.subr.bf16.mxu1 %v18782_v63  ;;  %v18866_v63 = vld [vmem:[#allocation10 + $0x5b4] ss:$8 sps:$4 sm:$0xff]  }
 0x846   : > { %13485 = vmatpush1.bf16.msra.mxu0 %v18777_v33  ;;  %v18861_v33 = vld [vmem:[#allocation10 + $0x520] ss:$8 sps:$4 sm:$0xff]  }
 0x847   : > { %13486 = vmatprep.subr.bf16.mxu0 %v18785_v49  ;;  %v18869_v49 = vld [vmem:[#allocation10 + $0x534] ss:$8 sps:$4 sm:$0xff]  }
 0x848   : > { %13629 = vmatpush1.bf16.msra.mxu1 %v18780_v54  ;;  %v18864_v54 = vld [vmem:[#allocation10 + $0x5b0] ss:$8 sps:$4 sm:$0xff]  }
 0x849   : > { %13630 = vmatprep.subr.bf16.mxu1 %v18788_v0  ;;  %v18872_v0 = vld [vmem:[#allocation10 + $0x5c4] ss:$8 sps:$4 sm:$0xff]  }
 0x84a   : > { %13487 = vmatpush1.bf16.msra.mxu0 %v18783_v62  ;;  %v18867_v62 = vld [vmem:[#allocation10 + $0x530] ss:$8 sps:$4 sm:$0xff]  }
 0x84b   : > { %13488 = vmatprep.subr.bf16.mxu0 %v18791_v29  ;;  %v18875_v29 = vld [vmem:[#allocation10 + $0x544] ss:$8 sps:$4 sm:$0xff]  }
 0x84c   : > { %13631 = vmatpush1.bf16.msra.mxu1 %v18786_v6  ;;  %v18870_v6 = vld [vmem:[#allocation10 + $0x5c0] ss:$8 sps:$4 sm:$0xff]  }
 0x84d   : > { %13632 = vmatprep.subr.bf16.mxu1 %v18794_v2  ;;  %v18878_v2 = vld [vmem:[#allocation10 + $0x5d4] ss:$8 sps:$4 sm:$0xff]  }
 0x84e   : > { %13489 = vmatpush1.bf16.msra.mxu0 %v18789_v24  ;;  %v18873_v24 = vld [vmem:[#allocation10 + $0x540] ss:$8 sps:$4 sm:$0xff]  }
 0x84f   : > { %13490 = vmatprep.subr.bf16.mxu0 %v18797_v7  ;;  %v18881_v7 = vld [vmem:[#allocation10 + $0x554] ss:$8 sps:$4 sm:$0xff]  }
 0x850   : > { %13633 = vmatpush1.bf16.msra.mxu1 %v18792_v30  ;;  %v18876_v30 = vld [vmem:[#allocation10 + $0x5d0] ss:$8 sps:$4 sm:$0xff]  }
 0x851   : > { %13902 = vmatprep.subr.bf16.mxu1 %v18800_v46  ;;  %v18884_v46 = vld [vmem:[#allocation10 + $0x5e4] ss:$8 sps:$4 sm:$0xff]  }
 0x852   : > { %13491 = vmatpush1.bf16.msra.mxu0 %v18795_v27  ;;  %v18879_v27 = vld [vmem:[#allocation10 + $0x550] ss:$8 sps:$4 sm:$0xff]  }
 0x853   : > { %13651 = vmatmul.mubr.bf16.vlgmr.msra.gmra.mrb[64].mxu1 %v13536_v1  ;;  %13760 = vmatprep.subr.bf16.mxu0 %v18803_v12  ;;  %v18887_v12 = vld [vmem:[#allocation10 + $0x564] ss:$8 sps:$4 sm:$0xff]   ;;  %v18890_v1 = vld [vmem:[#allocation10 + $0x5f4] ss:$8 sps:$4 sm:$0xff]  }
 0x854   : > { %13903 = vmatpush1.bf16.msra.mxu1 %v18798_v17  ;;  %13934 = vmatprep.mubr.bf16.mxu1 %v22795_v22  ;;  %v18882_v17 = vld [vmem:[#allocation10 + $0x5e0] ss:$8 sps:$4 sm:$0xff]  }
 0x855   : > { %13509 = vmatmul.mubr.bf16.vlgmr.msra.gmra.mrb[36].mxu0 %v13394_v37  ;;  %13904 = vmatprep.subr.bf16.mxu1 %v18806_v36  ;;  %v18885_v36 = vld [vmem:[#allocation10 + $0x560] ss:$8 sps:$4 sm:$0xff]   ;;  %v18888_v37 = vld [vmem:[#allocation10 + $0x5f0] ss:$8 sps:$4 sm:$0xff]  }
 0x856   : > { %13761 = vmatpush1.bf16.msra.mxu0 %v18801_v45  ;;  %13792 = vmatprep.mubr.bf16.mxu0 %v22795_v22  ;;  %v18893_v45 = vld [vmem:[#allocation10 + $0x574] ss:$8 sps:$4 sm:$0xff]  }
 0x857   : > { %13762 = vmatprep.subr.bf16.mxu0 %v18809_v16  ;;  %v18896_v16 = vld [vmem:[#allocation10 + $0x684] ss:$8 sps:$4 sm:$0xff]  }
 0x858   : > { %13905 = vmatpush1.bf16.msra.mxu1 %v18804_v52  ;;  %v18891_v52 = vld [vmem:[#allocation10 + $0x570] ss:$8 sps:$4 sm:$0xff]  }
 0x859   : > { %13906 = vmatprep.subr.bf16.mxu1 %v18812_v51  ;;  %v18899_v51 = vld [vmem:[#allocation10 + $0x604] ss:$8 sps:$4 sm:$0xff]  }
 0x85a   : > { %13763 = vmatpush1.bf16.msra.mxu0 %v18807_v18  ;;  %v18894_v18 = vld [vmem:[#allocation10 + $0x680] ss:$8 sps:$4 sm:$0xff]  }
 0x85b   : > { %13764 = vmatprep.subr.bf16.mxu0 %v18815_v50  ;;  %v14104_v50 = vrot.slane %v22503_v41, 5 }
 0x85c   : > { %13907 = vmatpush1.bf16.msra.mxu1 %v18810_v20  ;;  %v18902_v20 = vld [vmem:[#allocation10 + $0x694] ss:$8 sps:$4 sm:$0xff]  }
 0x85d   : > { %13908 = vmatprep.subr.bf16.mxu1 %v18818_v21  ;;  %v18897_v21 = vld [vmem:[#allocation10 + $0x600] ss:$8 sps:$4 sm:$0xff]  }
 0x85e   : > { %13765 = vmatpush1.bf16.msra.mxu0 %v18813_v48  ;;  %v13962_v48 = vrot.slane %v22499_v47, 5 }
 0x85f   : > { %13766 = vmatprep.subr.bf16.mxu0 %v18821_v25  ;;  %v18905_v25 = vld [vmem:[#allocation10 + $0x614] ss:$8 sps:$4 sm:$0xff]  }
 0x860   : > { %13909 = vmatpush1.bf16.msra.mxu1 %v18816_v34  ;;  %v18900_v34 = vld [vmem:[#allocation10 + $0x690] ss:$8 sps:$4 sm:$0xff]  }
 0x861   : > { %13910 = vmatprep.subr.bf16.mxu1 %v18824_v31  ;;  %v18908_v31 = vld [vmem:[#allocation10 + $0x6a4] ss:$8 sps:$4 sm:$0xff]  }
 0x862   : > { %13767 = vmatpush1.bf16.msra.mxu0 %v18819_v55  ;;  %v18903_v55 = vld [vmem:[#allocation10 + $0x610] ss:$8 sps:$4 sm:$0xff]  }
 0x863   : > { %13768 = vmatprep.subr.bf16.mxu0 %v18827_v59  ;;  %v18911_v59 = vld [vmem:[#allocation10 + $0x624] ss:$8 sps:$4 sm:$0xff]  }
 0x864   : > { %13911 = vmatpush1.bf16.msra.mxu1 %v18822_v58  ;;  %v18906_v58 = vld [vmem:[#allocation10 + $0x6a0] ss:$8 sps:$4 sm:$0xff]  }
 0x865   : > { %13912 = vmatprep.subr.bf16.mxu1 %v18830_v14  ;;  %v18914_v14 = vld [vmem:[#allocation10 + $0x6b4] ss:$8 sps:$4 sm:$0xff]  }
 0x866   : > { %13769 = vmatpush1.bf16.msra.mxu0 %v18825_v10  ;;  %v18909_v10 = vld [vmem:[#allocation10 + $0x620] ss:$8 sps:$4 sm:$0xff]  }
 0x867   : > { %13770 = vmatprep.subr.bf16.mxu0 %v18833_v60  ;;  %v18917_v60 = vld [vmem:[#allocation10 + $0x634] ss:$8 sps:$4 sm:$0xff]  }
 0x868   : > { %13913 = vmatpush1.bf16.msra.mxu1 %v18828_v61  ;;  %v18912_v61 = vld [vmem:[#allocation10 + $0x6b0] ss:$8 sps:$4 sm:$0xff]  }
 0x869   : > { %13914 = vmatprep.subr.bf16.mxu1 %v18836_v9  ;;  %v18920_v9 = vld [vmem:[#allocation10 + $0x6c4] ss:$8 sps:$4 sm:$0xff]  }
 0x86a   : > { %13771 = vmatpush1.bf16.msra.mxu0 %v18831_v13  ;;  %v18915_v13 = vld [vmem:[#allocation10 + $0x630] ss:$8 sps:$4 sm:$0xff]  }
 0x86b   : > { %13772 = vmatprep.subr.bf16.mxu0 %v18839_v42  ;;  %v18923_v42 = vld [vmem:[#allocation10 + $0x644] ss:$8 sps:$4 sm:$0xff]  }
 0x86c   : > { %13915 = vmatpush1.bf16.msra.mxu1 %v18834_v53  ;;  %v18918_v53 = vld [vmem:[#allocation10 + $0x6c0] ss:$8 sps:$4 sm:$0xff]  }
 0x86d   : > { %13916 = vmatprep.subr.bf16.mxu1 %v18842_v28  ;;  %v18926_v28 = vld [vmem:[#allocation10 + $0x6d4] ss:$8 sps:$4 sm:$0xff]  }
 0x86e   : > { %13773 = vmatpush1.bf16.msra.mxu0 %v18837_v5  ;;  %v18921_v5 = vld [vmem:[#allocation10 + $0x640] ss:$8 sps:$4 sm:$0xff]  }
 0x86f   : > { %13774 = vmatprep.subr.bf16.mxu0 %v18845_v11  ;;  %v18929_v11 = vld [vmem:[#allocation10 + $0x654] ss:$8 sps:$4 sm:$0xff]  }
 0x870   : > { %13917 = vmatpush1.bf16.msra.mxu1 %v18840_v39  ;;  %v18924_v39 = vld [vmem:[#allocation10 + $0x6d0] ss:$8 sps:$4 sm:$0xff]  }
 0x871   : > { %14186 = vmatprep.subr.bf16.mxu1 %v18848_v19  ;;  %v18932_v19 = vld [vmem:[#allocation10 + $0x6e4] ss:$8 sps:$4 sm:$0xff]  }
 0x872   : > { %13775 = vmatpush1.bf16.msra.mxu0 %v18843_v56  ;;  %v18927_v56 = vld [vmem:[#allocation10 + $0x650] ss:$8 sps:$4 sm:$0xff]  }
 0x873   : > { %13935 = vmatmul.mubr.bf16.vlgmr.msra.gmra.mrb[68].mxu1 %v13820_v26  ;;  %14044 = vmatprep.subr.bf16.mxu0 %v18851_v44  ;;  %v18935_v44 = vld [vmem:[#allocation10 + $0x664] ss:$8 sps:$4 sm:$0xff]   ;;  %v18938_v26 = vld [vmem:[#allocation10 + $0x6f4] ss:$8 sps:$4 sm:$0xff]  }
 0x874   : > { %14187 = vmatpush1.bf16.msra.mxu1 %v18846_v32  ;;  %14218 = vmatprep.mubr.bf16.mxu1 %v22795_v22  ;;  %v18930_v32 = vld [vmem:[#allocation10 + $0x6e0] ss:$8 sps:$4 sm:$0xff]  }
 0x875   : > { %13793 = vmatmul.mubr.bf16.vlgmr.msra.gmra.mrb[40].mxu0 %v13678_v40  ;;  %14188 = vmatprep.subr.bf16.mxu1 %v18854_v23  ;;  %v18933_v23 = vld [vmem:[#allocation10 + $0x660] ss:$8 sps:$4 sm:$0xff]   ;;  %v18936_v40 = vld [vmem:[#allocation10 + $0x6f0] ss:$8 sps:$4 sm:$0xff]  }
 0x876   : > { %14045 = vmatpush1.bf16.msra.mxu0 %v18849_v15  ;;  %14076 = vmatprep.mubr.bf16.mxu0 %v22795_v22  ;;  %v18941_v15 = vld [vmem:[#allocation10 + $0x674] ss:$8 sps:$4 sm:$0xff]  }
 0x877   : > { %14046 = vmatprep.subr.bf16.mxu0 %v18857_v57  ;;  %v18944_v57 = vld [vmem:[#allocation10 + $0x784] ss:$8 sps:$4 sm:$0xff]  }
 0x878   : > { %14189 = vmatpush1.bf16.msra.mxu1 %v18852_v35  ;;  %v18939_v35 = vld [vmem:[#allocation10 + $0x670] ss:$8 sps:$4 sm:$0xff]  }
 0x879   : > { %14190 = vmatprep.subr.bf16.mxu1 %v18860_v3  ;;  %v18947_v3 = vld [vmem:[#allocation10 + $0x704] ss:$8 sps:$4 sm:$0xff]  }
 0x87a   : > { %14047 = vmatpush1.bf16.msra.mxu0 %v18855_v38  ;;  %v18942_v38 = vld [vmem:[#allocation10 + $0x780] ss:$8 sps:$4 sm:$0xff]  }
 0x87b   : > { %14048 = vmatprep.subr.bf16.mxu0 %v18863_v43  ;;  %v14388_v43 = vrot.slane %v22503_v41, 6 }
 0x87c   : > { %14191 = vmatpush1.bf16.msra.mxu1 %v18858_v8  ;;  %v18950_v8 = vld [vmem:[#allocation10 + $0x794] ss:$8 sps:$4 sm:$0xff]  }
 0x87d   : > { %14192 = vmatprep.subr.bf16.mxu1 %v18866_v63  ;;  %v18945_v63 = vld [vmem:[#allocation10 + $0x700] ss:$8 sps:$4 sm:$0xff]  }
 0x87e   : > { %14049 = vmatpush1.bf16.msra.mxu0 %v18861_v33  ;;  %v14246_v33 = vrot.slane %v22499_v47, 6 }
 0x87f   : > { %14050 = vmatprep.subr.bf16.mxu0 %v18869_v49  ;;  %v18953_v49 = vld [vmem:[#allocation10 + $0x714] ss:$8 sps:$4 sm:$0xff]  }
 0x880   : > { %14193 = vmatpush1.bf16.msra.mxu1 %v18864_v54  ;;  %v18948_v54 = vld [vmem:[#allocation10 + $0x790] ss:$8 sps:$4 sm:$0xff]  }
 0x881   : > { %14194 = vmatprep.subr.bf16.mxu1 %v18872_v0  ;;  %v18956_v0 = vld [vmem:[#allocation10 + $0x7a4] ss:$8 sps:$4 sm:$0xff]  }
 0x882   : > { %14051 = vmatpush1.bf16.msra.mxu0 %v18867_v62  ;;  %v18951_v62 = vld [vmem:[#allocation10 + $0x710] ss:$8 sps:$4 sm:$0xff]  }
 0x883   : > { %14052 = vmatprep.subr.bf16.mxu0 %v18875_v29  ;;  %v18959_v29 = vld [vmem:[#allocation10 + $0x724] ss:$8 sps:$4 sm:$0xff]  }
 0x884   : > { %14195 = vmatpush1.bf16.msra.mxu1 %v18870_v6  ;;  %v18954_v6 = vld [vmem:[#allocation10 + $0x7a0] ss:$8 sps:$4 sm:$0xff]  }
 0x885   : > { %14196 = vmatprep.subr.bf16.mxu1 %v18878_v2  ;;  %v18962_v2 = vld [vmem:[#allocation10 + $0x7b4] ss:$8 sps:$4 sm:$0xff]  }
 0x886   : > { %14053 = vmatpush1.bf16.msra.mxu0 %v18873_v24  ;;  %v18957_v24 = vld [vmem:[#allocation10 + $0x720] ss:$8 sps:$4 sm:$0xff]  }
 0x887   : > { %14054 = vmatprep.subr.bf16.mxu0 %v18881_v7  ;;  %v18965_v7 = vld [vmem:[#allocation10 + $0x734] ss:$8 sps:$4 sm:$0xff]  }
 0x888   : > { %14197 = vmatpush1.bf16.msra.mxu1 %v18876_v30  ;;  %v18960_v30 = vld [vmem:[#allocation10 + $0x7b0] ss:$8 sps:$4 sm:$0xff]  }
 0x889   : > { %14198 = vmatprep.subr.bf16.mxu1 %v18884_v46  ;;  %v18968_v46 = vld [vmem:[#allocation10 + $0x7c4] ss:$8 sps:$4 sm:$0xff]  }
 0x88a   : > { %14055 = vmatpush1.bf16.msra.mxu0 %v18879_v27  ;;  %v18963_v27 = vld [vmem:[#allocation10 + $0x730] ss:$8 sps:$4 sm:$0xff]  }
 0x88b   : > { %14056 = vmatprep.subr.bf16.mxu0 %v18887_v12  ;;  %v18971_v12 = vld [vmem:[#allocation10 + $0x744] ss:$8 sps:$4 sm:$0xff]  }
 0x88c   : > { %14199 = vmatpush1.bf16.msra.mxu1 %v18882_v17  ;;  %v18974_v17 = vld [vmem:[#allocation10 + $0x7d4] ss:$8 sps:$4 sm:$0xff]  }
 0x88d   : > { %14200 = vmatprep.subr.bf16.mxu1 %v18890_v1  ;;  %v18969_v1 = vld [vmem:[#allocation10 + $0x740] ss:$8 sps:$4 sm:$0xff]  }
 0x88e   : > { %14057 = vmatpush1.bf16.msra.mxu0 %v18885_v36  ;;  %v18977_v36 = vld [vmem:[#allocation10 + $0x754] ss:$8 sps:$4 sm:$0xff]  }
 0x88f   : > { %14058 = vmatprep.subr.bf16.mxu0 %v18893_v45  ;;  %v18972_v45 = vld [vmem:[#allocation10 + $0x7d0] ss:$8 sps:$4 sm:$0xff]  }
 0x890   : > { %14201 = vmatpush1.bf16.msra.mxu1 %v18888_v37  ;;  %v18980_v37 = vld [vmem:[#allocation10 + $0x7e4] ss:$8 sps:$4 sm:$0xff]  }
 0x891   : > { %14470 = vmatprep.subr.bf16.mxu1 %v18896_v16 }
 0x892   : > { %14059 = vmatpush1.bf16.msra.mxu0 %v18891_v52  ;;  %v18975_v52 = vld [vmem:[#allocation10 + $0x750] ss:$8 sps:$4 sm:$0xff]  }
 0x893   : > { %14219 = vmatmul.mubr.bf16.vlgmr.msra.gmra.mrb[72].mxu1 %v14104_v50  ;;  %14328 = vmatprep.subr.bf16.mxu0 %v18899_v51 }
 0x894   : > { %14471 = vmatpush1.bf16.msra.mxu1 %v18894_v18  ;;  %14502 = vmatprep.mubr.bf16.mxu1 %v22795_v22  ;;  %v18983_v18 = vld [vmem:[#allocation10 + $0x764] ss:$8 sps:$4 sm:$0xff]  }
 0x895   : > { %14077 = vmatmul.mubr.bf16.vlgmr.msra.gmra.mrb[44].mxu0 %v13962_v48  ;;  %14472 = vmatprep.subr.bf16.mxu1 %v18902_v20 }
 0x896   : > { %14329 = vmatpush1.bf16.msra.mxu0 %v18897_v21  ;;  %14360 = vmatprep.mubr.bf16.mxu0 %v22795_v22  ;;  %v18978_v21 = vld [vmem:[#allocation10 + $0x7e0] ss:$8 sps:$4 sm:$0xff]  }
 0x897   : > { %14330 = vmatprep.subr.bf16.mxu0 %v18905_v25 }
 0x898   : > { %14473 = vmatpush1.bf16.msra.mxu1 %v18900_v34 }
 0x899   : > { %14474 = vmatprep.subr.bf16.mxu1 %v18908_v31  ;;  %v18986_v31 = vld [vmem:[#allocation10 + $0x7f4] ss:$8 sps:$4 sm:$0xff]  }
 0x89a   : > { %14331 = vmatpush1.bf16.msra.mxu0 %v18903_v55 }
 0x89b   : > { %14332 = vmatprep.subr.bf16.mxu0 %v18911_v59 }
 0x89c   : > { %14475 = vmatpush1.bf16.msra.mxu1 %v18906_v58  ;;  %v18981_v58 = vld [vmem:[#allocation10 + $0x760] ss:$8 sps:$4 sm:$0xff]  }
 0x89d   : > { %14476 = vmatprep.subr.bf16.mxu1 %v18914_v14 }
 0x89e   : > { %14333 = vmatpush1.bf16.msra.mxu0 %v18909_v10  ;;  %v18989_v10 = vld [vmem:[#allocation10 + $0x774] ss:$8 sps:$4 sm:$0xff]  }
 0x89f   : > { %14334 = vmatprep.subr.bf16.mxu0 %v18917_v60  ;;  %v18984_v60 = vld [vmem:[#allocation10 + $0x7f0] ss:$8 sps:$4 sm:$0xff]  }
 0x8a0   : > { %14477 = vmatpush1.bf16.msra.mxu1 %v18912_v61  ;;  %v18987_v61 = vld [vmem:[#allocation10 + $0x770] ss:$8 sps:$4 sm:$0xff]  }
 0x8a1   : > { %14478 = vmatprep.subr.bf16.mxu1 %v18920_v9  ;;  %v14672_v9 = vrot.slane %v22503_v41, 7 }
 0x8a2   : > { %14335 = vmatpush1.bf16.msra.mxu0 %v18915_v13  ;;  %v14530_v13 = vrot.slane %v22499_v47, 7 }
 0x8a3   : > { %14336 = vmatprep.subr.bf16.mxu0 %v18923_v42 }
 0x8a4   : > { %14479 = vmatpush1.bf16.msra.mxu1 %v18918_v53 }
 0x8a5   : > { %14480 = vmatprep.subr.bf16.mxu1 %v18926_v28 }
 0x8a6   : > { %14337 = vmatpush1.bf16.msra.mxu0 %v18921_v5 }
 0x8a7   : > { %14338 = vmatprep.subr.bf16.mxu0 %v18929_v11 }
 0x8a8   : > { %14481 = vmatpush1.bf16.msra.mxu1 %v18924_v39 }
 0x8a9   : > { %14482 = vmatprep.subr.bf16.mxu1 %v18932_v19 }
 0x8aa   : > { %14339 = vmatpush1.bf16.msra.mxu0 %v18927_v56 }
 0x8ab   : > { %14340 = vmatprep.subr.bf16.mxu0 %v18935_v44 }
 0x8ac   : > { %14483 = vmatpush1.bf16.msra.mxu1 %v18930_v32 }
 0x8ad   : > { %14484 = vmatprep.subr.bf16.mxu1 %v18938_v26 }
 0x8ae   : > { %14341 = vmatpush1.bf16.msra.mxu0 %v18933_v23 }
 0x8af   : > { %14342 = vmatprep.subr.bf16.mxu0 %v18941_v15 }
 0x8b0   : > { %14485 = vmatpush1.bf16.msra.mxu1 %v18936_v40 }
 0x8b1   : > { %14754 = vmatprep.subr.bf16.mxu1 %v18944_v57 }
 0x8b2   : > { %14343 = vmatpush1.bf16.msra.mxu0 %v18939_v35 }
 0x8b3   : > { %14503 = vmatmul.mubr.bf16.vlgmr.msra.gmra.mrb[76].mxu1 %v14388_v43  ;;  %14612 = vmatprep.subr.bf16.mxu0 %v18947_v3 }
 0x8b4   : > { %14755 = vmatpush1.bf16.msra.mxu1 %v18942_v38  ;;  %14786 = vmatprep.mubr.bf16.mxu1 %v22795_v22 }
 0x8b5   : > { %14361 = vmatmul.mubr.bf16.vlgmr.msra.gmra.mrb[48].mxu0 %v14246_v33  ;;  %14756 = vmatprep.subr.bf16.mxu1 %v18950_v8  ;;  %v18990_v33 = vld [vmem:[%s22646_s9 + $0x40] sm:$0xff]  }
 0x8b6   : > { %14613 = vmatpush1.bf16.msra.mxu0 %v18945_v63  ;;  %14644 = vmatprep.mubr.bf16.mxu0 %v22795_v22  ;;  %v18966_v22 = vld [vmem:[#allocation10 + $0x7c0] ss:$8 sps:$4 sm:$0xff]  }
 0x8b7   : > { %14614 = vmatprep.subr.bf16.mxu0 %v18953_v49  ;;  %v18991_v49 = vld [vmem:[%s22646_s9] sm:$0xff]  }
 0x8b8   : > { %14757 = vmatpush1.bf16.msra.mxu1 %v18948_v54  ;;  %v18992_v54 = vld [vmem:[%s22646_s9 + $0x48] sm:$0xff]  }
 0x8b9   : > { %14758 = vmatprep.subr.bf16.mxu1 %v18956_v0 }
 0x8ba   : > { %14615 = vmatpush1.bf16.msra.mxu0 %v18951_v62  ;;  %v18993_v62 = vld [vmem:[%s22646_s9 + $0x8] sm:$0xff]  }
 0x8bb   : > { %14616 = vmatprep.subr.bf16.mxu0 %v18959_v29  ;;  %v18994_v29 = vld [vmem:[%s22646_s9 + $0x50] sm:$0xff]  }
 0x8bc   : > { %14759 = vmatpush1.bf16.msra.mxu1 %v18954_v6  ;;  %v18995_v6 = vld [vmem:[%s22646_s9 + $0x10] sm:$0xff]  }
 0x8bd   : > { %14760 = vmatprep.subr.bf16.mxu1 %v18962_v2  ;;  %v18996_v2 = vld [vmem:[%s22646_s9 + $0x58] sm:$0xff]  }
 0x8be   : > { %14617 = vmatpush1.bf16.msra.mxu0 %v18957_v24  ;;  %v18997_v24 = vld [vmem:[%s22646_s9 + $0x18] sm:$0xff]  }
 0x8bf   : > { %14618 = vmatprep.subr.bf16.mxu0 %v18965_v7  ;;  %v18998_v7 = vld [vmem:[%s22646_s9 + $0x60] sm:$0xff]  }
 0x8c0   : > { %14761 = vmatpush1.bf16.msra.mxu1 %v18960_v30 }
 0x8c1   : > { %14762 = vmatprep.subr.bf16.mxu1 %v18968_v46  ;;  %v18999_v46 = vld [vmem:[%s22646_s9 + $0x20] sm:$0xff]  }
 0x8c2   : > { %14619 = vmatpush1.bf16.msra.mxu0 %v18963_v27 }
 0x8c3   : > { %14620 = vmatprep.subr.bf16.mxu0 %v18971_v12 }
 0x8c4   : > { %14763 = vmatpush1.bf16.msra.mxu1 %v18966_v22 }
 0x8c5   : > { %14764 = vmatprep.subr.bf16.mxu1 %v18974_v17 }
 0x8c6   : > { %14621 = vmatpush1.bf16.msra.mxu0 %v18969_v1  ;;  %v12801_v16 = vpop.f32.mrb[52].mxu1 }
 0x8c7   : > { %v12803_v51 = vpop.f32.mrb[53].mxu1  ;;  %14622 = vmatprep.subr.bf16.mxu0 %v18977_v36 }
 0x8c8   : > { %14765 = vmatpush1.bf16.msra.mxu1 %v18972_v45  ;;  %v12680_v50 = vpop.f32.mrb[24].mxu0  ;;  %v12805_v20 = vpop.f32.mrb[54].mxu1 }
 0x8c9   : > { %v12802_v48 = vadd.f32 %v12801_v16, %v12680_v50  ;;  %v12682_v25 = vpop.f32.mrb[25].mxu0  ;;  %v12806_v34 = vpop.f32.mrb[55].mxu1  ;;  %14766 = vmatprep.subr.bf16.mxu1 %v18980_v37  ;;  %v19001_v50 = vld [vmem:[%s22646_s9 + $0x28] sm:$0xff]   ;;  %v19002_v20 = vld [vmem:[%s22646_s9 + $0x70] sm:$0xff]  }
 0x8ca   : > { %v12804_v55 = vadd.f32 %v12803_v51, %v12682_v25  ;;  %14623 = vmatpush1.bf16.msra.mxu0 %v18975_v52  ;;  %v12684_v59 = vpop.f32.mrb[26].mxu0  ;;  %v19005_v25 = vld [vmem:[%s22646_s9 + $0x38] sm:$0xff]  }
 0x8cb   : > { %v12685_v14 = vpop.f32.mrb[27].mxu0  ;;  %14624 = vmatprep.subr.bf16.mxu0 %v18983_v18  ;;  %v19000_v18 = vld [vmem:[%s22646_s9 + $0x68] sm:$0xff]  }
 0x8cc   : > { %14767 = vmatpush1.bf16.msra.mxu1 %v18978_v21  ;;  %v19003_v21 = vld [vmem:[%s22646_s9 + $0x30] sm:$0xff]  }
 0x8cd   : > { %14768 = vmatprep.subr.bf16.mxu1 %v18986_v31 }
 0x8ce   : > { %14625 = vmatpush1.bf16.msra.mxu0 %v18981_v58 }
 0x8cf   : > { %14626 = vmatprep.subr.bf16.mxu0 %v18989_v10 }
 0x8d0   : > { %14769 = vmatpush1.bf16.msra.mxu1 %v18984_v60 }
 0x8d2   : > { %14627 = vmatpush1.bf16.msra.mxu0 %v18987_v61 }
 0x8d3   : > { %14787 = vmatmul.mubr.bf16.vlgmr.msra.gmra.mrb[80].mxu1 %v14672_v9  ;;  %16860 = vmatprep.subr.bf16.mxu0 %v18990_v33 }
 0x8d5   : > { %14645 = vmatmul.mubr.bf16.vlgmr.msra.gmra.mrb[52].mxu0 %v14530_v13 }
 0x8d6   : > { %16861 = vmatpush3.bf16.msra.mxu0 %v18991_v49 }
 0x8d7   : > { %16862 = vmatprep.subr.bf16.mxu0 %v18992_v54  ;;  %v14801_v54 = vsub.s32 0, %v21436_v4 }
 0x8da   : > { %16863 = vmatpush3.bf16.msra.mxu0 %v18993_v62  ;;  %v14797_v62 = vld [vmem:[%s22645_s8] sm:$0x3] }
 0x8db   : > { %16864 = vmatprep.subr.bf16.mxu0 %v18994_v29  ;;  %v14805_v29 = vsub.s32 1, %v21436_v4 }
 0x8de   : > { %16865 = vmatpush3.bf16.msra.mxu0 %v18995_v6 }
 0x8df   : > { %16866 = vmatprep.subr.bf16.mxu0 %v18996_v2 }
 0x8e2   : > { %16867 = vmatpush3.bf16.msra.mxu0 %v18997_v24 }
 0x8e3   : > { %16868 = vmatprep.subr.bf16.mxu0 %v18998_v7 }
 0x8e6   : > { %v13084_v42 = vpop.f32.mrb[56].mxu1  ;;  %16869 = vmatpush3.bf16.msra.mxu0 %v18999_v46 }
 0x8e7   : > { %v13086_v53 = vpop.f32.mrb[57].mxu1  ;;  %16870 = vmatprep.subr.bf16.mxu0 %v19000_v18 }
 0x8e8   : > { %v12942_v28 = vpop.f32.mrb[28].mxu0  ;;  %v13088_v5 = vpop.f32.mrb[58].mxu1 }
 0x8e9   : > { %v12949_v11 = vadd.f32 %v12942_v28, %v12802_v48  ;;  %v12944_v39 = vpop.f32.mrb[29].mxu0  ;;  %v13089_v19 = vpop.f32.mrb[59].mxu1  ;;  %v19004_v48 = vld [vmem:[%s22646_s9 + $0x78] sm:$0xff]  }
 0x8ea   : > { %v12950_v56 = vadd.f32 %v12944_v39, %v12804_v55  ;;  %v12946_v44 = vpop.f32.mrb[30].mxu0  ;;  %16871 = vmatpush3.bf16.msra.mxu0 %v19001_v50 }
 0x8eb   : > { %v12947_v32 = vpop.f32.mrb[31].mxu0  ;;  %v13091_v26 = vadd.f32 %v13084_v42, %v12949_v11  ;;  %16872 = vmatprep.subr.bf16.mxu0 %v19002_v20  ;;  %v14847_v20 = vld [vmem:[%s22647_s10] sm:$0x1] }
 0x8ec   : > { %v13092_v23 = vadd.f32 %v13086_v53, %v12950_v56 }
 0x8ee   : > { %16873 = vmatpush3.bf16.msra.mxu0 %v19003_v21 }
 0x8ef   : > { %16874 = vmatprep.subr.bf16.mxu0 %v19004_v48 }
 0x8f2   : > { %16875 = vmatpush3.bf16.msra.mxu0 %v19005_v25 }
 0x906   : > { %v13368_v15 = vpop.f32.mrb[60].mxu1 }
 0x907   : > { %v13370_v40 = vpop.f32.mrb[61].mxu1 }
 0x908   : > { %v13226_v41 = vpop.f32.mrb[32].mxu0  ;;  %v13372_v57 = vpop.f32.mrb[62].mxu1 }
 0x909   : > { %v13233_v35 = vadd.f32 %v13226_v41, %v13091_v26  ;;  %v13228_v3 = vpop.f32.mrb[33].mxu0  ;;  %v13373_v47 = vpop.f32.mrb[63].mxu1 }
 0x90a   : > { %v13234_v38 = vadd.f32 %v13228_v3, %v13092_v23  ;;  %v13230_v43 = vpop.f32.mrb[34].mxu0 }
 0x90b   : > { %v13231_v8 = vpop.f32.mrb[35].mxu0  ;;  %v13375_v63 = vadd.f32 %v13368_v15, %v13233_v35 }
 0x90c   : > { %v13376_v0 = vadd.f32 %v13370_v40, %v13234_v38 }
 0x926   : > { %v13652_v30 = vpop.f32.mrb[64].mxu1 }
 0x927   : > { %v13654_v27 = vpop.f32.mrb[65].mxu1 }
 0x928   : > { %v13510_v12 = vpop.f32.mrb[36].mxu0  ;;  %v13656_v22 = vpop.f32.mrb[66].mxu1 }
 0x929   : > { %v13517_v17 = vadd.f32 %v13510_v12, %v13375_v63  ;;  %v13512_v1 = vpop.f32.mrb[37].mxu0  ;;  %v13657_v36 = vpop.f32.mrb[67].mxu1  ;;  %v14806_v22 = vrot.slane %v14797_v62, %v14805_v29 }
 0x92a   : > { %v13518_v45 = vadd.f32 %v13512_v1, %v13376_v0  ;;  %v13514_v37 = vpop.f32.mrb[38].mxu0 }
 0x92b   : > { %v13515_v16 = vpop.f32.mrb[39].mxu0  ;;  %v13659_v52 = vadd.f32 %v13652_v30, %v13517_v17  ;;  %v14802_v30 = vrot.slane %v14797_v62, %v14801_v54 }
 0x92c   : > { %v13660_v51 = vadd.f32 %v13654_v27, %v13518_v45 }
 0x946   : > { %v13936_v34 = vpop.f32.mrb[68].mxu1 }
 0x947   : > { %v13938_v31 = vpop.f32.mrb[69].mxu1 }
 0x948   : > { %v13794_v55 = vpop.f32.mrb[40].mxu0  ;;  %v13940_v59 = vpop.f32.mrb[70].mxu1 }
 0x949   : > { %v13801_v58 = vadd.f32 %v13794_v55, %v13659_v52  ;;  %v13796_v14 = vpop.f32.mrb[41].mxu0  ;;  %v13941_v10 = vpop.f32.mrb[71].mxu1 }
 0x94a   : > { %v13802_v60 = vadd.f32 %v13796_v14, %v13660_v51  ;;  %v13798_v61 = vpop.f32.mrb[42].mxu0 }
 0x94b   : > { %v13799_v9 = vpop.f32.mrb[43].mxu0  ;;  %v13943_v13 = vadd.f32 %v13936_v34, %v13801_v58 }
 0x94c   : > { %v13944_v42 = vadd.f32 %v13938_v31, %v13802_v60 }
 0x966   : > { %v14220_v53 = vpop.f32.mrb[72].mxu1 }
 0x967   : > { %v14222_v28 = vpop.f32.mrb[73].mxu1 }
 0x968   : > { %v14078_v5 = vpop.f32.mrb[44].mxu0  ;;  %v14224_v11 = vpop.f32.mrb[74].mxu1 }
 0x969   : > { %v14085_v39 = vadd.f32 %v14078_v5, %v13943_v13  ;;  %v14080_v19 = vpop.f32.mrb[45].mxu0  ;;  %v14225_v56 = vpop.f32.mrb[75].mxu1 }
 0x96a   : > { %v14086_v44 = vadd.f32 %v14080_v19, %v13944_v42  ;;  %v14082_v32 = vpop.f32.mrb[46].mxu0 }
 0x96b   : > { %v14083_v26 = vpop.f32.mrb[47].mxu0  ;;  %v14227_v23 = vadd.f32 %v14220_v53, %v14085_v39 }
 0x96c   : > { %v14228_v15 = vadd.f32 %v14222_v28, %v14086_v44 }
 0x986   : > { %v14504_v40 = vpop.f32.mrb[76].mxu1 }
 0x987   : > { %v14506_v41 = vpop.f32.mrb[77].mxu1 }
 0x988   : > { %v14362_v57 = vpop.f32.mrb[48].mxu0  ;;  %v14508_v35 = vpop.f32.mrb[78].mxu1 }
 0x989   : > { %v14369_v3 = vadd.f32 %v14362_v57, %v14227_v23  ;;  %v14364_v47 = vpop.f32.mrb[49].mxu0  ;;  %v14509_v38 = vpop.f32.mrb[79].mxu1 }
 0x98a   : > { %v14370_v43 = vadd.f32 %v14364_v47, %v14228_v15  ;;  %v14366_v8 = vpop.f32.mrb[50].mxu0 }
 0x98b   : > { %v14367_v63 = vpop.f32.mrb[51].mxu0  ;;  %v14511_v33 = vadd.f32 %v14504_v40, %v14369_v3 }
 0x98c   : > { %v14512_v49 = vadd.f32 %v14506_v41, %v14370_v43 }
 0x9a6   : > { %v14788_v0 = vpop.f32.mrb[80].mxu1 }
 0x9a7   : > { %v14790_v6 = vpop.f32.mrb[81].mxu1 }
 0x9a8   : > { %v14646_v2 = vpop.f32.mrb[52].mxu0  ;;  %v14792_v24 = vpop.f32.mrb[82].mxu1 }
 0x9a9   : > { %v14653_v7 = vadd.f32 %v14646_v2, %v14511_v33  ;;  %v14648_v46 = vpop.f32.mrb[53].mxu0  ;;  %v14793_v27 = vpop.f32.mrb[83].mxu1 }
 0x9aa   : > { %v14654_v12 = vadd.f32 %v14648_v46, %v14512_v49  ;;  %v14650_v17 = vpop.f32.mrb[54].mxu0 }
 0x9ab   : > { %v14795_v1 = vadd.f32 %v14788_v0, %v14653_v7  ;;  %v14651_v36 = vpop.f32.mrb[55].mxu0 }
 0x9ac   : > { %v14796_v45 = vadd.f32 %v14790_v6, %v14654_v12 }
 0x9ad   : > { %v14809_v37 = vadd.f32 %v14802_v30, %v14795_v1 }
 0x9ae   : > { %v14810_v16 = vadd.f32 %v14806_v22, %v14796_v45 }
 0x9af   : > { %v14811_v52 = vmax.f32 %v14809_v37, 0.0 }
 0x9b0   : > { %v14812_v51 = vmax.f32 %v14810_v16, 0.0 }
 0x9b1   : > { %v14813_v18 = vpack.c.bf16 %v14811_v52, %v14811_v52 }
 0x9b2   : > { %v14814_v4 = vpack.c.bf16 %v14812_v51, %v14812_v51 }
 0x9b4   : > { %14976 = vmatprep.mubr.bf16.mxu0 %v14814_v4 }
 0x9b5   : > { %14977 = vmatmul.mubr.bf16.vlgmr.msra.gmra.mrb[56].mxu0 %v14813_v18 }
 0xa88   : > { %v16876_v50 = vpop.f32.mrb[56].mxu0 }
 0xa89   : > { %v16877_v21 = vpop.f32.mrb[57].mxu0 }
 0xa8a   : > { %v16878_v48 = vadd.f32 %v16877_v21, %v16876_v50  ;;  %v16879_v25 = vpop.f32.mrb[58].mxu0 }
 0xa8b   : > { %v16880_v34 = vpop.f32.mrb[59].mxu0 }
 0xa8c   : > { %v14979_v31 = vadd.f32 %v16878_v48, %v14847_v20 }
 0xa8e   : > { %14984 = vst [vmem:[%s422_s22] sm:$0x1] %v14979_v31 }
 0xa8f   : > { %19135 = shalt.err (!%p19132_p9)
}
 0xa90   : > { %s19136_s24 = scalar_lea.hbm %s22595_s30, 16  ;;  %s19140_s23 = scalar_lea.hbm %s22804_s25, 32 }
 0xa91   : > { %p19137_p2 = scmp.ne.s32.totalorder %s22595_s30, %s19136_s24  ;;  %p19141_p5 = scmp.lt.u32.totalorder %s22595_s30, %s22804_s25 }
 0xa92   : > { %p19142_p10 = scmp.lt.u32.totalorder %s19140_s23, %s19136_s24  ;;  %p19144_p4 = scmp.lt.u32.totalorder %s19136_s24, %s22595_s30 }
 0xa93   : > { %p19138_p3 = pnand %p19137_p2, %p22805_p7 }
 0xa94   : > { %p19143_p12 = por %p19142_p10, %p19141_p5 }
 0xa95   : > { %p19139_p0 = pneg %p19138_p3 }
 0xa96   : > { %p19145_p8 = por %p19144_p4, %p19143_p12 }
 0xa98   : > { %p19146_p11 = pnand %p19145_p8, %p19139_p0 }
 0xa9a   : > { %19149 = shalt.err (!%p19146_p11)
}
 0xa9b   : > { %18186 = dma.vmem_to_hbm [thread:$0]  (%p22805_p7), %s22597_s17, 16, %s22595_s30, %s14986_s16  }
 0xa9c PF: > { %s22806_s13 = sld [smem:[#allocation17_spill]]  ;;  %s22807_s22 = sld [smem:[#allocation15_spill]] }
 0xa9d   : > { %s22808_s20 = sld [smem:[#allocation20_spill]] }
 0xaa2   : > { %p18208_p13 = scmp.ge.s32.totalorder %s22806_s13, 2  ;;  %s15010_s28 = sand.u32 1, %s22807_s22  }
 0xaa3   : > { %p22809_p1 = scmp.ne.s32.totalorder %s22808_s20, 0  ;;  %s15011_s19 = scalar_lea.sflag [#allocation7], %s15010_s28 }
 0xaa5   : > { %p18199_p6 = pnand %p18208_p13, %p22809_p1 }
 0xaa7   : > { %19175 = dma.done.wait (!%p18199_p6), %s15011_s19, 16  }
 0xaa8   : > { %19177 = vsyncadd (!%p18199_p6), %s15011_s19, 4294967280  ;;  %s22810_s20 = sld [smem:[#allocation18_spill]]  ;;  %s22811_s21 = sld [smem:[#allocation16_spill]] }
 0xaa9   : > { %s22812_s19 = sld [smem:[#allocation19_spill]]  ;;  %s22813_s17 = smov %s19184_s18 }
 0xaae   : > { %p23_p9 = scmp.ge.s32.totalorder %s22810_s20, 4   ;;  %s22814_s18 = smov %s22811_s21 }
 0xab0   :  { %25 = sbr.rel (!%p23_p9) target bundleno = 7 (0x7), region = 161 }
 0xab7   :  { %15015 = vsyncpa [#allocation6], 1 }
 0xab8   :  { %15017 = vsyncpa [#allocation6 + $0x1], 1 }
 0xab9   :  { %15018 = vsyncpa [#allocation9], 1 }
 0xaba   :  { %15019 = vsyncpa [#allocation7], 1 }
 0xabb   :  { %15021 = vsyncpa [#allocation7 + $0x1], 1 }

</bundles_post_ra>
